<compile_context>
chip_gen: v7x
topology: tpu7x:2x2x1
jax: 0.10.0
libtpu: 0.0.40
codegen_flags: <defaults>
</compile_context>

<pallas_src>
import numpy as np
import jax
import jax.numpy as jnp
from jax import lax
from jax.experimental import pallas as pl
from jax.experimental.pallas import tpu as pltpu


def _upsample_conv_kernel(x_ref, w_ref, b_ref, o_ref):
    # x_ref: (B, C, H+2, 2W+2)  bf16  -- W-upsampled, zero-padded low-res-rows image
    # w_ref: (2*Co, 9*C)        bf16  -- H-parity-folded conv weights
    # b_ref: (2*Co, 1)          f32   -- bias, tiled over the two row parities
    # o_ref: (B, Co, 2H, 2W)    f32   -- final NCHW output, written directly
    B, C, Hp, Wp2 = x_ref.shape
    H = Hp - 2
    TW = Wp2 - 2                       # = 2*W (output width)
    two_co = w_ref.shape[0]
    Co = two_co // 2

    w = w_ref[...]                     # hoisted: loaded once, reused every row
    bias = b_ref[...]                  # (2*Co, 1) f32

    for b in range(B):                 # toy shape: unrolled; see TODO for prod
        for i in range(H):             # one low-res row -> output rows 2i, 2i+1
            # In-kernel im2col: 9 shifted (C, 2W) views of the padded image.
            # Row shifts (si) are sublane-index picks, column shifts (kw) are
            # static lane slices -- no extra HBM traffic, no roll/mask needed.
            parts = []
            for si in range(3):
                for kw in range(3):
                    parts.append(x_ref[b, :, i + si, kw:kw + TW])   # (C, 2W)
            slab = jnp.concatenate(parts, axis=0)                   # (9C, 2W) bf16

            # One MXU dot produces both output-row parities; f32 accumulate,
            # bias add rides the VPU.
            acc = jnp.dot(w, slab, preferred_element_type=jnp.float32) + bias
            acc = acc.astype(o_ref.dtype)                           # (2Co, 2W)

            o_ref[b, :, 2 * i, :] = acc[:Co]       # di = 0 rows
            o_ref[b, :, 2 * i + 1, :] = acc[Co:]   # di = 1 rows


def _fold_weights_h(weight_oihw):
    """Fold the H-direction nearest-x2 upsample + kh taps into the weights.

    Returns (2*Co, 9*C): rows r = di*Co + co (di = output-row parity), columns
    m = (si*3 + kw)*C + c matching the kernel's slab concatenation order.
    """
    Co, C, KH, KW = weight_oihw.shape
    assert (KH, KW) == (3, 3), "fold assumes a 3x3 conv with padding=1"
    # up[di, si, kh] = 1  iff  (di + kh - 1) // 2 + 1 == si   (parity/shift map,
    # consistent with the zero padding of both the upsampled and low-res images)
    up = np.zeros((2, 3, 3), dtype=np.float32)
    for di in range(2):
        for kh in range(3):
            up[di, (di + kh - 1) // 2 + 1, kh] = 1.0
    up = jnp.asarray(up, dtype=weight_oihw.dtype)
    # Wh[d, o, s, w, c] = sum_kh up[d, s, kh] * W[o, c, kh, w]
    wh = jnp.einsum("dsk,ockw->doswc", up, weight_oihw)
    return wh.reshape(2 * Co, 9 * C)


def upsample2d_forward(x_nchw, weight_oihw, bias):
    """Upsample2D.forward: nearest x2 upsample then Conv2d(3x3, pad=1) + bias."""
    assert x_nchw.ndim == 4
    assert weight_oihw.shape[2:] == (3, 3), "only kernel_size=3, padding=1 supported"
    B, C, H, W = x_nchw.shape
    Co = weight_oihw.shape[0]
    compute_dtype = jnp.bfloat16

    # ---- layout plumbing (plain JAX, small) ----
    # W-direction half of the nearest upsample + 1-pixel zero pad; the
    # H-direction upsample is folded into the weights instead.
    xw = jnp.repeat(x_nchw, 2, axis=3)                                   # (B,C,H,2W)
    xwp = jnp.pad(xw, ((0, 0), (0, 0), (1, 1), (1, 1))).astype(compute_dtype)

    wh = _fold_weights_h(weight_oihw).astype(compute_dtype)             # (2Co, 9C)
    bias_col = jnp.tile(bias, 2).reshape(2 * Co, 1).astype(jnp.float32)  # (2Co, 1)

    Hp, Wp2 = H + 2, 2 * W + 2
    TW = 2 * W

    flops = 2 * B * (2 * Co) * (9 * C) * (H * TW)
    bytes_accessed = (xwp.size * 2 + wh.size * 2 + bias_col.size * 4
                      + B * Co * 2 * H * TW * 4)
    cost = pl.CostEstimate(flops=flops, transcendentals=0,
                           bytes_accessed=bytes_accessed)

    out = pl.pallas_call(
        _upsample_conv_kernel,
        out_shape=jax.ShapeDtypeStruct((B, Co, 2 * H, TW), x_nchw.dtype),
        grid_spec=pltpu.PrefetchScalarGridSpec(
            num_scalar_prefetch=0,
            grid=(1,),  # single step at this shape; see TODO for prod tiling
            in_specs=[
                pl.BlockSpec((B, C, Hp, Wp2), lambda g: (0, 0, 0, 0)),
                pl.BlockSpec((2 * Co, 9 * C), lambda g: (0, 0)),
                pl.BlockSpec((2 * Co, 1), lambda g: (0, 0)),
            ],
            out_specs=pl.BlockSpec((B, Co, 2 * H, TW), lambda g: (0, 0, 0, 0)),
        ),
        compiler_params=pltpu.CompilerParams(
            dimension_semantics=("arbitrary",),
            vmem_limit_bytes=32 * 1024 * 1024),
        cost_estimate=cost,
    )(xwp, wh, bias_col)
    return out


def _reference_forward(x_nchw, weight_oihw, bias):
    """Plain-JAX reference matching torch: F.interpolate(nearest, 2x) + Conv2d."""
    x_up = jnp.repeat(jnp.repeat(x_nchw, 2, axis=2), 2, axis=3)
    out = lax.conv_general_dilated(
        x_up, weight_oihw, window_strides=(1, 1), padding=((1, 1), (1, 1)),
        dimension_numbers=("NCHW", "OIHW", "NCHW"))
    return out + bias[None, :, None, None]


if __name__ == "__main__":
    B, C, H, W = 2, 4, 16, 16
    Co = C  # out_channels defaults to channels

    key = jax.random.PRNGKey(0)
    kx, kw, kb = jax.random.split(key, 3)
    x = jax.random.normal(kx, (B, C, H, W), dtype=jnp.float32)
    # Deterministic synthetic Conv2d params (torch layout: (out_ch, in_ch, kH, kW)).
    weight = 0.1 * jax.random.normal(kw, (Co, C, 3, 3), dtype=jnp.float32)
    bias = 0.1 * jax.random.normal(kb, (Co,), dtype=jnp.float32)

    out = upsample2d_forward(x, weight, bias)
    out = jax.block_until_ready(out)

    ref = _reference_forward(x, weight, bias)
    assert out.shape == (B, Co, 2 * H, 2 * W), out.shape
    # Tolerance loosened for bf16 matmul operands (accumulation is f32).
    assert jnp.allclose(out, ref, atol=5e-2, rtol=5e-2), float(jnp.max(jnp.abs(out - ref)))

    print("KERNEL_OK")
</pallas_src>

<mosaic_0001>
module attributes {stable_mosaic.version = 11 : i64} {
  func.func @_upsample_conv_kernel(%arg0: i32, %arg1: memref<2x4x18x34xbf16, #tpu.memory_space<vmem>>, %arg2: memref<8x36xbf16, #tpu.memory_space<vmem>>, %arg3: memref<8x1xf32, #tpu.memory_space<vmem>>, %arg4: memref<2x4x32x32xf32, #tpu.memory_space<vmem>>) attributes {dimension_semantics = [#tpu.dimension_semantics<arbitrary>], iteration_bounds = array<i64: 1>, scalar_prefetch = 0 : i64, scratch_operands = 0 : i64, tpu.core_type = #tpu.core_type<tc>, window_params = [{pipeline_mode = #tpu.pipeline_mode<synchronous>, transform_indices = @transform_0, window_bounds = array<i64: 2, 4, 18, 34>}, {pipeline_mode = #tpu.pipeline_mode<synchronous>, transform_indices = @transform_1, window_bounds = array<i64: 8, 36>}, {pipeline_mode = #tpu.pipeline_mode<synchronous>, transform_indices = @transform_2, window_bounds = array<i64: 8, 1>}, {pipeline_mode = #tpu.pipeline_mode<synchronous>, transform_indices = @transform_3, window_bounds = array<i64: 2, 4, 32, 32>}]} {
    %c0 = arith.constant 0 : index
    %c0_0 = arith.constant 0 : index
    %0 = vector.load %arg2[%c0, %c0_0] : memref<8x36xbf16, #tpu.memory_space<vmem>>, vector<8x36xbf16>
    %c0_1 = arith.constant 0 : index
    %c0_2 = arith.constant 0 : index
    %1 = vector.load %arg3[%c0_1, %c0_2] : memref<8x1xf32, #tpu.memory_space<vmem>>, vector<8x1xf32>
    %c0_3 = arith.constant 0 : index
    %c0_4 = arith.constant 0 : index
    %c0_5 = arith.constant 0 : index
    %c0_6 = arith.constant 0 : index
    %2 = vector.load %arg1[%c0_3, %c0_4, %c0_5, %c0_6] : memref<2x4x18x34xbf16, #tpu.memory_space<vmem>>, vector<1x4x1x32xbf16>
    %3 = vector.shape_cast %2 : vector<1x4x1x32xbf16> to vector<4x32xbf16>
    %c0_7 = arith.constant 0 : index
    %c0_8 = arith.constant 0 : index
    %c0_9 = arith.constant 0 : index
    %c1 = arith.constant 1 : index
    %4 = vector.load %arg1[%c0_7, %c0_8, %c0_9, %c1] : memref<2x4x18x34xbf16, #tpu.memory_space<vmem>>, vector<1x4x1x32xbf16>
    %5 = vector.shape_cast %4 : vector<1x4x1x32xbf16> to vector<4x32xbf16>
    %c0_10 = arith.constant 0 : index
    %c0_11 = arith.constant 0 : index
    %c0_12 = arith.constant 0 : index
    %c2 = arith.constant 2 : index
    %6 = vector.load %arg1[%c0_10, %c0_11, %c0_12, %c2] : memref<2x4x18x34xbf16, #tpu.memory_space<vmem>>, vector<1x4x1x32xbf16>
    %7 = vector.shape_cast %6 : vector<1x4x1x32xbf16> to vector<4x32xbf16>
    %c0_13 = arith.constant 0 : index
    %c0_14 = arith.constant 0 : index
    %c1_15 = arith.constant 1 : index
    %c0_16 = arith.constant 0 : index
    %8 = vector.load %arg1[%c0_13, %c0_14, %c1_15, %c0_16] : memref<2x4x18x34xbf16, #tpu.memory_space<vmem>>, vector<1x4x1x32xbf16>
    %9 = vector.shape_cast %8 : vector<1x4x1x32xbf16> to vector<4x32xbf16>
    %c0_17 = arith.constant 0 : index
    %c0_18 = arith.constant 0 : index
    %c1_19 = arith.constant 1 : index
    %c1_20 = arith.constant 1 : index
    %10 = vector.load %arg1[%c0_17, %c0_18, %c1_19, %c1_20] : memref<2x4x18x34xbf16, #tpu.memory_space<vmem>>, vector<1x4x1x32xbf16>
    %11 = vector.shape_cast %10 : vector<1x4x1x32xbf16> to vector<4x32xbf16>
    %c0_21 = arith.constant 0 : index
    %c0_22 = arith.constant 0 : index
    %c1_23 = arith.constant 1 : index
    %c2_24 = arith.constant 2 : index
    %12 = vector.load %arg1[%c0_21, %c0_22, %c1_23, %c2_24] : memref<2x4x18x34xbf16, #tpu.memory_space<vmem>>, vector<1x4x1x32xbf16>
    %13 = vector.shape_cast %12 : vector<1x4x1x32xbf16> to vector<4x32xbf16>
    %c0_25 = arith.constant 0 : index
    %c0_26 = arith.constant 0 : index
    %c2_27 = arith.constant 2 : index
    %c0_28 = arith.constant 0 : index
    %14 = vector.load %arg1[%c0_25, %c0_26, %c2_27, %c0_28] : memref<2x4x18x34xbf16, #tpu.memory_space<vmem>>, vector<1x4x1x32xbf16>
    %15 = vector.shape_cast %14 : vector<1x4x1x32xbf16> to vector<4x32xbf16>
    %c0_29 = arith.constant 0 : index
    %c0_30 = arith.constant 0 : index
    %c2_31 = arith.constant 2 : index
    %c1_32 = arith.constant 1 : index
    %16 = vector.load %arg1[%c0_29, %c0_30, %c2_31, %c1_32] : memref<2x4x18x34xbf16, #tpu.memory_space<vmem>>, vector<1x4x1x32xbf16>
    %17 = vector.shape_cast %16 : vector<1x4x1x32xbf16> to vector<4x32xbf16>
    %c0_33 = arith.constant 0 : index
    %c0_34 = arith.constant 0 : index
    %c2_35 = arith.constant 2 : index
    %c2_36 = arith.constant 2 : index
    %18 = vector.load %arg1[%c0_33, %c0_34, %c2_35, %c2_36] : memref<2x4x18x34xbf16, #tpu.memory_space<vmem>>, vector<1x4x1x32xbf16>
    %19 = vector.shape_cast %18 : vector<1x4x1x32xbf16> to vector<4x32xbf16>
    %20 = tpu.concatenate %3, %5, %7, %9, %11, %13, %15, %17, %19 in 0 : vector<4x32xbf16>, vector<4x32xbf16>, vector<4x32xbf16>, vector<4x32xbf16>, vector<4x32xbf16>, vector<4x32xbf16>, vector<4x32xbf16>, vector<4x32xbf16>, vector<4x32xbf16> -> vector<36x32xbf16>
    %cst = arith.constant dense<0.000000e+00> : vector<8x32xf32>
    %21 = tpu.matmul %0, %20, %cst {dimension_numbers = #tpu.dot_dimension_numbers<[1], [0], [0], [1], [0, 0, 1, 1], [], []>} : vector<8x36xbf16>, vector<36x32xbf16>, vector<8x32xf32> -> vector<8x32xf32>
    %22 = vector.broadcast %1 : vector<8x1xf32> to vector<8x32xf32>
    %23 = arith.addf %21, %22 : vector<8x32xf32>
    %24 = vector.extract_strided_slice %23 {offsets = [0, 0], sizes = [4, 32], strides = [1, 1]} : vector<8x32xf32> to vector<4x32xf32>
    %c0_37 = arith.constant 0 : index
    %c0_38 = arith.constant 0 : index
    %c0_39 = arith.constant 0 : index
    %c0_40 = arith.constant 0 : index
    %25 = vector.load %arg4[%c0_37, %c0_38, %c0_39, %c0_40] : memref<2x4x32x32xf32, #tpu.memory_space<vmem>>, vector<1x4x1x32xf32>
    %26 = vector.shape_cast %25 : vector<1x4x1x32xf32> to vector<4x32xf32>
    %27 = vector.shape_cast %24 : vector<4x32xf32> to vector<1x4x1x32xf32>
    tpu.vector_store %arg4[%c0_37, %c0_38, %c0_39, %c0_40], %27 {strides = array<i32>} : memref<2x4x32x32xf32, #tpu.memory_space<vmem>>, vector<1x4x1x32xf32>,
    %28 = vector.extract_strided_slice %23 {offsets = [4, 0], sizes = [4, 32], strides = [1, 1]} : vector<8x32xf32> to vector<4x32xf32>
    %c0_41 = arith.constant 0 : index
    %c0_42 = arith.constant 0 : index
    %c1_43 = arith.constant 1 : index
    %c0_44 = arith.constant 0 : index
    %29 = vector.load %arg4[%c0_41, %c0_42, %c1_43, %c0_44] : memref<2x4x32x32xf32, #tpu.memory_space<vmem>>, vector<1x4x1x32xf32>
    %30 = vector.shape_cast %29 : vector<1x4x1x32xf32> to vector<4x32xf32>
    %31 = vector.shape_cast %28 : vector<4x32xf32> to vector<1x4x1x32xf32>
    tpu.vector_store %arg4[%c0_41, %c0_42, %c1_43, %c0_44], %31 {strides = array<i32>} : memref<2x4x32x32xf32, #tpu.memory_space<vmem>>, vector<1x4x1x32xf32>,
    %c0_45 = arith.constant 0 : index
    %c0_46 = arith.constant 0 : index
    %c1_47 = arith.constant 1 : index
    %c0_48 = arith.constant 0 : index
    %32 = vector.load %arg1[%c0_45, %c0_46, %c1_47, %c0_48] : memref<2x4x18x34xbf16, #tpu.memory_space<vmem>>, vector<1x4x1x32xbf16>
    %33 = vector.shape_cast %32 : vector<1x4x1x32xbf16> to vector<4x32xbf16>
    %c0_49 = arith.constant 0 : index
    %c0_50 = arith.constant 0 : index
    %c1_51 = arith.constant 1 : index
    %c1_52 = arith.constant 1 : index
    %34 = vector.load %arg1[%c0_49, %c0_50, %c1_51, %c1_52] : memref<2x4x18x34xbf16, #tpu.memory_space<vmem>>, vector<1x4x1x32xbf16>
    %35 = vector.shape_cast %34 : vector<1x4x1x32xbf16> to vector<4x32xbf16>
    %c0_53 = arith.constant 0 : index
    %c0_54 = arith.constant 0 : index
    %c1_55 = arith.constant 1 : index
    %c2_56 = arith.constant 2 : index
    %36 = vector.load %arg1[%c0_53, %c0_54, %c1_55, %c2_56] : memref<2x4x18x34xbf16, #tpu.memory_space<vmem>>, vector<1x4x1x32xbf16>
    %37 = vector.shape_cast %36 : vector<1x4x1x32xbf16> to vector<4x32xbf16>
    %c0_57 = arith.constant 0 : index
    %c0_58 = arith.constant 0 : index
    %c2_59 = arith.constant 2 : index
    %c0_60 = arith.constant 0 : index
    %38 = vector.load %arg1[%c0_57, %c0_58, %c2_59, %c0_60] : memref<2x4x18x34xbf16, #tpu.memory_space<vmem>>, vector<1x4x1x32xbf16>
    %39 = vector.shape_cast %38 : vector<1x4x1x32xbf16> to vector<4x32xbf16>
    %c0_61 = arith.constant 0 : index
    %c0_62 = arith.constant 0 : index
    %c2_63 = arith.constant 2 : index
    %c1_64 = arith.constant 1 : index
    %40 = vector.load %arg1[%c0_61, %c0_62, %c2_63, %c1_64] : memref<2x4x18x34xbf16, #tpu.memory_space<vmem>>, vector<1x4x1x32xbf16>
    %41 = vector.shape_cast %40 : vector<1x4x1x32xbf16> to vector<4x32xbf16>
    %c0_65 = arith.constant 0 : index
    %c0_66 = arith.constant 0 : index
    %c2_67 = arith.constant 2 : index
    %c2_68 = arith.constant 2 : index
    %42 = vector.load %arg1[%c0_65, %c0_66, %c2_67, %c2_68] : memref<2x4x18x34xbf16, #tpu.memory_space<vmem>>, vector<1x4x1x32xbf16>
    %43 = vector.shape_cast %42 : vector<1x4x1x32xbf16> to vector<4x32xbf16>
    %c0_69 = arith.constant 0 : index
    %c0_70 = arith.constant 0 : index
    %c3 = arith.constant 3 : index
    %c0_71 = arith.constant 0 : index
    %44 = vector.load %arg1[%c0_69, %c0_70, %c3, %c0_71] : memref<2x4x18x34xbf16, #tpu.memory_space<vmem>>, vector<1x4x1x32xbf16>
    %45 = vector.shape_cast %44 : vector<1x4x1x32xbf16> to vector<4x32xbf16>
    %c0_72 = arith.constant 0 : index
    %c0_73 = arith.constant 0 : index
    %c3_74 = arith.constant 3 : index
    %c1_75 = arith.constant 1 : index
    %46 = vector.load %arg1[%c0_72, %c0_73, %c3_74, %c1_75] : memref<2x4x18x34xbf16, #tpu.memory_space<vmem>>, vector<1x4x1x32xbf16>
    %47 = vector.shape_cast %46 : vector<1x4x1x32xbf16> to vector<4x32xbf16>
    %c0_76 = arith.constant 0 : index
    %c0_77 = arith.constant 0 : index
    %c3_78 = arith.constant 3 : index
    %c2_79 = arith.constant 2 : index
    %48 = vector.load %arg1[%c0_76, %c0_77, %c3_78, %c2_79] : memref<2x4x18x34xbf16, #tpu.memory_space<vmem>>, vector<1x4x1x32xbf16>
    %49 = vector.shape_cast %48 : vector<1x4x1x32xbf16> to vector<4x32xbf16>
    %50 = tpu.concatenate %33, %35, %37, %39, %41, %43, %45, %47, %49 in 0 : vector<4x32xbf16>, vector<4x32xbf16>, vector<4x32xbf16>, vector<4x32xbf16>, vector<4x32xbf16>, vector<4x32xbf16>, vector<4x32xbf16>, vector<4x32xbf16>, vector<4x32xbf16> -> vector<36x32xbf16>
    %cst_80 = arith.constant dense<0.000000e+00> : vector<8x32xf32>
    %51 = tpu.matmul %0, %50, %cst_80 {dimension_numbers = #tpu.dot_dimension_numbers<[1], [0], [0], [1], [0, 0, 1, 1], [], []>} : vector<8x36xbf16>, vector<36x32xbf16>, vector<8x32xf32> -> vector<8x32xf32>
    %52 = vector.broadcast %1 : vector<8x1xf32> to vector<8x32xf32>
    %53 = arith.addf %51, %52 : vector<8x32xf32>
    %54 = vector.extract_strided_slice %53 {offsets = [0, 0], sizes = [4, 32], strides = [1, 1]} : vector<8x32xf32> to vector<4x32xf32>
    %c0_81 = arith.constant 0 : index
    %c0_82 = arith.constant 0 : index
    %c2_83 = arith.constant 2 : index
    %c0_84 = arith.constant 0 : index
    %55 = vector.load %arg4[%c0_81, %c0_82, %c2_83, %c0_84] : memref<2x4x32x32xf32, #tpu.memory_space<vmem>>, vector<1x4x1x32xf32>
    %56 = vector.shape_cast %55 : vector<1x4x1x32xf32> to vector<4x32xf32>
    %57 = vector.shape_cast %54 : vector<4x32xf32> to vector<1x4x1x32xf32>
    tpu.vector_store %arg4[%c0_81, %c0_82, %c2_83, %c0_84], %57 {strides = array<i32>} : memref<2x4x32x32xf32, #tpu.memory_space<vmem>>, vector<1x4x1x32xf32>,
    %58 = vector.extract_strided_slice %53 {offsets = [4, 0], sizes = [4, 32], strides = [1, 1]} : vector<8x32xf32> to vector<4x32xf32>
    %c0_85 = arith.constant 0 : index
    %c0_86 = arith.constant 0 : index
    %c3_87 = arith.constant 3 : index
    %c0_88 = arith.constant 0 : index
    %59 = vector.load %arg4[%c0_85, %c0_86, %c3_87, %c0_88] : memref<2x4x32x32xf32, #tpu.memory_space<vmem>>, vector<1x4x1x32xf32>
    %60 = vector.shape_cast %59 : vector<1x4x1x32xf32> to vector<4x32xf32>
    %61 = vector.shape_cast %58 : vector<4x32xf32> to vector<1x4x1x32xf32>
    tpu.vector_store %arg4[%c0_85, %c0_86, %c3_87, %c0_88], %61 {strides = array<i32>} : memref<2x4x32x32xf32, #tpu.memory_space<vmem>>, vector<1x4x1x32xf32>,
    %c0_89 = arith.constant 0 : index
    %c0_90 = arith.constant 0 : index
    %c2_91 = arith.constant 2 : index
    %c0_92 = arith.constant 0 : index
    %62 = vector.load %arg1[%c0_89, %c0_90, %c2_91, %c0_92] : memref<2x4x18x34xbf16, #tpu.memory_space<vmem>>, vector<1x4x1x32xbf16>
    %63 = vector.shape_cast %62 : vector<1x4x1x32xbf16> to vector<4x32xbf16>
    %c0_93 = arith.constant 0 : index
    %c0_94 = arith.constant 0 : index
    %c2_95 = arith.constant 2 : index
    %c1_96 = arith.constant 1 : index
    %64 = vector.load %arg1[%c0_93, %c0_94, %c2_95, %c1_96] : memref<2x4x18x34xbf16, #tpu.memory_space<vmem>>, vector<1x4x1x32xbf16>
    %65 = vector.shape_cast %64 : vector<1x4x1x32xbf16> to vector<4x32xbf16>
    %c0_97 = arith.constant 0 : index
    %c0_98 = arith.constant 0 : index
    %c2_99 = arith.constant 2 : index
    %c2_100 = arith.constant 2 : index
    %66 = vector.load %arg1[%c0_97, %c0_98, %c2_99, %c2_100] : memref<2x4x18x34xbf16, #tpu.memory_space<vmem>>, vector<1x4x1x32xbf16>
    %67 = vector.shape_cast %66 : vector<1x4x1x32xbf16> to vector<4x32xbf16>
    %c0_101 = arith.constant 0 : index
    %c0_102 = arith.constant 0 : index
    %c3_103 = arith.constant 3 : index
    %c0_104 = arith.constant 0 : index
    %68 = vector.load %arg1[%c0_101, %c0_102, %c3_103, %c0_104] : memref<2x4x18x34xbf16, #tpu.memory_space<vmem>>, vector<1x4x1x32xbf16>
    %69 = vector.shape_cast %68 : vector<1x4x1x32xbf16> to vector<4x32xbf16>
    %c0_105 = arith.constant 0 : index
    %c0_106 = arith.constant 0 : index
    %c3_107 = arith.constant 3 : index
    %c1_108 = arith.constant 1 : index
    %70 = vector.load %arg1[%c0_105, %c0_106, %c3_107, %c1_108] : memref<2x4x18x34xbf16, #tpu.memory_space<vmem>>, vector<1x4x1x32xbf16>
    %71 = vector.shape_cast %70 : vector<1x4x1x32xbf16> to vector<4x32xbf16>
    %c0_109 = arith.constant 0 : index
    %c0_110 = arith.constant 0 : index
    %c3_111 = arith.constant 3 : index
    %c2_112 = arith.constant 2 : index
    %72 = vector.load %arg1[%c0_109, %c0_110, %c3_111, %c2_112] : memref<2x4x18x34xbf16, #tpu.memory_space<vmem>>, vector<1x4x1x32xbf16>
    %73 = vector.shape_cast %72 : vector<1x4x1x32xbf16> to vector<4x32xbf16>
    %c0_113 = arith.constant 0 : index
    %c0_114 = arith.constant 0 : index
    %c4 = arith.constant 4 : index
    %c0_115 = arith.constant 0 : index
    %74 = vector.load %arg1[%c0_113, %c0_114, %c4, %c0_115] : memref<2x4x18x34xbf16, #tpu.memory_space<vmem>>, vector<1x4x1x32xbf16>
    %75 = vector.shape_cast %74 : vector<1x4x1x32xbf16> to vector<4x32xbf16>
    %c0_116 = arith.constant 0 : index
    %c0_117 = arith.constant 0 : index
    %c4_118 = arith.constant 4 : index
    %c1_119 = arith.constant 1 : index
    %76 = vector.load %arg1[%c0_116, %c0_117, %c4_118, %c1_119] : memref<2x4x18x34xbf16, #tpu.memory_space<vmem>>, vector<1x4x1x32xbf16>
    %77 = vector.shape_cast %76 : vector<1x4x1x32xbf16> to vector<4x32xbf16>
    %c0_120 = arith.constant 0 : index
    %c0_121 = arith.constant 0 : index
    %c4_122 = arith.constant 4 : index
    %c2_123 = arith.constant 2 : index
    %78 = vector.load %arg1[%c0_120, %c0_121, %c4_122, %c2_123] : memref<2x4x18x34xbf16, #tpu.memory_space<vmem>>, vector<1x4x1x32xbf16>
    %79 = vector.shape_cast %78 : vector<1x4x1x32xbf16> to vector<4x32xbf16>
    %80 = tpu.concatenate %63, %65, %67, %69, %71, %73, %75, %77, %79 in 0 : vector<4x32xbf16>, vector<4x32xbf16>, vector<4x32xbf16>, vector<4x32xbf16>, vector<4x32xbf16>, vector<4x32xbf16>, vector<4x32xbf16>, vector<4x32xbf16>, vector<4x32xbf16> -> vector<36x32xbf16>
    %cst_124 = arith.constant dense<0.000000e+00> : vector<8x32xf32>
    %81 = tpu.matmul %0, %80, %cst_124 {dimension_numbers = #tpu.dot_dimension_numbers<[1], [0], [0], [1], [0, 0, 1, 1], [], []>} : vector<8x36xbf16>, vector<36x32xbf16>, vector<8x32xf32> -> vector<8x32xf32>
    %82 = vector.broadcast %1 : vector<8x1xf32> to vector<8x32xf32>
    %83 = arith.addf %81, %82 : vector<8x32xf32>
    %84 = vector.extract_strided_slice %83 {offsets = [0, 0], sizes = [4, 32], strides = [1, 1]} : vector<8x32xf32> to vector<4x32xf32>
    %c0_125 = arith.constant 0 : index
    %c0_126 = arith.constant 0 : index
    %c4_127 = arith.constant 4 : index
    %c0_128 = arith.constant 0 : index
    %85 = vector.load %arg4[%c0_125, %c0_126, %c4_127, %c0_128] : memref<2x4x32x32xf32, #tpu.memory_space<vmem>>, vector<1x4x1x32xf32>
    %86 = vector.shape_cast %85 : vector<1x4x1x32xf32> to vector<4x32xf32>
    %87 = vector.shape_cast %84 : vector<4x32xf32> to vector<1x4x1x32xf32>
    tpu.vector_store %arg4[%c0_125, %c0_126, %c4_127, %c0_128], %87 {strides = array<i32>} : memref<2x4x32x32xf32, #tpu.memory_space<vmem>>, vector<1x4x1x32xf32>,
    %88 = vector.extract_strided_slice %83 {offsets = [4, 0], sizes = [4, 32], strides = [1, 1]} : vector<8x32xf32> to vector<4x32xf32>
    %c0_129 = arith.constant 0 : index
    %c0_130 = arith.constant 0 : index
    %c5 = arith.constant 5 : index
    %c0_131 = arith.constant 0 : index
    %89 = vector.load %arg4[%c0_129, %c0_130, %c5, %c0_131] : memref<2x4x32x32xf32, #tpu.memory_space<vmem>>, vector<1x4x1x32xf32>
    %90 = vector.shape_cast %89 : vector<1x4x1x32xf32> to vector<4x32xf32>
    %91 = vector.shape_cast %88 : vector<4x32xf32> to vector<1x4x1x32xf32>
    tpu.vector_store %arg4[%c0_129, %c0_130, %c5, %c0_131], %91 {strides = array<i32>} : memref<2x4x32x32xf32, #tpu.memory_space<vmem>>, vector<1x4x1x32xf32>,
    %c0_132 = arith.constant 0 : index
    %c0_133 = arith.constant 0 : index
    %c3_134 = arith.constant 3 : index
    %c0_135 = arith.constant 0 : index
    %92 = vector.load %arg1[%c0_132, %c0_133, %c3_134, %c0_135] : memref<2x4x18x34xbf16, #tpu.memory_space<vmem>>, vector<1x4x1x32xbf16>
    %93 = vector.shape_cast %92 : vector<1x4x1x32xbf16> to vector<4x32xbf16>
    %c0_136 = arith.constant 0 : index
    %c0_137 = arith.constant 0 : index
    %c3_138 = arith.constant 3 : index
    %c1_139 = arith.constant 1 : index
    %94 = vector.load %arg1[%c0_136, %c0_137, %c3_138, %c1_139] : memref<2x4x18x34xbf16, #tpu.memory_space<vmem>>, vector<1x4x1x32xbf16>
    %95 = vector.shape_cast %94 : vector<1x4x1x32xbf16> to vector<4x32xbf16>
    %c0_140 = arith.constant 0 : index
    %c0_141 = arith.constant 0 : index
    %c3_142 = arith.constant 3 : index
    %c2_143 = arith.constant 2 : index
    %96 = vector.load %arg1[%c0_140, %c0_141, %c3_142, %c2_143] : memref<2x4x18x34xbf16, #tpu.memory_space<vmem>>, vector<1x4x1x32xbf16>
    %97 = vector.shape_cast %96 : vector<1x4x1x32xbf16> to vector<4x32xbf16>
    %c0_144 = arith.constant 0 : index
    %c0_145 = arith.constant 0 : index
    %c4_146 = arith.constant 4 : index
    %c0_147 = arith.constant 0 : index
    %98 = vector.load %arg1[%c0_144, %c0_145, %c4_146, %c0_147] : memref<2x4x18x34xbf16, #tpu.memory_space<vmem>>, vector<1x4x1x32xbf16>
    %99 = vector.shape_cast %98 : vector<1x4x1x32xbf16> to vector<4x32xbf16>
    %c0_148 = arith.constant 0 : index
    %c0_149 = arith.constant 0 : index
    %c4_150 = arith.constant 4 : index
    %c1_151 = arith.constant 1 : index
    %100 = vector.load %arg1[%c0_148, %c0_149, %c4_150, %c1_151] : memref<2x4x18x34xbf16, #tpu.memory_space<vmem>>, vector<1x4x1x32xbf16>
    %101 = vector.shape_cast %100 : vector<1x4x1x32xbf16> to vector<4x32xbf16>
    %c0_152 = arith.constant 0 : index
    %c0_153 = arith.constant 0 : index
    %c4_154 = arith.constant 4 : index
    %c2_155 = arith.constant 2 : index
    %102 = vector.load %arg1[%c0_152, %c0_153, %c4_154, %c2_155] : memref<2x4x18x34xbf16, #tpu.memory_space<vmem>>, vector<1x4x1x32xbf16>
    %103 = vector.shape_cast %102 : vector<1x4x1x32xbf16> to vector<4x32xbf16>
    %c0_156 = arith.constant 0 : index
    %c0_157 = arith.constant 0 : index
    %c5_158 = arith.constant 5 : index
    %c0_159 = arith.constant 0 : index
    %104 = vector.load %arg1[%c0_156, %c0_157, %c5_158, %c0_159] : memref<2x4x18x34xbf16, #tpu.memory_space<vmem>>, vector<1x4x1x32xbf16>
    %105 = vector.shape_cast %104 : vector<1x4x1x32xbf16> to vector<4x32xbf16>
    %c0_160 = arith.constant 0 : index
    %c0_161 = arith.constant 0 : index
    %c5_162 = arith.constant 5 : index
    %c1_163 = arith.constant 1 : index
    %106 = vector.load %arg1[%c0_160, %c0_161, %c5_162, %c1_163] : memref<2x4x18x34xbf16, #tpu.memory_space<vmem>>, vector<1x4x1x32xbf16>
    %107 = vector.shape_cast %106 : vector<1x4x1x32xbf16> to vector<4x32xbf16>
    %c0_164 = arith.constant 0 : index
    %c0_165 = arith.constant 0 : index
    %c5_166 = arith.constant 5 : index
    %c2_167 = arith.constant 2 : index
    %108 = vector.load %arg1[%c0_164, %c0_165, %c5_166, %c2_167] : memref<2x4x18x34xbf16, #tpu.memory_space<vmem>>, vector<1x4x1x32xbf16>
    %109 = vector.shape_cast %108 : vector<1x4x1x32xbf16> to vector<4x32xbf16>
    %110 = tpu.concatenate %93, %95, %97, %99, %101, %103, %105, %107, %109 in 0 : vector<4x32xbf16>, vector<4x32xbf16>, vector<4x32xbf16>, vector<4x32xbf16>, vector<4x32xbf16>, vector<4x32xbf16>, vector<4x32xbf16>, vector<4x32xbf16>, vector<4x32xbf16> -> vector<36x32xbf16>
    %cst_168 = arith.constant dense<0.000000e+00> : vector<8x32xf32>
    %111 = tpu.matmul %0, %110, %cst_168 {dimension_numbers = #tpu.dot_dimension_numbers<[1], [0], [0], [1], [0, 0, 1, 1], [], []>} : vector<8x36xbf16>, vector<36x32xbf16>, vector<8x32xf32> -> vector<8x32xf32>
    %112 = vector.broadcast %1 : vector<8x1xf32> to vector<8x32xf32>
    %113 = arith.addf %111, %112 : vector<8x32xf32>
    %114 = vector.extract_strided_slice %113 {offsets = [0, 0], sizes = [4, 32], strides = [1, 1]} : vector<8x32xf32> to vector<4x32xf32>
    %c0_169 = arith.constant 0 : index
    %c0_170 = arith.constant 0 : index
    %c6 = arith.constant 6 : index
    %c0_171 = arith.constant 0 : index
    %115 = vector.load %arg4[%c0_169, %c0_170, %c6, %c0_171] : memref<2x4x32x32xf32, #tpu.memory_space<vmem>>, vector<1x4x1x32xf32>
    %116 = vector.shape_cast %115 : vector<1x4x1x32xf32> to vector<4x32xf32>
    %117 = vector.shape_cast %114 : vector<4x32xf32> to vector<1x4x1x32xf32>
    tpu.vector_store %arg4[%c0_169, %c0_170, %c6, %c0_171], %117 {strides = array<i32>} : memref<2x4x32x32xf32, #tpu.memory_space<vmem>>, vector<1x4x1x32xf32>,
    %118 = vector.extract_strided_slice %113 {offsets = [4, 0], sizes = [4, 32], strides = [1, 1]} : vector<8x32xf32> to vector<4x32xf32>
    %c0_172 = arith.constant 0 : index
    %c0_173 = arith.constant 0 : index
    %c7 = arith.constant 7 : index
    %c0_174 = arith.constant 0 : index
    %119 = vector.load %arg4[%c0_172, %c0_173, %c7, %c0_174] : memref<2x4x32x32xf32, #tpu.memory_space<vmem>>, vector<1x4x1x32xf32>
    %120 = vector.shape_cast %119 : vector<1x4x1x32xf32> to vector<4x32xf32>
    %121 = vector.shape_cast %118 : vector<4x32xf32> to vector<1x4x1x32xf32>
    tpu.vector_store %arg4[%c0_172, %c0_173, %c7, %c0_174], %121 {strides = array<i32>} : memref<2x4x32x32xf32, #tpu.memory_space<vmem>>, vector<1x4x1x32xf32>,
    %c0_175 = arith.constant 0 : index
    %c0_176 = arith.constant 0 : index
    %c4_177 = arith.constant 4 : index
    %c0_178 = arith.constant 0 : index
    %122 = vector.load %arg1[%c0_175, %c0_176, %c4_177, %c0_178] : memref<2x4x18x34xbf16, #tpu.memory_space<vmem>>, vector<1x4x1x32xbf16>
    %123 = vector.shape_cast %122 : vector<1x4x1x32xbf16> to vector<4x32xbf16>
    %c0_179 = arith.constant 0 : index
    %c0_180 = arith.constant 0 : index
    %c4_181 = arith.constant 4 : index
    %c1_182 = arith.constant 1 : index
    %124 = vector.load %arg1[%c0_179, %c0_180, %c4_181, %c1_182] : memref<2x4x18x34xbf16, #tpu.memory_space<vmem>>, vector<1x4x1x32xbf16>
    %125 = vector.shape_cast %124 : vector<1x4x1x32xbf16> to vector<4x32xbf16>
    %c0_183 = arith.constant 0 : index
    %c0_184 = arith.constant 0 : index
    %c4_185 = arith.constant 4 : index
    %c2_186 = arith.constant 2 : index
    %126 = vector.load %arg1[%c0_183, %c0_184, %c4_185, %c2_186] : memref<2x4x18x34xbf16, #tpu.memory_space<vmem>>, vector<1x4x1x32xbf16>
    %127 = vector.shape_cast %126 : vector<1x4x1x32xbf16> to vector<4x32xbf16>
    %c0_187 = arith.constant 0 : index
    %c0_188 = arith.constant 0 : index
    %c5_189 = arith.constant 5 : index
    %c0_190 = arith.constant 0 : index
    %128 = vector.load %arg1[%c0_187, %c0_188, %c5_189, %c0_190] : memref<2x4x18x34xbf16, #tpu.memory_space<vmem>>, vector<1x4x1x32xbf16>
    %129 = vector.shape_cast %128 : vector<1x4x1x32xbf16> to vector<4x32xbf16>
    %c0_191 = arith.constant 0 : index
    %c0_192 = arith.constant 0 : index
    %c5_193 = arith.constant 5 : index
    %c1_194 = arith.constant 1 : index
    %130 = vector.load %arg1[%c0_191, %c0_192, %c5_193, %c1_194] : memref<2x4x18x34xbf16, #tpu.memory_space<vmem>>, vector<1x4x1x32xbf16>
    %131 = vector.shape_cast %130 : vector<1x4x1x32xbf16> to vector<4x32xbf16>
    %c0_195 = arith.constant 0 : index
    %c0_196 = arith.constant 0 : index
    %c5_197 = arith.constant 5 : index
    %c2_198 = arith.constant 2 : index
    %132 = vector.load %arg1[%c0_195, %c0_196, %c5_197, %c2_198] : memref<2x4x18x34xbf16, #tpu.memory_space<vmem>>, vector<1x4x1x32xbf16>
    %133 = vector.shape_cast %132 : vector<1x4x1x32xbf16> to vector<4x32xbf16>
    %c0_199 = arith.constant 0 : index
    %c0_200 = arith.constant 0 : index
    %c6_201 = arith.constant 6 : index
    %c0_202 = arith.constant 0 : index
    %134 = vector.load %arg1[%c0_199, %c0_200, %c6_201, %c0_202] : memref<2x4x18x34xbf16, #tpu.memory_space<vmem>>, vector<1x4x1x32xbf16>
    %135 = vector.shape_cast %134 : vector<1x4x1x32xbf16> to vector<4x32xbf16>
    %c0_203 = arith.constant 0 : index
    %c0_204 = arith.constant 0 : index
    %c6_205 = arith.constant 6 : index
    %c1_206 = arith.constant 1 : index
    %136 = vector.load %arg1[%c0_203, %c0_204, %c6_205, %c1_206] : memref<2x4x18x34xbf16, #tpu.memory_space<vmem>>, vector<1x4x1x32xbf16>
    %137 = vector.shape_cast %136 : vector<1x4x1x32xbf16> to vector<4x32xbf16>
    %c0_207 = arith.constant 0 : index
    %c0_208 = arith.constant 0 : index
    %c6_209 = arith.constant 6 : index
    %c2_210 = arith.constant 2 : index
    %138 = vector.load %arg1[%c0_207, %c0_208, %c6_209, %c2_210] : memref<2x4x18x34xbf16, #tpu.memory_space<vmem>>, vector<1x4x1x32xbf16>
    %139 = vector.shape_cast %138 : vector<1x4x1x32xbf16> to vector<4x32xbf16>
    %140 = tpu.concatenate %123, %125, %127, %129, %131, %133, %135, %137, %139 in 0 : vector<4x32xbf16>, vector<4x32xbf16>, vector<4x32xbf16>, vector<4x32xbf16>, vector<4x32xbf16>, vector<4x32xbf16>, vector<4x32xbf16>, vector<4x32xbf16>, vector<4x32xbf16> -> vector<36x32xbf16>
    %cst_211 = arith.constant dense<0.000000e+00> : vector<8x32xf32>
    %141 = tpu.matmul %0, %140, %cst_211 {dimension_numbers = #tpu.dot_dimension_numbers<[1], [0], [0], [1], [0, 0, 1, 1], [], []>} : vector<8x36xbf16>, vector<36x32xbf16>, vector<8x32xf32> -> vector<8x32xf32>
    %142 = vector.broadcast %1 : vector<8x1xf32> to vector<8x32xf32>
    %143 = arith.addf %141, %142 : vector<8x32xf32>
    %144 = vector.extract_strided_slice %143 {offsets = [0, 0], sizes = [4, 32], strides = [1, 1]} : vector<8x32xf32> to vector<4x32xf32>
    %c0_212 = arith.constant 0 : index
    %c0_213 = arith.constant 0 : index
    %c8 = arith.constant 8 : index
    %c0_214 = arith.constant 0 : index
    %145 = vector.load %arg4[%c0_212, %c0_213, %c8, %c0_214] : memref<2x4x32x32xf32, #tpu.memory_space<vmem>>, vector<1x4x1x32xf32>
    %146 = vector.shape_cast %145 : vector<1x4x1x32xf32> to vector<4x32xf32>
    %147 = vector.shape_cast %144 : vector<4x32xf32> to vector<1x4x1x32xf32>
    tpu.vector_store %arg4[%c0_212, %c0_213, %c8, %c0_214], %147 {strides = array<i32>} : memref<2x4x32x32xf32, #tpu.memory_space<vmem>>, vector<1x4x1x32xf32>,
    %148 = vector.extract_strided_slice %143 {offsets = [4, 0], sizes = [4, 32], strides = [1, 1]} : vector<8x32xf32> to vector<4x32xf32>
    %c0_215 = arith.constant 0 : index
    %c0_216 = arith.constant 0 : index
    %c9 = arith.constant 9 : index
    %c0_217 = arith.constant 0 : index
    %149 = vector.load %arg4[%c0_215, %c0_216, %c9, %c0_217] : memref<2x4x32x32xf32, #tpu.memory_space<vmem>>, vector<1x4x1x32xf32>
    %150 = vector.shape_cast %149 : vector<1x4x1x32xf32> to vector<4x32xf32>
    %151 = vector.shape_cast %148 : vector<4x32xf32> to vector<1x4x1x32xf32>
    tpu.vector_store %arg4[%c0_215, %c0_216, %c9, %c0_217], %151 {strides = array<i32>} : memref<2x4x32x32xf32, #tpu.memory_space<vmem>>, vector<1x4x1x32xf32>,
    %c0_218 = arith.constant 0 : index
    %c0_219 = arith.constant 0 : index
    %c5_220 = arith.constant 5 : index
    %c0_221 = arith.constant 0 : index
    %152 = vector.load %arg1[%c0_218, %c0_219, %c5_220, %c0_221] : memref<2x4x18x34xbf16, #tpu.memory_space<vmem>>, vector<1x4x1x32xbf16>
    %153 = vector.shape_cast %152 : vector<1x4x1x32xbf16> to vector<4x32xbf16>
    %c0_222 = arith.constant 0 : index
    %c0_223 = arith.constant 0 : index
    %c5_224 = arith.constant 5 : index
    %c1_225 = arith.constant 1 : index
    %154 = vector.load %arg1[%c0_222, %c0_223, %c5_224, %c1_225] : memref<2x4x18x34xbf16, #tpu.memory_space<vmem>>, vector<1x4x1x32xbf16>
    %155 = vector.shape_cast %154 : vector<1x4x1x32xbf16> to vector<4x32xbf16>
    %c0_226 = arith.constant 0 : index
    %c0_227 = arith.constant 0 : index
    %c5_228 = arith.constant 5 : index
    %c2_229 = arith.constant 2 : index
    %156 = vector.load %arg1[%c0_226, %c0_227, %c5_228, %c2_229] : memref<2x4x18x34xbf16, #tpu.memory_space<vmem>>, vector<1x4x1x32xbf16>
    %157 = vector.shape_cast %156 : vector<1x4x1x32xbf16> to vector<4x32xbf16>
    %c0_230 = arith.constant 0 : index
    %c0_231 = arith.constant 0 : index
    %c6_232 = arith.constant 6 : index
    %c0_233 = arith.constant 0 : index
    %158 = vector.load %arg1[%c0_230, %c0_231, %c6_232, %c0_233] : memref<2x4x18x34xbf16, #tpu.memory_space<vmem>>, vector<1x4x1x32xbf16>
    %159 = vector.shape_cast %158 : vector<1x4x1x32xbf16> to vector<4x32xbf16>
    %c0_234 = arith.constant 0 : index
    %c0_235 = arith.constant 0 : index
    %c6_236 = arith.constant 6 : index
    %c1_237 = arith.constant 1 : index
    %160 = vector.load %arg1[%c0_234, %c0_235, %c6_236, %c1_237] : memref<2x4x18x34xbf16, #tpu.memory_space<vmem>>, vector<1x4x1x32xbf16>
    %161 = vector.shape_cast %160 : vector<1x4x1x32xbf16> to vector<4x32xbf16>
    %c0_238 = arith.constant 0 : index
    %c0_239 = arith.constant 0 : index
    %c6_240 = arith.constant 6 : index
    %c2_241 = arith.constant 2 : index
    %162 = vector.load %arg1[%c0_238, %c0_239, %c6_240, %c2_241] : memref<2x4x18x34xbf16, #tpu.memory_space<vmem>>, vector<1x4x1x32xbf16>
    %163 = vector.shape_cast %162 : vector<1x4x1x32xbf16> to vector<4x32xbf16>
    %c0_242 = arith.constant 0 : index
    %c0_243 = arith.constant 0 : index
    %c7_244 = arith.constant 7 : index
    %c0_245 = arith.constant 0 : index
    %164 = vector.load %arg1[%c0_242, %c0_243, %c7_244, %c0_245] : memref<2x4x18x34xbf16, #tpu.memory_space<vmem>>, vector<1x4x1x32xbf16>
    %165 = vector.shape_cast %164 : vector<1x4x1x32xbf16> to vector<4x32xbf16>
    %c0_246 = arith.constant 0 : index
    %c0_247 = arith.constant 0 : index
    %c7_248 = arith.constant 7 : index
    %c1_249 = arith.constant 1 : index
    %166 = vector.load %arg1[%c0_246, %c0_247, %c7_248, %c1_249] : memref<2x4x18x34xbf16, #tpu.memory_space<vmem>>, vector<1x4x1x32xbf16>
    %167 = vector.shape_cast %166 : vector<1x4x1x32xbf16> to vector<4x32xbf16>
    %c0_250 = arith.constant 0 : index
    %c0_251 = arith.constant 0 : index
    %c7_252 = arith.constant 7 : index
    %c2_253 = arith.constant 2 : index
    %168 = vector.load %arg1[%c0_250, %c0_251, %c7_252, %c2_253] : memref<2x4x18x34xbf16, #tpu.memory_space<vmem>>, vector<1x4x1x32xbf16>
    %169 = vector.shape_cast %168 : vector<1x4x1x32xbf16> to vector<4x32xbf16>
    %170 = tpu.concatenate %153, %155, %157, %159, %161, %163, %165, %167, %169 in 0 : vector<4x32xbf16>, vector<4x32xbf16>, vector<4x32xbf16>, vector<4x32xbf16>, vector<4x32xbf16>, vector<4x32xbf16>, vector<4x32xbf16>, vector<4x32xbf16>, vector<4x32xbf16> -> vector<36x32xbf16>
    %cst_254 = arith.constant dense<0.000000e+00> : vector<8x32xf32>
    %171 = tpu.matmul %0, %170, %cst_254 {dimension_numbers = #tpu.dot_dimension_numbers<[1], [0], [0], [1], [0, 0, 1, 1], [], []>} : vector<8x36xbf16>, vector<36x32xbf16>, vector<8x32xf32> -> vector<8x32xf32>
    %172 = vector.broadcast %1 : vector<8x1xf32> to vector<8x32xf32>
    %173 = arith.addf %171, %172 : vector<8x32xf32>
    %174 = vector.extract_strided_slice %173 {offsets = [0, 0], sizes = [4, 32], strides = [1, 1]} : vector<8x32xf32> to vector<4x32xf32>
    %c0_255 = arith.constant 0 : index
    %c0_256 = arith.constant 0 : index
    %c10 = arith.constant 10 : index
    %c0_257 = arith.constant 0 : index
    %175 = vector.load %arg4[%c0_255, %c0_256, %c10, %c0_257] : memref<2x4x32x32xf32, #tpu.memory_space<vmem>>, vector<1x4x1x32xf32>
    %176 = vector.shape_cast %175 : vector<1x4x1x32xf32> to vector<4x32xf32>
    %177 = vector.shape_cast %174 : vector<4x32xf32> to vector<1x4x1x32xf32>
    tpu.vector_store %arg4[%c0_255, %c0_256, %c10, %c0_257], %177 {strides = array<i32>} : memref<2x4x32x32xf32, #tpu.memory_space<vmem>>, vector<1x4x1x32xf32>,
    %178 = vector.extract_strided_slice %173 {offsets = [4, 0], sizes = [4, 32], strides = [1, 1]} : vector<8x32xf32> to vector<4x32xf32>
    %c0_258 = arith.constant 0 : index
    %c0_259 = arith.constant 0 : index
    %c11 = arith.constant 11 : index
    %c0_260 = arith.constant 0 : index
    %179 = vector.load %arg4[%c0_258, %c0_259, %c11, %c0_260] : memref<2x4x32x32xf32, #tpu.memory_space<vmem>>, vector<1x4x1x32xf32>
    %180 = vector.shape_cast %179 : vector<1x4x1x32xf32> to vector<4x32xf32>
    %181 = vector.shape_cast %178 : vector<4x32xf32> to vector<1x4x1x32xf32>
    tpu.vector_store %arg4[%c0_258, %c0_259, %c11, %c0_260], %181 {strides = array<i32>} : memref<2x4x32x32xf32, #tpu.memory_space<vmem>>, vector<1x4x1x32xf32>,
    %c0_261 = arith.constant 0 : index
    %c0_262 = arith.constant 0 : index
    %c6_263 = arith.constant 6 : index
    %c0_264 = arith.constant 0 : index
    %182 = vector.load %arg1[%c0_261, %c0_262, %c6_263, %c0_264] : memref<2x4x18x34xbf16, #tpu.memory_space<vmem>>, vector<1x4x1x32xbf16>
    %183 = vector.shape_cast %182 : vector<1x4x1x32xbf16> to vector<4x32xbf16>
    %c0_265 = arith.constant 0 : index
    %c0_266 = arith.constant 0 : index
    %c6_267 = arith.constant 6 : index
    %c1_268 = arith.constant 1 : index
    %184 = vector.load %arg1[%c0_265, %c0_266, %c6_267, %c1_268] : memref<2x4x18x34xbf16, #tpu.memory_space<vmem>>, vector<1x4x1x32xbf16>
    %185 = vector.shape_cast %184 : vector<1x4x1x32xbf16> to vector<4x32xbf16>
    %c0_269 = arith.constant 0 : index
    %c0_270 = arith.constant 0 : index
    %c6_271 = arith.constant 6 : index
    %c2_272 = arith.constant 2 : index
    %186 = vector.load %arg1[%c0_269, %c0_270, %c6_271, %c2_272] : memref<2x4x18x34xbf16, #tpu.memory_space<vmem>>, vector<1x4x1x32xbf16>
    %187 = vector.shape_cast %186 : vector<1x4x1x32xbf16> to vector<4x32xbf16>
    %c0_273 = arith.constant 0 : index
    %c0_274 = arith.constant 0 : index
    %c7_275 = arith.constant 7 : index
    %c0_276 = arith.constant 0 : index
    %188 = vector.load %arg1[%c0_273, %c0_274, %c7_275, %c0_276] : memref<2x4x18x34xbf16, #tpu.memory_space<vmem>>, vector<1x4x1x32xbf16>
    %189 = vector.shape_cast %188 : vector<1x4x1x32xbf16> to vector<4x32xbf16>
    %c0_277 = arith.constant 0 : index
    %c0_278 = arith.constant 0 : index
    %c7_279 = arith.constant 7 : index
    %c1_280 = arith.constant 1 : index
    %190 = vector.load %arg1[%c0_277, %c0_278, %c7_279, %c1_280] : memref<2x4x18x34xbf16, #tpu.memory_space<vmem>>, vector<1x4x1x32xbf16>
    %191 = vector.shape_cast %190 : vector<1x4x1x32xbf16> to vector<4x32xbf16>
    %c0_281 = arith.constant 0 : index
    %c0_282 = arith.constant 0 : index
    %c7_283 = arith.constant 7 : index
    %c2_284 = arith.constant 2 : index
    %192 = vector.load %arg1[%c0_281, %c0_282, %c7_283, %c2_284] : memref<2x4x18x34xbf16, #tpu.memory_space<vmem>>, vector<1x4x1x32xbf16>
    %193 = vector.shape_cast %192 : vector<1x4x1x32xbf16> to vector<4x32xbf16>
    %c0_285 = arith.constant 0 : index
    %c0_286 = arith.constant 0 : index
    %c8_287 = arith.constant 8 : index
    %c0_288 = arith.constant 0 : index
    %194 = vector.load %arg1[%c0_285, %c0_286, %c8_287, %c0_288] : memref<2x4x18x34xbf16, #tpu.memory_space<vmem>>, vector<1x4x1x32xbf16>
    %195 = vector.shape_cast %194 : vector<1x4x1x32xbf16> to vector<4x32xbf16>
    %c0_289 = arith.constant 0 : index
    %c0_290 = arith.constant 0 : index
    %c8_291 = arith.constant 8 : index
    %c1_292 = arith.constant 1 : index
    %196 = vector.load %arg1[%c0_289, %c0_290, %c8_291, %c1_292] : memref<2x4x18x34xbf16, #tpu.memory_space<vmem>>, vector<1x4x1x32xbf16>
    %197 = vector.shape_cast %196 : vector<1x4x1x32xbf16> to vector<4x32xbf16>
    %c0_293 = arith.constant 0 : index
    %c0_294 = arith.constant 0 : index
    %c8_295 = arith.constant 8 : index
    %c2_296 = arith.constant 2 : index
    %198 = vector.load %arg1[%c0_293, %c0_294, %c8_295, %c2_296] : memref<2x4x18x34xbf16, #tpu.memory_space<vmem>>, vector<1x4x1x32xbf16>
    %199 = vector.shape_cast %198 : vector<1x4x1x32xbf16> to vector<4x32xbf16>
    %200 = tpu.concatenate %183, %185, %187, %189, %191, %193, %195, %197, %199 in 0 : vector<4x32xbf16>, vector<4x32xbf16>, vector<4x32xbf16>, vector<4x32xbf16>, vector<4x32xbf16>, vector<4x32xbf16>, vector<4x32xbf16>, vector<4x32xbf16>, vector<4x32xbf16> -> vector<36x32xbf16>
    %cst_297 = arith.constant dense<0.000000e+00> : vector<8x32xf32>
    %201 = tpu.matmul %0, %200, %cst_297 {dimension_numbers = #tpu.dot_dimension_numbers<[1], [0], [0], [1], [0, 0, 1, 1], [], []>} : vector<8x36xbf16>, vector<36x32xbf16>, vector<8x32xf32> -> vector<8x32xf32>
    %202 = vector.broadcast %1 : vector<8x1xf32> to vector<8x32xf32>
    %203 = arith.addf %201, %202 : vector<8x32xf32>
    %204 = vector.extract_strided_slice %203 {offsets = [0, 0], sizes = [4, 32], strides = [1, 1]} : vector<8x32xf32> to vector<4x32xf32>
    %c0_298 = arith.constant 0 : index
    %c0_299 = arith.constant 0 : index
    %c12 = arith.constant 12 : index
    %c0_300 = arith.constant 0 : index
    %205 = vector.load %arg4[%c0_298, %c0_299, %c12, %c0_300] : memref<2x4x32x32xf32, #tpu.memory_space<vmem>>, vector<1x4x1x32xf32>
    %206 = vector.shape_cast %205 : vector<1x4x1x32xf32> to vector<4x32xf32>
    %207 = vector.shape_cast %204 : vector<4x32xf32> to vector<1x4x1x32xf32>
    tpu.vector_store %arg4[%c0_298, %c0_299, %c12, %c0_300], %207 {strides = array<i32>} : memref<2x4x32x32xf32, #tpu.memory_space<vmem>>, vector<1x4x1x32xf32>,
    %208 = vector.extract_strided_slice %203 {offsets = [4, 0], sizes = [4, 32], strides = [1, 1]} : vector<8x32xf32> to vector<4x32xf32>
    %c0_301 = arith.constant 0 : index
    %c0_302 = arith.constant 0 : index
    %c13 = arith.constant 13 : index
    %c0_303 = arith.constant 0 : index
    %209 = vector.load %arg4[%c0_301, %c0_302, %c13, %c0_303] : memref<2x4x32x32xf32, #tpu.memory_space<vmem>>, vector<1x4x1x32xf32>
    %210 = vector.shape_cast %209 : vector<1x4x1x32xf32> to vector<4x32xf32>
    %211 = vector.shape_cast %208 : vector<4x32xf32> to vector<1x4x1x32xf32>
    tpu.vector_store %arg4[%c0_301, %c0_302, %c13, %c0_303], %211 {strides = array<i32>} : memref<2x4x32x32xf32, #tpu.memory_space<vmem>>, vector<1x4x1x32xf32>,
    %c0_304 = arith.constant 0 : index
    %c0_305 = arith.constant 0 : index
    %c7_306 = arith.constant 7 : index
    %c0_307 = arith.constant 0 : index
    %212 = vector.load %arg1[%c0_304, %c0_305, %c7_306, %c0_307] : memref<2x4x18x34xbf16, #tpu.memory_space<vmem>>, vector<1x4x1x32xbf16>
    %213 = vector.shape_cast %212 : vector<1x4x1x32xbf16> to vector<4x32xbf16>
    %c0_308 = arith.constant 0 : index
    %c0_309 = arith.constant 0 : index
    %c7_310 = arith.constant 7 : index
    %c1_311 = arith.constant 1 : index
    %214 = vector.load %arg1[%c0_308, %c0_309, %c7_310, %c1_311] : memref<2x4x18x34xbf16, #tpu.memory_space<vmem>>, vector<1x4x1x32xbf16>
    %215 = vector.shape_cast %214 : vector<1x4x1x32xbf16> to vector<4x32xbf16>
    %c0_312 = arith.constant 0 : index
    %c0_313 = arith.constant 0 : index
    %c7_314 = arith.constant 7 : index
    %c2_315 = arith.constant 2 : index
    %216 = vector.load %arg1[%c0_312, %c0_313, %c7_314, %c2_315] : memref<2x4x18x34xbf16, #tpu.memory_space<vmem>>, vector<1x4x1x32xbf16>
    %217 = vector.shape_cast %216 : vector<1x4x1x32xbf16> to vector<4x32xbf16>
    %c0_316 = arith.constant 0 : index
    %c0_317 = arith.constant 0 : index
    %c8_318 = arith.constant 8 : index
    %c0_319 = arith.constant 0 : index
    %218 = vector.load %arg1[%c0_316, %c0_317, %c8_318, %c0_319] : memref<2x4x18x34xbf16, #tpu.memory_space<vmem>>, vector<1x4x1x32xbf16>
    %219 = vector.shape_cast %218 : vector<1x4x1x32xbf16> to vector<4x32xbf16>
    %c0_320 = arith.constant 0 : index
    %c0_321 = arith.constant 0 : index
    %c8_322 = arith.constant 8 : index
    %c1_323 = arith.constant 1 : index
    %220 = vector.load %arg1[%c0_320, %c0_321, %c8_322, %c1_323] : memref<2x4x18x34xbf16, #tpu.memory_space<vmem>>, vector<1x4x1x32xbf16>
    %221 = vector.shape_cast %220 : vector<1x4x1x32xbf16> to vector<4x32xbf16>
    %c0_324 = arith.constant 0 : index
    %c0_325 = arith.constant 0 : index
    %c8_326 = arith.constant 8 : index
    %c2_327 = arith.constant 2 : index
    %222 = vector.load %arg1[%c0_324, %c0_325, %c8_326, %c2_327] : memref<2x4x18x34xbf16, #tpu.memory_space<vmem>>, vector<1x4x1x32xbf16>
    %223 = vector.shape_cast %222 : vector<1x4x1x32xbf16> to vector<4x32xbf16>
    %c0_328 = arith.constant 0 : index
    %c0_329 = arith.constant 0 : index
    %c9_330 = arith.constant 9 : index
    %c0_331 = arith.constant 0 : index
    %224 = vector.load %arg1[%c0_328, %c0_329, %c9_330, %c0_331] : memref<2x4x18x34xbf16, #tpu.memory_space<vmem>>, vector<1x4x1x32xbf16>
    %225 = vector.shape_cast %224 : vector<1x4x1x32xbf16> to vector<4x32xbf16>
    %c0_332 = arith.constant 0 : index
    %c0_333 = arith.constant 0 : index
    %c9_334 = arith.constant 9 : index
    %c1_335 = arith.constant 1 : index
    %226 = vector.load %arg1[%c0_332, %c0_333, %c9_334, %c1_335] : memref<2x4x18x34xbf16, #tpu.memory_space<vmem>>, vector<1x4x1x32xbf16>
    %227 = vector.shape_cast %226 : vector<1x4x1x32xbf16> to vector<4x32xbf16>
    %c0_336 = arith.constant 0 : index
    %c0_337 = arith.constant 0 : index
    %c9_338 = arith.constant 9 : index
    %c2_339 = arith.constant 2 : index
    %228 = vector.load %arg1[%c0_336, %c0_337, %c9_338, %c2_339] : memref<2x4x18x34xbf16, #tpu.memory_space<vmem>>, vector<1x4x1x32xbf16>
    %229 = vector.shape_cast %228 : vector<1x4x1x32xbf16> to vector<4x32xbf16>
    %230 = tpu.concatenate %213, %215, %217, %219, %221, %223, %225, %227, %229 in 0 : vector<4x32xbf16>, vector<4x32xbf16>, vector<4x32xbf16>, vector<4x32xbf16>, vector<4x32xbf16>, vector<4x32xbf16>, vector<4x32xbf16>, vector<4x32xbf16>, vector<4x32xbf16> -> vector<36x32xbf16>
    %cst_340 = arith.constant dense<0.000000e+00> : vector<8x32xf32>
    %231 = tpu.matmul %0, %230, %cst_340 {dimension_numbers = #tpu.dot_dimension_numbers<[1], [0], [0], [1], [0, 0, 1, 1], [], []>} : vector<8x36xbf16>, vector<36x32xbf16>, vector<8x32xf32> -> vector<8x32xf32>
    %232 = vector.broadcast %1 : vector<8x1xf32> to vector<8x32xf32>
    %233 = arith.addf %231, %232 : vector<8x32xf32>
    %234 = vector.extract_strided_slice %233 {offsets = [0, 0], sizes = [4, 32], strides = [1, 1]} : vector<8x32xf32> to vector<4x32xf32>
    %c0_341 = arith.constant 0 : index
    %c0_342 = arith.constant 0 : index
    %c14 = arith.constant 14 : index
    %c0_343 = arith.constant 0 : index
    %235 = vector.load %arg4[%c0_341, %c0_342, %c14, %c0_343] : memref<2x4x32x32xf32, #tpu.memory_space<vmem>>, vector<1x4x1x32xf32>
    %236 = vector.shape_cast %235 : vector<1x4x1x32xf32> to vector<4x32xf32>
    %237 = vector.shape_cast %234 : vector<4x32xf32> to vector<1x4x1x32xf32>
    tpu.vector_store %arg4[%c0_341, %c0_342, %c14, %c0_343], %237 {strides = array<i32>} : memref<2x4x32x32xf32, #tpu.memory_space<vmem>>, vector<1x4x1x32xf32>,
    %238 = vector.extract_strided_slice %233 {offsets = [4, 0], sizes = [4, 32], strides = [1, 1]} : vector<8x32xf32> to vector<4x32xf32>
    %c0_344 = arith.constant 0 : index
    %c0_345 = arith.constant 0 : index
    %c15 = arith.constant 15 : index
    %c0_346 = arith.constant 0 : index
    %239 = vector.load %arg4[%c0_344, %c0_345, %c15, %c0_346] : memref<2x4x32x32xf32, #tpu.memory_space<vmem>>, vector<1x4x1x32xf32>
    %240 = vector.shape_cast %239 : vector<1x4x1x32xf32> to vector<4x32xf32>
    %241 = vector.shape_cast %238 : vector<4x32xf32> to vector<1x4x1x32xf32>
    tpu.vector_store %arg4[%c0_344, %c0_345, %c15, %c0_346], %241 {strides = array<i32>} : memref<2x4x32x32xf32, #tpu.memory_space<vmem>>, vector<1x4x1x32xf32>,
    %c0_347 = arith.constant 0 : index
    %c0_348 = arith.constant 0 : index
    %c8_349 = arith.constant 8 : index
    %c0_350 = arith.constant 0 : index
    %242 = vector.load %arg1[%c0_347, %c0_348, %c8_349, %c0_350] : memref<2x4x18x34xbf16, #tpu.memory_space<vmem>>, vector<1x4x1x32xbf16>
    %243 = vector.shape_cast %242 : vector<1x4x1x32xbf16> to vector<4x32xbf16>
    %c0_351 = arith.constant 0 : index
    %c0_352 = arith.constant 0 : index
    %c8_353 = arith.constant 8 : index
    %c1_354 = arith.constant 1 : index
    %244 = vector.load %arg1[%c0_351, %c0_352, %c8_353, %c1_354] : memref<2x4x18x34xbf16, #tpu.memory_space<vmem>>, vector<1x4x1x32xbf16>
    %245 = vector.shape_cast %244 : vector<1x4x1x32xbf16> to vector<4x32xbf16>
    %c0_355 = arith.constant 0 : index
    %c0_356 = arith.constant 0 : index
    %c8_357 = arith.constant 8 : index
    %c2_358 = arith.constant 2 : index
    %246 = vector.load %arg1[%c0_355, %c0_356, %c8_357, %c2_358] : memref<2x4x18x34xbf16, #tpu.memory_space<vmem>>, vector<1x4x1x32xbf16>
    %247 = vector.shape_cast %246 : vector<1x4x1x32xbf16> to vector<4x32xbf16>
    %c0_359 = arith.constant 0 : index
    %c0_360 = arith.constant 0 : index
    %c9_361 = arith.constant 9 : index
    %c0_362 = arith.constant 0 : index
    %248 = vector.load %arg1[%c0_359, %c0_360, %c9_361, %c0_362] : memref<2x4x18x34xbf16, #tpu.memory_space<vmem>>, vector<1x4x1x32xbf16>
    %249 = vector.shape_cast %248 : vector<1x4x1x32xbf16> to vector<4x32xbf16>
    %c0_363 = arith.constant 0 : index
    %c0_364 = arith.constant 0 : index
    %c9_365 = arith.constant 9 : index
    %c1_366 = arith.constant 1 : index
    %250 = vector.load %arg1[%c0_363, %c0_364, %c9_365, %c1_366] : memref<2x4x18x34xbf16, #tpu.memory_space<vmem>>, vector<1x4x1x32xbf16>
    %251 = vector.shape_cast %250 : vector<1x4x1x32xbf16> to vector<4x32xbf16>
    %c0_367 = arith.constant 0 : index
    %c0_368 = arith.constant 0 : index
    %c9_369 = arith.constant 9 : index
    %c2_370 = arith.constant 2 : index
    %252 = vector.load %arg1[%c0_367, %c0_368, %c9_369, %c2_370] : memref<2x4x18x34xbf16, #tpu.memory_space<vmem>>, vector<1x4x1x32xbf16>
    %253 = vector.shape_cast %252 : vector<1x4x1x32xbf16> to vector<4x32xbf16>
    %c0_371 = arith.constant 0 : index
    %c0_372 = arith.constant 0 : index
    %c10_373 = arith.constant 10 : index
    %c0_374 = arith.constant 0 : index
    %254 = vector.load %arg1[%c0_371, %c0_372, %c10_373, %c0_374] : memref<2x4x18x34xbf16, #tpu.memory_space<vmem>>, vector<1x4x1x32xbf16>
    %255 = vector.shape_cast %254 : vector<1x4x1x32xbf16> to vector<4x32xbf16>
    %c0_375 = arith.constant 0 : index
    %c0_376 = arith.constant 0 : index
    %c10_377 = arith.constant 10 : index
    %c1_378 = arith.constant 1 : index
    %256 = vector.load %arg1[%c0_375, %c0_376, %c10_377, %c1_378] : memref<2x4x18x34xbf16, #tpu.memory_space<vmem>>, vector<1x4x1x32xbf16>
    %257 = vector.shape_cast %256 : vector<1x4x1x32xbf16> to vector<4x32xbf16>
    %c0_379 = arith.constant 0 : index
    %c0_380 = arith.constant 0 : index
    %c10_381 = arith.constant 10 : index
    %c2_382 = arith.constant 2 : index
    %258 = vector.load %arg1[%c0_379, %c0_380, %c10_381, %c2_382] : memref<2x4x18x34xbf16, #tpu.memory_space<vmem>>, vector<1x4x1x32xbf16>
    %259 = vector.shape_cast %258 : vector<1x4x1x32xbf16> to vector<4x32xbf16>
    %260 = tpu.concatenate %243, %245, %247, %249, %251, %253, %255, %257, %259 in 0 : vector<4x32xbf16>, vector<4x32xbf16>, vector<4x32xbf16>, vector<4x32xbf16>, vector<4x32xbf16>, vector<4x32xbf16>, vector<4x32xbf16>, vector<4x32xbf16>, vector<4x32xbf16> -> vector<36x32xbf16>
    %cst_383 = arith.constant dense<0.000000e+00> : vector<8x32xf32>
    %261 = tpu.matmul %0, %260, %cst_383 {dimension_numbers = #tpu.dot_dimension_numbers<[1], [0], [0], [1], [0, 0, 1, 1], [], []>} : vector<8x36xbf16>, vector<36x32xbf16>, vector<8x32xf32> -> vector<8x32xf32>
    %262 = vector.broadcast %1 : vector<8x1xf32> to vector<8x32xf32>
    %263 = arith.addf %261, %262 : vector<8x32xf32>
    %264 = vector.extract_strided_slice %263 {offsets = [0, 0], sizes = [4, 32], strides = [1, 1]} : vector<8x32xf32> to vector<4x32xf32>
    %c0_384 = arith.constant 0 : index
    %c0_385 = arith.constant 0 : index
    %c16 = arith.constant 16 : index
    %c0_386 = arith.constant 0 : index
    %265 = vector.load %arg4[%c0_384, %c0_385, %c16, %c0_386] : memref<2x4x32x32xf32, #tpu.memory_space<vmem>>, vector<1x4x1x32xf32>
    %266 = vector.shape_cast %265 : vector<1x4x1x32xf32> to vector<4x32xf32>
    %267 = vector.shape_cast %264 : vector<4x32xf32> to vector<1x4x1x32xf32>
    tpu.vector_store %arg4[%c0_384, %c0_385, %c16, %c0_386], %267 {strides = array<i32>} : memref<2x4x32x32xf32, #tpu.memory_space<vmem>>, vector<1x4x1x32xf32>,
    %268 = vector.extract_strided_slice %263 {offsets = [4, 0], sizes = [4, 32], strides = [1, 1]} : vector<8x32xf32> to vector<4x32xf32>
    %c0_387 = arith.constant 0 : index
    %c0_388 = arith.constant 0 : index
    %c17 = arith.constant 17 : index
    %c0_389 = arith.constant 0 : index
    %269 = vector.load %arg4[%c0_387, %c0_388, %c17, %c0_389] : memref<2x4x32x32xf32, #tpu.memory_space<vmem>>, vector<1x4x1x32xf32>
    %270 = vector.shape_cast %269 : vector<1x4x1x32xf32> to vector<4x32xf32>
    %271 = vector.shape_cast %268 : vector<4x32xf32> to vector<1x4x1x32xf32>
    tpu.vector_store %arg4[%c0_387, %c0_388, %c17, %c0_389], %271 {strides = array<i32>} : memref<2x4x32x32xf32, #tpu.memory_space<vmem>>, vector<1x4x1x32xf32>,
    %c0_390 = arith.constant 0 : index
    %c0_391 = arith.constant 0 : index
    %c9_392 = arith.constant 9 : index
    %c0_393 = arith.constant 0 : index
    %272 = vector.load %arg1[%c0_390, %c0_391, %c9_392, %c0_393] : memref<2x4x18x34xbf16, #tpu.memory_space<vmem>>, vector<1x4x1x32xbf16>
    %273 = vector.shape_cast %272 : vector<1x4x1x32xbf16> to vector<4x32xbf16>
    %c0_394 = arith.constant 0 : index
    %c0_395 = arith.constant 0 : index
    %c9_396 = arith.constant 9 : index
    %c1_397 = arith.constant 1 : index
    %274 = vector.load %arg1[%c0_394, %c0_395, %c9_396, %c1_397] : memref<2x4x18x34xbf16, #tpu.memory_space<vmem>>, vector<1x4x1x32xbf16>
    %275 = vector.shape_cast %274 : vector<1x4x1x32xbf16> to vector<4x32xbf16>
    %c0_398 = arith.constant 0 : index
    %c0_399 = arith.constant 0 : index
    %c9_400 = arith.constant 9 : index
    %c2_401 = arith.constant 2 : index
    %276 = vector.load %arg1[%c0_398, %c0_399, %c9_400, %c2_401] : memref<2x4x18x34xbf16, #tpu.memory_space<vmem>>, vector<1x4x1x32xbf16>
    %277 = vector.shape_cast %276 : vector<1x4x1x32xbf16> to vector<4x32xbf16>
    %c0_402 = arith.constant 0 : index
    %c0_403 = arith.constant 0 : index
    %c10_404 = arith.constant 10 : index
    %c0_405 = arith.constant 0 : index
    %278 = vector.load %arg1[%c0_402, %c0_403, %c10_404, %c0_405] : memref<2x4x18x34xbf16, #tpu.memory_space<vmem>>, vector<1x4x1x32xbf16>
    %279 = vector.shape_cast %278 : vector<1x4x1x32xbf16> to vector<4x32xbf16>
    %c0_406 = arith.constant 0 : index
    %c0_407 = arith.constant 0 : index
    %c10_408 = arith.constant 10 : index
    %c1_409 = arith.constant 1 : index
    %280 = vector.load %arg1[%c0_406, %c0_407, %c10_408, %c1_409] : memref<2x4x18x34xbf16, #tpu.memory_space<vmem>>, vector<1x4x1x32xbf16>
    %281 = vector.shape_cast %280 : vector<1x4x1x32xbf16> to vector<4x32xbf16>
    %c0_410 = arith.constant 0 : index
    %c0_411 = arith.constant 0 : index
    %c10_412 = arith.constant 10 : index
    %c2_413 = arith.constant 2 : index
    %282 = vector.load %arg1[%c0_410, %c0_411, %c10_412, %c2_413] : memref<2x4x18x34xbf16, #tpu.memory_space<vmem>>, vector<1x4x1x32xbf16>
    %283 = vector.shape_cast %282 : vector<1x4x1x32xbf16> to vector<4x32xbf16>
    %c0_414 = arith.constant 0 : index
    %c0_415 = arith.constant 0 : index
    %c11_416 = arith.constant 11 : index
    %c0_417 = arith.constant 0 : index
    %284 = vector.load %arg1[%c0_414, %c0_415, %c11_416, %c0_417] : memref<2x4x18x34xbf16, #tpu.memory_space<vmem>>, vector<1x4x1x32xbf16>
    %285 = vector.shape_cast %284 : vector<1x4x1x32xbf16> to vector<4x32xbf16>
    %c0_418 = arith.constant 0 : index
    %c0_419 = arith.constant 0 : index
    %c11_420 = arith.constant 11 : index
    %c1_421 = arith.constant 1 : index
    %286 = vector.load %arg1[%c0_418, %c0_419, %c11_420, %c1_421] : memref<2x4x18x34xbf16, #tpu.memory_space<vmem>>, vector<1x4x1x32xbf16>
    %287 = vector.shape_cast %286 : vector<1x4x1x32xbf16> to vector<4x32xbf16>
    %c0_422 = arith.constant 0 : index
    %c0_423 = arith.constant 0 : index
    %c11_424 = arith.constant 11 : index
    %c2_425 = arith.constant 2 : index
    %288 = vector.load %arg1[%c0_422, %c0_423, %c11_424, %c2_425] : memref<2x4x18x34xbf16, #tpu.memory_space<vmem>>, vector<1x4x1x32xbf16>
    %289 = vector.shape_cast %288 : vector<1x4x1x32xbf16> to vector<4x32xbf16>
    %290 = tpu.concatenate %273, %275, %277, %279, %281, %283, %285, %287, %289 in 0 : vector<4x32xbf16>, vector<4x32xbf16>, vector<4x32xbf16>, vector<4x32xbf16>, vector<4x32xbf16>, vector<4x32xbf16>, vector<4x32xbf16>, vector<4x32xbf16>, vector<4x32xbf16> -> vector<36x32xbf16>
    %cst_426 = arith.constant dense<0.000000e+00> : vector<8x32xf32>
    %291 = tpu.matmul %0, %290, %cst_426 {dimension_numbers = #tpu.dot_dimension_numbers<[1], [0], [0], [1], [0, 0, 1, 1], [], []>} : vector<8x36xbf16>, vector<36x32xbf16>, vector<8x32xf32> -> vector<8x32xf32>
    %292 = vector.broadcast %1 : vector<8x1xf32> to vector<8x32xf32>
    %293 = arith.addf %291, %292 : vector<8x32xf32>
    %294 = vector.extract_strided_slice %293 {offsets = [0, 0], sizes = [4, 32], strides = [1, 1]} : vector<8x32xf32> to vector<4x32xf32>
    %c0_427 = arith.constant 0 : index
    %c0_428 = arith.constant 0 : index
    %c18 = arith.constant 18 : index
    %c0_429 = arith.constant 0 : index
    %295 = vector.load %arg4[%c0_427, %c0_428, %c18, %c0_429] : memref<2x4x32x32xf32, #tpu.memory_space<vmem>>, vector<1x4x1x32xf32>
    %296 = vector.shape_cast %295 : vector<1x4x1x32xf32> to vector<4x32xf32>
    %297 = vector.shape_cast %294 : vector<4x32xf32> to vector<1x4x1x32xf32>
    tpu.vector_store %arg4[%c0_427, %c0_428, %c18, %c0_429], %297 {strides = array<i32>} : memref<2x4x32x32xf32, #tpu.memory_space<vmem>>, vector<1x4x1x32xf32>,
    %298 = vector.extract_strided_slice %293 {offsets = [4, 0], sizes = [4, 32], strides = [1, 1]} : vector<8x32xf32> to vector<4x32xf32>
    %c0_430 = arith.constant 0 : index
    %c0_431 = arith.constant 0 : index
    %c19 = arith.constant 19 : index
    %c0_432 = arith.constant 0 : index
    %299 = vector.load %arg4[%c0_430, %c0_431, %c19, %c0_432] : memref<2x4x32x32xf32, #tpu.memory_space<vmem>>, vector<1x4x1x32xf32>
    %300 = vector.shape_cast %299 : vector<1x4x1x32xf32> to vector<4x32xf32>
    %301 = vector.shape_cast %298 : vector<4x32xf32> to vector<1x4x1x32xf32>
    tpu.vector_store %arg4[%c0_430, %c0_431, %c19, %c0_432], %301 {strides = array<i32>} : memref<2x4x32x32xf32, #tpu.memory_space<vmem>>, vector<1x4x1x32xf32>,
    %c0_433 = arith.constant 0 : index
    %c0_434 = arith.constant 0 : index
    %c10_435 = arith.constant 10 : index
    %c0_436 = arith.constant 0 : index
    %302 = vector.load %arg1[%c0_433, %c0_434, %c10_435, %c0_436] : memref<2x4x18x34xbf16, #tpu.memory_space<vmem>>, vector<1x4x1x32xbf16>
    %303 = vector.shape_cast %302 : vector<1x4x1x32xbf16> to vector<4x32xbf16>
    %c0_437 = arith.constant 0 : index
    %c0_438 = arith.constant 0 : index
    %c10_439 = arith.constant 10 : index
    %c1_440 = arith.constant 1 : index
    %304 = vector.load %arg1[%c0_437, %c0_438, %c10_439, %c1_440] : memref<2x4x18x34xbf16, #tpu.memory_space<vmem>>, vector<1x4x1x32xbf16>
    %305 = vector.shape_cast %304 : vector<1x4x1x32xbf16> to vector<4x32xbf16>
    %c0_441 = arith.constant 0 : index
    %c0_442 = arith.constant 0 : index
    %c10_443 = arith.constant 10 : index
    %c2_444 = arith.constant 2 : index
    %306 = vector.load %arg1[%c0_441, %c0_442, %c10_443, %c2_444] : memref<2x4x18x34xbf16, #tpu.memory_space<vmem>>, vector<1x4x1x32xbf16>
    %307 = vector.shape_cast %306 : vector<1x4x1x32xbf16> to vector<4x32xbf16>
    %c0_445 = arith.constant 0 : index
    %c0_446 = arith.constant 0 : index
    %c11_447 = arith.constant 11 : index
    %c0_448 = arith.constant 0 : index
    %308 = vector.load %arg1[%c0_445, %c0_446, %c11_447, %c0_448] : memref<2x4x18x34xbf16, #tpu.memory_space<vmem>>, vector<1x4x1x32xbf16>
    %309 = vector.shape_cast %308 : vector<1x4x1x32xbf16> to vector<4x32xbf16>
    %c0_449 = arith.constant 0 : index
    %c0_450 = arith.constant 0 : index
    %c11_451 = arith.constant 11 : index
    %c1_452 = arith.constant 1 : index
    %310 = vector.load %arg1[%c0_449, %c0_450, %c11_451, %c1_452] : memref<2x4x18x34xbf16, #tpu.memory_space<vmem>>, vector<1x4x1x32xbf16>
    %311 = vector.shape_cast %310 : vector<1x4x1x32xbf16> to vector<4x32xbf16>
    %c0_453 = arith.constant 0 : index
    %c0_454 = arith.constant 0 : index
    %c11_455 = arith.constant 11 : index
    %c2_456 = arith.constant 2 : index
    %312 = vector.load %arg1[%c0_453, %c0_454, %c11_455, %c2_456] : memref<2x4x18x34xbf16, #tpu.memory_space<vmem>>, vector<1x4x1x32xbf16>
    %313 = vector.shape_cast %312 : vector<1x4x1x32xbf16> to vector<4x32xbf16>
    %c0_457 = arith.constant 0 : index
    %c0_458 = arith.constant 0 : index
    %c12_459 = arith.constant 12 : index
    %c0_460 = arith.constant 0 : index
    %314 = vector.load %arg1[%c0_457, %c0_458, %c12_459, %c0_460] : memref<2x4x18x34xbf16, #tpu.memory_space<vmem>>, vector<1x4x1x32xbf16>
    %315 = vector.shape_cast %314 : vector<1x4x1x32xbf16> to vector<4x32xbf16>
    %c0_461 = arith.constant 0 : index
    %c0_462 = arith.constant 0 : index
    %c12_463 = arith.constant 12 : index
    %c1_464 = arith.constant 1 : index
    %316 = vector.load %arg1[%c0_461, %c0_462, %c12_463, %c1_464] : memref<2x4x18x34xbf16, #tpu.memory_space<vmem>>, vector<1x4x1x32xbf16>
    %317 = vector.shape_cast %316 : vector<1x4x1x32xbf16> to vector<4x32xbf16>
    %c0_465 = arith.constant 0 : index
    %c0_466 = arith.constant 0 : index
    %c12_467 = arith.constant 12 : index
    %c2_468 = arith.constant 2 : index
    %318 = vector.load %arg1[%c0_465, %c0_466, %c12_467, %c2_468] : memref<2x4x18x34xbf16, #tpu.memory_space<vmem>>, vector<1x4x1x32xbf16>
    %319 = vector.shape_cast %318 : vector<1x4x1x32xbf16> to vector<4x32xbf16>
    %320 = tpu.concatenate %303, %305, %307, %309, %311, %313, %315, %317, %319 in 0 : vector<4x32xbf16>, vector<4x32xbf16>, vector<4x32xbf16>, vector<4x32xbf16>, vector<4x32xbf16>, vector<4x32xbf16>, vector<4x32xbf16>, vector<4x32xbf16>, vector<4x32xbf16> -> vector<36x32xbf16>
    %cst_469 = arith.constant dense<0.000000e+00> : vector<8x32xf32>
    %321 = tpu.matmul %0, %320, %cst_469 {dimension_numbers = #tpu.dot_dimension_numbers<[1], [0], [0], [1], [0, 0, 1, 1], [], []>} : vector<8x36xbf16>, vector<36x32xbf16>, vector<8x32xf32> -> vector<8x32xf32>
    %322 = vector.broadcast %1 : vector<8x1xf32> to vector<8x32xf32>
    %323 = arith.addf %321, %322 : vector<8x32xf32>
    %324 = vector.extract_strided_slice %323 {offsets = [0, 0], sizes = [4, 32], strides = [1, 1]} : vector<8x32xf32> to vector<4x32xf32>
    %c0_470 = arith.constant 0 : index
    %c0_471 = arith.constant 0 : index
    %c20 = arith.constant 20 : index
    %c0_472 = arith.constant 0 : index
    %325 = vector.load %arg4[%c0_470, %c0_471, %c20, %c0_472] : memref<2x4x32x32xf32, #tpu.memory_space<vmem>>, vector<1x4x1x32xf32>
    %326 = vector.shape_cast %325 : vector<1x4x1x32xf32> to vector<4x32xf32>
    %327 = vector.shape_cast %324 : vector<4x32xf32> to vector<1x4x1x32xf32>
    tpu.vector_store %arg4[%c0_470, %c0_471, %c20, %c0_472], %327 {strides = array<i32>} : memref<2x4x32x32xf32, #tpu.memory_space<vmem>>, vector<1x4x1x32xf32>,
    %328 = vector.extract_strided_slice %323 {offsets = [4, 0], sizes = [4, 32], strides = [1, 1]} : vector<8x32xf32> to vector<4x32xf32>
    %c0_473 = arith.constant 0 : index
    %c0_474 = arith.constant 0 : index
    %c21 = arith.constant 21 : index
    %c0_475 = arith.constant 0 : index
    %329 = vector.load %arg4[%c0_473, %c0_474, %c21, %c0_475] : memref<2x4x32x32xf32, #tpu.memory_space<vmem>>, vector<1x4x1x32xf32>
    %330 = vector.shape_cast %329 : vector<1x4x1x32xf32> to vector<4x32xf32>
    %331 = vector.shape_cast %328 : vector<4x32xf32> to vector<1x4x1x32xf32>
    tpu.vector_store %arg4[%c0_473, %c0_474, %c21, %c0_475], %331 {strides = array<i32>} : memref<2x4x32x32xf32, #tpu.memory_space<vmem>>, vector<1x4x1x32xf32>,
    %c0_476 = arith.constant 0 : index
    %c0_477 = arith.constant 0 : index
    %c11_478 = arith.constant 11 : index
    %c0_479 = arith.constant 0 : index
    %332 = vector.load %arg1[%c0_476, %c0_477, %c11_478, %c0_479] : memref<2x4x18x34xbf16, #tpu.memory_space<vmem>>, vector<1x4x1x32xbf16>
    %333 = vector.shape_cast %332 : vector<1x4x1x32xbf16> to vector<4x32xbf16>
    %c0_480 = arith.constant 0 : index
    %c0_481 = arith.constant 0 : index
    %c11_482 = arith.constant 11 : index
    %c1_483 = arith.constant 1 : index
    %334 = vector.load %arg1[%c0_480, %c0_481, %c11_482, %c1_483] : memref<2x4x18x34xbf16, #tpu.memory_space<vmem>>, vector<1x4x1x32xbf16>
    %335 = vector.shape_cast %334 : vector<1x4x1x32xbf16> to vector<4x32xbf16>
    %c0_484 = arith.constant 0 : index
    %c0_485 = arith.constant 0 : index
    %c11_486 = arith.constant 11 : index
    %c2_487 = arith.constant 2 : index
    %336 = vector.load %arg1[%c0_484, %c0_485, %c11_486, %c2_487] : memref<2x4x18x34xbf16, #tpu.memory_space<vmem>>, vector<1x4x1x32xbf16>
    %337 = vector.shape_cast %336 : vector<1x4x1x32xbf16> to vector<4x32xbf16>
    %c0_488 = arith.constant 0 : index
    %c0_489 = arith.constant 0 : index
    %c12_490 = arith.constant 12 : index
    %c0_491 = arith.constant 0 : index
    %338 = vector.load %arg1[%c0_488, %c0_489, %c12_490, %c0_491] : memref<2x4x18x34xbf16, #tpu.memory_space<vmem>>, vector<1x4x1x32xbf16>
    %339 = vector.shape_cast %338 : vector<1x4x1x32xbf16> to vector<4x32xbf16>
    %c0_492 = arith.constant 0 : index
    %c0_493 = arith.constant 0 : index
    %c12_494 = arith.constant 12 : index
    %c1_495 = arith.constant 1 : index
    %340 = vector.load %arg1[%c0_492, %c0_493, %c12_494, %c1_495] : memref<2x4x18x34xbf16, #tpu.memory_space<vmem>>, vector<1x4x1x32xbf16>
    %341 = vector.shape_cast %340 : vector<1x4x1x32xbf16> to vector<4x32xbf16>
    %c0_496 = arith.constant 0 : index
    %c0_497 = arith.constant 0 : index
    %c12_498 = arith.constant 12 : index
    %c2_499 = arith.constant 2 : index
    %342 = vector.load %arg1[%c0_496, %c0_497, %c12_498, %c2_499] : memref<2x4x18x34xbf16, #tpu.memory_space<vmem>>, vector<1x4x1x32xbf16>
    %343 = vector.shape_cast %342 : vector<1x4x1x32xbf16> to vector<4x32xbf16>
    %c0_500 = arith.constant 0 : index
    %c0_501 = arith.constant 0 : index
    %c13_502 = arith.constant 13 : index
    %c0_503 = arith.constant 0 : index
    %344 = vector.load %arg1[%c0_500, %c0_501, %c13_502, %c0_503] : memref<2x4x18x34xbf16, #tpu.memory_space<vmem>>, vector<1x4x1x32xbf16>
    %345 = vector.shape_cast %344 : vector<1x4x1x32xbf16> to vector<4x32xbf16>
    %c0_504 = arith.constant 0 : index
    %c0_505 = arith.constant 0 : index
    %c13_506 = arith.constant 13 : index
    %c1_507 = arith.constant 1 : index
    %346 = vector.load %arg1[%c0_504, %c0_505, %c13_506, %c1_507] : memref<2x4x18x34xbf16, #tpu.memory_space<vmem>>, vector<1x4x1x32xbf16>
    %347 = vector.shape_cast %346 : vector<1x4x1x32xbf16> to vector<4x32xbf16>
    %c0_508 = arith.constant 0 : index
    %c0_509 = arith.constant 0 : index
    %c13_510 = arith.constant 13 : index
    %c2_511 = arith.constant 2 : index
    %348 = vector.load %arg1[%c0_508, %c0_509, %c13_510, %c2_511] : memref<2x4x18x34xbf16, #tpu.memory_space<vmem>>, vector<1x4x1x32xbf16>
    %349 = vector.shape_cast %348 : vector<1x4x1x32xbf16> to vector<4x32xbf16>
    %350 = tpu.concatenate %333, %335, %337, %339, %341, %343, %345, %347, %349 in 0 : vector<4x32xbf16>, vector<4x32xbf16>, vector<4x32xbf16>, vector<4x32xbf16>, vector<4x32xbf16>, vector<4x32xbf16>, vector<4x32xbf16>, vector<4x32xbf16>, vector<4x32xbf16> -> vector<36x32xbf16>
    %cst_512 = arith.constant dense<0.000000e+00> : vector<8x32xf32>
    %351 = tpu.matmul %0, %350, %cst_512 {dimension_numbers = #tpu.dot_dimension_numbers<[1], [0], [0], [1], [0, 0, 1, 1], [], []>} : vector<8x36xbf16>, vector<36x32xbf16>, vector<8x32xf32> -> vector<8x32xf32>
    %352 = vector.broadcast %1 : vector<8x1xf32> to vector<8x32xf32>
    %353 = arith.addf %351, %352 : vector<8x32xf32>
    %354 = vector.extract_strided_slice %353 {offsets = [0, 0], sizes = [4, 32], strides = [1, 1]} : vector<8x32xf32> to vector<4x32xf32>
    %c0_513 = arith.constant 0 : index
    %c0_514 = arith.constant 0 : index
    %c22 = arith.constant 22 : index
    %c0_515 = arith.constant 0 : index
    %355 = vector.load %arg4[%c0_513, %c0_514, %c22, %c0_515] : memref<2x4x32x32xf32, #tpu.memory_space<vmem>>, vector<1x4x1x32xf32>
    %356 = vector.shape_cast %355 : vector<1x4x1x32xf32> to vector<4x32xf32>
    %357 = vector.shape_cast %354 : vector<4x32xf32> to vector<1x4x1x32xf32>
    tpu.vector_store %arg4[%c0_513, %c0_514, %c22, %c0_515], %357 {strides = array<i32>} : memref<2x4x32x32xf32, #tpu.memory_space<vmem>>, vector<1x4x1x32xf32>,
    %358 = vector.extract_strided_slice %353 {offsets = [4, 0], sizes = [4, 32], strides = [1, 1]} : vector<8x32xf32> to vector<4x32xf32>
    %c0_516 = arith.constant 0 : index
    %c0_517 = arith.constant 0 : index
    %c23 = arith.constant 23 : index
    %c0_518 = arith.constant 0 : index
    %359 = vector.load %arg4[%c0_516, %c0_517, %c23, %c0_518] : memref<2x4x32x32xf32, #tpu.memory_space<vmem>>, vector<1x4x1x32xf32>
    %360 = vector.shape_cast %359 : vector<1x4x1x32xf32> to vector<4x32xf32>
    %361 = vector.shape_cast %358 : vector<4x32xf32> to vector<1x4x1x32xf32>
    tpu.vector_store %arg4[%c0_516, %c0_517, %c23, %c0_518], %361 {strides = array<i32>} : memref<2x4x32x32xf32, #tpu.memory_space<vmem>>, vector<1x4x1x32xf32>,
    %c0_519 = arith.constant 0 : index
    %c0_520 = arith.constant 0 : index
    %c12_521 = arith.constant 12 : index
    %c0_522 = arith.constant 0 : index
    %362 = vector.load %arg1[%c0_519, %c0_520, %c12_521, %c0_522] : memref<2x4x18x34xbf16, #tpu.memory_space<vmem>>, vector<1x4x1x32xbf16>
    %363 = vector.shape_cast %362 : vector<1x4x1x32xbf16> to vector<4x32xbf16>
    %c0_523 = arith.constant 0 : index
    %c0_524 = arith.constant 0 : index
    %c12_525 = arith.constant 12 : index
    %c1_526 = arith.constant 1 : index
    %364 = vector.load %arg1[%c0_523, %c0_524, %c12_525, %c1_526] : memref<2x4x18x34xbf16, #tpu.memory_space<vmem>>, vector<1x4x1x32xbf16>
    %365 = vector.shape_cast %364 : vector<1x4x1x32xbf16> to vector<4x32xbf16>
    %c0_527 = arith.constant 0 : index
    %c0_528 = arith.constant 0 : index
    %c12_529 = arith.constant 12 : index
    %c2_530 = arith.constant 2 : index
    %366 = vector.load %arg1[%c0_527, %c0_528, %c12_529, %c2_530] : memref<2x4x18x34xbf16, #tpu.memory_space<vmem>>, vector<1x4x1x32xbf16>
    %367 = vector.shape_cast %366 : vector<1x4x1x32xbf16> to vector<4x32xbf16>
    %c0_531 = arith.constant 0 : index
    %c0_532 = arith.constant 0 : index
    %c13_533 = arith.constant 13 : index
    %c0_534 = arith.constant 0 : index
    %368 = vector.load %arg1[%c0_531, %c0_532, %c13_533, %c0_534] : memref<2x4x18x34xbf16, #tpu.memory_space<vmem>>, vector<1x4x1x32xbf16>
    %369 = vector.shape_cast %368 : vector<1x4x1x32xbf16> to vector<4x32xbf16>
    %c0_535 = arith.constant 0 : index
    %c0_536 = arith.constant 0 : index
    %c13_537 = arith.constant 13 : index
    %c1_538 = arith.constant 1 : index
    %370 = vector.load %arg1[%c0_535, %c0_536, %c13_537, %c1_538] : memref<2x4x18x34xbf16, #tpu.memory_space<vmem>>, vector<1x4x1x32xbf16>
    %371 = vector.shape_cast %370 : vector<1x4x1x32xbf16> to vector<4x32xbf16>
    %c0_539 = arith.constant 0 : index
    %c0_540 = arith.constant 0 : index
    %c13_541 = arith.constant 13 : index
    %c2_542 = arith.constant 2 : index
    %372 = vector.load %arg1[%c0_539, %c0_540, %c13_541, %c2_542] : memref<2x4x18x34xbf16, #tpu.memory_space<vmem>>, vector<1x4x1x32xbf16>
    %373 = vector.shape_cast %372 : vector<1x4x1x32xbf16> to vector<4x32xbf16>
    %c0_543 = arith.constant 0 : index
    %c0_544 = arith.constant 0 : index
    %c14_545 = arith.constant 14 : index
    %c0_546 = arith.constant 0 : index
    %374 = vector.load %arg1[%c0_543, %c0_544, %c14_545, %c0_546] : memref<2x4x18x34xbf16, #tpu.memory_space<vmem>>, vector<1x4x1x32xbf16>
    %375 = vector.shape_cast %374 : vector<1x4x1x32xbf16> to vector<4x32xbf16>
    %c0_547 = arith.constant 0 : index
    %c0_548 = arith.constant 0 : index
    %c14_549 = arith.constant 14 : index
    %c1_550 = arith.constant 1 : index
    %376 = vector.load %arg1[%c0_547, %c0_548, %c14_549, %c1_550] : memref<2x4x18x34xbf16, #tpu.memory_space<vmem>>, vector<1x4x1x32xbf16>
    %377 = vector.shape_cast %376 : vector<1x4x1x32xbf16> to vector<4x32xbf16>
    %c0_551 = arith.constant 0 : index
    %c0_552 = arith.constant 0 : index
    %c14_553 = arith.constant 14 : index
    %c2_554 = arith.constant 2 : index
    %378 = vector.load %arg1[%c0_551, %c0_552, %c14_553, %c2_554] : memref<2x4x18x34xbf16, #tpu.memory_space<vmem>>, vector<1x4x1x32xbf16>
    %379 = vector.shape_cast %378 : vector<1x4x1x32xbf16> to vector<4x32xbf16>
    %380 = tpu.concatenate %363, %365, %367, %369, %371, %373, %375, %377, %379 in 0 : vector<4x32xbf16>, vector<4x32xbf16>, vector<4x32xbf16>, vector<4x32xbf16>, vector<4x32xbf16>, vector<4x32xbf16>, vector<4x32xbf16>, vector<4x32xbf16>, vector<4x32xbf16> -> vector<36x32xbf16>
    %cst_555 = arith.constant dense<0.000000e+00> : vector<8x32xf32>
    %381 = tpu.matmul %0, %380, %cst_555 {dimension_numbers = #tpu.dot_dimension_numbers<[1], [0], [0], [1], [0, 0, 1, 1], [], []>} : vector<8x36xbf16>, vector<36x32xbf16>, vector<8x32xf32> -> vector<8x32xf32>
    %382 = vector.broadcast %1 : vector<8x1xf32> to vector<8x32xf32>
    %383 = arith.addf %381, %382 : vector<8x32xf32>
    %384 = vector.extract_strided_slice %383 {offsets = [0, 0], sizes = [4, 32], strides = [1, 1]} : vector<8x32xf32> to vector<4x32xf32>
    %c0_556 = arith.constant 0 : index
    %c0_557 = arith.constant 0 : index
    %c24 = arith.constant 24 : index
    %c0_558 = arith.constant 0 : index
    %385 = vector.load %arg4[%c0_556, %c0_557, %c24, %c0_558] : memref<2x4x32x32xf32, #tpu.memory_space<vmem>>, vector<1x4x1x32xf32>
    %386 = vector.shape_cast %385 : vector<1x4x1x32xf32> to vector<4x32xf32>
    %387 = vector.shape_cast %384 : vector<4x32xf32> to vector<1x4x1x32xf32>
    tpu.vector_store %arg4[%c0_556, %c0_557, %c24, %c0_558], %387 {strides = array<i32>} : memref<2x4x32x32xf32, #tpu.memory_space<vmem>>, vector<1x4x1x32xf32>,
    %388 = vector.extract_strided_slice %383 {offsets = [4, 0], sizes = [4, 32], strides = [1, 1]} : vector<8x32xf32> to vector<4x32xf32>
    %c0_559 = arith.constant 0 : index
    %c0_560 = arith.constant 0 : index
    %c25 = arith.constant 25 : index
    %c0_561 = arith.constant 0 : index
    %389 = vector.load %arg4[%c0_559, %c0_560, %c25, %c0_561] : memref<2x4x32x32xf32, #tpu.memory_space<vmem>>, vector<1x4x1x32xf32>
    %390 = vector.shape_cast %389 : vector<1x4x1x32xf32> to vector<4x32xf32>
    %391 = vector.shape_cast %388 : vector<4x32xf32> to vector<1x4x1x32xf32>
    tpu.vector_store %arg4[%c0_559, %c0_560, %c25, %c0_561], %391 {strides = array<i32>} : memref<2x4x32x32xf32, #tpu.memory_space<vmem>>, vector<1x4x1x32xf32>,
    %c0_562 = arith.constant 0 : index
    %c0_563 = arith.constant 0 : index
    %c13_564 = arith.constant 13 : index
    %c0_565 = arith.constant 0 : index
    %392 = vector.load %arg1[%c0_562, %c0_563, %c13_564, %c0_565] : memref<2x4x18x34xbf16, #tpu.memory_space<vmem>>, vector<1x4x1x32xbf16>
    %393 = vector.shape_cast %392 : vector<1x4x1x32xbf16> to vector<4x32xbf16>
    %c0_566 = arith.constant 0 : index
    %c0_567 = arith.constant 0 : index
    %c13_568 = arith.constant 13 : index
    %c1_569 = arith.constant 1 : index
    %394 = vector.load %arg1[%c0_566, %c0_567, %c13_568, %c1_569] : memref<2x4x18x34xbf16, #tpu.memory_space<vmem>>, vector<1x4x1x32xbf16>
    %395 = vector.shape_cast %394 : vector<1x4x1x32xbf16> to vector<4x32xbf16>
    %c0_570 = arith.constant 0 : index
    %c0_571 = arith.constant 0 : index
    %c13_572 = arith.constant 13 : index
    %c2_573 = arith.constant 2 : index
    %396 = vector.load %arg1[%c0_570, %c0_571, %c13_572, %c2_573] : memref<2x4x18x34xbf16, #tpu.memory_space<vmem>>, vector<1x4x1x32xbf16>
    %397 = vector.shape_cast %396 : vector<1x4x1x32xbf16> to vector<4x32xbf16>
    %c0_574 = arith.constant 0 : index
    %c0_575 = arith.constant 0 : index
    %c14_576 = arith.constant 14 : index
    %c0_577 = arith.constant 0 : index
    %398 = vector.load %arg1[%c0_574, %c0_575, %c14_576, %c0_577] : memref<2x4x18x34xbf16, #tpu.memory_space<vmem>>, vector<1x4x1x32xbf16>
    %399 = vector.shape_cast %398 : vector<1x4x1x32xbf16> to vector<4x32xbf16>
    %c0_578 = arith.constant 0 : index
    %c0_579 = arith.constant 0 : index
    %c14_580 = arith.constant 14 : index
    %c1_581 = arith.constant 1 : index
    %400 = vector.load %arg1[%c0_578, %c0_579, %c14_580, %c1_581] : memref<2x4x18x34xbf16, #tpu.memory_space<vmem>>, vector<1x4x1x32xbf16>
    %401 = vector.shape_cast %400 : vector<1x4x1x32xbf16> to vector<4x32xbf16>
    %c0_582 = arith.constant 0 : index
    %c0_583 = arith.constant 0 : index
    %c14_584 = arith.constant 14 : index
    %c2_585 = arith.constant 2 : index
    %402 = vector.load %arg1[%c0_582, %c0_583, %c14_584, %c2_585] : memref<2x4x18x34xbf16, #tpu.memory_space<vmem>>, vector<1x4x1x32xbf16>
    %403 = vector.shape_cast %402 : vector<1x4x1x32xbf16> to vector<4x32xbf16>
    %c0_586 = arith.constant 0 : index
    %c0_587 = arith.constant 0 : index
    %c15_588 = arith.constant 15 : index
    %c0_589 = arith.constant 0 : index
    %404 = vector.load %arg1[%c0_586, %c0_587, %c15_588, %c0_589] : memref<2x4x18x34xbf16, #tpu.memory_space<vmem>>, vector<1x4x1x32xbf16>
    %405 = vector.shape_cast %404 : vector<1x4x1x32xbf16> to vector<4x32xbf16>
    %c0_590 = arith.constant 0 : index
    %c0_591 = arith.constant 0 : index
    %c15_592 = arith.constant 15 : index
    %c1_593 = arith.constant 1 : index
    %406 = vector.load %arg1[%c0_590, %c0_591, %c15_592, %c1_593] : memref<2x4x18x34xbf16, #tpu.memory_space<vmem>>, vector<1x4x1x32xbf16>
    %407 = vector.shape_cast %406 : vector<1x4x1x32xbf16> to vector<4x32xbf16>
    %c0_594 = arith.constant 0 : index
    %c0_595 = arith.constant 0 : index
    %c15_596 = arith.constant 15 : index
    %c2_597 = arith.constant 2 : index
    %408 = vector.load %arg1[%c0_594, %c0_595, %c15_596, %c2_597] : memref<2x4x18x34xbf16, #tpu.memory_space<vmem>>, vector<1x4x1x32xbf16>
    %409 = vector.shape_cast %408 : vector<1x4x1x32xbf16> to vector<4x32xbf16>
    %410 = tpu.concatenate %393, %395, %397, %399, %401, %403, %405, %407, %409 in 0 : vector<4x32xbf16>, vector<4x32xbf16>, vector<4x32xbf16>, vector<4x32xbf16>, vector<4x32xbf16>, vector<4x32xbf16>, vector<4x32xbf16>, vector<4x32xbf16>, vector<4x32xbf16> -> vector<36x32xbf16>
    %cst_598 = arith.constant dense<0.000000e+00> : vector<8x32xf32>
    %411 = tpu.matmul %0, %410, %cst_598 {dimension_numbers = #tpu.dot_dimension_numbers<[1], [0], [0], [1], [0, 0, 1, 1], [], []>} : vector<8x36xbf16>, vector<36x32xbf16>, vector<8x32xf32> -> vector<8x32xf32>
    %412 = vector.broadcast %1 : vector<8x1xf32> to vector<8x32xf32>
    %413 = arith.addf %411, %412 : vector<8x32xf32>
    %414 = vector.extract_strided_slice %413 {offsets = [0, 0], sizes = [4, 32], strides = [1, 1]} : vector<8x32xf32> to vector<4x32xf32>
    %c0_599 = arith.constant 0 : index
    %c0_600 = arith.constant 0 : index
    %c26 = arith.constant 26 : index
    %c0_601 = arith.constant 0 : index
    %415 = vector.load %arg4[%c0_599, %c0_600, %c26, %c0_601] : memref<2x4x32x32xf32, #tpu.memory_space<vmem>>, vector<1x4x1x32xf32>
    %416 = vector.shape_cast %415 : vector<1x4x1x32xf32> to vector<4x32xf32>
    %417 = vector.shape_cast %414 : vector<4x32xf32> to vector<1x4x1x32xf32>
    tpu.vector_store %arg4[%c0_599, %c0_600, %c26, %c0_601], %417 {strides = array<i32>} : memref<2x4x32x32xf32, #tpu.memory_space<vmem>>, vector<1x4x1x32xf32>,
    %418 = vector.extract_strided_slice %413 {offsets = [4, 0], sizes = [4, 32], strides = [1, 1]} : vector<8x32xf32> to vector<4x32xf32>
    %c0_602 = arith.constant 0 : index
    %c0_603 = arith.constant 0 : index
    %c27 = arith.constant 27 : index
    %c0_604 = arith.constant 0 : index
    %419 = vector.load %arg4[%c0_602, %c0_603, %c27, %c0_604] : memref<2x4x32x32xf32, #tpu.memory_space<vmem>>, vector<1x4x1x32xf32>
    %420 = vector.shape_cast %419 : vector<1x4x1x32xf32> to vector<4x32xf32>
    %421 = vector.shape_cast %418 : vector<4x32xf32> to vector<1x4x1x32xf32>
    tpu.vector_store %arg4[%c0_602, %c0_603, %c27, %c0_604], %421 {strides = array<i32>} : memref<2x4x32x32xf32, #tpu.memory_space<vmem>>, vector<1x4x1x32xf32>,
    %c0_605 = arith.constant 0 : index
    %c0_606 = arith.constant 0 : index
    %c14_607 = arith.constant 14 : index
    %c0_608 = arith.constant 0 : index
    %422 = vector.load %arg1[%c0_605, %c0_606, %c14_607, %c0_608] : memref<2x4x18x34xbf16, #tpu.memory_space<vmem>>, vector<1x4x1x32xbf16>
    %423 = vector.shape_cast %422 : vector<1x4x1x32xbf16> to vector<4x32xbf16>
    %c0_609 = arith.constant 0 : index
    %c0_610 = arith.constant 0 : index
    %c14_611 = arith.constant 14 : index
    %c1_612 = arith.constant 1 : index
    %424 = vector.load %arg1[%c0_609, %c0_610, %c14_611, %c1_612] : memref<2x4x18x34xbf16, #tpu.memory_space<vmem>>, vector<1x4x1x32xbf16>
    %425 = vector.shape_cast %424 : vector<1x4x1x32xbf16> to vector<4x32xbf16>
    %c0_613 = arith.constant 0 : index
    %c0_614 = arith.constant 0 : index
    %c14_615 = arith.constant 14 : index
    %c2_616 = arith.constant 2 : index
    %426 = vector.load %arg1[%c0_613, %c0_614, %c14_615, %c2_616] : memref<2x4x18x34xbf16, #tpu.memory_space<vmem>>, vector<1x4x1x32xbf16>
    %427 = vector.shape_cast %426 : vector<1x4x1x32xbf16> to vector<4x32xbf16>
    %c0_617 = arith.constant 0 : index
    %c0_618 = arith.constant 0 : index
    %c15_619 = arith.constant 15 : index
    %c0_620 = arith.constant 0 : index
    %428 = vector.load %arg1[%c0_617, %c0_618, %c15_619, %c0_620] : memref<2x4x18x34xbf16, #tpu.memory_space<vmem>>, vector<1x4x1x32xbf16>
    %429 = vector.shape_cast %428 : vector<1x4x1x32xbf16> to vector<4x32xbf16>
    %c0_621 = arith.constant 0 : index
    %c0_622 = arith.constant 0 : index
    %c15_623 = arith.constant 15 : index
    %c1_624 = arith.constant 1 : index
    %430 = vector.load %arg1[%c0_621, %c0_622, %c15_623, %c1_624] : memref<2x4x18x34xbf16, #tpu.memory_space<vmem>>, vector<1x4x1x32xbf16>
    %431 = vector.shape_cast %430 : vector<1x4x1x32xbf16> to vector<4x32xbf16>
    %c0_625 = arith.constant 0 : index
    %c0_626 = arith.constant 0 : index
    %c15_627 = arith.constant 15 : index
    %c2_628 = arith.constant 2 : index
    %432 = vector.load %arg1[%c0_625, %c0_626, %c15_627, %c2_628] : memref<2x4x18x34xbf16, #tpu.memory_space<vmem>>, vector<1x4x1x32xbf16>
    %433 = vector.shape_cast %432 : vector<1x4x1x32xbf16> to vector<4x32xbf16>
    %c0_629 = arith.constant 0 : index
    %c0_630 = arith.constant 0 : index
    %c16_631 = arith.constant 16 : index
    %c0_632 = arith.constant 0 : index
    %434 = vector.load %arg1[%c0_629, %c0_630, %c16_631, %c0_632] : memref<2x4x18x34xbf16, #tpu.memory_space<vmem>>, vector<1x4x1x32xbf16>
    %435 = vector.shape_cast %434 : vector<1x4x1x32xbf16> to vector<4x32xbf16>
    %c0_633 = arith.constant 0 : index
    %c0_634 = arith.constant 0 : index
    %c16_635 = arith.constant 16 : index
    %c1_636 = arith.constant 1 : index
    %436 = vector.load %arg1[%c0_633, %c0_634, %c16_635, %c1_636] : memref<2x4x18x34xbf16, #tpu.memory_space<vmem>>, vector<1x4x1x32xbf16>
    %437 = vector.shape_cast %436 : vector<1x4x1x32xbf16> to vector<4x32xbf16>
    %c0_637 = arith.constant 0 : index
    %c0_638 = arith.constant 0 : index
    %c16_639 = arith.constant 16 : index
    %c2_640 = arith.constant 2 : index
    %438 = vector.load %arg1[%c0_637, %c0_638, %c16_639, %c2_640] : memref<2x4x18x34xbf16, #tpu.memory_space<vmem>>, vector<1x4x1x32xbf16>
    %439 = vector.shape_cast %438 : vector<1x4x1x32xbf16> to vector<4x32xbf16>
    %440 = tpu.concatenate %423, %425, %427, %429, %431, %433, %435, %437, %439 in 0 : vector<4x32xbf16>, vector<4x32xbf16>, vector<4x32xbf16>, vector<4x32xbf16>, vector<4x32xbf16>, vector<4x32xbf16>, vector<4x32xbf16>, vector<4x32xbf16>, vector<4x32xbf16> -> vector<36x32xbf16>
    %cst_641 = arith.constant dense<0.000000e+00> : vector<8x32xf32>
    %441 = tpu.matmul %0, %440, %cst_641 {dimension_numbers = #tpu.dot_dimension_numbers<[1], [0], [0], [1], [0, 0, 1, 1], [], []>} : vector<8x36xbf16>, vector<36x32xbf16>, vector<8x32xf32> -> vector<8x32xf32>
    %442 = vector.broadcast %1 : vector<8x1xf32> to vector<8x32xf32>
    %443 = arith.addf %441, %442 : vector<8x32xf32>
    %444 = vector.extract_strided_slice %443 {offsets = [0, 0], sizes = [4, 32], strides = [1, 1]} : vector<8x32xf32> to vector<4x32xf32>
    %c0_642 = arith.constant 0 : index
    %c0_643 = arith.constant 0 : index
    %c28 = arith.constant 28 : index
    %c0_644 = arith.constant 0 : index
    %445 = vector.load %arg4[%c0_642, %c0_643, %c28, %c0_644] : memref<2x4x32x32xf32, #tpu.memory_space<vmem>>, vector<1x4x1x32xf32>
    %446 = vector.shape_cast %445 : vector<1x4x1x32xf32> to vector<4x32xf32>
    %447 = vector.shape_cast %444 : vector<4x32xf32> to vector<1x4x1x32xf32>
    tpu.vector_store %arg4[%c0_642, %c0_643, %c28, %c0_644], %447 {strides = array<i32>} : memref<2x4x32x32xf32, #tpu.memory_space<vmem>>, vector<1x4x1x32xf32>,
    %448 = vector.extract_strided_slice %443 {offsets = [4, 0], sizes = [4, 32], strides = [1, 1]} : vector<8x32xf32> to vector<4x32xf32>
    %c0_645 = arith.constant 0 : index
    %c0_646 = arith.constant 0 : index
    %c29 = arith.constant 29 : index
    %c0_647 = arith.constant 0 : index
    %449 = vector.load %arg4[%c0_645, %c0_646, %c29, %c0_647] : memref<2x4x32x32xf32, #tpu.memory_space<vmem>>, vector<1x4x1x32xf32>
    %450 = vector.shape_cast %449 : vector<1x4x1x32xf32> to vector<4x32xf32>
    %451 = vector.shape_cast %448 : vector<4x32xf32> to vector<1x4x1x32xf32>
    tpu.vector_store %arg4[%c0_645, %c0_646, %c29, %c0_647], %451 {strides = array<i32>} : memref<2x4x32x32xf32, #tpu.memory_space<vmem>>, vector<1x4x1x32xf32>,
    %c0_648 = arith.constant 0 : index
    %c0_649 = arith.constant 0 : index
    %c15_650 = arith.constant 15 : index
    %c0_651 = arith.constant 0 : index
    %452 = vector.load %arg1[%c0_648, %c0_649, %c15_650, %c0_651] : memref<2x4x18x34xbf16, #tpu.memory_space<vmem>>, vector<1x4x1x32xbf16>
    %453 = vector.shape_cast %452 : vector<1x4x1x32xbf16> to vector<4x32xbf16>
    %c0_652 = arith.constant 0 : index
    %c0_653 = arith.constant 0 : index
    %c15_654 = arith.constant 15 : index
    %c1_655 = arith.constant 1 : index
    %454 = vector.load %arg1[%c0_652, %c0_653, %c15_654, %c1_655] : memref<2x4x18x34xbf16, #tpu.memory_space<vmem>>, vector<1x4x1x32xbf16>
    %455 = vector.shape_cast %454 : vector<1x4x1x32xbf16> to vector<4x32xbf16>
    %c0_656 = arith.constant 0 : index
    %c0_657 = arith.constant 0 : index
    %c15_658 = arith.constant 15 : index
    %c2_659 = arith.constant 2 : index
    %456 = vector.load %arg1[%c0_656, %c0_657, %c15_658, %c2_659] : memref<2x4x18x34xbf16, #tpu.memory_space<vmem>>, vector<1x4x1x32xbf16>
    %457 = vector.shape_cast %456 : vector<1x4x1x32xbf16> to vector<4x32xbf16>
    %c0_660 = arith.constant 0 : index
    %c0_661 = arith.constant 0 : index
    %c16_662 = arith.constant 16 : index
    %c0_663 = arith.constant 0 : index
    %458 = vector.load %arg1[%c0_660, %c0_661, %c16_662, %c0_663] : memref<2x4x18x34xbf16, #tpu.memory_space<vmem>>, vector<1x4x1x32xbf16>
    %459 = vector.shape_cast %458 : vector<1x4x1x32xbf16> to vector<4x32xbf16>
    %c0_664 = arith.constant 0 : index
    %c0_665 = arith.constant 0 : index
    %c16_666 = arith.constant 16 : index
    %c1_667 = arith.constant 1 : index
    %460 = vector.load %arg1[%c0_664, %c0_665, %c16_666, %c1_667] : memref<2x4x18x34xbf16, #tpu.memory_space<vmem>>, vector<1x4x1x32xbf16>
    %461 = vector.shape_cast %460 : vector<1x4x1x32xbf16> to vector<4x32xbf16>
    %c0_668 = arith.constant 0 : index
    %c0_669 = arith.constant 0 : index
    %c16_670 = arith.constant 16 : index
    %c2_671 = arith.constant 2 : index
    %462 = vector.load %arg1[%c0_668, %c0_669, %c16_670, %c2_671] : memref<2x4x18x34xbf16, #tpu.memory_space<vmem>>, vector<1x4x1x32xbf16>
    %463 = vector.shape_cast %462 : vector<1x4x1x32xbf16> to vector<4x32xbf16>
    %c0_672 = arith.constant 0 : index
    %c0_673 = arith.constant 0 : index
    %c17_674 = arith.constant 17 : index
    %c0_675 = arith.constant 0 : index
    %464 = vector.load %arg1[%c0_672, %c0_673, %c17_674, %c0_675] : memref<2x4x18x34xbf16, #tpu.memory_space<vmem>>, vector<1x4x1x32xbf16>
    %465 = vector.shape_cast %464 : vector<1x4x1x32xbf16> to vector<4x32xbf16>
    %c0_676 = arith.constant 0 : index
    %c0_677 = arith.constant 0 : index
    %c17_678 = arith.constant 17 : index
    %c1_679 = arith.constant 1 : index
    %466 = vector.load %arg1[%c0_676, %c0_677, %c17_678, %c1_679] : memref<2x4x18x34xbf16, #tpu.memory_space<vmem>>, vector<1x4x1x32xbf16>
    %467 = vector.shape_cast %466 : vector<1x4x1x32xbf16> to vector<4x32xbf16>
    %c0_680 = arith.constant 0 : index
    %c0_681 = arith.constant 0 : index
    %c17_682 = arith.constant 17 : index
    %c2_683 = arith.constant 2 : index
    %468 = vector.load %arg1[%c0_680, %c0_681, %c17_682, %c2_683] : memref<2x4x18x34xbf16, #tpu.memory_space<vmem>>, vector<1x4x1x32xbf16>
    %469 = vector.shape_cast %468 : vector<1x4x1x32xbf16> to vector<4x32xbf16>
    %470 = tpu.concatenate %453, %455, %457, %459, %461, %463, %465, %467, %469 in 0 : vector<4x32xbf16>, vector<4x32xbf16>, vector<4x32xbf16>, vector<4x32xbf16>, vector<4x32xbf16>, vector<4x32xbf16>, vector<4x32xbf16>, vector<4x32xbf16>, vector<4x32xbf16> -> vector<36x32xbf16>
    %cst_684 = arith.constant dense<0.000000e+00> : vector<8x32xf32>
    %471 = tpu.matmul %0, %470, %cst_684 {dimension_numbers = #tpu.dot_dimension_numbers<[1], [0], [0], [1], [0, 0, 1, 1], [], []>} : vector<8x36xbf16>, vector<36x32xbf16>, vector<8x32xf32> -> vector<8x32xf32>
    %472 = vector.broadcast %1 : vector<8x1xf32> to vector<8x32xf32>
    %473 = arith.addf %471, %472 : vector<8x32xf32>
    %474 = vector.extract_strided_slice %473 {offsets = [0, 0], sizes = [4, 32], strides = [1, 1]} : vector<8x32xf32> to vector<4x32xf32>
    %c0_685 = arith.constant 0 : index
    %c0_686 = arith.constant 0 : index
    %c30 = arith.constant 30 : index
    %c0_687 = arith.constant 0 : index
    %475 = vector.load %arg4[%c0_685, %c0_686, %c30, %c0_687] : memref<2x4x32x32xf32, #tpu.memory_space<vmem>>, vector<1x4x1x32xf32>
    %476 = vector.shape_cast %475 : vector<1x4x1x32xf32> to vector<4x32xf32>
    %477 = vector.shape_cast %474 : vector<4x32xf32> to vector<1x4x1x32xf32>
    tpu.vector_store %arg4[%c0_685, %c0_686, %c30, %c0_687], %477 {strides = array<i32>} : memref<2x4x32x32xf32, #tpu.memory_space<vmem>>, vector<1x4x1x32xf32>,
    %478 = vector.extract_strided_slice %473 {offsets = [4, 0], sizes = [4, 32], strides = [1, 1]} : vector<8x32xf32> to vector<4x32xf32>
    %c0_688 = arith.constant 0 : index
    %c0_689 = arith.constant 0 : index
    %c31 = arith.constant 31 : index
    %c0_690 = arith.constant 0 : index
    %479 = vector.load %arg4[%c0_688, %c0_689, %c31, %c0_690] : memref<2x4x32x32xf32, #tpu.memory_space<vmem>>, vector<1x4x1x32xf32>
    %480 = vector.shape_cast %479 : vector<1x4x1x32xf32> to vector<4x32xf32>
    %481 = vector.shape_cast %478 : vector<4x32xf32> to vector<1x4x1x32xf32>
    tpu.vector_store %arg4[%c0_688, %c0_689, %c31, %c0_690], %481 {strides = array<i32>} : memref<2x4x32x32xf32, #tpu.memory_space<vmem>>, vector<1x4x1x32xf32>,
    %c1_691 = arith.constant 1 : index
    %c0_692 = arith.constant 0 : index
    %c0_693 = arith.constant 0 : index
    %c0_694 = arith.constant 0 : index
    %482 = vector.load %arg1[%c1_691, %c0_692, %c0_693, %c0_694] : memref<2x4x18x34xbf16, #tpu.memory_space<vmem>>, vector<1x4x1x32xbf16>
    %483 = vector.shape_cast %482 : vector<1x4x1x32xbf16> to vector<4x32xbf16>
    %c1_695 = arith.constant 1 : index
    %c0_696 = arith.constant 0 : index
    %c0_697 = arith.constant 0 : index
    %c1_698 = arith.constant 1 : index
    %484 = vector.load %arg1[%c1_695, %c0_696, %c0_697, %c1_698] : memref<2x4x18x34xbf16, #tpu.memory_space<vmem>>, vector<1x4x1x32xbf16>
    %485 = vector.shape_cast %484 : vector<1x4x1x32xbf16> to vector<4x32xbf16>
    %c1_699 = arith.constant 1 : index
    %c0_700 = arith.constant 0 : index
    %c0_701 = arith.constant 0 : index
    %c2_702 = arith.constant 2 : index
    %486 = vector.load %arg1[%c1_699, %c0_700, %c0_701, %c2_702] : memref<2x4x18x34xbf16, #tpu.memory_space<vmem>>, vector<1x4x1x32xbf16>
    %487 = vector.shape_cast %486 : vector<1x4x1x32xbf16> to vector<4x32xbf16>
    %c1_703 = arith.constant 1 : index
    %c0_704 = arith.constant 0 : index
    %c1_705 = arith.constant 1 : index
    %c0_706 = arith.constant 0 : index
    %488 = vector.load %arg1[%c1_703, %c0_704, %c1_705, %c0_706] : memref<2x4x18x34xbf16, #tpu.memory_space<vmem>>, vector<1x4x1x32xbf16>
    %489 = vector.shape_cast %488 : vector<1x4x1x32xbf16> to vector<4x32xbf16>
    %c1_707 = arith.constant 1 : index
    %c0_708 = arith.constant 0 : index
    %c1_709 = arith.constant 1 : index
    %c1_710 = arith.constant 1 : index
    %490 = vector.load %arg1[%c1_707, %c0_708, %c1_709, %c1_710] : memref<2x4x18x34xbf16, #tpu.memory_space<vmem>>, vector<1x4x1x32xbf16>
    %491 = vector.shape_cast %490 : vector<1x4x1x32xbf16> to vector<4x32xbf16>
    %c1_711 = arith.constant 1 : index
    %c0_712 = arith.constant 0 : index
    %c1_713 = arith.constant 1 : index
    %c2_714 = arith.constant 2 : index
    %492 = vector.load %arg1[%c1_711, %c0_712, %c1_713, %c2_714] : memref<2x4x18x34xbf16, #tpu.memory_space<vmem>>, vector<1x4x1x32xbf16>
    %493 = vector.shape_cast %492 : vector<1x4x1x32xbf16> to vector<4x32xbf16>
    %c1_715 = arith.constant 1 : index
    %c0_716 = arith.constant 0 : index
    %c2_717 = arith.constant 2 : index
    %c0_718 = arith.constant 0 : index
    %494 = vector.load %arg1[%c1_715, %c0_716, %c2_717, %c0_718] : memref<2x4x18x34xbf16, #tpu.memory_space<vmem>>, vector<1x4x1x32xbf16>
    %495 = vector.shape_cast %494 : vector<1x4x1x32xbf16> to vector<4x32xbf16>
    %c1_719 = arith.constant 1 : index
    %c0_720 = arith.constant 0 : index
    %c2_721 = arith.constant 2 : index
    %c1_722 = arith.constant 1 : index
    %496 = vector.load %arg1[%c1_719, %c0_720, %c2_721, %c1_722] : memref<2x4x18x34xbf16, #tpu.memory_space<vmem>>, vector<1x4x1x32xbf16>
    %497 = vector.shape_cast %496 : vector<1x4x1x32xbf16> to vector<4x32xbf16>
    %c1_723 = arith.constant 1 : index
    %c0_724 = arith.constant 0 : index
    %c2_725 = arith.constant 2 : index
    %c2_726 = arith.constant 2 : index
    %498 = vector.load %arg1[%c1_723, %c0_724, %c2_725, %c2_726] : memref<2x4x18x34xbf16, #tpu.memory_space<vmem>>, vector<1x4x1x32xbf16>
    %499 = vector.shape_cast %498 : vector<1x4x1x32xbf16> to vector<4x32xbf16>
    %500 = tpu.concatenate %483, %485, %487, %489, %491, %493, %495, %497, %499 in 0 : vector<4x32xbf16>, vector<4x32xbf16>, vector<4x32xbf16>, vector<4x32xbf16>, vector<4x32xbf16>, vector<4x32xbf16>, vector<4x32xbf16>, vector<4x32xbf16>, vector<4x32xbf16> -> vector<36x32xbf16>
    %cst_727 = arith.constant dense<0.000000e+00> : vector<8x32xf32>
    %501 = tpu.matmul %0, %500, %cst_727 {dimension_numbers = #tpu.dot_dimension_numbers<[1], [0], [0], [1], [0, 0, 1, 1], [], []>} : vector<8x36xbf16>, vector<36x32xbf16>, vector<8x32xf32> -> vector<8x32xf32>
    %502 = vector.broadcast %1 : vector<8x1xf32> to vector<8x32xf32>
    %503 = arith.addf %501, %502 : vector<8x32xf32>
    %504 = vector.extract_strided_slice %503 {offsets = [0, 0], sizes = [4, 32], strides = [1, 1]} : vector<8x32xf32> to vector<4x32xf32>
    %c1_728 = arith.constant 1 : index
    %c0_729 = arith.constant 0 : index
    %c0_730 = arith.constant 0 : index
    %c0_731 = arith.constant 0 : index
    %505 = vector.load %arg4[%c1_728, %c0_729, %c0_730, %c0_731] : memref<2x4x32x32xf32, #tpu.memory_space<vmem>>, vector<1x4x1x32xf32>
    %506 = vector.shape_cast %505 : vector<1x4x1x32xf32> to vector<4x32xf32>
    %507 = vector.shape_cast %504 : vector<4x32xf32> to vector<1x4x1x32xf32>
    tpu.vector_store %arg4[%c1_728, %c0_729, %c0_730, %c0_731], %507 {strides = array<i32>} : memref<2x4x32x32xf32, #tpu.memory_space<vmem>>, vector<1x4x1x32xf32>,
    %508 = vector.extract_strided_slice %503 {offsets = [4, 0], sizes = [4, 32], strides = [1, 1]} : vector<8x32xf32> to vector<4x32xf32>
    %c1_732 = arith.constant 1 : index
    %c0_733 = arith.constant 0 : index
    %c1_734 = arith.constant 1 : index
    %c0_735 = arith.constant 0 : index
    %509 = vector.load %arg4[%c1_732, %c0_733, %c1_734, %c0_735] : memref<2x4x32x32xf32, #tpu.memory_space<vmem>>, vector<1x4x1x32xf32>
    %510 = vector.shape_cast %509 : vector<1x4x1x32xf32> to vector<4x32xf32>
    %511 = vector.shape_cast %508 : vector<4x32xf32> to vector<1x4x1x32xf32>
    tpu.vector_store %arg4[%c1_732, %c0_733, %c1_734, %c0_735], %511 {strides = array<i32>} : memref<2x4x32x32xf32, #tpu.memory_space<vmem>>, vector<1x4x1x32xf32>,
    %c1_736 = arith.constant 1 : index
    %c0_737 = arith.constant 0 : index
    %c1_738 = arith.constant 1 : index
    %c0_739 = arith.constant 0 : index
    %512 = vector.load %arg1[%c1_736, %c0_737, %c1_738, %c0_739] : memref<2x4x18x34xbf16, #tpu.memory_space<vmem>>, vector<1x4x1x32xbf16>
    %513 = vector.shape_cast %512 : vector<1x4x1x32xbf16> to vector<4x32xbf16>
    %c1_740 = arith.constant 1 : index
    %c0_741 = arith.constant 0 : index
    %c1_742 = arith.constant 1 : index
    %c1_743 = arith.constant 1 : index
    %514 = vector.load %arg1[%c1_740, %c0_741, %c1_742, %c1_743] : memref<2x4x18x34xbf16, #tpu.memory_space<vmem>>, vector<1x4x1x32xbf16>
    %515 = vector.shape_cast %514 : vector<1x4x1x32xbf16> to vector<4x32xbf16>
    %c1_744 = arith.constant 1 : index
    %c0_745 = arith.constant 0 : index
    %c1_746 = arith.constant 1 : index
    %c2_747 = arith.constant 2 : index
    %516 = vector.load %arg1[%c1_744, %c0_745, %c1_746, %c2_747] : memref<2x4x18x34xbf16, #tpu.memory_space<vmem>>, vector<1x4x1x32xbf16>
    %517 = vector.shape_cast %516 : vector<1x4x1x32xbf16> to vector<4x32xbf16>
    %c1_748 = arith.constant 1 : index
    %c0_749 = arith.constant 0 : index
    %c2_750 = arith.constant 2 : index
    %c0_751 = arith.constant 0 : index
    %518 = vector.load %arg1[%c1_748, %c0_749, %c2_750, %c0_751] : memref<2x4x18x34xbf16, #tpu.memory_space<vmem>>, vector<1x4x1x32xbf16>
    %519 = vector.shape_cast %518 : vector<1x4x1x32xbf16> to vector<4x32xbf16>
    %c1_752 = arith.constant 1 : index
    %c0_753 = arith.constant 0 : index
    %c2_754 = arith.constant 2 : index
    %c1_755 = arith.constant 1 : index
    %520 = vector.load %arg1[%c1_752, %c0_753, %c2_754, %c1_755] : memref<2x4x18x34xbf16, #tpu.memory_space<vmem>>, vector<1x4x1x32xbf16>
    %521 = vector.shape_cast %520 : vector<1x4x1x32xbf16> to vector<4x32xbf16>
    %c1_756 = arith.constant 1 : index
    %c0_757 = arith.constant 0 : index
    %c2_758 = arith.constant 2 : index
    %c2_759 = arith.constant 2 : index
    %522 = vector.load %arg1[%c1_756, %c0_757, %c2_758, %c2_759] : memref<2x4x18x34xbf16, #tpu.memory_space<vmem>>, vector<1x4x1x32xbf16>
    %523 = vector.shape_cast %522 : vector<1x4x1x32xbf16> to vector<4x32xbf16>
    %c1_760 = arith.constant 1 : index
    %c0_761 = arith.constant 0 : index
    %c3_762 = arith.constant 3 : index
    %c0_763 = arith.constant 0 : index
    %524 = vector.load %arg1[%c1_760, %c0_761, %c3_762, %c0_763] : memref<2x4x18x34xbf16, #tpu.memory_space<vmem>>, vector<1x4x1x32xbf16>
    %525 = vector.shape_cast %524 : vector<1x4x1x32xbf16> to vector<4x32xbf16>
    %c1_764 = arith.constant 1 : index
    %c0_765 = arith.constant 0 : index
    %c3_766 = arith.constant 3 : index
    %c1_767 = arith.constant 1 : index
    %526 = vector.load %arg1[%c1_764, %c0_765, %c3_766, %c1_767] : memref<2x4x18x34xbf16, #tpu.memory_space<vmem>>, vector<1x4x1x32xbf16>
    %527 = vector.shape_cast %526 : vector<1x4x1x32xbf16> to vector<4x32xbf16>
    %c1_768 = arith.constant 1 : index
    %c0_769 = arith.constant 0 : index
    %c3_770 = arith.constant 3 : index
    %c2_771 = arith.constant 2 : index
    %528 = vector.load %arg1[%c1_768, %c0_769, %c3_770, %c2_771] : memref<2x4x18x34xbf16, #tpu.memory_space<vmem>>, vector<1x4x1x32xbf16>
    %529 = vector.shape_cast %528 : vector<1x4x1x32xbf16> to vector<4x32xbf16>
    %530 = tpu.concatenate %513, %515, %517, %519, %521, %523, %525, %527, %529 in 0 : vector<4x32xbf16>, vector<4x32xbf16>, vector<4x32xbf16>, vector<4x32xbf16>, vector<4x32xbf16>, vector<4x32xbf16>, vector<4x32xbf16>, vector<4x32xbf16>, vector<4x32xbf16> -> vector<36x32xbf16>
    %cst_772 = arith.constant dense<0.000000e+00> : vector<8x32xf32>
    %531 = tpu.matmul %0, %530, %cst_772 {dimension_numbers = #tpu.dot_dimension_numbers<[1], [0], [0], [1], [0, 0, 1, 1], [], []>} : vector<8x36xbf16>, vector<36x32xbf16>, vector<8x32xf32> -> vector<8x32xf32>
    %532 = vector.broadcast %1 : vector<8x1xf32> to vector<8x32xf32>
    %533 = arith.addf %531, %532 : vector<8x32xf32>
    %534 = vector.extract_strided_slice %533 {offsets = [0, 0], sizes = [4, 32], strides = [1, 1]} : vector<8x32xf32> to vector<4x32xf32>
    %c1_773 = arith.constant 1 : index
    %c0_774 = arith.constant 0 : index
    %c2_775 = arith.constant 2 : index
    %c0_776 = arith.constant 0 : index
    %535 = vector.load %arg4[%c1_773, %c0_774, %c2_775, %c0_776] : memref<2x4x32x32xf32, #tpu.memory_space<vmem>>, vector<1x4x1x32xf32>
    %536 = vector.shape_cast %535 : vector<1x4x1x32xf32> to vector<4x32xf32>
    %537 = vector.shape_cast %534 : vector<4x32xf32> to vector<1x4x1x32xf32>
    tpu.vector_store %arg4[%c1_773, %c0_774, %c2_775, %c0_776], %537 {strides = array<i32>} : memref<2x4x32x32xf32, #tpu.memory_space<vmem>>, vector<1x4x1x32xf32>,
    %538 = vector.extract_strided_slice %533 {offsets = [4, 0], sizes = [4, 32], strides = [1, 1]} : vector<8x32xf32> to vector<4x32xf32>
    %c1_777 = arith.constant 1 : index
    %c0_778 = arith.constant 0 : index
    %c3_779 = arith.constant 3 : index
    %c0_780 = arith.constant 0 : index
    %539 = vector.load %arg4[%c1_777, %c0_778, %c3_779, %c0_780] : memref<2x4x32x32xf32, #tpu.memory_space<vmem>>, vector<1x4x1x32xf32>
    %540 = vector.shape_cast %539 : vector<1x4x1x32xf32> to vector<4x32xf32>
    %541 = vector.shape_cast %538 : vector<4x32xf32> to vector<1x4x1x32xf32>
    tpu.vector_store %arg4[%c1_777, %c0_778, %c3_779, %c0_780], %541 {strides = array<i32>} : memref<2x4x32x32xf32, #tpu.memory_space<vmem>>, vector<1x4x1x32xf32>,
    %c1_781 = arith.constant 1 : index
    %c0_782 = arith.constant 0 : index
    %c2_783 = arith.constant 2 : index
    %c0_784 = arith.constant 0 : index
    %542 = vector.load %arg1[%c1_781, %c0_782, %c2_783, %c0_784] : memref<2x4x18x34xbf16, #tpu.memory_space<vmem>>, vector<1x4x1x32xbf16>
    %543 = vector.shape_cast %542 : vector<1x4x1x32xbf16> to vector<4x32xbf16>
    %c1_785 = arith.constant 1 : index
    %c0_786 = arith.constant 0 : index
    %c2_787 = arith.constant 2 : index
    %c1_788 = arith.constant 1 : index
    %544 = vector.load %arg1[%c1_785, %c0_786, %c2_787, %c1_788] : memref<2x4x18x34xbf16, #tpu.memory_space<vmem>>, vector<1x4x1x32xbf16>
    %545 = vector.shape_cast %544 : vector<1x4x1x32xbf16> to vector<4x32xbf16>
    %c1_789 = arith.constant 1 : index
    %c0_790 = arith.constant 0 : index
    %c2_791 = arith.constant 2 : index
    %c2_792 = arith.constant 2 : index
    %546 = vector.load %arg1[%c1_789, %c0_790, %c2_791, %c2_792] : memref<2x4x18x34xbf16, #tpu.memory_space<vmem>>, vector<1x4x1x32xbf16>
    %547 = vector.shape_cast %546 : vector<1x4x1x32xbf16> to vector<4x32xbf16>
    %c1_793 = arith.constant 1 : index
    %c0_794 = arith.constant 0 : index
    %c3_795 = arith.constant 3 : index
    %c0_796 = arith.constant 0 : index
    %548 = vector.load %arg1[%c1_793, %c0_794, %c3_795, %c0_796] : memref<2x4x18x34xbf16, #tpu.memory_space<vmem>>, vector<1x4x1x32xbf16>
    %549 = vector.shape_cast %548 : vector<1x4x1x32xbf16> to vector<4x32xbf16>
    %c1_797 = arith.constant 1 : index
    %c0_798 = arith.constant 0 : index
    %c3_799 = arith.constant 3 : index
    %c1_800 = arith.constant 1 : index
    %550 = vector.load %arg1[%c1_797, %c0_798, %c3_799, %c1_800] : memref<2x4x18x34xbf16, #tpu.memory_space<vmem>>, vector<1x4x1x32xbf16>
    %551 = vector.shape_cast %550 : vector<1x4x1x32xbf16> to vector<4x32xbf16>
    %c1_801 = arith.constant 1 : index
    %c0_802 = arith.constant 0 : index
    %c3_803 = arith.constant 3 : index
    %c2_804 = arith.constant 2 : index
    %552 = vector.load %arg1[%c1_801, %c0_802, %c3_803, %c2_804] : memref<2x4x18x34xbf16, #tpu.memory_space<vmem>>, vector<1x4x1x32xbf16>
    %553 = vector.shape_cast %552 : vector<1x4x1x32xbf16> to vector<4x32xbf16>
    %c1_805 = arith.constant 1 : index
    %c0_806 = arith.constant 0 : index
    %c4_807 = arith.constant 4 : index
    %c0_808 = arith.constant 0 : index
    %554 = vector.load %arg1[%c1_805, %c0_806, %c4_807, %c0_808] : memref<2x4x18x34xbf16, #tpu.memory_space<vmem>>, vector<1x4x1x32xbf16>
    %555 = vector.shape_cast %554 : vector<1x4x1x32xbf16> to vector<4x32xbf16>
    %c1_809 = arith.constant 1 : index
    %c0_810 = arith.constant 0 : index
    %c4_811 = arith.constant 4 : index
    %c1_812 = arith.constant 1 : index
    %556 = vector.load %arg1[%c1_809, %c0_810, %c4_811, %c1_812] : memref<2x4x18x34xbf16, #tpu.memory_space<vmem>>, vector<1x4x1x32xbf16>
    %557 = vector.shape_cast %556 : vector<1x4x1x32xbf16> to vector<4x32xbf16>
    %c1_813 = arith.constant 1 : index
    %c0_814 = arith.constant 0 : index
    %c4_815 = arith.constant 4 : index
    %c2_816 = arith.constant 2 : index
    %558 = vector.load %arg1[%c1_813, %c0_814, %c4_815, %c2_816] : memref<2x4x18x34xbf16, #tpu.memory_space<vmem>>, vector<1x4x1x32xbf16>
    %559 = vector.shape_cast %558 : vector<1x4x1x32xbf16> to vector<4x32xbf16>
    %560 = tpu.concatenate %543, %545, %547, %549, %551, %553, %555, %557, %559 in 0 : vector<4x32xbf16>, vector<4x32xbf16>, vector<4x32xbf16>, vector<4x32xbf16>, vector<4x32xbf16>, vector<4x32xbf16>, vector<4x32xbf16>, vector<4x32xbf16>, vector<4x32xbf16> -> vector<36x32xbf16>
    %cst_817 = arith.constant dense<0.000000e+00> : vector<8x32xf32>
    %561 = tpu.matmul %0, %560, %cst_817 {dimension_numbers = #tpu.dot_dimension_numbers<[1], [0], [0], [1], [0, 0, 1, 1], [], []>} : vector<8x36xbf16>, vector<36x32xbf16>, vector<8x32xf32> -> vector<8x32xf32>
    %562 = vector.broadcast %1 : vector<8x1xf32> to vector<8x32xf32>
    %563 = arith.addf %561, %562 : vector<8x32xf32>
    %564 = vector.extract_strided_slice %563 {offsets = [0, 0], sizes = [4, 32], strides = [1, 1]} : vector<8x32xf32> to vector<4x32xf32>
    %c1_818 = arith.constant 1 : index
    %c0_819 = arith.constant 0 : index
    %c4_820 = arith.constant 4 : index
    %c0_821 = arith.constant 0 : index
    %565 = vector.load %arg4[%c1_818, %c0_819, %c4_820, %c0_821] : memref<2x4x32x32xf32, #tpu.memory_space<vmem>>, vector<1x4x1x32xf32>
    %566 = vector.shape_cast %565 : vector<1x4x1x32xf32> to vector<4x32xf32>
    %567 = vector.shape_cast %564 : vector<4x32xf32> to vector<1x4x1x32xf32>
    tpu.vector_store %arg4[%c1_818, %c0_819, %c4_820, %c0_821], %567 {strides = array<i32>} : memref<2x4x32x32xf32, #tpu.memory_space<vmem>>, vector<1x4x1x32xf32>,
    %568 = vector.extract_strided_slice %563 {offsets = [4, 0], sizes = [4, 32], strides = [1, 1]} : vector<8x32xf32> to vector<4x32xf32>
    %c1_822 = arith.constant 1 : index
    %c0_823 = arith.constant 0 : index
    %c5_824 = arith.constant 5 : index
    %c0_825 = arith.constant 0 : index
    %569 = vector.load %arg4[%c1_822, %c0_823, %c5_824, %c0_825] : memref<2x4x32x32xf32, #tpu.memory_space<vmem>>, vector<1x4x1x32xf32>
    %570 = vector.shape_cast %569 : vector<1x4x1x32xf32> to vector<4x32xf32>
    %571 = vector.shape_cast %568 : vector<4x32xf32> to vector<1x4x1x32xf32>
    tpu.vector_store %arg4[%c1_822, %c0_823, %c5_824, %c0_825], %571 {strides = array<i32>} : memref<2x4x32x32xf32, #tpu.memory_space<vmem>>, vector<1x4x1x32xf32>,
    %c1_826 = arith.constant 1 : index
    %c0_827 = arith.constant 0 : index
    %c3_828 = arith.constant 3 : index
    %c0_829 = arith.constant 0 : index
    %572 = vector.load %arg1[%c1_826, %c0_827, %c3_828, %c0_829] : memref<2x4x18x34xbf16, #tpu.memory_space<vmem>>, vector<1x4x1x32xbf16>
    %573 = vector.shape_cast %572 : vector<1x4x1x32xbf16> to vector<4x32xbf16>
    %c1_830 = arith.constant 1 : index
    %c0_831 = arith.constant 0 : index
    %c3_832 = arith.constant 3 : index
    %c1_833 = arith.constant 1 : index
    %574 = vector.load %arg1[%c1_830, %c0_831, %c3_832, %c1_833] : memref<2x4x18x34xbf16, #tpu.memory_space<vmem>>, vector<1x4x1x32xbf16>
    %575 = vector.shape_cast %574 : vector<1x4x1x32xbf16> to vector<4x32xbf16>
    %c1_834 = arith.constant 1 : index
    %c0_835 = arith.constant 0 : index
    %c3_836 = arith.constant 3 : index
    %c2_837 = arith.constant 2 : index
    %576 = vector.load %arg1[%c1_834, %c0_835, %c3_836, %c2_837] : memref<2x4x18x34xbf16, #tpu.memory_space<vmem>>, vector<1x4x1x32xbf16>
    %577 = vector.shape_cast %576 : vector<1x4x1x32xbf16> to vector<4x32xbf16>
    %c1_838 = arith.constant 1 : index
    %c0_839 = arith.constant 0 : index
    %c4_840 = arith.constant 4 : index
    %c0_841 = arith.constant 0 : index
    %578 = vector.load %arg1[%c1_838, %c0_839, %c4_840, %c0_841] : memref<2x4x18x34xbf16, #tpu.memory_space<vmem>>, vector<1x4x1x32xbf16>
    %579 = vector.shape_cast %578 : vector<1x4x1x32xbf16> to vector<4x32xbf16>
    %c1_842 = arith.constant 1 : index
    %c0_843 = arith.constant 0 : index
    %c4_844 = arith.constant 4 : index
    %c1_845 = arith.constant 1 : index
    %580 = vector.load %arg1[%c1_842, %c0_843, %c4_844, %c1_845] : memref<2x4x18x34xbf16, #tpu.memory_space<vmem>>, vector<1x4x1x32xbf16>
    %581 = vector.shape_cast %580 : vector<1x4x1x32xbf16> to vector<4x32xbf16>
    %c1_846 = arith.constant 1 : index
    %c0_847 = arith.constant 0 : index
    %c4_848 = arith.constant 4 : index
    %c2_849 = arith.constant 2 : index
    %582 = vector.load %arg1[%c1_846, %c0_847, %c4_848, %c2_849] : memref<2x4x18x34xbf16, #tpu.memory_space<vmem>>, vector<1x4x1x32xbf16>
    %583 = vector.shape_cast %582 : vector<1x4x1x32xbf16> to vector<4x32xbf16>
    %c1_850 = arith.constant 1 : index
    %c0_851 = arith.constant 0 : index
    %c5_852 = arith.constant 5 : index
    %c0_853 = arith.constant 0 : index
    %584 = vector.load %arg1[%c1_850, %c0_851, %c5_852, %c0_853] : memref<2x4x18x34xbf16, #tpu.memory_space<vmem>>, vector<1x4x1x32xbf16>
    %585 = vector.shape_cast %584 : vector<1x4x1x32xbf16> to vector<4x32xbf16>
    %c1_854 = arith.constant 1 : index
    %c0_855 = arith.constant 0 : index
    %c5_856 = arith.constant 5 : index
    %c1_857 = arith.constant 1 : index
    %586 = vector.load %arg1[%c1_854, %c0_855, %c5_856, %c1_857] : memref<2x4x18x34xbf16, #tpu.memory_space<vmem>>, vector<1x4x1x32xbf16>
    %587 = vector.shape_cast %586 : vector<1x4x1x32xbf16> to vector<4x32xbf16>
    %c1_858 = arith.constant 1 : index
    %c0_859 = arith.constant 0 : index
    %c5_860 = arith.constant 5 : index
    %c2_861 = arith.constant 2 : index
    %588 = vector.load %arg1[%c1_858, %c0_859, %c5_860, %c2_861] : memref<2x4x18x34xbf16, #tpu.memory_space<vmem>>, vector<1x4x1x32xbf16>
    %589 = vector.shape_cast %588 : vector<1x4x1x32xbf16> to vector<4x32xbf16>
    %590 = tpu.concatenate %573, %575, %577, %579, %581, %583, %585, %587, %589 in 0 : vector<4x32xbf16>, vector<4x32xbf16>, vector<4x32xbf16>, vector<4x32xbf16>, vector<4x32xbf16>, vector<4x32xbf16>, vector<4x32xbf16>, vector<4x32xbf16>, vector<4x32xbf16> -> vector<36x32xbf16>
    %cst_862 = arith.constant dense<0.000000e+00> : vector<8x32xf32>
    %591 = tpu.matmul %0, %590, %cst_862 {dimension_numbers = #tpu.dot_dimension_numbers<[1], [0], [0], [1], [0, 0, 1, 1], [], []>} : vector<8x36xbf16>, vector<36x32xbf16>, vector<8x32xf32> -> vector<8x32xf32>
    %592 = vector.broadcast %1 : vector<8x1xf32> to vector<8x32xf32>
    %593 = arith.addf %591, %592 : vector<8x32xf32>
    %594 = vector.extract_strided_slice %593 {offsets = [0, 0], sizes = [4, 32], strides = [1, 1]} : vector<8x32xf32> to vector<4x32xf32>
    %c1_863 = arith.constant 1 : index
    %c0_864 = arith.constant 0 : index
    %c6_865 = arith.constant 6 : index
    %c0_866 = arith.constant 0 : index
    %595 = vector.load %arg4[%c1_863, %c0_864, %c6_865, %c0_866] : memref<2x4x32x32xf32, #tpu.memory_space<vmem>>, vector<1x4x1x32xf32>
    %596 = vector.shape_cast %595 : vector<1x4x1x32xf32> to vector<4x32xf32>
    %597 = vector.shape_cast %594 : vector<4x32xf32> to vector<1x4x1x32xf32>
    tpu.vector_store %arg4[%c1_863, %c0_864, %c6_865, %c0_866], %597 {strides = array<i32>} : memref<2x4x32x32xf32, #tpu.memory_space<vmem>>, vector<1x4x1x32xf32>,
    %598 = vector.extract_strided_slice %593 {offsets = [4, 0], sizes = [4, 32], strides = [1, 1]} : vector<8x32xf32> to vector<4x32xf32>
    %c1_867 = arith.constant 1 : index
    %c0_868 = arith.constant 0 : index
    %c7_869 = arith.constant 7 : index
    %c0_870 = arith.constant 0 : index
    %599 = vector.load %arg4[%c1_867, %c0_868, %c7_869, %c0_870] : memref<2x4x32x32xf32, #tpu.memory_space<vmem>>, vector<1x4x1x32xf32>
    %600 = vector.shape_cast %599 : vector<1x4x1x32xf32> to vector<4x32xf32>
    %601 = vector.shape_cast %598 : vector<4x32xf32> to vector<1x4x1x32xf32>
    tpu.vector_store %arg4[%c1_867, %c0_868, %c7_869, %c0_870], %601 {strides = array<i32>} : memref<2x4x32x32xf32, #tpu.memory_space<vmem>>, vector<1x4x1x32xf32>,
    %c1_871 = arith.constant 1 : index
    %c0_872 = arith.constant 0 : index
    %c4_873 = arith.constant 4 : index
    %c0_874 = arith.constant 0 : index
    %602 = vector.load %arg1[%c1_871, %c0_872, %c4_873, %c0_874] : memref<2x4x18x34xbf16, #tpu.memory_space<vmem>>, vector<1x4x1x32xbf16>
    %603 = vector.shape_cast %602 : vector<1x4x1x32xbf16> to vector<4x32xbf16>
    %c1_875 = arith.constant 1 : index
    %c0_876 = arith.constant 0 : index
    %c4_877 = arith.constant 4 : index
    %c1_878 = arith.constant 1 : index
    %604 = vector.load %arg1[%c1_875, %c0_876, %c4_877, %c1_878] : memref<2x4x18x34xbf16, #tpu.memory_space<vmem>>, vector<1x4x1x32xbf16>
    %605 = vector.shape_cast %604 : vector<1x4x1x32xbf16> to vector<4x32xbf16>
    %c1_879 = arith.constant 1 : index
    %c0_880 = arith.constant 0 : index
    %c4_881 = arith.constant 4 : index
    %c2_882 = arith.constant 2 : index
    %606 = vector.load %arg1[%c1_879, %c0_880, %c4_881, %c2_882] : memref<2x4x18x34xbf16, #tpu.memory_space<vmem>>, vector<1x4x1x32xbf16>
    %607 = vector.shape_cast %606 : vector<1x4x1x32xbf16> to vector<4x32xbf16>
    %c1_883 = arith.constant 1 : index
    %c0_884 = arith.constant 0 : index
    %c5_885 = arith.constant 5 : index
    %c0_886 = arith.constant 0 : index
    %608 = vector.load %arg1[%c1_883, %c0_884, %c5_885, %c0_886] : memref<2x4x18x34xbf16, #tpu.memory_space<vmem>>, vector<1x4x1x32xbf16>
    %609 = vector.shape_cast %608 : vector<1x4x1x32xbf16> to vector<4x32xbf16>
    %c1_887 = arith.constant 1 : index
    %c0_888 = arith.constant 0 : index
    %c5_889 = arith.constant 5 : index
    %c1_890 = arith.constant 1 : index
    %610 = vector.load %arg1[%c1_887, %c0_888, %c5_889, %c1_890] : memref<2x4x18x34xbf16, #tpu.memory_space<vmem>>, vector<1x4x1x32xbf16>
    %611 = vector.shape_cast %610 : vector<1x4x1x32xbf16> to vector<4x32xbf16>
    %c1_891 = arith.constant 1 : index
    %c0_892 = arith.constant 0 : index
    %c5_893 = arith.constant 5 : index
    %c2_894 = arith.constant 2 : index
    %612 = vector.load %arg1[%c1_891, %c0_892, %c5_893, %c2_894] : memref<2x4x18x34xbf16, #tpu.memory_space<vmem>>, vector<1x4x1x32xbf16>
    %613 = vector.shape_cast %612 : vector<1x4x1x32xbf16> to vector<4x32xbf16>
    %c1_895 = arith.constant 1 : index
    %c0_896 = arith.constant 0 : index
    %c6_897 = arith.constant 6 : index
    %c0_898 = arith.constant 0 : index
    %614 = vector.load %arg1[%c1_895, %c0_896, %c6_897, %c0_898] : memref<2x4x18x34xbf16, #tpu.memory_space<vmem>>, vector<1x4x1x32xbf16>
    %615 = vector.shape_cast %614 : vector<1x4x1x32xbf16> to vector<4x32xbf16>
    %c1_899 = arith.constant 1 : index
    %c0_900 = arith.constant 0 : index
    %c6_901 = arith.constant 6 : index
    %c1_902 = arith.constant 1 : index
    %616 = vector.load %arg1[%c1_899, %c0_900, %c6_901, %c1_902] : memref<2x4x18x34xbf16, #tpu.memory_space<vmem>>, vector<1x4x1x32xbf16>
    %617 = vector.shape_cast %616 : vector<1x4x1x32xbf16> to vector<4x32xbf16>
    %c1_903 = arith.constant 1 : index
    %c0_904 = arith.constant 0 : index
    %c6_905 = arith.constant 6 : index
    %c2_906 = arith.constant 2 : index
    %618 = vector.load %arg1[%c1_903, %c0_904, %c6_905, %c2_906] : memref<2x4x18x34xbf16, #tpu.memory_space<vmem>>, vector<1x4x1x32xbf16>
    %619 = vector.shape_cast %618 : vector<1x4x1x32xbf16> to vector<4x32xbf16>
    %620 = tpu.concatenate %603, %605, %607, %609, %611, %613, %615, %617, %619 in 0 : vector<4x32xbf16>, vector<4x32xbf16>, vector<4x32xbf16>, vector<4x32xbf16>, vector<4x32xbf16>, vector<4x32xbf16>, vector<4x32xbf16>, vector<4x32xbf16>, vector<4x32xbf16> -> vector<36x32xbf16>
    %cst_907 = arith.constant dense<0.000000e+00> : vector<8x32xf32>
    %621 = tpu.matmul %0, %620, %cst_907 {dimension_numbers = #tpu.dot_dimension_numbers<[1], [0], [0], [1], [0, 0, 1, 1], [], []>} : vector<8x36xbf16>, vector<36x32xbf16>, vector<8x32xf32> -> vector<8x32xf32>
    %622 = vector.broadcast %1 : vector<8x1xf32> to vector<8x32xf32>
    %623 = arith.addf %621, %622 : vector<8x32xf32>
    %624 = vector.extract_strided_slice %623 {offsets = [0, 0], sizes = [4, 32], strides = [1, 1]} : vector<8x32xf32> to vector<4x32xf32>
    %c1_908 = arith.constant 1 : index
    %c0_909 = arith.constant 0 : index
    %c8_910 = arith.constant 8 : index
    %c0_911 = arith.constant 0 : index
    %625 = vector.load %arg4[%c1_908, %c0_909, %c8_910, %c0_911] : memref<2x4x32x32xf32, #tpu.memory_space<vmem>>, vector<1x4x1x32xf32>
    %626 = vector.shape_cast %625 : vector<1x4x1x32xf32> to vector<4x32xf32>
    %627 = vector.shape_cast %624 : vector<4x32xf32> to vector<1x4x1x32xf32>
    tpu.vector_store %arg4[%c1_908, %c0_909, %c8_910, %c0_911], %627 {strides = array<i32>} : memref<2x4x32x32xf32, #tpu.memory_space<vmem>>, vector<1x4x1x32xf32>,
    %628 = vector.extract_strided_slice %623 {offsets = [4, 0], sizes = [4, 32], strides = [1, 1]} : vector<8x32xf32> to vector<4x32xf32>
    %c1_912 = arith.constant 1 : index
    %c0_913 = arith.constant 0 : index
    %c9_914 = arith.constant 9 : index
    %c0_915 = arith.constant 0 : index
    %629 = vector.load %arg4[%c1_912, %c0_913, %c9_914, %c0_915] : memref<2x4x32x32xf32, #tpu.memory_space<vmem>>, vector<1x4x1x32xf32>
    %630 = vector.shape_cast %629 : vector<1x4x1x32xf32> to vector<4x32xf32>
    %631 = vector.shape_cast %628 : vector<4x32xf32> to vector<1x4x1x32xf32>
    tpu.vector_store %arg4[%c1_912, %c0_913, %c9_914, %c0_915], %631 {strides = array<i32>} : memref<2x4x32x32xf32, #tpu.memory_space<vmem>>, vector<1x4x1x32xf32>,
    %c1_916 = arith.constant 1 : index
    %c0_917 = arith.constant 0 : index
    %c5_918 = arith.constant 5 : index
    %c0_919 = arith.constant 0 : index
    %632 = vector.load %arg1[%c1_916, %c0_917, %c5_918, %c0_919] : memref<2x4x18x34xbf16, #tpu.memory_space<vmem>>, vector<1x4x1x32xbf16>
    %633 = vector.shape_cast %632 : vector<1x4x1x32xbf16> to vector<4x32xbf16>
    %c1_920 = arith.constant 1 : index
    %c0_921 = arith.constant 0 : index
    %c5_922 = arith.constant 5 : index
    %c1_923 = arith.constant 1 : index
    %634 = vector.load %arg1[%c1_920, %c0_921, %c5_922, %c1_923] : memref<2x4x18x34xbf16, #tpu.memory_space<vmem>>, vector<1x4x1x32xbf16>
    %635 = vector.shape_cast %634 : vector<1x4x1x32xbf16> to vector<4x32xbf16>
    %c1_924 = arith.constant 1 : index
    %c0_925 = arith.constant 0 : index
    %c5_926 = arith.constant 5 : index
    %c2_927 = arith.constant 2 : index
    %636 = vector.load %arg1[%c1_924, %c0_925, %c5_926, %c2_927] : memref<2x4x18x34xbf16, #tpu.memory_space<vmem>>, vector<1x4x1x32xbf16>
    %637 = vector.shape_cast %636 : vector<1x4x1x32xbf16> to vector<4x32xbf16>
    %c1_928 = arith.constant 1 : index
    %c0_929 = arith.constant 0 : index
    %c6_930 = arith.constant 6 : index
    %c0_931 = arith.constant 0 : index
    %638 = vector.load %arg1[%c1_928, %c0_929, %c6_930, %c0_931] : memref<2x4x18x34xbf16, #tpu.memory_space<vmem>>, vector<1x4x1x32xbf16>
    %639 = vector.shape_cast %638 : vector<1x4x1x32xbf16> to vector<4x32xbf16>
    %c1_932 = arith.constant 1 : index
    %c0_933 = arith.constant 0 : index
    %c6_934 = arith.constant 6 : index
    %c1_935 = arith.constant 1 : index
    %640 = vector.load %arg1[%c1_932, %c0_933, %c6_934, %c1_935] : memref<2x4x18x34xbf16, #tpu.memory_space<vmem>>, vector<1x4x1x32xbf16>
    %641 = vector.shape_cast %640 : vector<1x4x1x32xbf16> to vector<4x32xbf16>
    %c1_936 = arith.constant 1 : index
    %c0_937 = arith.constant 0 : index
    %c6_938 = arith.constant 6 : index
    %c2_939 = arith.constant 2 : index
    %642 = vector.load %arg1[%c1_936, %c0_937, %c6_938, %c2_939] : memref<2x4x18x34xbf16, #tpu.memory_space<vmem>>, vector<1x4x1x32xbf16>
    %643 = vector.shape_cast %642 : vector<1x4x1x32xbf16> to vector<4x32xbf16>
    %c1_940 = arith.constant 1 : index
    %c0_941 = arith.constant 0 : index
    %c7_942 = arith.constant 7 : index
    %c0_943 = arith.constant 0 : index
    %644 = vector.load %arg1[%c1_940, %c0_941, %c7_942, %c0_943] : memref<2x4x18x34xbf16, #tpu.memory_space<vmem>>, vector<1x4x1x32xbf16>
    %645 = vector.shape_cast %644 : vector<1x4x1x32xbf16> to vector<4x32xbf16>
    %c1_944 = arith.constant 1 : index
    %c0_945 = arith.constant 0 : index
    %c7_946 = arith.constant 7 : index
    %c1_947 = arith.constant 1 : index
    %646 = vector.load %arg1[%c1_944, %c0_945, %c7_946, %c1_947] : memref<2x4x18x34xbf16, #tpu.memory_space<vmem>>, vector<1x4x1x32xbf16>
    %647 = vector.shape_cast %646 : vector<1x4x1x32xbf16> to vector<4x32xbf16>
    %c1_948 = arith.constant 1 : index
    %c0_949 = arith.constant 0 : index
    %c7_950 = arith.constant 7 : index
    %c2_951 = arith.constant 2 : index
    %648 = vector.load %arg1[%c1_948, %c0_949, %c7_950, %c2_951] : memref<2x4x18x34xbf16, #tpu.memory_space<vmem>>, vector<1x4x1x32xbf16>
    %649 = vector.shape_cast %648 : vector<1x4x1x32xbf16> to vector<4x32xbf16>
    %650 = tpu.concatenate %633, %635, %637, %639, %641, %643, %645, %647, %649 in 0 : vector<4x32xbf16>, vector<4x32xbf16>, vector<4x32xbf16>, vector<4x32xbf16>, vector<4x32xbf16>, vector<4x32xbf16>, vector<4x32xbf16>, vector<4x32xbf16>, vector<4x32xbf16> -> vector<36x32xbf16>
    %cst_952 = arith.constant dense<0.000000e+00> : vector<8x32xf32>
    %651 = tpu.matmul %0, %650, %cst_952 {dimension_numbers = #tpu.dot_dimension_numbers<[1], [0], [0], [1], [0, 0, 1, 1], [], []>} : vector<8x36xbf16>, vector<36x32xbf16>, vector<8x32xf32> -> vector<8x32xf32>
    %652 = vector.broadcast %1 : vector<8x1xf32> to vector<8x32xf32>
    %653 = arith.addf %651, %652 : vector<8x32xf32>
    %654 = vector.extract_strided_slice %653 {offsets = [0, 0], sizes = [4, 32], strides = [1, 1]} : vector<8x32xf32> to vector<4x32xf32>
    %c1_953 = arith.constant 1 : index
    %c0_954 = arith.constant 0 : index
    %c10_955 = arith.constant 10 : index
    %c0_956 = arith.constant 0 : index
    %655 = vector.load %arg4[%c1_953, %c0_954, %c10_955, %c0_956] : memref<2x4x32x32xf32, #tpu.memory_space<vmem>>, vector<1x4x1x32xf32>
    %656 = vector.shape_cast %655 : vector<1x4x1x32xf32> to vector<4x32xf32>
    %657 = vector.shape_cast %654 : vector<4x32xf32> to vector<1x4x1x32xf32>
    tpu.vector_store %arg4[%c1_953, %c0_954, %c10_955, %c0_956], %657 {strides = array<i32>} : memref<2x4x32x32xf32, #tpu.memory_space<vmem>>, vector<1x4x1x32xf32>,
    %658 = vector.extract_strided_slice %653 {offsets = [4, 0], sizes = [4, 32], strides = [1, 1]} : vector<8x32xf32> to vector<4x32xf32>
    %c1_957 = arith.constant 1 : index
    %c0_958 = arith.constant 0 : index
    %c11_959 = arith.constant 11 : index
    %c0_960 = arith.constant 0 : index
    %659 = vector.load %arg4[%c1_957, %c0_958, %c11_959, %c0_960] : memref<2x4x32x32xf32, #tpu.memory_space<vmem>>, vector<1x4x1x32xf32>
    %660 = vector.shape_cast %659 : vector<1x4x1x32xf32> to vector<4x32xf32>
    %661 = vector.shape_cast %658 : vector<4x32xf32> to vector<1x4x1x32xf32>
    tpu.vector_store %arg4[%c1_957, %c0_958, %c11_959, %c0_960], %661 {strides = array<i32>} : memref<2x4x32x32xf32, #tpu.memory_space<vmem>>, vector<1x4x1x32xf32>,
    %c1_961 = arith.constant 1 : index
    %c0_962 = arith.constant 0 : index
    %c6_963 = arith.constant 6 : index
    %c0_964 = arith.constant 0 : index
    %662 = vector.load %arg1[%c1_961, %c0_962, %c6_963, %c0_964] : memref<2x4x18x34xbf16, #tpu.memory_space<vmem>>, vector<1x4x1x32xbf16>
    %663 = vector.shape_cast %662 : vector<1x4x1x32xbf16> to vector<4x32xbf16>
    %c1_965 = arith.constant 1 : index
    %c0_966 = arith.constant 0 : index
    %c6_967 = arith.constant 6 : index
    %c1_968 = arith.constant 1 : index
    %664 = vector.load %arg1[%c1_965, %c0_966, %c6_967, %c1_968] : memref<2x4x18x34xbf16, #tpu.memory_space<vmem>>, vector<1x4x1x32xbf16>
    %665 = vector.shape_cast %664 : vector<1x4x1x32xbf16> to vector<4x32xbf16>
    %c1_969 = arith.constant 1 : index
    %c0_970 = arith.constant 0 : index
    %c6_971 = arith.constant 6 : index
    %c2_972 = arith.constant 2 : index
    %666 = vector.load %arg1[%c1_969, %c0_970, %c6_971, %c2_972] : memref<2x4x18x34xbf16, #tpu.memory_space<vmem>>, vector<1x4x1x32xbf16>
    %667 = vector.shape_cast %666 : vector<1x4x1x32xbf16> to vector<4x32xbf16>
    %c1_973 = arith.constant 1 : index
    %c0_974 = arith.constant 0 : index
    %c7_975 = arith.constant 7 : index
    %c0_976 = arith.constant 0 : index
    %668 = vector.load %arg1[%c1_973, %c0_974, %c7_975, %c0_976] : memref<2x4x18x34xbf16, #tpu.memory_space<vmem>>, vector<1x4x1x32xbf16>
    %669 = vector.shape_cast %668 : vector<1x4x1x32xbf16> to vector<4x32xbf16>
    %c1_977 = arith.constant 1 : index
    %c0_978 = arith.constant 0 : index
    %c7_979 = arith.constant 7 : index
    %c1_980 = arith.constant 1 : index
    %670 = vector.load %arg1[%c1_977, %c0_978, %c7_979, %c1_980] : memref<2x4x18x34xbf16, #tpu.memory_space<vmem>>, vector<1x4x1x32xbf16>
    %671 = vector.shape_cast %670 : vector<1x4x1x32xbf16> to vector<4x32xbf16>
    %c1_981 = arith.constant 1 : index
    %c0_982 = arith.constant 0 : index
    %c7_983 = arith.constant 7 : index
    %c2_984 = arith.constant 2 : index
    %672 = vector.load %arg1[%c1_981, %c0_982, %c7_983, %c2_984] : memref<2x4x18x34xbf16, #tpu.memory_space<vmem>>, vector<1x4x1x32xbf16>
    %673 = vector.shape_cast %672 : vector<1x4x1x32xbf16> to vector<4x32xbf16>
    %c1_985 = arith.constant 1 : index
    %c0_986 = arith.constant 0 : index
    %c8_987 = arith.constant 8 : index
    %c0_988 = arith.constant 0 : index
    %674 = vector.load %arg1[%c1_985, %c0_986, %c8_987, %c0_988] : memref<2x4x18x34xbf16, #tpu.memory_space<vmem>>, vector<1x4x1x32xbf16>
    %675 = vector.shape_cast %674 : vector<1x4x1x32xbf16> to vector<4x32xbf16>
    %c1_989 = arith.constant 1 : index
    %c0_990 = arith.constant 0 : index
    %c8_991 = arith.constant 8 : index
    %c1_992 = arith.constant 1 : index
    %676 = vector.load %arg1[%c1_989, %c0_990, %c8_991, %c1_992] : memref<2x4x18x34xbf16, #tpu.memory_space<vmem>>, vector<1x4x1x32xbf16>
    %677 = vector.shape_cast %676 : vector<1x4x1x32xbf16> to vector<4x32xbf16>
    %c1_993 = arith.constant 1 : index
    %c0_994 = arith.constant 0 : index
    %c8_995 = arith.constant 8 : index
    %c2_996 = arith.constant 2 : index
    %678 = vector.load %arg1[%c1_993, %c0_994, %c8_995, %c2_996] : memref<2x4x18x34xbf16, #tpu.memory_space<vmem>>, vector<1x4x1x32xbf16>
    %679 = vector.shape_cast %678 : vector<1x4x1x32xbf16> to vector<4x32xbf16>
    %680 = tpu.concatenate %663, %665, %667, %669, %671, %673, %675, %677, %679 in 0 : vector<4x32xbf16>, vector<4x32xbf16>, vector<4x32xbf16>, vector<4x32xbf16>, vector<4x32xbf16>, vector<4x32xbf16>, vector<4x32xbf16>, vector<4x32xbf16>, vector<4x32xbf16> -> vector<36x32xbf16>
    %cst_997 = arith.constant dense<0.000000e+00> : vector<8x32xf32>
    %681 = tpu.matmul %0, %680, %cst_997 {dimension_numbers = #tpu.dot_dimension_numbers<[1], [0], [0], [1], [0, 0, 1, 1], [], []>} : vector<8x36xbf16>, vector<36x32xbf16>, vector<8x32xf32> -> vector<8x32xf32>
    %682 = vector.broadcast %1 : vector<8x1xf32> to vector<8x32xf32>
    %683 = arith.addf %681, %682 : vector<8x32xf32>
    %684 = vector.extract_strided_slice %683 {offsets = [0, 0], sizes = [4, 32], strides = [1, 1]} : vector<8x32xf32> to vector<4x32xf32>
    %c1_998 = arith.constant 1 : index
    %c0_999 = arith.constant 0 : index
    %c12_1000 = arith.constant 12 : index
    %c0_1001 = arith.constant 0 : index
    %685 = vector.load %arg4[%c1_998, %c0_999, %c12_1000, %c0_1001] : memref<2x4x32x32xf32, #tpu.memory_space<vmem>>, vector<1x4x1x32xf32>
    %686 = vector.shape_cast %685 : vector<1x4x1x32xf32> to vector<4x32xf32>
    %687 = vector.shape_cast %684 : vector<4x32xf32> to vector<1x4x1x32xf32>
    tpu.vector_store %arg4[%c1_998, %c0_999, %c12_1000, %c0_1001], %687 {strides = array<i32>} : memref<2x4x32x32xf32, #tpu.memory_space<vmem>>, vector<1x4x1x32xf32>,
    %688 = vector.extract_strided_slice %683 {offsets = [4, 0], sizes = [4, 32], strides = [1, 1]} : vector<8x32xf32> to vector<4x32xf32>
    %c1_1002 = arith.constant 1 : index
    %c0_1003 = arith.constant 0 : index
    %c13_1004 = arith.constant 13 : index
    %c0_1005 = arith.constant 0 : index
    %689 = vector.load %arg4[%c1_1002, %c0_1003, %c13_1004, %c0_1005] : memref<2x4x32x32xf32, #tpu.memory_space<vmem>>, vector<1x4x1x32xf32>
    %690 = vector.shape_cast %689 : vector<1x4x1x32xf32> to vector<4x32xf32>
    %691 = vector.shape_cast %688 : vector<4x32xf32> to vector<1x4x1x32xf32>
    tpu.vector_store %arg4[%c1_1002, %c0_1003, %c13_1004, %c0_1005], %691 {strides = array<i32>} : memref<2x4x32x32xf32, #tpu.memory_space<vmem>>, vector<1x4x1x32xf32>,
    %c1_1006 = arith.constant 1 : index
    %c0_1007 = arith.constant 0 : index
    %c7_1008 = arith.constant 7 : index
    %c0_1009 = arith.constant 0 : index
    %692 = vector.load %arg1[%c1_1006, %c0_1007, %c7_1008, %c0_1009] : memref<2x4x18x34xbf16, #tpu.memory_space<vmem>>, vector<1x4x1x32xbf16>
    %693 = vector.shape_cast %692 : vector<1x4x1x32xbf16> to vector<4x32xbf16>
    %c1_1010 = arith.constant 1 : index
    %c0_1011 = arith.constant 0 : index
    %c7_1012 = arith.constant 7 : index
    %c1_1013 = arith.constant 1 : index
    %694 = vector.load %arg1[%c1_1010, %c0_1011, %c7_1012, %c1_1013] : memref<2x4x18x34xbf16, #tpu.memory_space<vmem>>, vector<1x4x1x32xbf16>
    %695 = vector.shape_cast %694 : vector<1x4x1x32xbf16> to vector<4x32xbf16>
    %c1_1014 = arith.constant 1 : index
    %c0_1015 = arith.constant 0 : index
    %c7_1016 = arith.constant 7 : index
    %c2_1017 = arith.constant 2 : index
    %696 = vector.load %arg1[%c1_1014, %c0_1015, %c7_1016, %c2_1017] : memref<2x4x18x34xbf16, #tpu.memory_space<vmem>>, vector<1x4x1x32xbf16>
    %697 = vector.shape_cast %696 : vector<1x4x1x32xbf16> to vector<4x32xbf16>
    %c1_1018 = arith.constant 1 : index
    %c0_1019 = arith.constant 0 : index
    %c8_1020 = arith.constant 8 : index
    %c0_1021 = arith.constant 0 : index
    %698 = vector.load %arg1[%c1_1018, %c0_1019, %c8_1020, %c0_1021] : memref<2x4x18x34xbf16, #tpu.memory_space<vmem>>, vector<1x4x1x32xbf16>
    %699 = vector.shape_cast %698 : vector<1x4x1x32xbf16> to vector<4x32xbf16>
    %c1_1022 = arith.constant 1 : index
    %c0_1023 = arith.constant 0 : index
    %c8_1024 = arith.constant 8 : index
    %c1_1025 = arith.constant 1 : index
    %700 = vector.load %arg1[%c1_1022, %c0_1023, %c8_1024, %c1_1025] : memref<2x4x18x34xbf16, #tpu.memory_space<vmem>>, vector<1x4x1x32xbf16>
    %701 = vector.shape_cast %700 : vector<1x4x1x32xbf16> to vector<4x32xbf16>
    %c1_1026 = arith.constant 1 : index
    %c0_1027 = arith.constant 0 : index
    %c8_1028 = arith.constant 8 : index
    %c2_1029 = arith.constant 2 : index
    %702 = vector.load %arg1[%c1_1026, %c0_1027, %c8_1028, %c2_1029] : memref<2x4x18x34xbf16, #tpu.memory_space<vmem>>, vector<1x4x1x32xbf16>
    %703 = vector.shape_cast %702 : vector<1x4x1x32xbf16> to vector<4x32xbf16>
    %c1_1030 = arith.constant 1 : index
    %c0_1031 = arith.constant 0 : index
    %c9_1032 = arith.constant 9 : index
    %c0_1033 = arith.constant 0 : index
    %704 = vector.load %arg1[%c1_1030, %c0_1031, %c9_1032, %c0_1033] : memref<2x4x18x34xbf16, #tpu.memory_space<vmem>>, vector<1x4x1x32xbf16>
    %705 = vector.shape_cast %704 : vector<1x4x1x32xbf16> to vector<4x32xbf16>
    %c1_1034 = arith.constant 1 : index
    %c0_1035 = arith.constant 0 : index
    %c9_1036 = arith.constant 9 : index
    %c1_1037 = arith.constant 1 : index
    %706 = vector.load %arg1[%c1_1034, %c0_1035, %c9_1036, %c1_1037] : memref<2x4x18x34xbf16, #tpu.memory_space<vmem>>, vector<1x4x1x32xbf16>
    %707 = vector.shape_cast %706 : vector<1x4x1x32xbf16> to vector<4x32xbf16>
    %c1_1038 = arith.constant 1 : index
    %c0_1039 = arith.constant 0 : index
    %c9_1040 = arith.constant 9 : index
    %c2_1041 = arith.constant 2 : index
    %708 = vector.load %arg1[%c1_1038, %c0_1039, %c9_1040, %c2_1041] : memref<2x4x18x34xbf16, #tpu.memory_space<vmem>>, vector<1x4x1x32xbf16>
    %709 = vector.shape_cast %708 : vector<1x4x1x32xbf16> to vector<4x32xbf16>
    %710 = tpu.concatenate %693, %695, %697, %699, %701, %703, %705, %707, %709 in 0 : vector<4x32xbf16>, vector<4x32xbf16>, vector<4x32xbf16>, vector<4x32xbf16>, vector<4x32xbf16>, vector<4x32xbf16>, vector<4x32xbf16>, vector<4x32xbf16>, vector<4x32xbf16> -> vector<36x32xbf16>
    %cst_1042 = arith.constant dense<0.000000e+00> : vector<8x32xf32>
    %711 = tpu.matmul %0, %710, %cst_1042 {dimension_numbers = #tpu.dot_dimension_numbers<[1], [0], [0], [1], [0, 0, 1, 1], [], []>} : vector<8x36xbf16>, vector<36x32xbf16>, vector<8x32xf32> -> vector<8x32xf32>
    %712 = vector.broadcast %1 : vector<8x1xf32> to vector<8x32xf32>
    %713 = arith.addf %711, %712 : vector<8x32xf32>
    %714 = vector.extract_strided_slice %713 {offsets = [0, 0], sizes = [4, 32], strides = [1, 1]} : vector<8x32xf32> to vector<4x32xf32>
    %c1_1043 = arith.constant 1 : index
    %c0_1044 = arith.constant 0 : index
    %c14_1045 = arith.constant 14 : index
    %c0_1046 = arith.constant 0 : index
    %715 = vector.load %arg4[%c1_1043, %c0_1044, %c14_1045, %c0_1046] : memref<2x4x32x32xf32, #tpu.memory_space<vmem>>, vector<1x4x1x32xf32>
    %716 = vector.shape_cast %715 : vector<1x4x1x32xf32> to vector<4x32xf32>
    %717 = vector.shape_cast %714 : vector<4x32xf32> to vector<1x4x1x32xf32>
    tpu.vector_store %arg4[%c1_1043, %c0_1044, %c14_1045, %c0_1046], %717 {strides = array<i32>} : memref<2x4x32x32xf32, #tpu.memory_space<vmem>>, vector<1x4x1x32xf32>,
    %718 = vector.extract_strided_slice %713 {offsets = [4, 0], sizes = [4, 32], strides = [1, 1]} : vector<8x32xf32> to vector<4x32xf32>
    %c1_1047 = arith.constant 1 : index
    %c0_1048 = arith.constant 0 : index
    %c15_1049 = arith.constant 15 : index
    %c0_1050 = arith.constant 0 : index
    %719 = vector.load %arg4[%c1_1047, %c0_1048, %c15_1049, %c0_1050] : memref<2x4x32x32xf32, #tpu.memory_space<vmem>>, vector<1x4x1x32xf32>
    %720 = vector.shape_cast %719 : vector<1x4x1x32xf32> to vector<4x32xf32>
    %721 = vector.shape_cast %718 : vector<4x32xf32> to vector<1x4x1x32xf32>
    tpu.vector_store %arg4[%c1_1047, %c0_1048, %c15_1049, %c0_1050], %721 {strides = array<i32>} : memref<2x4x32x32xf32, #tpu.memory_space<vmem>>, vector<1x4x1x32xf32>,
    %c1_1051 = arith.constant 1 : index
    %c0_1052 = arith.constant 0 : index
    %c8_1053 = arith.constant 8 : index
    %c0_1054 = arith.constant 0 : index
    %722 = vector.load %arg1[%c1_1051, %c0_1052, %c8_1053, %c0_1054] : memref<2x4x18x34xbf16, #tpu.memory_space<vmem>>, vector<1x4x1x32xbf16>
    %723 = vector.shape_cast %722 : vector<1x4x1x32xbf16> to vector<4x32xbf16>
    %c1_1055 = arith.constant 1 : index
    %c0_1056 = arith.constant 0 : index
    %c8_1057 = arith.constant 8 : index
    %c1_1058 = arith.constant 1 : index
    %724 = vector.load %arg1[%c1_1055, %c0_1056, %c8_1057, %c1_1058] : memref<2x4x18x34xbf16, #tpu.memory_space<vmem>>, vector<1x4x1x32xbf16>
    %725 = vector.shape_cast %724 : vector<1x4x1x32xbf16> to vector<4x32xbf16>
    %c1_1059 = arith.constant 1 : index
    %c0_1060 = arith.constant 0 : index
    %c8_1061 = arith.constant 8 : index
    %c2_1062 = arith.constant 2 : index
    %726 = vector.load %arg1[%c1_1059, %c0_1060, %c8_1061, %c2_1062] : memref<2x4x18x34xbf16, #tpu.memory_space<vmem>>, vector<1x4x1x32xbf16>
    %727 = vector.shape_cast %726 : vector<1x4x1x32xbf16> to vector<4x32xbf16>
    %c1_1063 = arith.constant 1 : index
    %c0_1064 = arith.constant 0 : index
    %c9_1065 = arith.constant 9 : index
    %c0_1066 = arith.constant 0 : index
    %728 = vector.load %arg1[%c1_1063, %c0_1064, %c9_1065, %c0_1066] : memref<2x4x18x34xbf16, #tpu.memory_space<vmem>>, vector<1x4x1x32xbf16>
    %729 = vector.shape_cast %728 : vector<1x4x1x32xbf16> to vector<4x32xbf16>
    %c1_1067 = arith.constant 1 : index
    %c0_1068 = arith.constant 0 : index
    %c9_1069 = arith.constant 9 : index
    %c1_1070 = arith.constant 1 : index
    %730 = vector.load %arg1[%c1_1067, %c0_1068, %c9_1069, %c1_1070] : memref<2x4x18x34xbf16, #tpu.memory_space<vmem>>, vector<1x4x1x32xbf16>
    %731 = vector.shape_cast %730 : vector<1x4x1x32xbf16> to vector<4x32xbf16>
    %c1_1071 = arith.constant 1 : index
    %c0_1072 = arith.constant 0 : index
    %c9_1073 = arith.constant 9 : index
    %c2_1074 = arith.constant 2 : index
    %732 = vector.load %arg1[%c1_1071, %c0_1072, %c9_1073, %c2_1074] : memref<2x4x18x34xbf16, #tpu.memory_space<vmem>>, vector<1x4x1x32xbf16>
    %733 = vector.shape_cast %732 : vector<1x4x1x32xbf16> to vector<4x32xbf16>
    %c1_1075 = arith.constant 1 : index
    %c0_1076 = arith.constant 0 : index
    %c10_1077 = arith.constant 10 : index
    %c0_1078 = arith.constant 0 : index
    %734 = vector.load %arg1[%c1_1075, %c0_1076, %c10_1077, %c0_1078] : memref<2x4x18x34xbf16, #tpu.memory_space<vmem>>, vector<1x4x1x32xbf16>
    %735 = vector.shape_cast %734 : vector<1x4x1x32xbf16> to vector<4x32xbf16>
    %c1_1079 = arith.constant 1 : index
    %c0_1080 = arith.constant 0 : index
    %c10_1081 = arith.constant 10 : index
    %c1_1082 = arith.constant 1 : index
    %736 = vector.load %arg1[%c1_1079, %c0_1080, %c10_1081, %c1_1082] : memref<2x4x18x34xbf16, #tpu.memory_space<vmem>>, vector<1x4x1x32xbf16>
    %737 = vector.shape_cast %736 : vector<1x4x1x32xbf16> to vector<4x32xbf16>
    %c1_1083 = arith.constant 1 : index
    %c0_1084 = arith.constant 0 : index
    %c10_1085 = arith.constant 10 : index
    %c2_1086 = arith.constant 2 : index
    %738 = vector.load %arg1[%c1_1083, %c0_1084, %c10_1085, %c2_1086] : memref<2x4x18x34xbf16, #tpu.memory_space<vmem>>, vector<1x4x1x32xbf16>
    %739 = vector.shape_cast %738 : vector<1x4x1x32xbf16> to vector<4x32xbf16>
    %740 = tpu.concatenate %723, %725, %727, %729, %731, %733, %735, %737, %739 in 0 : vector<4x32xbf16>, vector<4x32xbf16>, vector<4x32xbf16>, vector<4x32xbf16>, vector<4x32xbf16>, vector<4x32xbf16>, vector<4x32xbf16>, vector<4x32xbf16>, vector<4x32xbf16> -> vector<36x32xbf16>
    %cst_1087 = arith.constant dense<0.000000e+00> : vector<8x32xf32>
    %741 = tpu.matmul %0, %740, %cst_1087 {dimension_numbers = #tpu.dot_dimension_numbers<[1], [0], [0], [1], [0, 0, 1, 1], [], []>} : vector<8x36xbf16>, vector<36x32xbf16>, vector<8x32xf32> -> vector<8x32xf32>
    %742 = vector.broadcast %1 : vector<8x1xf32> to vector<8x32xf32>
    %743 = arith.addf %741, %742 : vector<8x32xf32>
    %744 = vector.extract_strided_slice %743 {offsets = [0, 0], sizes = [4, 32], strides = [1, 1]} : vector<8x32xf32> to vector<4x32xf32>
    %c1_1088 = arith.constant 1 : index
    %c0_1089 = arith.constant 0 : index
    %c16_1090 = arith.constant 16 : index
    %c0_1091 = arith.constant 0 : index
    %745 = vector.load %arg4[%c1_1088, %c0_1089, %c16_1090, %c0_1091] : memref<2x4x32x32xf32, #tpu.memory_space<vmem>>, vector<1x4x1x32xf32>
    %746 = vector.shape_cast %745 : vector<1x4x1x32xf32> to vector<4x32xf32>
    %747 = vector.shape_cast %744 : vector<4x32xf32> to vector<1x4x1x32xf32>
    tpu.vector_store %arg4[%c1_1088, %c0_1089, %c16_1090, %c0_1091], %747 {strides = array<i32>} : memref<2x4x32x32xf32, #tpu.memory_space<vmem>>, vector<1x4x1x32xf32>,
    %748 = vector.extract_strided_slice %743 {offsets = [4, 0], sizes = [4, 32], strides = [1, 1]} : vector<8x32xf32> to vector<4x32xf32>
    %c1_1092 = arith.constant 1 : index
    %c0_1093 = arith.constant 0 : index
    %c17_1094 = arith.constant 17 : index
    %c0_1095 = arith.constant 0 : index
    %749 = vector.load %arg4[%c1_1092, %c0_1093, %c17_1094, %c0_1095] : memref<2x4x32x32xf32, #tpu.memory_space<vmem>>, vector<1x4x1x32xf32>
    %750 = vector.shape_cast %749 : vector<1x4x1x32xf32> to vector<4x32xf32>
    %751 = vector.shape_cast %748 : vector<4x32xf32> to vector<1x4x1x32xf32>
    tpu.vector_store %arg4[%c1_1092, %c0_1093, %c17_1094, %c0_1095], %751 {strides = array<i32>} : memref<2x4x32x32xf32, #tpu.memory_space<vmem>>, vector<1x4x1x32xf32>,
    %c1_1096 = arith.constant 1 : index
    %c0_1097 = arith.constant 0 : index
    %c9_1098 = arith.constant 9 : index
    %c0_1099 = arith.constant 0 : index
    %752 = vector.load %arg1[%c1_1096, %c0_1097, %c9_1098, %c0_1099] : memref<2x4x18x34xbf16, #tpu.memory_space<vmem>>, vector<1x4x1x32xbf16>
    %753 = vector.shape_cast %752 : vector<1x4x1x32xbf16> to vector<4x32xbf16>
    %c1_1100 = arith.constant 1 : index
    %c0_1101 = arith.constant 0 : index
    %c9_1102 = arith.constant 9 : index
    %c1_1103 = arith.constant 1 : index
    %754 = vector.load %arg1[%c1_1100, %c0_1101, %c9_1102, %c1_1103] : memref<2x4x18x34xbf16, #tpu.memory_space<vmem>>, vector<1x4x1x32xbf16>
    %755 = vector.shape_cast %754 : vector<1x4x1x32xbf16> to vector<4x32xbf16>
    %c1_1104 = arith.constant 1 : index
    %c0_1105 = arith.constant 0 : index
    %c9_1106 = arith.constant 9 : index
    %c2_1107 = arith.constant 2 : index
    %756 = vector.load %arg1[%c1_1104, %c0_1105, %c9_1106, %c2_1107] : memref<2x4x18x34xbf16, #tpu.memory_space<vmem>>, vector<1x4x1x32xbf16>
    %757 = vector.shape_cast %756 : vector<1x4x1x32xbf16> to vector<4x32xbf16>
    %c1_1108 = arith.constant 1 : index
    %c0_1109 = arith.constant 0 : index
    %c10_1110 = arith.constant 10 : index
    %c0_1111 = arith.constant 0 : index
    %758 = vector.load %arg1[%c1_1108, %c0_1109, %c10_1110, %c0_1111] : memref<2x4x18x34xbf16, #tpu.memory_space<vmem>>, vector<1x4x1x32xbf16>
    %759 = vector.shape_cast %758 : vector<1x4x1x32xbf16> to vector<4x32xbf16>
    %c1_1112 = arith.constant 1 : index
    %c0_1113 = arith.constant 0 : index
    %c10_1114 = arith.constant 10 : index
    %c1_1115 = arith.constant 1 : index
    %760 = vector.load %arg1[%c1_1112, %c0_1113, %c10_1114, %c1_1115] : memref<2x4x18x34xbf16, #tpu.memory_space<vmem>>, vector<1x4x1x32xbf16>
    %761 = vector.shape_cast %760 : vector<1x4x1x32xbf16> to vector<4x32xbf16>
    %c1_1116 = arith.constant 1 : index
    %c0_1117 = arith.constant 0 : index
    %c10_1118 = arith.constant 10 : index
    %c2_1119 = arith.constant 2 : index
    %762 = vector.load %arg1[%c1_1116, %c0_1117, %c10_1118, %c2_1119] : memref<2x4x18x34xbf16, #tpu.memory_space<vmem>>, vector<1x4x1x32xbf16>
    %763 = vector.shape_cast %762 : vector<1x4x1x32xbf16> to vector<4x32xbf16>
    %c1_1120 = arith.constant 1 : index
    %c0_1121 = arith.constant 0 : index
    %c11_1122 = arith.constant 11 : index
    %c0_1123 = arith.constant 0 : index
    %764 = vector.load %arg1[%c1_1120, %c0_1121, %c11_1122, %c0_1123] : memref<2x4x18x34xbf16, #tpu.memory_space<vmem>>, vector<1x4x1x32xbf16>
    %765 = vector.shape_cast %764 : vector<1x4x1x32xbf16> to vector<4x32xbf16>
    %c1_1124 = arith.constant 1 : index
    %c0_1125 = arith.constant 0 : index
    %c11_1126 = arith.constant 11 : index
    %c1_1127 = arith.constant 1 : index
    %766 = vector.load %arg1[%c1_1124, %c0_1125, %c11_1126, %c1_1127] : memref<2x4x18x34xbf16, #tpu.memory_space<vmem>>, vector<1x4x1x32xbf16>
    %767 = vector.shape_cast %766 : vector<1x4x1x32xbf16> to vector<4x32xbf16>
    %c1_1128 = arith.constant 1 : index
    %c0_1129 = arith.constant 0 : index
    %c11_1130 = arith.constant 11 : index
    %c2_1131 = arith.constant 2 : index
    %768 = vector.load %arg1[%c1_1128, %c0_1129, %c11_1130, %c2_1131] : memref<2x4x18x34xbf16, #tpu.memory_space<vmem>>, vector<1x4x1x32xbf16>
    %769 = vector.shape_cast %768 : vector<1x4x1x32xbf16> to vector<4x32xbf16>
    %770 = tpu.concatenate %753, %755, %757, %759, %761, %763, %765, %767, %769 in 0 : vector<4x32xbf16>, vector<4x32xbf16>, vector<4x32xbf16>, vector<4x32xbf16>, vector<4x32xbf16>, vector<4x32xbf16>, vector<4x32xbf16>, vector<4x32xbf16>, vector<4x32xbf16> -> vector<36x32xbf16>
    %cst_1132 = arith.constant dense<0.000000e+00> : vector<8x32xf32>
    %771 = tpu.matmul %0, %770, %cst_1132 {dimension_numbers = #tpu.dot_dimension_numbers<[1], [0], [0], [1], [0, 0, 1, 1], [], []>} : vector<8x36xbf16>, vector<36x32xbf16>, vector<8x32xf32> -> vector<8x32xf32>
    %772 = vector.broadcast %1 : vector<8x1xf32> to vector<8x32xf32>
    %773 = arith.addf %771, %772 : vector<8x32xf32>
    %774 = vector.extract_strided_slice %773 {offsets = [0, 0], sizes = [4, 32], strides = [1, 1]} : vector<8x32xf32> to vector<4x32xf32>
    %c1_1133 = arith.constant 1 : index
    %c0_1134 = arith.constant 0 : index
    %c18_1135 = arith.constant 18 : index
    %c0_1136 = arith.constant 0 : index
    %775 = vector.load %arg4[%c1_1133, %c0_1134, %c18_1135, %c0_1136] : memref<2x4x32x32xf32, #tpu.memory_space<vmem>>, vector<1x4x1x32xf32>
    %776 = vector.shape_cast %775 : vector<1x4x1x32xf32> to vector<4x32xf32>
    %777 = vector.shape_cast %774 : vector<4x32xf32> to vector<1x4x1x32xf32>
    tpu.vector_store %arg4[%c1_1133, %c0_1134, %c18_1135, %c0_1136], %777 {strides = array<i32>} : memref<2x4x32x32xf32, #tpu.memory_space<vmem>>, vector<1x4x1x32xf32>,
    %778 = vector.extract_strided_slice %773 {offsets = [4, 0], sizes = [4, 32], strides = [1, 1]} : vector<8x32xf32> to vector<4x32xf32>
    %c1_1137 = arith.constant 1 : index
    %c0_1138 = arith.constant 0 : index
    %c19_1139 = arith.constant 19 : index
    %c0_1140 = arith.constant 0 : index
    %779 = vector.load %arg4[%c1_1137, %c0_1138, %c19_1139, %c0_1140] : memref<2x4x32x32xf32, #tpu.memory_space<vmem>>, vector<1x4x1x32xf32>
    %780 = vector.shape_cast %779 : vector<1x4x1x32xf32> to vector<4x32xf32>
    %781 = vector.shape_cast %778 : vector<4x32xf32> to vector<1x4x1x32xf32>
    tpu.vector_store %arg4[%c1_1137, %c0_1138, %c19_1139, %c0_1140], %781 {strides = array<i32>} : memref<2x4x32x32xf32, #tpu.memory_space<vmem>>, vector<1x4x1x32xf32>,
    %c1_1141 = arith.constant 1 : index
    %c0_1142 = arith.constant 0 : index
    %c10_1143 = arith.constant 10 : index
    %c0_1144 = arith.constant 0 : index
    %782 = vector.load %arg1[%c1_1141, %c0_1142, %c10_1143, %c0_1144] : memref<2x4x18x34xbf16, #tpu.memory_space<vmem>>, vector<1x4x1x32xbf16>
    %783 = vector.shape_cast %782 : vector<1x4x1x32xbf16> to vector<4x32xbf16>
    %c1_1145 = arith.constant 1 : index
    %c0_1146 = arith.constant 0 : index
    %c10_1147 = arith.constant 10 : index
    %c1_1148 = arith.constant 1 : index
    %784 = vector.load %arg1[%c1_1145, %c0_1146, %c10_1147, %c1_1148] : memref<2x4x18x34xbf16, #tpu.memory_space<vmem>>, vector<1x4x1x32xbf16>
    %785 = vector.shape_cast %784 : vector<1x4x1x32xbf16> to vector<4x32xbf16>
    %c1_1149 = arith.constant 1 : index
    %c0_1150 = arith.constant 0 : index
    %c10_1151 = arith.constant 10 : index
    %c2_1152 = arith.constant 2 : index
    %786 = vector.load %arg1[%c1_1149, %c0_1150, %c10_1151, %c2_1152] : memref<2x4x18x34xbf16, #tpu.memory_space<vmem>>, vector<1x4x1x32xbf16>
    %787 = vector.shape_cast %786 : vector<1x4x1x32xbf16> to vector<4x32xbf16>
    %c1_1153 = arith.constant 1 : index
    %c0_1154 = arith.constant 0 : index
    %c11_1155 = arith.constant 11 : index
    %c0_1156 = arith.constant 0 : index
    %788 = vector.load %arg1[%c1_1153, %c0_1154, %c11_1155, %c0_1156] : memref<2x4x18x34xbf16, #tpu.memory_space<vmem>>, vector<1x4x1x32xbf16>
    %789 = vector.shape_cast %788 : vector<1x4x1x32xbf16> to vector<4x32xbf16>
    %c1_1157 = arith.constant 1 : index
    %c0_1158 = arith.constant 0 : index
    %c11_1159 = arith.constant 11 : index
    %c1_1160 = arith.constant 1 : index
    %790 = vector.load %arg1[%c1_1157, %c0_1158, %c11_1159, %c1_1160] : memref<2x4x18x34xbf16, #tpu.memory_space<vmem>>, vector<1x4x1x32xbf16>
    %791 = vector.shape_cast %790 : vector<1x4x1x32xbf16> to vector<4x32xbf16>
    %c1_1161 = arith.constant 1 : index
    %c0_1162 = arith.constant 0 : index
    %c11_1163 = arith.constant 11 : index
    %c2_1164 = arith.constant 2 : index
    %792 = vector.load %arg1[%c1_1161, %c0_1162, %c11_1163, %c2_1164] : memref<2x4x18x34xbf16, #tpu.memory_space<vmem>>, vector<1x4x1x32xbf16>
    %793 = vector.shape_cast %792 : vector<1x4x1x32xbf16> to vector<4x32xbf16>
    %c1_1165 = arith.constant 1 : index
    %c0_1166 = arith.constant 0 : index
    %c12_1167 = arith.constant 12 : index
    %c0_1168 = arith.constant 0 : index
    %794 = vector.load %arg1[%c1_1165, %c0_1166, %c12_1167, %c0_1168] : memref<2x4x18x34xbf16, #tpu.memory_space<vmem>>, vector<1x4x1x32xbf16>
    %795 = vector.shape_cast %794 : vector<1x4x1x32xbf16> to vector<4x32xbf16>
    %c1_1169 = arith.constant 1 : index
    %c0_1170 = arith.constant 0 : index
    %c12_1171 = arith.constant 12 : index
    %c1_1172 = arith.constant 1 : index
    %796 = vector.load %arg1[%c1_1169, %c0_1170, %c12_1171, %c1_1172] : memref<2x4x18x34xbf16, #tpu.memory_space<vmem>>, vector<1x4x1x32xbf16>
    %797 = vector.shape_cast %796 : vector<1x4x1x32xbf16> to vector<4x32xbf16>
    %c1_1173 = arith.constant 1 : index
    %c0_1174 = arith.constant 0 : index
    %c12_1175 = arith.constant 12 : index
    %c2_1176 = arith.constant 2 : index
    %798 = vector.load %arg1[%c1_1173, %c0_1174, %c12_1175, %c2_1176] : memref<2x4x18x34xbf16, #tpu.memory_space<vmem>>, vector<1x4x1x32xbf16>
    %799 = vector.shape_cast %798 : vector<1x4x1x32xbf16> to vector<4x32xbf16>
    %800 = tpu.concatenate %783, %785, %787, %789, %791, %793, %795, %797, %799 in 0 : vector<4x32xbf16>, vector<4x32xbf16>, vector<4x32xbf16>, vector<4x32xbf16>, vector<4x32xbf16>, vector<4x32xbf16>, vector<4x32xbf16>, vector<4x32xbf16>, vector<4x32xbf16> -> vector<36x32xbf16>
    %cst_1177 = arith.constant dense<0.000000e+00> : vector<8x32xf32>
    %801 = tpu.matmul %0, %800, %cst_1177 {dimension_numbers = #tpu.dot_dimension_numbers<[1], [0], [0], [1], [0, 0, 1, 1], [], []>} : vector<8x36xbf16>, vector<36x32xbf16>, vector<8x32xf32> -> vector<8x32xf32>
    %802 = vector.broadcast %1 : vector<8x1xf32> to vector<8x32xf32>
    %803 = arith.addf %801, %802 : vector<8x32xf32>
    %804 = vector.extract_strided_slice %803 {offsets = [0, 0], sizes = [4, 32], strides = [1, 1]} : vector<8x32xf32> to vector<4x32xf32>
    %c1_1178 = arith.constant 1 : index
    %c0_1179 = arith.constant 0 : index
    %c20_1180 = arith.constant 20 : index
    %c0_1181 = arith.constant 0 : index
    %805 = vector.load %arg4[%c1_1178, %c0_1179, %c20_1180, %c0_1181] : memref<2x4x32x32xf32, #tpu.memory_space<vmem>>, vector<1x4x1x32xf32>
    %806 = vector.shape_cast %805 : vector<1x4x1x32xf32> to vector<4x32xf32>
    %807 = vector.shape_cast %804 : vector<4x32xf32> to vector<1x4x1x32xf32>
    tpu.vector_store %arg4[%c1_1178, %c0_1179, %c20_1180, %c0_1181], %807 {strides = array<i32>} : memref<2x4x32x32xf32, #tpu.memory_space<vmem>>, vector<1x4x1x32xf32>,
    %808 = vector.extract_strided_slice %803 {offsets = [4, 0], sizes = [4, 32], strides = [1, 1]} : vector<8x32xf32> to vector<4x32xf32>
    %c1_1182 = arith.constant 1 : index
    %c0_1183 = arith.constant 0 : index
    %c21_1184 = arith.constant 21 : index
    %c0_1185 = arith.constant 0 : index
    %809 = vector.load %arg4[%c1_1182, %c0_1183, %c21_1184, %c0_1185] : memref<2x4x32x32xf32, #tpu.memory_space<vmem>>, vector<1x4x1x32xf32>
    %810 = vector.shape_cast %809 : vector<1x4x1x32xf32> to vector<4x32xf32>
    %811 = vector.shape_cast %808 : vector<4x32xf32> to vector<1x4x1x32xf32>
    tpu.vector_store %arg4[%c1_1182, %c0_1183, %c21_1184, %c0_1185], %811 {strides = array<i32>} : memref<2x4x32x32xf32, #tpu.memory_space<vmem>>, vector<1x4x1x32xf32>,
    %c1_1186 = arith.constant 1 : index
    %c0_1187 = arith.constant 0 : index
    %c11_1188 = arith.constant 11 : index
    %c0_1189 = arith.constant 0 : index
    %812 = vector.load %arg1[%c1_1186, %c0_1187, %c11_1188, %c0_1189] : memref<2x4x18x34xbf16, #tpu.memory_space<vmem>>, vector<1x4x1x32xbf16>
    %813 = vector.shape_cast %812 : vector<1x4x1x32xbf16> to vector<4x32xbf16>
    %c1_1190 = arith.constant 1 : index
    %c0_1191 = arith.constant 0 : index
    %c11_1192 = arith.constant 11 : index
    %c1_1193 = arith.constant 1 : index
    %814 = vector.load %arg1[%c1_1190, %c0_1191, %c11_1192, %c1_1193] : memref<2x4x18x34xbf16, #tpu.memory_space<vmem>>, vector<1x4x1x32xbf16>
    %815 = vector.shape_cast %814 : vector<1x4x1x32xbf16> to vector<4x32xbf16>
    %c1_1194 = arith.constant 1 : index
    %c0_1195 = arith.constant 0 : index
    %c11_1196 = arith.constant 11 : index
    %c2_1197 = arith.constant 2 : index
    %816 = vector.load %arg1[%c1_1194, %c0_1195, %c11_1196, %c2_1197] : memref<2x4x18x34xbf16, #tpu.memory_space<vmem>>, vector<1x4x1x32xbf16>
    %817 = vector.shape_cast %816 : vector<1x4x1x32xbf16> to vector<4x32xbf16>
    %c1_1198 = arith.constant 1 : index
    %c0_1199 = arith.constant 0 : index
    %c12_1200 = arith.constant 12 : index
    %c0_1201 = arith.constant 0 : index
    %818 = vector.load %arg1[%c1_1198, %c0_1199, %c12_1200, %c0_1201] : memref<2x4x18x34xbf16, #tpu.memory_space<vmem>>, vector<1x4x1x32xbf16>
    %819 = vector.shape_cast %818 : vector<1x4x1x32xbf16> to vector<4x32xbf16>
    %c1_1202 = arith.constant 1 : index
    %c0_1203 = arith.constant 0 : index
    %c12_1204 = arith.constant 12 : index
    %c1_1205 = arith.constant 1 : index
    %820 = vector.load %arg1[%c1_1202, %c0_1203, %c12_1204, %c1_1205] : memref<2x4x18x34xbf16, #tpu.memory_space<vmem>>, vector<1x4x1x32xbf16>
    %821 = vector.shape_cast %820 : vector<1x4x1x32xbf16> to vector<4x32xbf16>
    %c1_1206 = arith.constant 1 : index
    %c0_1207 = arith.constant 0 : index
    %c12_1208 = arith.constant 12 : index
    %c2_1209 = arith.constant 2 : index
    %822 = vector.load %arg1[%c1_1206, %c0_1207, %c12_1208, %c2_1209] : memref<2x4x18x34xbf16, #tpu.memory_space<vmem>>, vector<1x4x1x32xbf16>
    %823 = vector.shape_cast %822 : vector<1x4x1x32xbf16> to vector<4x32xbf16>
    %c1_1210 = arith.constant 1 : index
    %c0_1211 = arith.constant 0 : index
    %c13_1212 = arith.constant 13 : index
    %c0_1213 = arith.constant 0 : index
    %824 = vector.load %arg1[%c1_1210, %c0_1211, %c13_1212, %c0_1213] : memref<2x4x18x34xbf16, #tpu.memory_space<vmem>>, vector<1x4x1x32xbf16>
    %825 = vector.shape_cast %824 : vector<1x4x1x32xbf16> to vector<4x32xbf16>
    %c1_1214 = arith.constant 1 : index
    %c0_1215 = arith.constant 0 : index
    %c13_1216 = arith.constant 13 : index
    %c1_1217 = arith.constant 1 : index
    %826 = vector.load %arg1[%c1_1214, %c0_1215, %c13_1216, %c1_1217] : memref<2x4x18x34xbf16, #tpu.memory_space<vmem>>, vector<1x4x1x32xbf16>
    %827 = vector.shape_cast %826 : vector<1x4x1x32xbf16> to vector<4x32xbf16>
    %c1_1218 = arith.constant 1 : index
    %c0_1219 = arith.constant 0 : index
    %c13_1220 = arith.constant 13 : index
    %c2_1221 = arith.constant 2 : index
    %828 = vector.load %arg1[%c1_1218, %c0_1219, %c13_1220, %c2_1221] : memref<2x4x18x34xbf16, #tpu.memory_space<vmem>>, vector<1x4x1x32xbf16>
    %829 = vector.shape_cast %828 : vector<1x4x1x32xbf16> to vector<4x32xbf16>
    %830 = tpu.concatenate %813, %815, %817, %819, %821, %823, %825, %827, %829 in 0 : vector<4x32xbf16>, vector<4x32xbf16>, vector<4x32xbf16>, vector<4x32xbf16>, vector<4x32xbf16>, vector<4x32xbf16>, vector<4x32xbf16>, vector<4x32xbf16>, vector<4x32xbf16> -> vector<36x32xbf16>
    %cst_1222 = arith.constant dense<0.000000e+00> : vector<8x32xf32>
    %831 = tpu.matmul %0, %830, %cst_1222 {dimension_numbers = #tpu.dot_dimension_numbers<[1], [0], [0], [1], [0, 0, 1, 1], [], []>} : vector<8x36xbf16>, vector<36x32xbf16>, vector<8x32xf32> -> vector<8x32xf32>
    %832 = vector.broadcast %1 : vector<8x1xf32> to vector<8x32xf32>
    %833 = arith.addf %831, %832 : vector<8x32xf32>
    %834 = vector.extract_strided_slice %833 {offsets = [0, 0], sizes = [4, 32], strides = [1, 1]} : vector<8x32xf32> to vector<4x32xf32>
    %c1_1223 = arith.constant 1 : index
    %c0_1224 = arith.constant 0 : index
    %c22_1225 = arith.constant 22 : index
    %c0_1226 = arith.constant 0 : index
    %835 = vector.load %arg4[%c1_1223, %c0_1224, %c22_1225, %c0_1226] : memref<2x4x32x32xf32, #tpu.memory_space<vmem>>, vector<1x4x1x32xf32>
    %836 = vector.shape_cast %835 : vector<1x4x1x32xf32> to vector<4x32xf32>
    %837 = vector.shape_cast %834 : vector<4x32xf32> to vector<1x4x1x32xf32>
    tpu.vector_store %arg4[%c1_1223, %c0_1224, %c22_1225, %c0_1226], %837 {strides = array<i32>} : memref<2x4x32x32xf32, #tpu.memory_space<vmem>>, vector<1x4x1x32xf32>,
    %838 = vector.extract_strided_slice %833 {offsets = [4, 0], sizes = [4, 32], strides = [1, 1]} : vector<8x32xf32> to vector<4x32xf32>
    %c1_1227 = arith.constant 1 : index
    %c0_1228 = arith.constant 0 : index
    %c23_1229 = arith.constant 23 : index
    %c0_1230 = arith.constant 0 : index
    %839 = vector.load %arg4[%c1_1227, %c0_1228, %c23_1229, %c0_1230] : memref<2x4x32x32xf32, #tpu.memory_space<vmem>>, vector<1x4x1x32xf32>
    %840 = vector.shape_cast %839 : vector<1x4x1x32xf32> to vector<4x32xf32>
    %841 = vector.shape_cast %838 : vector<4x32xf32> to vector<1x4x1x32xf32>
    tpu.vector_store %arg4[%c1_1227, %c0_1228, %c23_1229, %c0_1230], %841 {strides = array<i32>} : memref<2x4x32x32xf32, #tpu.memory_space<vmem>>, vector<1x4x1x32xf32>,
    %c1_1231 = arith.constant 1 : index
    %c0_1232 = arith.constant 0 : index
    %c12_1233 = arith.constant 12 : index
    %c0_1234 = arith.constant 0 : index
    %842 = vector.load %arg1[%c1_1231, %c0_1232, %c12_1233, %c0_1234] : memref<2x4x18x34xbf16, #tpu.memory_space<vmem>>, vector<1x4x1x32xbf16>
    %843 = vector.shape_cast %842 : vector<1x4x1x32xbf16> to vector<4x32xbf16>
    %c1_1235 = arith.constant 1 : index
    %c0_1236 = arith.constant 0 : index
    %c12_1237 = arith.constant 12 : index
    %c1_1238 = arith.constant 1 : index
    %844 = vector.load %arg1[%c1_1235, %c0_1236, %c12_1237, %c1_1238] : memref<2x4x18x34xbf16, #tpu.memory_space<vmem>>, vector<1x4x1x32xbf16>
    %845 = vector.shape_cast %844 : vector<1x4x1x32xbf16> to vector<4x32xbf16>
    %c1_1239 = arith.constant 1 : index
    %c0_1240 = arith.constant 0 : index
    %c12_1241 = arith.constant 12 : index
    %c2_1242 = arith.constant 2 : index
    %846 = vector.load %arg1[%c1_1239, %c0_1240, %c12_1241, %c2_1242] : memref<2x4x18x34xbf16, #tpu.memory_space<vmem>>, vector<1x4x1x32xbf16>
    %847 = vector.shape_cast %846 : vector<1x4x1x32xbf16> to vector<4x32xbf16>
    %c1_1243 = arith.constant 1 : index
    %c0_1244 = arith.constant 0 : index
    %c13_1245 = arith.constant 13 : index
    %c0_1246 = arith.constant 0 : index
    %848 = vector.load %arg1[%c1_1243, %c0_1244, %c13_1245, %c0_1246] : memref<2x4x18x34xbf16, #tpu.memory_space<vmem>>, vector<1x4x1x32xbf16>
    %849 = vector.shape_cast %848 : vector<1x4x1x32xbf16> to vector<4x32xbf16>
    %c1_1247 = arith.constant 1 : index
    %c0_1248 = arith.constant 0 : index
    %c13_1249 = arith.constant 13 : index
    %c1_1250 = arith.constant 1 : index
    %850 = vector.load %arg1[%c1_1247, %c0_1248, %c13_1249, %c1_1250] : memref<2x4x18x34xbf16, #tpu.memory_space<vmem>>, vector<1x4x1x32xbf16>
    %851 = vector.shape_cast %850 : vector<1x4x1x32xbf16> to vector<4x32xbf16>
    %c1_1251 = arith.constant 1 : index
    %c0_1252 = arith.constant 0 : index
    %c13_1253 = arith.constant 13 : index
    %c2_1254 = arith.constant 2 : index
    %852 = vector.load %arg1[%c1_1251, %c0_1252, %c13_1253, %c2_1254] : memref<2x4x18x34xbf16, #tpu.memory_space<vmem>>, vector<1x4x1x32xbf16>
    %853 = vector.shape_cast %852 : vector<1x4x1x32xbf16> to vector<4x32xbf16>
    %c1_1255 = arith.constant 1 : index
    %c0_1256 = arith.constant 0 : index
    %c14_1257 = arith.constant 14 : index
    %c0_1258 = arith.constant 0 : index
    %854 = vector.load %arg1[%c1_1255, %c0_1256, %c14_1257, %c0_1258] : memref<2x4x18x34xbf16, #tpu.memory_space<vmem>>, vector<1x4x1x32xbf16>
    %855 = vector.shape_cast %854 : vector<1x4x1x32xbf16> to vector<4x32xbf16>
    %c1_1259 = arith.constant 1 : index
    %c0_1260 = arith.constant 0 : index
    %c14_1261 = arith.constant 14 : index
    %c1_1262 = arith.constant 1 : index
    %856 = vector.load %arg1[%c1_1259, %c0_1260, %c14_1261, %c1_1262] : memref<2x4x18x34xbf16, #tpu.memory_space<vmem>>, vector<1x4x1x32xbf16>
    %857 = vector.shape_cast %856 : vector<1x4x1x32xbf16> to vector<4x32xbf16>
    %c1_1263 = arith.constant 1 : index
    %c0_1264 = arith.constant 0 : index
    %c14_1265 = arith.constant 14 : index
    %c2_1266 = arith.constant 2 : index
    %858 = vector.load %arg1[%c1_1263, %c0_1264, %c14_1265, %c2_1266] : memref<2x4x18x34xbf16, #tpu.memory_space<vmem>>, vector<1x4x1x32xbf16>
    %859 = vector.shape_cast %858 : vector<1x4x1x32xbf16> to vector<4x32xbf16>
    %860 = tpu.concatenate %843, %845, %847, %849, %851, %853, %855, %857, %859 in 0 : vector<4x32xbf16>, vector<4x32xbf16>, vector<4x32xbf16>, vector<4x32xbf16>, vector<4x32xbf16>, vector<4x32xbf16>, vector<4x32xbf16>, vector<4x32xbf16>, vector<4x32xbf16> -> vector<36x32xbf16>
    %cst_1267 = arith.constant dense<0.000000e+00> : vector<8x32xf32>
    %861 = tpu.matmul %0, %860, %cst_1267 {dimension_numbers = #tpu.dot_dimension_numbers<[1], [0], [0], [1], [0, 0, 1, 1], [], []>} : vector<8x36xbf16>, vector<36x32xbf16>, vector<8x32xf32> -> vector<8x32xf32>
    %862 = vector.broadcast %1 : vector<8x1xf32> to vector<8x32xf32>
    %863 = arith.addf %861, %862 : vector<8x32xf32>
    %864 = vector.extract_strided_slice %863 {offsets = [0, 0], sizes = [4, 32], strides = [1, 1]} : vector<8x32xf32> to vector<4x32xf32>
    %c1_1268 = arith.constant 1 : index
    %c0_1269 = arith.constant 0 : index
    %c24_1270 = arith.constant 24 : index
    %c0_1271 = arith.constant 0 : index
    %865 = vector.load %arg4[%c1_1268, %c0_1269, %c24_1270, %c0_1271] : memref<2x4x32x32xf32, #tpu.memory_space<vmem>>, vector<1x4x1x32xf32>
    %866 = vector.shape_cast %865 : vector<1x4x1x32xf32> to vector<4x32xf32>
    %867 = vector.shape_cast %864 : vector<4x32xf32> to vector<1x4x1x32xf32>
    tpu.vector_store %arg4[%c1_1268, %c0_1269, %c24_1270, %c0_1271], %867 {strides = array<i32>} : memref<2x4x32x32xf32, #tpu.memory_space<vmem>>, vector<1x4x1x32xf32>,
    %868 = vector.extract_strided_slice %863 {offsets = [4, 0], sizes = [4, 32], strides = [1, 1]} : vector<8x32xf32> to vector<4x32xf32>
    %c1_1272 = arith.constant 1 : index
    %c0_1273 = arith.constant 0 : index
    %c25_1274 = arith.constant 25 : index
    %c0_1275 = arith.constant 0 : index
    %869 = vector.load %arg4[%c1_1272, %c0_1273, %c25_1274, %c0_1275] : memref<2x4x32x32xf32, #tpu.memory_space<vmem>>, vector<1x4x1x32xf32>
    %870 = vector.shape_cast %869 : vector<1x4x1x32xf32> to vector<4x32xf32>
    %871 = vector.shape_cast %868 : vector<4x32xf32> to vector<1x4x1x32xf32>
    tpu.vector_store %arg4[%c1_1272, %c0_1273, %c25_1274, %c0_1275], %871 {strides = array<i32>} : memref<2x4x32x32xf32, #tpu.memory_space<vmem>>, vector<1x4x1x32xf32>,
    %c1_1276 = arith.constant 1 : index
    %c0_1277 = arith.constant 0 : index
    %c13_1278 = arith.constant 13 : index
    %c0_1279 = arith.constant 0 : index
    %872 = vector.load %arg1[%c1_1276, %c0_1277, %c13_1278, %c0_1279] : memref<2x4x18x34xbf16, #tpu.memory_space<vmem>>, vector<1x4x1x32xbf16>
    %873 = vector.shape_cast %872 : vector<1x4x1x32xbf16> to vector<4x32xbf16>
    %c1_1280 = arith.constant 1 : index
    %c0_1281 = arith.constant 0 : index
    %c13_1282 = arith.constant 13 : index
    %c1_1283 = arith.constant 1 : index
    %874 = vector.load %arg1[%c1_1280, %c0_1281, %c13_1282, %c1_1283] : memref<2x4x18x34xbf16, #tpu.memory_space<vmem>>, vector<1x4x1x32xbf16>
    %875 = vector.shape_cast %874 : vector<1x4x1x32xbf16> to vector<4x32xbf16>
    %c1_1284 = arith.constant 1 : index
    %c0_1285 = arith.constant 0 : index
    %c13_1286 = arith.constant 13 : index
    %c2_1287 = arith.constant 2 : index
    %876 = vector.load %arg1[%c1_1284, %c0_1285, %c13_1286, %c2_1287] : memref<2x4x18x34xbf16, #tpu.memory_space<vmem>>, vector<1x4x1x32xbf16>
    %877 = vector.shape_cast %876 : vector<1x4x1x32xbf16> to vector<4x32xbf16>
    %c1_1288 = arith.constant 1 : index
    %c0_1289 = arith.constant 0 : index
    %c14_1290 = arith.constant 14 : index
    %c0_1291 = arith.constant 0 : index
    %878 = vector.load %arg1[%c1_1288, %c0_1289, %c14_1290, %c0_1291] : memref<2x4x18x34xbf16, #tpu.memory_space<vmem>>, vector<1x4x1x32xbf16>
    %879 = vector.shape_cast %878 : vector<1x4x1x32xbf16> to vector<4x32xbf16>
    %c1_1292 = arith.constant 1 : index
    %c0_1293 = arith.constant 0 : index
    %c14_1294 = arith.constant 14 : index
    %c1_1295 = arith.constant 1 : index
    %880 = vector.load %arg1[%c1_1292, %c0_1293, %c14_1294, %c1_1295] : memref<2x4x18x34xbf16, #tpu.memory_space<vmem>>, vector<1x4x1x32xbf16>
    %881 = vector.shape_cast %880 : vector<1x4x1x32xbf16> to vector<4x32xbf16>
    %c1_1296 = arith.constant 1 : index
    %c0_1297 = arith.constant 0 : index
    %c14_1298 = arith.constant 14 : index
    %c2_1299 = arith.constant 2 : index
    %882 = vector.load %arg1[%c1_1296, %c0_1297, %c14_1298, %c2_1299] : memref<2x4x18x34xbf16, #tpu.memory_space<vmem>>, vector<1x4x1x32xbf16>
    %883 = vector.shape_cast %882 : vector<1x4x1x32xbf16> to vector<4x32xbf16>
    %c1_1300 = arith.constant 1 : index
    %c0_1301 = arith.constant 0 : index
    %c15_1302 = arith.constant 15 : index
    %c0_1303 = arith.constant 0 : index
    %884 = vector.load %arg1[%c1_1300, %c0_1301, %c15_1302, %c0_1303] : memref<2x4x18x34xbf16, #tpu.memory_space<vmem>>, vector<1x4x1x32xbf16>
    %885 = vector.shape_cast %884 : vector<1x4x1x32xbf16> to vector<4x32xbf16>
    %c1_1304 = arith.constant 1 : index
    %c0_1305 = arith.constant 0 : index
    %c15_1306 = arith.constant 15 : index
    %c1_1307 = arith.constant 1 : index
    %886 = vector.load %arg1[%c1_1304, %c0_1305, %c15_1306, %c1_1307] : memref<2x4x18x34xbf16, #tpu.memory_space<vmem>>, vector<1x4x1x32xbf16>
    %887 = vector.shape_cast %886 : vector<1x4x1x32xbf16> to vector<4x32xbf16>
    %c1_1308 = arith.constant 1 : index
    %c0_1309 = arith.constant 0 : index
    %c15_1310 = arith.constant 15 : index
    %c2_1311 = arith.constant 2 : index
    %888 = vector.load %arg1[%c1_1308, %c0_1309, %c15_1310, %c2_1311] : memref<2x4x18x34xbf16, #tpu.memory_space<vmem>>, vector<1x4x1x32xbf16>
    %889 = vector.shape_cast %888 : vector<1x4x1x32xbf16> to vector<4x32xbf16>
    %890 = tpu.concatenate %873, %875, %877, %879, %881, %883, %885, %887, %889 in 0 : vector<4x32xbf16>, vector<4x32xbf16>, vector<4x32xbf16>, vector<4x32xbf16>, vector<4x32xbf16>, vector<4x32xbf16>, vector<4x32xbf16>, vector<4x32xbf16>, vector<4x32xbf16> -> vector<36x32xbf16>
    %cst_1312 = arith.constant dense<0.000000e+00> : vector<8x32xf32>
    %891 = tpu.matmul %0, %890, %cst_1312 {dimension_numbers = #tpu.dot_dimension_numbers<[1], [0], [0], [1], [0, 0, 1, 1], [], []>} : vector<8x36xbf16>, vector<36x32xbf16>, vector<8x32xf32> -> vector<8x32xf32>
    %892 = vector.broadcast %1 : vector<8x1xf32> to vector<8x32xf32>
    %893 = arith.addf %891, %892 : vector<8x32xf32>
    %894 = vector.extract_strided_slice %893 {offsets = [0, 0], sizes = [4, 32], strides = [1, 1]} : vector<8x32xf32> to vector<4x32xf32>
    %c1_1313 = arith.constant 1 : index
    %c0_1314 = arith.constant 0 : index
    %c26_1315 = arith.constant 26 : index
    %c0_1316 = arith.constant 0 : index
    %895 = vector.load %arg4[%c1_1313, %c0_1314, %c26_1315, %c0_1316] : memref<2x4x32x32xf32, #tpu.memory_space<vmem>>, vector<1x4x1x32xf32>
    %896 = vector.shape_cast %895 : vector<1x4x1x32xf32> to vector<4x32xf32>
    %897 = vector.shape_cast %894 : vector<4x32xf32> to vector<1x4x1x32xf32>
    tpu.vector_store %arg4[%c1_1313, %c0_1314, %c26_1315, %c0_1316], %897 {strides = array<i32>} : memref<2x4x32x32xf32, #tpu.memory_space<vmem>>, vector<1x4x1x32xf32>,
    %898 = vector.extract_strided_slice %893 {offsets = [4, 0], sizes = [4, 32], strides = [1, 1]} : vector<8x32xf32> to vector<4x32xf32>
    %c1_1317 = arith.constant 1 : index
    %c0_1318 = arith.constant 0 : index
    %c27_1319 = arith.constant 27 : index
    %c0_1320 = arith.constant 0 : index
    %899 = vector.load %arg4[%c1_1317, %c0_1318, %c27_1319, %c0_1320] : memref<2x4x32x32xf32, #tpu.memory_space<vmem>>, vector<1x4x1x32xf32>
    %900 = vector.shape_cast %899 : vector<1x4x1x32xf32> to vector<4x32xf32>
    %901 = vector.shape_cast %898 : vector<4x32xf32> to vector<1x4x1x32xf32>
    tpu.vector_store %arg4[%c1_1317, %c0_1318, %c27_1319, %c0_1320], %901 {strides = array<i32>} : memref<2x4x32x32xf32, #tpu.memory_space<vmem>>, vector<1x4x1x32xf32>,
    %c1_1321 = arith.constant 1 : index
    %c0_1322 = arith.constant 0 : index
    %c14_1323 = arith.constant 14 : index
    %c0_1324 = arith.constant 0 : index
    %902 = vector.load %arg1[%c1_1321, %c0_1322, %c14_1323, %c0_1324] : memref<2x4x18x34xbf16, #tpu.memory_space<vmem>>, vector<1x4x1x32xbf16>
    %903 = vector.shape_cast %902 : vector<1x4x1x32xbf16> to vector<4x32xbf16>
    %c1_1325 = arith.constant 1 : index
    %c0_1326 = arith.constant 0 : index
    %c14_1327 = arith.constant 14 : index
    %c1_1328 = arith.constant 1 : index
    %904 = vector.load %arg1[%c1_1325, %c0_1326, %c14_1327, %c1_1328] : memref<2x4x18x34xbf16, #tpu.memory_space<vmem>>, vector<1x4x1x32xbf16>
    %905 = vector.shape_cast %904 : vector<1x4x1x32xbf16> to vector<4x32xbf16>
    %c1_1329 = arith.constant 1 : index
    %c0_1330 = arith.constant 0 : index
    %c14_1331 = arith.constant 14 : index
    %c2_1332 = arith.constant 2 : index
    %906 = vector.load %arg1[%c1_1329, %c0_1330, %c14_1331, %c2_1332] : memref<2x4x18x34xbf16, #tpu.memory_space<vmem>>, vector<1x4x1x32xbf16>
    %907 = vector.shape_cast %906 : vector<1x4x1x32xbf16> to vector<4x32xbf16>
    %c1_1333 = arith.constant 1 : index
    %c0_1334 = arith.constant 0 : index
    %c15_1335 = arith.constant 15 : index
    %c0_1336 = arith.constant 0 : index
    %908 = vector.load %arg1[%c1_1333, %c0_1334, %c15_1335, %c0_1336] : memref<2x4x18x34xbf16, #tpu.memory_space<vmem>>, vector<1x4x1x32xbf16>
    %909 = vector.shape_cast %908 : vector<1x4x1x32xbf16> to vector<4x32xbf16>
    %c1_1337 = arith.constant 1 : index
    %c0_1338 = arith.constant 0 : index
    %c15_1339 = arith.constant 15 : index
    %c1_1340 = arith.constant 1 : index
    %910 = vector.load %arg1[%c1_1337, %c0_1338, %c15_1339, %c1_1340] : memref<2x4x18x34xbf16, #tpu.memory_space<vmem>>, vector<1x4x1x32xbf16>
    %911 = vector.shape_cast %910 : vector<1x4x1x32xbf16> to vector<4x32xbf16>
    %c1_1341 = arith.constant 1 : index
    %c0_1342 = arith.constant 0 : index
    %c15_1343 = arith.constant 15 : index
    %c2_1344 = arith.constant 2 : index
    %912 = vector.load %arg1[%c1_1341, %c0_1342, %c15_1343, %c2_1344] : memref<2x4x18x34xbf16, #tpu.memory_space<vmem>>, vector<1x4x1x32xbf16>
    %913 = vector.shape_cast %912 : vector<1x4x1x32xbf16> to vector<4x32xbf16>
    %c1_1345 = arith.constant 1 : index
    %c0_1346 = arith.constant 0 : index
    %c16_1347 = arith.constant 16 : index
    %c0_1348 = arith.constant 0 : index
    %914 = vector.load %arg1[%c1_1345, %c0_1346, %c16_1347, %c0_1348] : memref<2x4x18x34xbf16, #tpu.memory_space<vmem>>, vector<1x4x1x32xbf16>
    %915 = vector.shape_cast %914 : vector<1x4x1x32xbf16> to vector<4x32xbf16>
    %c1_1349 = arith.constant 1 : index
    %c0_1350 = arith.constant 0 : index
    %c16_1351 = arith.constant 16 : index
    %c1_1352 = arith.constant 1 : index
    %916 = vector.load %arg1[%c1_1349, %c0_1350, %c16_1351, %c1_1352] : memref<2x4x18x34xbf16, #tpu.memory_space<vmem>>, vector<1x4x1x32xbf16>
    %917 = vector.shape_cast %916 : vector<1x4x1x32xbf16> to vector<4x32xbf16>
    %c1_1353 = arith.constant 1 : index
    %c0_1354 = arith.constant 0 : index
    %c16_1355 = arith.constant 16 : index
    %c2_1356 = arith.constant 2 : index
    %918 = vector.load %arg1[%c1_1353, %c0_1354, %c16_1355, %c2_1356] : memref<2x4x18x34xbf16, #tpu.memory_space<vmem>>, vector<1x4x1x32xbf16>
    %919 = vector.shape_cast %918 : vector<1x4x1x32xbf16> to vector<4x32xbf16>
    %920 = tpu.concatenate %903, %905, %907, %909, %911, %913, %915, %917, %919 in 0 : vector<4x32xbf16>, vector<4x32xbf16>, vector<4x32xbf16>, vector<4x32xbf16>, vector<4x32xbf16>, vector<4x32xbf16>, vector<4x32xbf16>, vector<4x32xbf16>, vector<4x32xbf16> -> vector<36x32xbf16>
    %cst_1357 = arith.constant dense<0.000000e+00> : vector<8x32xf32>
    %921 = tpu.matmul %0, %920, %cst_1357 {dimension_numbers = #tpu.dot_dimension_numbers<[1], [0], [0], [1], [0, 0, 1, 1], [], []>} : vector<8x36xbf16>, vector<36x32xbf16>, vector<8x32xf32> -> vector<8x32xf32>
    %922 = vector.broadcast %1 : vector<8x1xf32> to vector<8x32xf32>
    %923 = arith.addf %921, %922 : vector<8x32xf32>
    %924 = vector.extract_strided_slice %923 {offsets = [0, 0], sizes = [4, 32], strides = [1, 1]} : vector<8x32xf32> to vector<4x32xf32>
    %c1_1358 = arith.constant 1 : index
    %c0_1359 = arith.constant 0 : index
    %c28_1360 = arith.constant 28 : index
    %c0_1361 = arith.constant 0 : index
    %925 = vector.load %arg4[%c1_1358, %c0_1359, %c28_1360, %c0_1361] : memref<2x4x32x32xf32, #tpu.memory_space<vmem>>, vector<1x4x1x32xf32>
    %926 = vector.shape_cast %925 : vector<1x4x1x32xf32> to vector<4x32xf32>
    %927 = vector.shape_cast %924 : vector<4x32xf32> to vector<1x4x1x32xf32>
    tpu.vector_store %arg4[%c1_1358, %c0_1359, %c28_1360, %c0_1361], %927 {strides = array<i32>} : memref<2x4x32x32xf32, #tpu.memory_space<vmem>>, vector<1x4x1x32xf32>,
    %928 = vector.extract_strided_slice %923 {offsets = [4, 0], sizes = [4, 32], strides = [1, 1]} : vector<8x32xf32> to vector<4x32xf32>
    %c1_1362 = arith.constant 1 : index
    %c0_1363 = arith.constant 0 : index
    %c29_1364 = arith.constant 29 : index
    %c0_1365 = arith.constant 0 : index
    %929 = vector.load %arg4[%c1_1362, %c0_1363, %c29_1364, %c0_1365] : memref<2x4x32x32xf32, #tpu.memory_space<vmem>>, vector<1x4x1x32xf32>
    %930 = vector.shape_cast %929 : vector<1x4x1x32xf32> to vector<4x32xf32>
    %931 = vector.shape_cast %928 : vector<4x32xf32> to vector<1x4x1x32xf32>
    tpu.vector_store %arg4[%c1_1362, %c0_1363, %c29_1364, %c0_1365], %931 {strides = array<i32>} : memref<2x4x32x32xf32, #tpu.memory_space<vmem>>, vector<1x4x1x32xf32>,
    %c1_1366 = arith.constant 1 : index
    %c0_1367 = arith.constant 0 : index
    %c15_1368 = arith.constant 15 : index
    %c0_1369 = arith.constant 0 : index
    %932 = vector.load %arg1[%c1_1366, %c0_1367, %c15_1368, %c0_1369] : memref<2x4x18x34xbf16, #tpu.memory_space<vmem>>, vector<1x4x1x32xbf16>
    %933 = vector.shape_cast %932 : vector<1x4x1x32xbf16> to vector<4x32xbf16>
    %c1_1370 = arith.constant 1 : index
    %c0_1371 = arith.constant 0 : index
    %c15_1372 = arith.constant 15 : index
    %c1_1373 = arith.constant 1 : index
    %934 = vector.load %arg1[%c1_1370, %c0_1371, %c15_1372, %c1_1373] : memref<2x4x18x34xbf16, #tpu.memory_space<vmem>>, vector<1x4x1x32xbf16>
    %935 = vector.shape_cast %934 : vector<1x4x1x32xbf16> to vector<4x32xbf16>
    %c1_1374 = arith.constant 1 : index
    %c0_1375 = arith.constant 0 : index
    %c15_1376 = arith.constant 15 : index
    %c2_1377 = arith.constant 2 : index
    %936 = vector.load %arg1[%c1_1374, %c0_1375, %c15_1376, %c2_1377] : memref<2x4x18x34xbf16, #tpu.memory_space<vmem>>, vector<1x4x1x32xbf16>
    %937 = vector.shape_cast %936 : vector<1x4x1x32xbf16> to vector<4x32xbf16>
    %c1_1378 = arith.constant 1 : index
    %c0_1379 = arith.constant 0 : index
    %c16_1380 = arith.constant 16 : index
    %c0_1381 = arith.constant 0 : index
    %938 = vector.load %arg1[%c1_1378, %c0_1379, %c16_1380, %c0_1381] : memref<2x4x18x34xbf16, #tpu.memory_space<vmem>>, vector<1x4x1x32xbf16>
    %939 = vector.shape_cast %938 : vector<1x4x1x32xbf16> to vector<4x32xbf16>
    %c1_1382 = arith.constant 1 : index
    %c0_1383 = arith.constant 0 : index
    %c16_1384 = arith.constant 16 : index
    %c1_1385 = arith.constant 1 : index
    %940 = vector.load %arg1[%c1_1382, %c0_1383, %c16_1384, %c1_1385] : memref<2x4x18x34xbf16, #tpu.memory_space<vmem>>, vector<1x4x1x32xbf16>
    %941 = vector.shape_cast %940 : vector<1x4x1x32xbf16> to vector<4x32xbf16>
    %c1_1386 = arith.constant 1 : index
    %c0_1387 = arith.constant 0 : index
    %c16_1388 = arith.constant 16 : index
    %c2_1389 = arith.constant 2 : index
    %942 = vector.load %arg1[%c1_1386, %c0_1387, %c16_1388, %c2_1389] : memref<2x4x18x34xbf16, #tpu.memory_space<vmem>>, vector<1x4x1x32xbf16>
    %943 = vector.shape_cast %942 : vector<1x4x1x32xbf16> to vector<4x32xbf16>
    %c1_1390 = arith.constant 1 : index
    %c0_1391 = arith.constant 0 : index
    %c17_1392 = arith.constant 17 : index
    %c0_1393 = arith.constant 0 : index
    %944 = vector.load %arg1[%c1_1390, %c0_1391, %c17_1392, %c0_1393] : memref<2x4x18x34xbf16, #tpu.memory_space<vmem>>, vector<1x4x1x32xbf16>
    %945 = vector.shape_cast %944 : vector<1x4x1x32xbf16> to vector<4x32xbf16>
    %c1_1394 = arith.constant 1 : index
    %c0_1395 = arith.constant 0 : index
    %c17_1396 = arith.constant 17 : index
    %c1_1397 = arith.constant 1 : index
    %946 = vector.load %arg1[%c1_1394, %c0_1395, %c17_1396, %c1_1397] : memref<2x4x18x34xbf16, #tpu.memory_space<vmem>>, vector<1x4x1x32xbf16>
    %947 = vector.shape_cast %946 : vector<1x4x1x32xbf16> to vector<4x32xbf16>
    %c1_1398 = arith.constant 1 : index
    %c0_1399 = arith.constant 0 : index
    %c17_1400 = arith.constant 17 : index
    %c2_1401 = arith.constant 2 : index
    %948 = vector.load %arg1[%c1_1398, %c0_1399, %c17_1400, %c2_1401] : memref<2x4x18x34xbf16, #tpu.memory_space<vmem>>, vector<1x4x1x32xbf16>
    %949 = vector.shape_cast %948 : vector<1x4x1x32xbf16> to vector<4x32xbf16>
    %950 = tpu.concatenate %933, %935, %937, %939, %941, %943, %945, %947, %949 in 0 : vector<4x32xbf16>, vector<4x32xbf16>, vector<4x32xbf16>, vector<4x32xbf16>, vector<4x32xbf16>, vector<4x32xbf16>, vector<4x32xbf16>, vector<4x32xbf16>, vector<4x32xbf16> -> vector<36x32xbf16>
    %cst_1402 = arith.constant dense<0.000000e+00> : vector<8x32xf32>
    %951 = tpu.matmul %0, %950, %cst_1402 {dimension_numbers = #tpu.dot_dimension_numbers<[1], [0], [0], [1], [0, 0, 1, 1], [], []>} : vector<8x36xbf16>, vector<36x32xbf16>, vector<8x32xf32> -> vector<8x32xf32>
    %952 = vector.broadcast %1 : vector<8x1xf32> to vector<8x32xf32>
    %953 = arith.addf %951, %952 : vector<8x32xf32>
    %954 = vector.extract_strided_slice %953 {offsets = [0, 0], sizes = [4, 32], strides = [1, 1]} : vector<8x32xf32> to vector<4x32xf32>
    %c1_1403 = arith.constant 1 : index
    %c0_1404 = arith.constant 0 : index
    %c30_1405 = arith.constant 30 : index
    %c0_1406 = arith.constant 0 : index
    %955 = vector.load %arg4[%c1_1403, %c0_1404, %c30_1405, %c0_1406] : memref<2x4x32x32xf32, #tpu.memory_space<vmem>>, vector<1x4x1x32xf32>
    %956 = vector.shape_cast %955 : vector<1x4x1x32xf32> to vector<4x32xf32>
    %957 = vector.shape_cast %954 : vector<4x32xf32> to vector<1x4x1x32xf32>
    tpu.vector_store %arg4[%c1_1403, %c0_1404, %c30_1405, %c0_1406], %957 {strides = array<i32>} : memref<2x4x32x32xf32, #tpu.memory_space<vmem>>, vector<1x4x1x32xf32>,
    %958 = vector.extract_strided_slice %953 {offsets = [4, 0], sizes = [4, 32], strides = [1, 1]} : vector<8x32xf32> to vector<4x32xf32>
    %c1_1407 = arith.constant 1 : index
    %c0_1408 = arith.constant 0 : index
    %c31_1409 = arith.constant 31 : index
    %c0_1410 = arith.constant 0 : index
    %959 = vector.load %arg4[%c1_1407, %c0_1408, %c31_1409, %c0_1410] : memref<2x4x32x32xf32, #tpu.memory_space<vmem>>, vector<1x4x1x32xf32>
    %960 = vector.shape_cast %959 : vector<1x4x1x32xf32> to vector<4x32xf32>
    %961 = vector.shape_cast %958 : vector<4x32xf32> to vector<1x4x1x32xf32>
    tpu.vector_store %arg4[%c1_1407, %c0_1408, %c31_1409, %c0_1410], %961 {strides = array<i32>} : memref<2x4x32x32xf32, #tpu.memory_space<vmem>>, vector<1x4x1x32xf32>,
    return
  }
  func.func @transform_0(%arg0: i32) -> (i32, i32, i32, i32) {
    %c0_i32 = arith.constant 0 : i32
    %c0_i32_0 = arith.constant 0 : i32
    %c0_i32_1 = arith.constant 0 : i32
    %c0_i32_2 = arith.constant 0 : i32
    %c0_i32_3 = arith.constant 0 : i32
    return %c0_i32, %c0_i32_0, %c0_i32_1, %c0_i32_2 : i32, i32, i32, i32
  }
  func.func @transform_1(%arg0: i32) -> (i32, i32) {
    %c0_i32 = arith.constant 0 : i32
    %c0_i32_0 = arith.constant 0 : i32
    %c0_i32_1 = arith.constant 0 : i32
    return %c0_i32, %c0_i32_0 : i32, i32
  }
  func.func @transform_2(%arg0: i32) -> (i32, i32) {
    %c0_i32 = arith.constant 0 : i32
    %c0_i32_0 = arith.constant 0 : i32
    %c0_i32_1 = arith.constant 0 : i32
    return %c0_i32, %c0_i32_0 : i32, i32
  }
  func.func @transform_3(%arg0: i32) -> (i32, i32, i32, i32) {
    %c0_i32 = arith.constant 0 : i32
    %c0_i32_0 = arith.constant 0 : i32
    %c0_i32_1 = arith.constant 0 : i32
    %c0_i32_2 = arith.constant 0 : i32
    %c0_i32_3 = arith.constant 0 : i32
    return %c0_i32, %c0_i32_0, %c0_i32_1, %c0_i32_2 : i32, i32, i32, i32
  }
}

</mosaic_0001>

<bundles_post_ra>
// kernel: tpu_custom_call.1
= control target key start
LH: loop header
LB: loop body
LE: loop exit
PB: predicated region body
PF: predicated region fallthrough
CT: control target
= control target key end

     0   :  { %vm43_vm0 = vcmask 1041409   ;;  %vm46_vm1 = vcmask 1042434   ;;  %vm49_vm2 = vcmask 1043459   ;;  %vm54_vm3 = vcmask 1045509   ;;  %s8493_s30 = smov 126   ;;  %s8494_s4 = smov 127   ;;  %s12937_s0 = inlined_call_operand.vmem [shape: bf16[2,4,18,34], index: 0, kind: input, shape index: {}]   ;;  %s12938_s1 = inlined_call_operand.vmem [shape: bf16[8,36], index: 1, kind: input, shape index: {}]   ;;  %s12939_s2 = inlined_call_operand.vmem [shape: f32[8,1], index: 2, kind: input, shape index: {}]   ;;  %s12940_s3 = inlined_call_operand.hbm [shape: f32[2,4,32,32], index: 3, kind: output, shape index: {}]  }
   0x1   :  { %v8181_v0 = vld [vmem:[%s12937_s0] ss:$0 sps:$4 sm:$0x11]   ;;  %v8182_v1 = vld [vmem:[%s12937_s0 + $0xc] ss:$0 sps:$4 sm:$0x11]  }
   0x2   :  { %v8183_v2 = vld [vmem:[%s12937_s0 + $0x18] ss:$0 sps:$4 sm:$0x11]   ;;  %v8184_v3 = vld [vmem:[%s12937_s0 + $0x24] ss:$0 sps:$4 sm:$0x11]   ;;  %v65_v4 = vunpack.c.h.b16 %v8181_v0  ;;  %v8534_v5 = vunpack.c.l.b16 %v8181_v0  ;;  %v8536_v6 = vunpack.c.l.b16 %v8182_v1  ;;  %v66_v8 = vunpack.c.h.b16 %v8182_v1 }
   0x3   :  { %v8538_v7 = vunpack.c.l.b16 %v8183_v2  ;;  %v67_v9 = vunpack.c.h.b16 %v8183_v2  ;;  %v8540_v10 = vunpack.c.l.b16 %v8184_v3  ;;  %v68_v11 = vunpack.c.h.b16 %v8184_v3  ;;  %v8185_v21 = vld [vmem:[%s12937_s0] ss:$0 sps:$4 sm:$0x11]   ;;  %v8186_v22 = vld [vmem:[%s12937_s0 + $0xc] ss:$0 sps:$4 sm:$0x11]  }
   0x4   :  { %v52_v12 = vrot.slane %v8534_v5, 4  ;;  %v69_v13 = vrot.slane %v66_v8, 7  ;;  %v53_v15 = vrot.slane %v8536_v6, 3  ;;  %vm57_vm4 = vcmask 1046534  }
   0x5   :  { %v71_v14 = vrot.slane %v67_v9, 6  ;;  %v56_v16 = vrot.slane %v8538_v7, 2  ;;  %v73_v17 = vrot.slane %v68_v11, 5  ;;  %v59_v18 = vrot.slane %v8540_v10, 1 }
   0x6   :  { %vm60_vm5 = vcmask 1047559   ;;  %v70_v19 = vsel %vm43_vm0, %v69_v13, %v65_v4  ;;  %v55_v20 = vsel %vm54_vm3, %v53_v15, %v52_v12  ;;  %v8187_v25 = vld [vmem:[%s12937_s0 + $0x18] ss:$0 sps:$4 sm:$0x11]   ;;  %v290_v29 = vunpack.c.l.b16 %v8185_v21 }
   0x7   :  { %v72_v23 = vsel %vm46_vm1, %v71_v14, %v70_v19  ;;  %v58_v24 = vsel %vm57_vm4, %v56_v16, %v55_v20  ;;  %v8188_v26 = vld [vmem:[%s12937_s0 + $0x24] ss:$0 sps:$4 sm:$0x11]   ;;  %v291_v30 = vunpack.c.l.b16 %v8186_v22  ;;  %v292_v33 = vunpack.c.l.b16 %v8187_v25  ;;  %v8189_v39 = vld [vmem:[%s12937_s0] ss:$0 sps:$4 sm:$0x22]  }
   0x8   :  { %v74_v27 = vsel %vm49_vm2, %v73_v17, %v72_v23  ;;  %v61_v28 = vsel %vm60_vm5, %v59_v18, %v58_v24  ;;  %v293_v34 = vunpack.c.l.b16 %v8188_v26  ;;  %v294_v35 = vrot.slane %v290_v29, 1  ;;  %v8190_v44 = vld [vmem:[%s12937_s0 + $0xc] ss:$0 sps:$4 sm:$0x22]  }
   0x9   :  { %v75_v31 = vpack.c.b16 %v74_v27, %v74_v27  ;;  %v62_v32 = vpack.c.b16 %v61_v28, %v61_v28  ;;  %v301_v36 = vrot.slane %v290_v29, 5  ;;  %v302_v37 = vrot.slane %v291_v30, 4  ;;  %v8191_v49 = vld [vmem:[%s12937_s0 + $0x18] ss:$0 sps:$4 sm:$0x22]  }
   0xa   :  { %v78_v38 = vrot.slane %v8534_v5, 5  ;;  %v296_v40 = vrot.slane %v292_v33, 7  ;;  %v298_v41 = vrot.slane %v293_v34, 6  ;;  %v304_v42 = vrot.slane %v292_v33, 3 }
   0xb   :  { %76 = vrot.lane.b32.xlu1 %v75_v31, %s8493_s30  ;;  %63 = vrot.lane.b32.xlu0 %v62_v32, %s8494_s4  ;;  %v306_v43 = vrot.slane %v293_v34, 2  ;;  %v295_v45 = vsel %vm43_vm0, %v291_v30, %v294_v35  ;;  %v303_v46 = vsel %vm54_vm3, %v302_v37, %v301_v36  ;;  %v79_v47 = vrot.slane %v8536_v6, 4  ;;  %v8192_v54 = vld [vmem:[%s12937_s0 + $0x24] ss:$0 sps:$4 sm:$0x22]  }
   0xc   :  { %v81_v48 = vrot.slane %v8538_v7, 3  ;;  %v297_v50 = vsel %vm46_vm1, %v296_v40, %v295_v45  ;;  %v305_v51 = vsel %vm57_vm4, %v304_v42, %v303_v46  ;;  %v83_v52 = vrot.slane %v8540_v10, 2  ;;  %v8193_v63 = vld [vmem:[%s12937_s0] ss:$0 sps:$4 sm:$0x22]  }
   0xd   :  { %v86_v53 = vrot.slane %v8534_v5, 1  ;;  %v299_v55 = vsel %vm49_vm2, %v298_v41, %v297_v50  ;;  %v307_v56 = vsel %vm60_vm5, %v306_v43, %v305_v51  ;;  %v80_v57 = vsel %vm54_vm3, %v79_v47, %v78_v38  ;;  %v8194_v0 = vld [vmem:[%s12937_s0 + $0xc] ss:$0 sps:$4 sm:$0x22]  }
   0xe   :  { %v88_v58 = vrot.slane %v8538_v7, 7  ;;  %v8591_v59 = vpack.c.b16 %v299_v55, %v299_v55  ;;  %v308_v60 = vpack.c.b16 %v307_v56, %v307_v56  ;;  %v82_v61 = vsel %vm57_vm4, %v81_v48, %v80_v57  ;;  %v8608_v8 = vld [vmem:[%s12937_s0 + $0x18] ss:$0 sps:$4 sm:$0x22]  }
   0xf   :  { %v87_v62 = vsel %vm43_vm0, %v8536_v6, %v86_v53  ;;  %v84_v1 = vsel %vm60_vm5, %v83_v52, %v82_v61  ;;  %v90_v3 = vrot.slane %v8540_v10, 6  ;;  %v325_v4 = vunpack.c.l.b16 %v8189_v39  ;;  %v8196_v22 = vld [vmem:[%s12937_s0 + $0x24] ss:$0 sps:$4 sm:$0x22]  }
  0x10   :  { %v89_v2 = vsel %vm46_vm1, %v88_v58, %v87_v62  ;;  %311 = vrot.lane.b32.xlu1 %v8591_v59, %s8493_s30  ;;  %309 = vrot.lane.b32.xlu0 %v308_v60, %s8494_s4  ;;  %v8613_v9 = vpack.c.b16 %v84_v1, %v84_v1  ;;  %v326_v11 = vunpack.c.l.b16 %v8190_v44  ;;  %v327_v12 = vunpack.c.l.b16 %v8191_v49  ;;  %v8197_v35 = vld [vmem:[%s12937_s0] ss:$0 sps:$4 sm:$0x22]   ;;  %v8198_v36 = vld [vmem:[%s12937_s0 + $0xc] ss:$0 sps:$4 sm:$0x22]  }
  0x11   :  { %v8615_v13 = vunpack.c.l.b16 %v8192_v54  ;;  %v91_v14 = vsel %vm49_vm2, %v90_v3, %v89_v2  ;;  %v329_v15 = vrot.slane %v325_v4, 6  ;;  %v337_v16 = vrot.slane %v325_v4, 2  ;;  %v8199_v45 = vld [vmem:[%s12937_s0 + $0x18] ss:$0 sps:$4 sm:$0x22]  }
  0x12   :  { %v355_v17 = vrot.slane %v325_v4, 7  ;;  %v92_v18 = vpack.c.b16 %v91_v14, %v91_v14  ;;  %v330_v19 = vrot.slane %v326_v11, 5  ;;  %v332_v20 = vrot.slane %v327_v12, 4  ;;  %v8651_v50 = vld [vmem:[%s12937_s0 + $0x24] ss:$0 sps:$4 sm:$0x22]  }
  0x13   :  { %v334_v21 = vrot.slane %v8615_v13, 3  ;;  %v338_v23 = vrot.slane %v326_v11, 1  ;;  %v341_v24 = vrot.slane %v8615_v13, 7  ;;  %v356_v25 = vrot.slane %v326_v11, 6 }
  0x14   :  { %v358_v26 = vrot.slane %v327_v12, 5  ;;  %95 = vrot.lane.b32.xlu1 %v8613_v9, %s8493_s30  ;;  %93 = vrot.lane.b32.xlu0 %v92_v18, %s8494_s4  ;;  %v331_v27 = vsel %vm54_vm3, %v330_v19, %v329_v15  ;;  %v360_v28 = vrot.slane %v8615_v13, 4  ;;  %v109_v29 = vunpack.c.l.b16 %v8193_v63  ;;  %v8201_v60 = vld [vmem:[%s12937_s0] ss:$0 sps:$4 sm:$0x22]  }
  0x15   :  { %v110_v30 = vunpack.c.l.b16 %v8194_v0  ;;  %v333_v31 = vsel %vm57_vm4, %v332_v20, %v331_v27  ;;  %v339_v32 = vsel %vm43_vm0, %v338_v23, %v337_v16  ;;  %v357_v33 = vsel %vm54_vm3, %v356_v25, %v355_v17  ;;  %v8202_v1 = vld [vmem:[%s12937_s0 + $0xc] ss:$0 sps:$4 sm:$0x22]  }
  0x16   :  { %v111_v34 = vunpack.c.l.b16 %v8608_v8  ;;  %v335_v37 = vsel %vm60_vm5, %v334_v21, %v333_v31  ;;  %v340_v38 = vsel %vm46_vm1, %v327_v12, %v339_v32  ;;  %v359_v39 = vsel %vm57_vm4, %v358_v26, %v357_v33 }
  0x17   :  { %v112_v40 = vunpack.c.l.b16 %v8196_v22  ;;  %v8641_v41 = vpack.c.b16 %v335_v37, %v335_v37  ;;  %v342_v42 = vsel %vm49_vm2, %v341_v24, %v340_v38  ;;  %v361_v43 = vsel %vm60_vm5, %v360_v28, %v359_v39 }
  0x18   :  { %v120_v44 = vrot.slane %v109_v29, 6  ;;  %v343_v46 = vpack.c.b16 %v342_v42, %v342_v42  ;;  %v362_v47 = vpack.c.b16 %v361_v43, %v361_v43  ;;  %v121_v48 = vrot.slane %v110_v30, 5  ;;  %v8205_v42 = vld [vmem:[%s12937_s0] ss:$0 sps:$4 sm:$0x44]  }
  0x19   :  { %v123_v49 = vrot.slane %v111_v34, 4  ;;  %346 = vrot.lane.b32.xlu1 %v8641_v41, %s8493_s30  ;;  %v125_v51 = vrot.slane %v112_v40, 3  ;;  %v348_v52 = vrot.slane %v325_v4, 3  ;;  %v349_v53 = vrot.slane %v326_v11, 2 }
  0x1a   :  { %v351_v54 = vrot.slane %v327_v12, 1  ;;  %344 = vrot.lane.b32.xlu0 %v343_v46, %s8494_s4  ;;  %v122_v55 = vsel %vm54_vm3, %v121_v48, %v120_v44  ;;  %v113_v56 = vrot.slane %v109_v29, 2  ;;  %v114_v57 = vrot.slane %v110_v30, 1  ;;  %v8203_v11 = vld [vmem:[%s12937_s0 + $0x18] ss:$0 sps:$4 sm:$0x22]  }
  0x1b   :  { %v117_v58 = vrot.slane %v112_v40, 7  ;;  %v124_v61 = vsel %vm57_vm4, %v123_v49, %v122_v55  ;;  %v350_v62 = vsel %vm43_vm0, %v349_v53, %v348_v52  ;;  %v738_v63 = vunpack.c.l.b16 %v8197_v35  ;;  %v8204_v12 = vld [vmem:[%s12937_s0 + $0x24] ss:$0 sps:$4 sm:$0x22]  }
  0x1c   :  { %v739_v0 = vunpack.c.l.b16 %v8198_v36  ;;  %v126_v2 = vsel %vm60_vm5, %v125_v51, %v124_v61  ;;  %v352_v3 = vsel %vm46_vm1, %v351_v54, %v350_v62  ;;  %v115_v4 = vsel %vm43_vm0, %v114_v57, %v113_v56  ;;  %v8207_v56 = vld [vmem:[%s12937_s0 + $0x18] ss:$0 sps:$4 sm:$0x44]   ;;  %v8208_v62 = vld [vmem:[%s12937_s0 + $0x24] ss:$0 sps:$4 sm:$0x44]  }
  0x1d   :  { %v740_v8 = vunpack.c.l.b16 %v8199_v45  ;;  %363 = vrot.lane.b32.xlu1 %v362_v47, %s8494_s4  ;;  %v127_v14 = vpack.c.b16 %v126_v2, %v126_v2  ;;  %v353_v15 = vsel %vm49_vm2, %v8615_v13, %v352_v3  ;;  %v116_v16 = vsel %vm46_vm1, %v111_v34, %v115_v4  ;;  %v8206_v47 = vld [vmem:[%s12937_s0 + $0xc] ss:$0 sps:$4 sm:$0x44]  }
  0x1e   :  { %v741_v17 = vunpack.c.l.b16 %v8651_v50  ;;  %v8679_v18 = vpack.c.b16 %v353_v15, %v353_v15  ;;  %v118_v19 = vsel %vm49_vm2, %v117_v58, %v116_v16  ;;  %v749_v20 = vrot.slane %v738_v63, 7 }
  0x1f   :  { %v750_v21 = vrot.slane %v739_v0, 6  ;;  %128 = vrot.lane.b32.xlu0 %v127_v14, %s8494_s4  ;;  %v8683_v22 = vpack.c.b16 %v118_v19, %v118_v19  ;;  %v752_v23 = vrot.slane %v740_v8, 5  ;;  %v512_v25 = vunpack.c.l.b16 %v8201_v60  ;;  %v8210_v19 = vld [vmem:[%s12937_s0 + $0xc] ss:$0 sps:$4 sm:$0x44]  }
  0x20   :  { %v754_v24 = vrot.slane %v741_v17, 4  ;;  %v513_v13 = vunpack.c.l.b16 %v8202_v1  ;;  %v514_v27 = vunpack.c.l.b16 %v8203_v11  ;;  %v515_v28 = vunpack.c.l.b16 %v8204_v12 }
  0x21   :  { %v751_v26 = vsel %vm54_vm3, %v750_v21, %v749_v20  ;;  %365 = vrot.lane.b32.xlu1 %v8679_v18, %s8493_s30  ;;  %v523_v30 = vrot.slane %v512_v25, 6  ;;  %v742_v31 = vrot.slane %v738_v63, 3  ;;  %v743_v32 = vrot.slane %v739_v0, 2 }
  0x22   :  { %v753_v29 = vsel %vm57_vm4, %v752_v23, %v751_v26  ;;  %v524_v34 = vrot.slane %v513_v13, 5  ;;  %v526_v35 = vrot.slane %v514_v27, 4  ;;  %v528_v36 = vrot.slane %v515_v28, 3 }
  0x23   :  { %v755_v33 = vsel %vm60_vm5, %v754_v24, %v753_v29  ;;  %130 = vrot.lane.b32.xlu0 %v8683_v22, %s8493_s30  ;;  %v744_v38 = vsel %vm43_vm0, %v743_v32, %v742_v31  ;;  %v745_v39 = vrot.slane %v740_v8, 1  ;;  %v516_v40 = vrot.slane %v512_v25, 2 }
  0x24   :  { %v756_v37 = vpack.c.b16 %v755_v33, %v755_v33  ;;  %v525_v43 = vsel %vm54_vm3, %v524_v34, %v523_v30  ;;  %v517_v44 = vrot.slane %v513_v13, 1  ;;  %v520_v45 = vrot.slane %v515_v28, 7  ;;  %v8212_v30 = vld [vmem:[%s12937_s0 + $0x24] ss:$0 sps:$4 sm:$0x44]  }
  0x25   :  { %v535_v46 = vrot.slane %v512_v25, 7  ;;  %v527_v48 = vsel %vm57_vm4, %v526_v35, %v525_v43  ;;  %v746_v49 = vsel %vm46_vm1, %v745_v39, %v744_v38  ;;  %v536_v50 = vrot.slane %v513_v13, 6 }
  0x26   :  { %757 = vrot.lane.b32.xlu1 %v756_v37, %s8494_s4  ;;  %v538_v51 = vrot.slane %v514_v27, 5  ;;  %v529_v52 = vsel %vm60_vm5, %v528_v36, %v527_v48  ;;  %v747_v53 = vsel %vm49_vm2, %v741_v17, %v746_v49  ;;  %v518_v54 = vsel %vm43_vm0, %v517_v44, %v516_v40  ;;  %v8732_v17 = vld [vmem:[%s12937_s0] ss:$0 sps:$4 sm:$0x44]  }
  0x27   :  { %v540_v55 = vrot.slane %v515_v28, 4  ;;  %v530_v57 = vpack.c.b16 %v529_v52, %v529_v52  ;;  %v8709_v58 = vpack.c.b16 %v747_v53, %v747_v53  ;;  %v519_v60 = vsel %vm46_vm1, %v514_v27, %v518_v54 }
  0x28   :  { %v537_v61 = vsel %vm54_vm3, %v536_v50, %v535_v46  ;;  %v521_v63 = vsel %vm49_vm2, %v520_v45, %v519_v60  ;;  %v543_v1 = vrot.slane %v512_v25, 3  ;;  %v544_v2 = vrot.slane %v513_v13, 2  ;;  %v8743_v25 = vld [vmem:[%s12937_s0 + $0x18] ss:$0 sps:$4 sm:$0x44]  }
  0x29   :  { %v539_v0 = vsel %vm57_vm4, %v538_v51, %v537_v61  ;;  %531 = vrot.lane.b32.xlu0 %v530_v57, %s8494_s4  ;;  %v8721_v3 = vpack.c.b16 %v521_v63, %v521_v63  ;;  %v546_v8 = vrot.slane %v514_v27, 1  ;;  %v784_v11 = vunpack.c.l.b16 %v8205_v42  ;;  %v8215_v63 = vld [vmem:[%s12937_s0 + $0x18] ss:$0 sps:$4 sm:$0x44]  }
  0x2a   :  { %759 = vrot.lane.b32.xlu1 %v8709_v58, %s8493_s30  ;;  %v541_v4 = vsel %vm60_vm5, %v540_v55, %v539_v0  ;;  %v545_v14 = vsel %vm43_vm0, %v544_v2, %v543_v1  ;;  %v785_v15 = vunpack.c.l.b16 %v8206_v47  ;;  %v8727_v16 = vunpack.c.l.b16 %v8207_v56  ;;  %v8213_v55 = vld [vmem:[%s12937_s0] ss:$0 sps:$4 sm:$0x44]   ;;  %v8214_v56 = vld [vmem:[%s12937_s0 + $0xc] ss:$0 sps:$4 sm:$0x44]  }
  0x2b   :  { %v8724_v12 = vpack.c.b16 %v541_v4, %v541_v4  ;;  %v547_v20 = vsel %vm46_vm1, %v546_v8, %v545_v14  ;;  %v8738_v21 = vunpack.c.l.b16 %v8208_v62  ;;  %v788_v23 = vrot.slane %v784_v11, 4  ;;  %v8216_v0 = vld [vmem:[%s12937_s0 + $0x24] ss:$0 sps:$4 sm:$0x44]  }
  0x2c   :  { %v815_v24 = vrot.slane %v784_v11, 1  ;;  %v548_v26 = vsel %vm49_vm2, %v515_v28, %v547_v20  ;;  %v798_v13 = vrot.slane %v785_v15, 7  ;;  %v800_v27 = vrot.slane %v8727_v16, 6 }
  0x2d   :  { %v789_v29 = vrot.slane %v785_v15, 3  ;;  %533 = vrot.lane.b32.xlu0 %v8721_v3, %s8493_s30  ;;  %v549_v31 = vpack.c.b16 %v548_v26, %v548_v26  ;;  %v802_v32 = vrot.slane %v8738_v21, 5  ;;  %v791_v33 = vrot.slane %v8727_v16, 2 }
  0x2e   :  { %552 = vrot.lane.b32.xlu1 %v8724_v12, %s8493_s30  ;;  %v793_v28 = vrot.slane %v8738_v21, 1  ;;  %v799_v34 = vsel %vm54_vm3, %v798_v13, %v784_v11  ;;  %v816_v36 = vsel %vm54_vm3, %v785_v15, %v815_v24  ;;  %v817_v37 = vrot.slane %v8727_v16, 7  ;;  %v8220_v13 = vld [vmem:[%s12937_s0 + $0x24] ss:$0 sps:$4 sm:$0x44]  }
  0x2f   :  { %v790_v35 = vsel %vm43_vm0, %v789_v29, %v788_v23  ;;  %v801_v38 = vsel %vm57_vm4, %v800_v27, %v799_v34  ;;  %v819_v40 = vrot.slane %v8738_v21, 6  ;;  %v578_v42 = vunpack.c.h.b16 %v8732_v17 }
  0x30   :  { %v792_v39 = vsel %vm46_vm1, %v791_v33, %v790_v35  ;;  %v803_v43 = vsel %vm60_vm5, %v802_v32, %v801_v38  ;;  %v818_v45 = vsel %vm57_vm4, %v817_v37, %v816_v36  ;;  %v579_v46 = vunpack.c.h.b16 %v8210_v19 }
  0x31   :  { %v794_v44 = vsel %vm49_vm2, %v793_v28, %v792_v39  ;;  %550 = vrot.lane.b32.xlu0 %v549_v31, %s8494_s4  ;;  %v804_v47 = vpack.c.b16 %v803_v43, %v803_v43  ;;  %v820_v49 = vsel %vm60_vm5, %v819_v40, %v818_v45  ;;  %v580_v50 = vunpack.c.h.b16 %v8743_v25 }
  0x32   :  { %v795_v48 = vpack.c.b16 %v794_v44, %v794_v44  ;;  %v821_v51 = vpack.c.b16 %v820_v49, %v820_v49  ;;  %v581_v52 = vunpack.c.h.b16 %v8212_v30  ;;  %v582_v53 = vrot.slane %v579_v46, 7 }
  0x33   :  { %v807_v54 = vrot.slane %v784_v11, 5  ;;  %805 = vrot.lane.b32.xlu1 %v804_v47, %s8493_s30  ;;  %v584_v57 = vrot.slane %v580_v50, 6  ;;  %v808_v60 = vrot.slane %v785_v15, 4  ;;  %v810_v61 = vrot.slane %v8727_v16, 3 }
  0x34   :  { %v812_v62 = vrot.slane %v8738_v21, 2  ;;  %v583_v1 = vsel %vm54_vm3, %v582_v53, %v578_v42  ;;  %v586_v2 = vrot.slane %v581_v52, 5  ;;  %v566_v4 = vunpack.c.l.b16 %v8732_v17  ;;  %v8217_v11 = vld [vmem:[%s12937_s0] ss:$0 sps:$4 sm:$0x44]  }
  0x35   :  { %v567_v8 = vunpack.c.l.b16 %v8210_v19  ;;  %796 = vrot.lane.b32.xlu0 %v795_v48, %s8494_s4  ;;  %v585_v14 = vsel %vm57_vm4, %v584_v57, %v583_v1  ;;  %v809_v15 = vsel %vm43_vm0, %v808_v60, %v807_v54  ;;  %v568_v16 = vunpack.c.l.b16 %v8743_v25  ;;  %v8218_v21 = vld [vmem:[%s12937_s0 + $0xc] ss:$0 sps:$4 sm:$0x44]   ;;  %v8219_v17 = vld [vmem:[%s12937_s0 + $0x18] ss:$0 sps:$4 sm:$0x44]  }
  0x36   :  { %v569_v20 = vunpack.c.l.b16 %v8212_v30  ;;  %v587_v19 = vsel %vm60_vm5, %v586_v2, %v585_v14  ;;  %v811_v23 = vsel %vm46_vm1, %v810_v61, %v809_v15  ;;  %v570_v24 = vrot.slane %v566_v4, 4  ;;  %v8221_v1 = vld [vmem:[%s12937_s0] ss:$0 sps:$4 sm:$0x88]  }
  0x37   :  { %v571_v26 = vrot.slane %v567_v8, 3  ;;  %822 = vrot.lane.b32.xlu1 %v821_v51, %s8494_s4  ;;  %v588_v25 = vpack.c.b16 %v587_v19, %v587_v19  ;;  %v813_v27 = vsel %vm49_vm2, %v812_v62, %v811_v23  ;;  %v573_v29 = vrot.slane %v568_v16, 2  ;;  %v8222_v2 = vld [vmem:[%s12937_s0 + $0xc] ss:$0 sps:$4 sm:$0x88]  }
  0x38   :  { %v575_v30 = vrot.slane %v569_v20, 1  ;;  %v8808_v31 = vpack.c.b16 %v813_v27, %v813_v27  ;;  %v1193_v33 = vunpack.c.l.b16 %v8213_v55  ;;  %v1194_v28 = vunpack.c.l.b16 %v8214_v56  ;;  %v8223_v15 = vld [vmem:[%s12937_s0 + $0x18] ss:$0 sps:$4 sm:$0x88]  }
  0x39   :  { %v572_v32 = vsel %vm43_vm0, %v571_v26, %v570_v24  ;;  %589 = vrot.lane.b32.xlu0 %v588_v25, %s8494_s4  ;;  %v1195_v35 = vunpack.c.l.b16 %v8215_v63  ;;  %v1196_v36 = vunpack.c.l.b16 %v8216_v0  ;;  %v971_v37 = vunpack.c.l.b16 %v8217_v11  ;;  %v8224_v16 = vld [vmem:[%s12937_s0 + $0x24] ss:$0 sps:$4 sm:$0x88]  }
  0x3a   :  { %v574_v34 = vsel %vm46_vm1, %v573_v29, %v572_v32  ;;  %v1205_v39 = vrot.slane %v1193_v33, 1  ;;  %v972_v40 = vunpack.c.l.b16 %v8218_v21  ;;  %v973_v42 = vunpack.c.l.b16 %v8219_v17 }
  0x3b   :  { %v576_v38 = vsel %vm49_vm2, %v575_v30, %v574_v34  ;;  %824 = vrot.lane.b32.xlu1 %v8808_v31, %s8493_s30  ;;  %v1207_v44 = vrot.slane %v1195_v35, 7  ;;  %v1209_v45 = vrot.slane %v1196_v36, 6  ;;  %v974_v46 = vunpack.c.l.b16 %v8220_v13 }
  0x3c   :  { %v8816_v43 = vpack.c.b16 %v576_v38, %v576_v38  ;;  %v1206_v47 = vsel %vm54_vm3, %v1194_v28, %v1205_v39  ;;  %v983_v48 = vrot.slane %v972_v40, 7  ;;  %v985_v49 = vrot.slane %v973_v42, 6 }
  0x3d   :  { %v1197_v50 = vrot.slane %v1193_v33, 5  ;;  %v1208_v51 = vsel %vm57_vm4, %v1207_v44, %v1206_v47  ;;  %v987_v52 = vrot.slane %v974_v46, 5  ;;  %v1198_v53 = vrot.slane %v1194_v28, 4 }
  0x3e   :  { %591 = vrot.lane.b32.xlu0 %v8816_v43, %s8493_s30  ;;  %v1200_v54 = vrot.slane %v1195_v35, 3  ;;  %v1210_v55 = vsel %vm60_vm5, %v1209_v45, %v1208_v51  ;;  %v984_v56 = vsel %vm54_vm3, %v983_v48, %v971_v37  ;;  %v1202_v57 = vrot.slane %v1196_v36, 2 }
  0x3f   :  { %v975_v60 = vrot.slane %v971_v37, 4  ;;  %v1211_v61 = vpack.c.b16 %v1210_v55, %v1210_v55  ;;  %v986_v62 = vsel %vm57_vm4, %v985_v49, %v984_v56  ;;  %v1199_v63 = vsel %vm43_vm0, %v1198_v53, %v1197_v50  ;;  %v8226_v50 = vld [vmem:[%s12937_s0 + $0xc] ss:$0 sps:$4 sm:$0x88]  }
  0x40   :  { %v976_v0 = vrot.slane %v972_v40, 3  ;;  %v988_v4 = vsel %vm60_vm5, %v987_v52, %v986_v62  ;;  %v1201_v8 = vsel %vm46_vm1, %v1200_v54, %v1199_v63  ;;  %v978_v11 = vrot.slane %v973_v42, 2  ;;  %v8227_v55 = vld [vmem:[%s12937_s0 + $0x18] ss:$0 sps:$4 sm:$0x88]  }
  0x41   :  { %v980_v14 = vrot.slane %v974_v46, 1  ;;  %1212 = vrot.lane.b32.xlu1 %v1211_v61, %s8494_s4  ;;  %v989_v20 = vpack.c.b16 %v988_v4, %v988_v4  ;;  %v1203_v21 = vsel %vm49_vm2, %v1202_v57, %v1201_v8  ;;  %v994_v19 = vrot.slane %v971_v37, 1  ;;  %v8228_v62 = vld [vmem:[%s12937_s0 + $0x24] ss:$0 sps:$4 sm:$0x88]  }
  0x42   :  { %v977_v17 = vsel %vm43_vm0, %v976_v0, %v975_v60  ;;  %v8843_v23 = vpack.c.b16 %v1203_v21, %v1203_v21  ;;  %v996_v26 = vrot.slane %v973_v42, 7  ;;  %v998_v13 = vrot.slane %v974_v46, 6 }
  0x43   :  { %v979_v24 = vsel %vm46_vm1, %v978_v11, %v977_v17  ;;  %990 = vrot.lane.b32.xlu0 %v989_v20, %s8494_s4  ;;  %v995_v27 = vsel %vm54_vm3, %v972_v40, %v994_v19  ;;  %v1001_v29 = vrot.slane %v971_v37, 5  ;;  %v1002_v30 = vrot.slane %v972_v40, 4  ;;  %v8225_v37 = vld [vmem:[%s12937_s0] ss:$0 sps:$4 sm:$0x88]  }
  0x44   :  { %v981_v25 = vsel %vm49_vm2, %v980_v14, %v979_v24  ;;  %v997_v33 = vsel %vm57_vm4, %v996_v26, %v995_v27  ;;  %v1004_v28 = vrot.slane %v973_v42, 3  ;;  %v1006_v34 = vrot.slane %v974_v46, 2  ;;  %v8229_v17 = vld [vmem:[%s12937_s0] ss:$0 sps:$4 sm:$0x88]  }
  0x45   :  { %v8849_v32 = vpack.c.b16 %v981_v25, %v981_v25  ;;  %1214 = vrot.lane.b32.xlu1 %v8843_v23, %s8493_s30  ;;  %v999_v35 = vsel %vm60_vm5, %v998_v13, %v997_v33  ;;  %v1003_v36 = vsel %vm43_vm0, %v1002_v30, %v1001_v29  ;;  %v1228_v38 = vunpack.c.l.b16 %v8221_v1  ;;  %v8230_v19 = vld [vmem:[%s12937_s0 + $0xc] ss:$0 sps:$4 sm:$0x88]   ;;  %v8231_v27 = vld [vmem:[%s12937_s0 + $0x18] ss:$0 sps:$4 sm:$0x88]  }
  0x46   :  { %v1229_v39 = vunpack.c.l.b16 %v8222_v2  ;;  %v8859_v40 = vpack.c.b16 %v999_v35, %v999_v35  ;;  %v1005_v44 = vsel %vm46_vm1, %v1004_v28, %v1003_v36  ;;  %v1230_v45 = vunpack.c.l.b16 %v8223_v15 }
  0x47   :  { %v8862_v42 = vunpack.c.l.b16 %v8224_v16  ;;  %992 = vrot.lane.b32.xlu0 %v8849_v32, %s8493_s30  ;;  %v1007_v46 = vsel %vm49_vm2, %v1006_v34, %v1005_v44  ;;  %v1232_v47 = vrot.slane %v1228_v38, 2  ;;  %v1239_v49 = vrot.slane %v1228_v38, 6  ;;  %v8232_v34 = vld [vmem:[%s12937_s0 + $0x24] ss:$0 sps:$4 sm:$0x88]  }
  0x48   :  { %v1233_v48 = vrot.slane %v1229_v39, 1  ;;  %v1008_v51 = vpack.c.b16 %v1007_v46, %v1007_v46  ;;  %v1240_v53 = vrot.slane %v1229_v39, 5  ;;  %v1242_v54 = vrot.slane %v1230_v45, 4  ;;  %v8233_v46 = vld [vmem:[%s12937_s0] ss:$0 sps:$4 sm:$0x88]  }
  0x49   :  { %v1236_v52 = vrot.slane %v8862_v42, 7  ;;  %1011 = vrot.lane.b32.xlu1 %v8859_v40, %s8493_s30  ;;  %v1244_v57 = vrot.slane %v8862_v42, 3  ;;  %v1259_v60 = vrot.slane %v1228_v38, 3  ;;  %v1260_v61 = vrot.slane %v1229_v39, 2 }
  0x4a   :  { %v1234_v56 = vsel %vm54_vm3, %v1233_v48, %v1232_v47  ;;  %v1241_v0 = vsel %vm43_vm0, %v1240_v53, %v1239_v49  ;;  %v1262_v1 = vrot.slane %v1230_v45, 1  ;;  %v1025_v2 = vunpack.c.l.b16 %v8225_v37 }
  0x4b   :  { %v1235_v63 = vsel %vm57_vm4, %v1230_v45, %v1234_v56  ;;  %1009 = vrot.lane.b32.xlu0 %v1008_v51, %s8494_s4  ;;  %v1243_v8 = vsel %vm46_vm1, %v1242_v54, %v1241_v0  ;;  %v1261_v11 = vsel %vm54_vm3, %v1260_v61, %v1259_v60  ;;  %v1026_v14 = vunpack.c.l.b16 %v8226_v50  ;;  %v8235_v56 = vld [vmem:[%s12937_s0 + $0x18] ss:$0 sps:$4 sm:$0x88]  }
  0x4c   :  { %v1237_v4 = vsel %vm60_vm5, %v1236_v52, %v1235_v63  ;;  %v1245_v16 = vsel %vm49_vm2, %v1244_v57, %v1243_v8  ;;  %v1263_v20 = vsel %vm57_vm4, %v1262_v1, %v1261_v11  ;;  %v1027_v21 = vunpack.c.l.b16 %v8227_v55  ;;  %v8236_v57 = vld [vmem:[%s12937_s0 + $0x24] ss:$0 sps:$4 sm:$0x88]  }
  0x4d   :  { %v8887_v15 = vpack.c.b16 %v1237_v4, %v1237_v4  ;;  %v1246_v24 = vpack.c.b16 %v1245_v16, %v1245_v16  ;;  %v1264_v26 = vsel %vm60_vm5, %v8862_v42, %v1263_v20  ;;  %v1028_v13 = vunpack.c.l.b16 %v8228_v62 }
  0x4e   :  { %v1037_v25 = vrot.slane %v1025_v2, 2  ;;  %v1265_v29 = vpack.c.b16 %v1264_v26, %v1264_v26  ;;  %v1038_v30 = vrot.slane %v1026_v14, 1  ;;  %v1251_v33 = vrot.slane %v1228_v38, 7 }
  0x4f   :  { %1249 = vrot.lane.b32.xlu1 %v8887_v15, %s8493_s30  ;;  %v1252_v28 = vrot.slane %v1229_v39, 6  ;;  %1247 = vrot.lane.b32.xlu0 %v1246_v24, %s8494_s4  ;;  %v1041_v35 = vrot.slane %v1028_v13, 7  ;;  %v1254_v36 = vrot.slane %v1230_v45, 5  ;;  %v1256_v37 = vrot.slane %v8862_v42, 4 }
  0x50   :  { %v1029_v44 = vrot.slane %v1025_v2, 6  ;;  %v1039_v47 = vsel %vm54_vm3, %v1038_v30, %v1037_v25  ;;  %v1030_v39 = vrot.slane %v1026_v14, 5  ;;  %v1032_v48 = vrot.slane %v1027_v21, 4  ;;  %v8234_v45 = vld [vmem:[%s12937_s0 + $0xc] ss:$0 sps:$4 sm:$0x88]  }
  0x51   :  { %v1253_v38 = vsel %vm43_vm0, %v1252_v28, %v1251_v33  ;;  %v1040_v49 = vsel %vm57_vm4, %v1027_v21, %v1039_v47  ;;  %v1034_v51 = vrot.slane %v1028_v13, 3  ;;  %v1648_v52 = vunpack.c.l.b16 %v8229_v17 }
  0x52   :  { %v1255_v50 = vsel %vm46_vm1, %v1254_v36, %v1253_v38  ;;  %v1042_v42 = vsel %vm60_vm5, %v1041_v35, %v1040_v49  ;;  %v1031_v54 = vsel %vm43_vm0, %v1030_v39, %v1029_v44  ;;  %v1649_v55 = vunpack.c.l.b16 %v8230_v19  ;;  %v8237_v38 = vld [vmem:[%s12937_s0 + $0x4] ss:$0 sps:$4 sm:$0x11]  }
  0x53   :  { %1266 = vrot.lane.b32.xlu1 %v1265_v29, %s8494_s4  ;;  %v1257_v53 = vsel %vm49_vm2, %v1256_v37, %v1255_v50  ;;  %v1043_v60 = vpack.c.b16 %v1042_v42, %v1042_v42  ;;  %v1033_v62 = vsel %vm46_vm1, %v1032_v48, %v1031_v54  ;;  %v1650_v63 = vunpack.c.l.b16 %v8231_v27  ;;  %v8239_v54 = vld [vmem:[%s12937_s0 + $0x1c] ss:$0 sps:$4 sm:$0x11]  }
  0x54   :  { %v8929_v61 = vpack.c.b16 %v1257_v53, %v1257_v53  ;;  %v1035_v0 = vsel %vm49_vm2, %v1034_v51, %v1033_v62  ;;  %v1651_v1 = vunpack.c.l.b16 %v8232_v34  ;;  %v1660_v2 = vrot.slane %v1648_v52, 3  ;;  %v8238_v51 = vld [vmem:[%s12937_s0 + $0x10] ss:$0 sps:$4 sm:$0x11]  }
  0x55   :  { %v1661_v4 = vrot.slane %v1649_v55, 2  ;;  %1044 = vrot.lane.b32.xlu0 %v1043_v60, %s8494_s4  ;;  %v8934_v8 = vpack.c.b16 %v1035_v0, %v1035_v0  ;;  %v1663_v11 = vrot.slane %v1650_v63, 1  ;;  %v1415_v14 = vunpack.c.l.b16 %v8233_v46  ;;  %v8240_v62 = vld [vmem:[%s12937_s0 + $0x28] ss:$0 sps:$4 sm:$0x11]  }
  0x56   :  { %v1416_v16 = vunpack.c.l.b16 %v8234_v45  ;;  %v1417_v21 = vunpack.c.l.b16 %v8235_v56  ;;  %v1418_v17 = vunpack.c.l.b16 %v8236_v57  ;;  %v1652_v19 = vrot.slane %v1648_v52, 7 }
  0x57   :  { %1268 = vrot.lane.b32.xlu1 %v8929_v61, %s8493_s30  ;;  %v1662_v20 = vsel %vm54_vm3, %v1661_v4, %v1660_v2  ;;  %v1427_v26 = vrot.slane %v1415_v14, 2  ;;  %v1653_v25 = vrot.slane %v1649_v55, 6  ;;  %v1655_v30 = vrot.slane %v1650_v63, 5 }
  0x58   :  { %v1664_v24 = vsel %vm57_vm4, %v1663_v11, %v1662_v20  ;;  %v1428_v13 = vrot.slane %v1416_v16, 1  ;;  %v1431_v29 = vrot.slane %v1418_v17, 7  ;;  %v1657_v33 = vrot.slane %v1651_v1, 4 }
  0x59   :  { %v1665_v27 = vsel %vm60_vm5, %v1651_v1, %v1664_v24  ;;  %1046 = vrot.lane.b32.xlu0 %v8934_v8, %s8493_s30  ;;  %v1654_v35 = vsel %vm43_vm0, %v1653_v25, %v1652_v19  ;;  %v1419_v36 = vrot.slane %v1415_v14, 6  ;;  %v1420_v46 = vrot.slane %v1416_v16, 5 }
  0x5a   :  { %v1666_v28 = vpack.c.b16 %v1665_v27, %v1665_v27  ;;  %v1429_v34 = vsel %vm54_vm3, %v1428_v13, %v1427_v26  ;;  %v1656_v44 = vsel %vm46_vm1, %v1655_v30, %v1654_v35  ;;  %v1422_v47 = vrot.slane %v1417_v21, 4  ;;  %v8242_v13 = vld [vmem:[%s12937_s0 + $0x10] ss:$0 sps:$4 sm:$0x11]  }
  0x5b   :  { %v1430_v37 = vsel %vm57_vm4, %v1417_v21, %v1429_v34  ;;  %v1658_v48 = vsel %vm49_vm2, %v1657_v33, %v1656_v44  ;;  %v1424_v49 = vrot.slane %v1418_v17, 3  ;;  %v1438_v50 = vrot.slane %v1415_v14, 3  ;;  %v8243_v30 = vld [vmem:[%s12937_s0 + $0x1c] ss:$0 sps:$4 sm:$0x11]  }
  0x5c   :  { %1667 = vrot.lane.b32.xlu1 %v1666_v28, %s8494_s4  ;;  %v1432_v39 = vsel %vm60_vm5, %v1431_v29, %v1430_v37  ;;  %v8956_v45 = vpack.c.b16 %v1658_v48, %v1658_v48  ;;  %v1421_v42 = vsel %vm43_vm0, %v1420_v46, %v1419_v36  ;;  %v1439_v53 = vrot.slane %v1416_v16, 2  ;;  %v8244_v36 = vld [vmem:[%s12937_s0 + $0x28] ss:$0 sps:$4 sm:$0x11]  }
  0x5d   :  { %v1433_v52 = vpack.c.b16 %v1432_v39, %v1432_v39  ;;  %v1423_v55 = vsel %vm46_vm1, %v1422_v47, %v1421_v42  ;;  %v1441_v56 = vrot.slane %v1417_v21, 1  ;;  %v1445_v57 = vrot.slane %v1415_v14, 7 }
  0x5e   :  { %v1446_v60 = vrot.slane %v1416_v16, 6  ;;  %v1425_v63 = vsel %vm49_vm2, %v1424_v49, %v1423_v55  ;;  %v1440_v0 = vsel %vm54_vm3, %v1439_v53, %v1438_v50  ;;  %v1448_v1 = vrot.slane %v1417_v21, 5  ;;  %v8984_v21 = vld [vmem:[%s12937_s0 + $0x4] ss:$0 sps:$4 sm:$0x11]  }
  0x5f   :  { %1434 = vrot.lane.b32.xlu0 %v1433_v52, %s8494_s4  ;;  %v1450_v2 = vrot.slane %v1418_v17, 4  ;;  %v8971_v4 = vpack.c.b16 %v1425_v63, %v1425_v63  ;;  %v1442_v11 = vsel %vm57_vm4, %v1441_v56, %v1440_v0  ;;  %v8975_v16 = vunpack.c.l.b16 %v8237_v38 }
  0x60   :  { %1669 = vrot.lane.b32.xlu1 %v8956_v45, %s8493_s30  ;;  %v1447_v14 = vsel %vm43_vm0, %v1446_v60, %v1445_v57  ;;  %v1443_v20 = vsel %vm60_vm5, %v1418_v17, %v1442_v11  ;;  %v1684_v24 = vunpack.c.l.b16 %v8238_v51  ;;  %v8979_v26 = vunpack.c.l.b16 %v8239_v54  ;;  %v8245_v57 = vld [vmem:[%s12937_s0 + $0x4] ss:$0 sps:$4 sm:$0x11]  }
  0x61   :  { %v1449_v19 = vsel %vm46_vm1, %v1448_v1, %v1447_v14  ;;  %v8989_v25 = vpack.c.b16 %v1443_v20, %v1443_v20  ;;  %v8992_v29 = vunpack.c.l.b16 %v8240_v62  ;;  %v1687_v17 = vrot.slane %v8975_v16, 4  ;;  %v8246_v1 = vld [vmem:[%s12937_s0 + $0x10] ss:$0 sps:$4 sm:$0x11]  }
  0x62   :  { %v1451_v27 = vsel %vm49_vm2, %v1450_v2, %v1449_v19  ;;  %v1688_v28 = vrot.slane %v1684_v24, 3  ;;  %v1690_v34 = vrot.slane %v8979_v26, 2  ;;  %v1695_v35 = vrot.slane %v1684_v24, 7  ;;  %v8247_v19 = vld [vmem:[%s12937_s0 + $0x1c] ss:$0 sps:$4 sm:$0x11]  }
  0x63   :  { %1436 = vrot.lane.b32.xlu0 %v8971_v4, %s8493_s30  ;;  %v1452_v33 = vpack.c.b16 %v1451_v27, %v1451_v27  ;;  %v1692_v37 = vrot.slane %v8992_v29, 1  ;;  %v1697_v44 = vrot.slane %v8979_v26, 6  ;;  %v1699_v46 = vrot.slane %v8992_v29, 5 }
  0x64   :  { %1455 = vrot.lane.b32.xlu1 %v8989_v25, %s8493_s30  ;;  %v1713_v47 = vrot.slane %v8975_v16, 5  ;;  %v1689_v38 = vsel %vm54_vm3, %v1688_v28, %v1687_v17  ;;  %v1696_v39 = vsel %vm43_vm0, %v1695_v35, %v8975_v16  ;;  %v1714_v48 = vrot.slane %v1684_v24, 4 }
  0x65   :  { %v1716_v49 = vrot.slane %v8979_v26, 3  ;;  %v1691_v50 = vsel %vm57_vm4, %v1690_v34, %v1689_v38  ;;  %v1698_v51 = vsel %vm46_vm1, %v1697_v44, %v1696_v39  ;;  %v1718_v52 = vrot.slane %v8992_v29, 2 }
  0x66   :  { %v1480_v42 = vunpack.c.l.b16 %v8984_v21  ;;  %v1693_v53 = vsel %vm60_vm5, %v1692_v37, %v1691_v50  ;;  %v1700_v54 = vsel %vm49_vm2, %v1699_v46, %v1698_v51  ;;  %v1715_v55 = vsel %vm54_vm3, %v1714_v48, %v1713_v47  ;;  %v8248_v21 = vld [vmem:[%s12937_s0 + $0x28] ss:$0 sps:$4 sm:$0x11]   ;;  %v8250_v37 = vld [vmem:[%s12937_s0 + $0x10] ss:$0 sps:$4 sm:$0x11]  }
  0x67   :  { %1453 = vrot.lane.b32.xlu0 %v1452_v33, %s8494_s4  ;;  %v1481_v56 = vunpack.c.l.b16 %v8242_v13  ;;  %v9025_v60 = vpack.c.b16 %v1693_v53, %v1693_v53  ;;  %v1701_v62 = vpack.c.b16 %v1700_v54, %v1700_v54  ;;  %v1717_v63 = vsel %vm57_vm4, %v1716_v49, %v1715_v55  ;;  %v9045_v33 = vld [vmem:[%s12937_s0 + $0x4] ss:$0 sps:$4 sm:$0x11]   ;;  %v8251_v47 = vld [vmem:[%s12937_s0 + $0x1c] ss:$0 sps:$4 sm:$0x11]  }
  0x68   :  { %v1482_v0 = vunpack.c.l.b16 %v8243_v30  ;;  %v1719_v2 = vsel %vm60_vm5, %v1718_v52, %v1717_v63  ;;  %v1483_v11 = vunpack.c.l.b16 %v8244_v36  ;;  %v1484_v14 = vrot.slane %v1480_v42, 4  ;;  %v8252_v49 = vld [vmem:[%s12937_s0 + $0x28] ss:$0 sps:$4 sm:$0x11]  }
  0x69   :  { %v1485_v20 = vrot.slane %v1481_v56, 3  ;;  %1704 = vrot.lane.b32.xlu1 %v9025_v60, %s8493_s30  ;;  %v1720_v13 = vpack.c.b16 %v1719_v2, %v1719_v2  ;;  %v1706_v17 = vrot.slane %v8975_v16, 1  ;;  %v1708_v30 = vrot.slane %v8979_v26, 7 }
  0x6a   :  { %v1487_v27 = vrot.slane %v1482_v0, 2  ;;  %v1489_v34 = vrot.slane %v1483_v11, 1  ;;  %v1710_v35 = vrot.slane %v8992_v29, 6  ;;  %v1494_v36 = vrot.slane %v1481_v56, 7 }
  0x6b   :  { %1702 = vrot.lane.b32.xlu0 %v1701_v62, %s8494_s4  ;;  %v1486_v28 = vsel %vm54_vm3, %v1485_v20, %v1484_v14  ;;  %v1707_v26 = vsel %vm43_vm0, %v1684_v24, %v1706_v17  ;;  %v1496_v44 = vrot.slane %v1482_v0, 6  ;;  %v1498_v46 = vrot.slane %v1483_v11, 5 }
  0x6c   :  { %v1488_v16 = vsel %vm57_vm4, %v1487_v27, %v1486_v28  ;;  %v1709_v39 = vsel %vm46_vm1, %v1708_v30, %v1707_v26  ;;  %v1495_v29 = vsel %vm43_vm0, %v1494_v36, %v1480_v42  ;;  %v2103_v48 = vunpack.c.l.b16 %v8245_v57 }
  0x6d   :  { %v1490_v38 = vsel %vm60_vm5, %v1489_v34, %v1488_v16  ;;  %1721 = vrot.lane.b32.xlu1 %v1720_v13, %s8494_s4  ;;  %v1711_v50 = vsel %vm49_vm2, %v1710_v35, %v1709_v39  ;;  %v1497_v51 = vsel %vm46_vm1, %v1496_v44, %v1495_v29  ;;  %v2104_v52 = vunpack.c.l.b16 %v8246_v1 }
  0x6e   :  { %v1491_v24 = vpack.c.b16 %v1490_v38, %v1490_v38  ;;  %v9067_v53 = vpack.c.b16 %v1711_v50, %v1711_v50  ;;  %v1499_v54 = vsel %vm49_vm2, %v1498_v46, %v1497_v51  ;;  %v2105_v55 = vunpack.c.l.b16 %v8247_v19  ;;  %v8253_v38 = vld [vmem:[%s12937_s0 + $0x4] ss:$0 sps:$4 sm:$0x22]   ;;  %v8254_v50 = vld [vmem:[%s12937_s0 + $0x10] ss:$0 sps:$4 sm:$0x22]  }
  0x6f   :  { %v2106_v56 = vunpack.c.l.b16 %v8248_v21  ;;  %v1500_v42 = vpack.c.b16 %v1499_v54, %v1499_v54  ;;  %v2114_v57 = vrot.slane %v2103_v48, 5  ;;  %v2115_v62 = vrot.slane %v2104_v52, 4 }
  0x70   :  { %1492 = vrot.lane.b32.xlu0 %v1491_v24, %s8494_s4  ;;  %v9072_v63 = vunpack.c.l.b16 %v9045_v33  ;;  %v2117_v0 = vrot.slane %v2105_v55, 3  ;;  %v9074_v11 = vunpack.c.l.b16 %v8250_v37  ;;  %v9076_v14 = vunpack.c.l.b16 %v8251_v47 }
  0x71   :  { %v2119_v2 = vrot.slane %v2106_v56, 2  ;;  %1723 = vrot.lane.b32.xlu1 %v9067_v53, %s8493_s30  ;;  %v2116_v1 = vsel %vm54_vm3, %v2115_v62, %v2114_v57  ;;  %v9081_v20 = vunpack.c.l.b16 %v8252_v49  ;;  %v2107_v21 = vrot.slane %v2103_v48, 1 }
  0x72   :  { %v1881_v19 = vrot.slane %v9072_v63, 4  ;;  %v2118_v13 = vsel %vm57_vm4, %v2117_v0, %v2116_v1  ;;  %v1882_v27 = vrot.slane %v9074_v11, 3  ;;  %v1884_v17 = vrot.slane %v9076_v14, 2 }
  0x73   :  { %v2109_v30 = vrot.slane %v2105_v55, 7  ;;  %v2120_v28 = vsel %vm60_vm5, %v2119_v2, %v2118_v13  ;;  %v1886_v34 = vrot.slane %v9081_v20, 1  ;;  %v2108_v35 = vsel %vm43_vm0, %v2104_v52, %v2107_v21  ;;  %v8255_v55 = vld [vmem:[%s12937_s0 + $0x1c] ss:$0 sps:$4 sm:$0x22]  }
  0x74   :  { %1501 = vrot.lane.b32.xlu0 %v1500_v42, %s8493_s30  ;;  %v2111_v36 = vrot.slane %v2106_v56, 6  ;;  %v2121_v16 = vpack.c.b16 %v2120_v28, %v2120_v28  ;;  %v1883_v26 = vsel %vm54_vm3, %v1882_v27, %v1881_v19  ;;  %v1891_v46 = vunpack.c.h.b16 %v9045_v33  ;;  %v8256_v13 = vld [vmem:[%s12937_s0 + $0x28] ss:$0 sps:$4 sm:$0x22]  }
  0x75   :  { %v2110_v44 = vsel %vm46_vm1, %v2109_v30, %v2108_v35  ;;  %v1885_v39 = vsel %vm57_vm4, %v1884_v17, %v1883_v26  ;;  %v1892_v48 = vunpack.c.h.b16 %v8250_v37  ;;  %v1893_v24 = vunpack.c.h.b16 %v8251_v47  ;;  %v9138_v26 = vld [vmem:[%s12937_s0 + $0x4] ss:$0 sps:$4 sm:$0x22]  }
  0x76   :  { %v2112_v29 = vsel %vm49_vm2, %v2111_v36, %v2110_v44  ;;  %2122 = vrot.lane.b32.xlu1 %v2121_v16, %s8494_s4  ;;  %v1887_v51 = vsel %vm60_vm5, %v1886_v34, %v1885_v39  ;;  %v1894_v33 = vunpack.c.h.b16 %v8252_v49  ;;  %v1904_v54 = vrot.slane %v9072_v63, 5 }
  0x77   :  { %v9104_v52 = vpack.c.b16 %v2112_v29, %v2112_v29  ;;  %v1888_v56 = vpack.c.b16 %v1887_v51, %v1887_v51  ;;  %v1895_v37 = vrot.slane %v1892_v48, 7  ;;  %v1897_v47 = vrot.slane %v1893_v24, 6  ;;  %v9148_v29 = vld [vmem:[%s12937_s0 + $0x10] ss:$0 sps:$4 sm:$0x22]  }
  0x78   :  { %v1905_v42 = vrot.slane %v9074_v11, 4  ;;  %v1899_v57 = vrot.slane %v1894_v33, 5  ;;  %v1907_v62 = vrot.slane %v9076_v14, 3  ;;  %v1909_v0 = vrot.slane %v9081_v20, 2 }
  0x79   :  { %v1912_v2 = vrot.slane %v9072_v63, 1  ;;  %1889 = vrot.lane.b32.xlu0 %v1888_v56, %s8494_s4  ;;  %v1896_v49 = vsel %vm43_vm0, %v1895_v37, %v1891_v46  ;;  %v1914_v19 = vrot.slane %v9076_v14, 7  ;;  %v1916_v21 = vrot.slane %v9081_v20, 6 }
  0x7a   :  { %v1906_v1 = vsel %vm54_vm3, %v1905_v42, %v1904_v54  ;;  %2124 = vrot.lane.b32.xlu1 %v9104_v52, %s8493_s30  ;;  %v1898_v27 = vsel %vm46_vm1, %v1897_v47, %v1896_v49  ;;  %v9128_v28 = vunpack.c.l.b16 %v8253_v38  ;;  %v9133_v16 = vunpack.c.l.b16 %v8254_v50  ;;  %v8260_v49 = vld [vmem:[%s12937_s0 + $0x28] ss:$0 sps:$4 sm:$0x22]  }
  0x7b   :  { %v1908_v17 = vsel %vm57_vm4, %v1907_v62, %v1906_v1  ;;  %v1913_v30 = vsel %vm43_vm0, %v9074_v11, %v1912_v2  ;;  %v1900_v34 = vsel %vm49_vm2, %v1899_v57, %v1898_v27  ;;  %v9143_v38 = vunpack.c.l.b16 %v8255_v55  ;;  %v9161_v55 = vld [vmem:[%s12937_s0 + $0x1c] ss:$0 sps:$4 sm:$0x22]  }
  0x7c   :  { %v1910_v35 = vsel %vm60_vm5, %v1909_v0, %v1908_v17  ;;  %v1915_v36 = vsel %vm46_vm1, %v1914_v19, %v1913_v30  ;;  %v1901_v44 = vpack.c.b16 %v1900_v34, %v1900_v34  ;;  %v9154_v51 = vunpack.c.l.b16 %v8256_v13 }
  0x7d   :  { %v9140_v46 = vpack.c.b16 %v1910_v35, %v1910_v35  ;;  %v1917_v39 = vsel %vm49_vm2, %v1916_v21, %v1915_v36  ;;  %v9150_v48 = vpop.permute.xlu1 %76  ;;  %v9152_v24 = vpop.permute.xlu0 %63  ;;  %v2142_v33 = vrot.slane %v9128_v28, 6  ;;  %v2143_v54 = vrot.slane %v9133_v16, 5 }
  0x7e   :  { %v1918_v50 = vpack.c.b16 %v1917_v39, %v1917_v39  ;;  %1902 = vrot.lane.b32.xlu0 %v1901_v44, %s8493_s30  ;;  %v2145_v56 = vrot.slane %v9143_v38, 4  ;;  %v2150_v37 = vrot.slane %v9128_v28, 2  ;;  %v2151_v47 = vrot.slane %v9133_v16, 1 }
  0x7f   :  { %1921 = vrot.lane.b32.xlu1 %v9140_v46, %s8493_s30  ;;  %v2168_v42 = vrot.slane %v9128_v28, 7  ;;  %v2144_v57 = vsel %vm54_vm3, %v2143_v54, %v2142_v33  ;;  %v2147_v62 = vrot.slane %v9154_v51, 3  ;;  %v2154_v0 = vrot.slane %v9154_v51, 7 }
  0x80   :  { %v2169_v2 = vrot.slane %v9133_v16, 6  ;;  %v2146_v1 = vsel %vm57_vm4, %v2145_v56, %v2144_v57  ;;  %v2152_v19 = vsel %vm43_vm0, %v2151_v47, %v2150_v37  ;;  %v2171_v21 = vrot.slane %v9143_v38, 5 }
  0x81   :  { %v2173_v13 = vrot.slane %v9154_v51, 4  ;;  %v2148_v27 = vsel %vm60_vm5, %v2147_v62, %v2146_v1  ;;  %v2153_v17 = vsel %vm46_vm1, %v9143_v38, %v2152_v19  ;;  %v1935_v34 = vunpack.c.l.b16 %v9138_v26 }
  0x82   :  { %v2170_v30 = vsel %vm54_vm3, %v2169_v2, %v2168_v42  ;;  %1919 = vrot.lane.b32.xlu0 %v1918_v50, %s8494_s4  ;;  %v9187_v35 = vpack.c.b16 %v2148_v27, %v2148_v27  ;;  %v2155_v36 = vsel %vm49_vm2, %v2154_v0, %v2153_v17  ;;  %v1936_v39 = vunpack.c.l.b16 %v9148_v29  ;;  %v9192_v33 = vpop.permute.xlu1 %311  ;;  %v310_v54 = vpop.permute.xlu0 %309  ;;  %v9217_v17 = vld [vmem:[%s12937_s0 + $0x4] ss:$0 sps:$4 sm:$0x22]  }
  0x83   :  { %v2172_v44 = vsel %vm57_vm4, %v2171_v21, %v2170_v30  ;;  %v2156_v56 = vpack.c.b16 %v2155_v36, %v2155_v36  ;;  %v1937_v47 = vunpack.c.l.b16 %v9161_v55  ;;  %v1938_v42 = vunpack.c.l.b16 %v8260_v49 }
  0x84   :  { %v2174_v37 = vsel %vm60_vm5, %v2173_v13, %v2172_v44  ;;  %2159 = vrot.lane.b32.xlu1 %v9187_v35, %s8493_s30  ;;  %v1946_v50 = vrot.slane %v1935_v34, 6  ;;  %v1947_v57 = vrot.slane %v1936_v39, 5  ;;  %v42_v62 = vrot.slane %v8536_v6, 7  ;;  %v9235_v44 = vld [vmem:[%s12937_s0 + $0x28] ss:$0 sps:$4 sm:$0x22]  }
  0x85   :  { %v2175_v26 = vpack.c.b16 %v2174_v37, %v2174_v37  ;;  %v1949_v0 = vrot.slane %v1937_v47, 4  ;;  %v1951_v2 = vrot.slane %v1938_v42, 3  ;;  %v45_v29 = vrot.slane %v8538_v7, 6 }
  0x86   :  { %v48_v1 = vrot.slane %v8540_v10, 5  ;;  %2157 = vrot.lane.b32.xlu0 %v2156_v56, %s8494_s4  ;;  %v1948_v19 = vsel %vm54_vm3, %v1947_v57, %v1946_v50  ;;  %vm132_vm6 = vcmask 1041408   ;;  %v44_v55 = vsel %vm43_vm0, %v42_v62, %v8534_v5  ;;  %v9206_v21 = vpop.permute.xlu1 %95  ;;  %v9208_v13 = vpop.permute.xlu0 %93  ;;  %v9222_v5 = vld [vmem:[%s12937_s0 + $0x10] ss:$0 sps:$4 sm:$0x22]  }
  0x87   :  { %v2161_v49 = vrot.slane %v9128_v28, 3  ;;  %v1950_v6 = vsel %vm57_vm4, %v1949_v0, %v1948_v19  ;;  %v47_v7 = vsel %vm46_vm1, %v45_v29, %v44_v55  ;;  %v2162_v10 = vrot.slane %v9133_v16, 2  ;;  %v8265_v56 = vld [vmem:[%s12937_s0 + $0x4] ss:$0 sps:$4 sm:$0x22]  }
  0x88   :  { %v2164_v27 = vrot.slane %v9143_v38, 1  ;;  %2176 = vrot.lane.b32.xlu1 %v2175_v26, %s8494_s4  ;;  %v1952_v28 = vsel %vm60_vm5, %v1951_v2, %v1950_v6  ;;  %v50_v30 = vsel %vm49_vm2, %v48_v1, %v47_v7  ;;  %v1939_v36 = vrot.slane %v1935_v34, 2  ;;  %v9230_v38 = vld [vmem:[%s12937_s0 + $0x1c] ss:$0 sps:$4 sm:$0x22]  }
  0x89   :  { %v1940_v16 = vrot.slane %v1936_v39, 1  ;;  %v1953_v37 = vpack.c.b16 %v1952_v28, %v1952_v28  ;;  %v51_v26 = vpack.c.b16 %v50_v30, %v50_v30  ;;  %v2163_v50 = vsel %vm43_vm0, %v2162_v10, %v2161_v49  ;;  %v8266_v39 = vld [vmem:[%s12937_s0 + $0x10] ss:$0 sps:$4 sm:$0x22]  }
  0x8a   :  { %v1943_v34 = vrot.slane %v1938_v42, 7  ;;  %v2165_v57 = vsel %vm46_vm1, %v2164_v27, %v2163_v50  ;;  %v369_v0 = vsel %vm132_vm6, %v8591_v59, %v310_v54  ;;  %v8267_v2 = vld [vmem:[%s12937_s0 + $0x1c] ss:$0 sps:$4 sm:$0x22]   ;;  %v12941_v19 = vmov 0.0  }
  0x8b   :  { %v1941_v62 = vsel %vm43_vm0, %v1940_v16, %v1939_v36  ;;  %1954 = vrot.lane.b32.xlu0 %v1953_v37, %s8494_s4  ;;  %v135_v42 = vsel %vm132_vm6, %v51_v26, %v9152_v24  ;;  %v2166_v29 = vsel %vm49_vm2, %v9154_v51, %v2165_v57  ;;  %7851 = vmatprep.subr.bf16.mxu0 %v12941_v19  ;;  %vm136_vm7 = vcmask 1043456   ;;  %v8268_v59 = vld [vmem:[%s12937_s0 + $0x28] ss:$0 sps:$4 sm:$0x22]   ;;  %v347_v54 = vpop.permute.xlu1 %346 }
  0x8c   :  { %v1942_v1 = vsel %vm46_vm1, %v1937_v47, %v1941_v62  ;;  %v9261_v55 = vpack.c.b16 %v2166_v29, %v2166_v29  ;;  %v138_v24 = vsel %vm136_vm7, %v135_v42, %v9150_v48  ;;  %vm139_vm8 = vcmask 1045504   ;;  %7861 = vmatprep.subr.bf16.mxu1 %v12941_v19  ;;  %v345_v51 = vpop.permute.xlu0 %344 }
  0x8d   :  { %v1944_v49 = vsel %vm49_vm2, %v1943_v34, %v1942_v1  ;;  %v141_v6 = vsel %vm139_vm8, %v138_v24, %v8613_v9  ;;  %v2551_v7 = vunpack.c.l.b16 %v9217_v17  ;;  %v2552_v10 = vunpack.c.l.b16 %v9222_v5 }
  0x8e   :  { %v9267_v47 = vpack.c.b16 %v1944_v49, %v1944_v49  ;;  %2178 = vrot.lane.b32.xlu1 %v9261_v55, %s8493_s30  ;;  %7852 = vmatpush3.bf16.msra.mxu0 %v141_v6  ;;  %v2553_v27 = vunpack.c.l.b16 %v9230_v38  ;;  %v2554_v48 = vunpack.c.l.b16 %v9235_v44  ;;  %v9277_v28 = vunpack.c.l.b16 %v8265_v56 }
  0x8f   :  { %v9279_v30 = vunpack.c.l.b16 %v8266_v39  ;;  %v2562_v9 = vrot.slane %v2551_v7, 7  ;;  %v2563_v36 = vrot.slane %v2552_v10, 6  ;;  %v9283_v17 = vunpack.c.l.b16 %v8267_v2  ;;  %v9287_v16 = vpop.permute.xlu1 %363  ;;  %7853 = vmatprep.subr.bf16.mxu0 %v12941_v19 }
  0x90   :  { %1956 = vrot.lane.b32.xlu0 %v9267_v47, %s8493_s30  ;;  %v9285_v5 = vunpack.c.l.b16 %v8268_v59  ;;  %v2565_v38 = vrot.slane %v2553_v27, 5  ;;  %v2567_v37 = vrot.slane %v2554_v48, 4  ;;  %v2336_v44 = vrot.slane %v9277_v28, 6 }
  0x91   :  { %v2337_v56 = vrot.slane %v9279_v30, 5  ;;  %v2564_v26 = vsel %vm54_vm3, %v2563_v36, %v2562_v9  ;;  %v2339_v50 = vrot.slane %v9283_v17, 4  ;;  %v371_v39 = vsel %vm136_vm7, %v369_v0, %v9192_v33  ;;  %v9297_v57 = vpop.permute.xlu0 %128 }
  0x92   :  { %v2341_v34 = vrot.slane %v9285_v5, 3  ;;  %v2566_v62 = vsel %vm57_vm4, %v2565_v38, %v2564_v26  ;;  %v373_v42 = vsel %vm139_vm8, %v371_v39, %v8641_v41  ;;  %v9306_v29 = vsel %vm132_vm6, %v9208_v13, %v9206_v21  ;;  %v8269_v21 = vld [vmem:[%s12937_s0 + $0x4] ss:$0 sps:$4 sm:$0x44]  }
  0x93   :  { %v2338_v2 = vsel %vm54_vm3, %v2337_v56, %v2336_v44  ;;  %v2568_v1 = vsel %vm60_vm5, %v2567_v37, %v2566_v62  ;;  %7862 = vmatpush3.bf16.msra.mxu1 %v373_v42  ;;  %v2555_v33 = vrot.slane %v2551_v7, 3  ;;  %v2556_v0 = vrot.slane %v2552_v10, 2  ;;  %v9310_v49 = vpop.permute.xlu1 %365  ;;  %v8270_v13 = vld [vmem:[%s12937_s0 + $0x10] ss:$0 sps:$4 sm:$0x44]  }
  0x94   :  { %v2340_v59 = vsel %vm57_vm4, %v2339_v50, %v2338_v2  ;;  %v2569_v24 = vpack.c.b16 %v2568_v1, %v2568_v1  ;;  %v2558_v9 = vrot.slane %v2553_v27, 1  ;;  %v2329_v41 = vrot.slane %v9277_v28, 2  ;;  %7863 = vmatprep.subr.bf16.mxu1 %v12941_v19  ;;  %v8271_v50 = vld [vmem:[%s12937_s0 + $0x1c] ss:$0 sps:$4 sm:$0x44]  }
  0x95   :  { %v2342_v6 = vsel %vm60_vm5, %v2341_v34, %v2340_v59  ;;  %v2557_v10 = vsel %vm43_vm0, %v2556_v0, %v2555_v33  ;;  %v2330_v36 = vrot.slane %v9279_v30, 1  ;;  %v2333_v38 = vrot.slane %v9285_v5, 7  ;;  %v9324_v27 = vpop.permute.xlu0 %130 }
  0x96   :  { %v2343_v7 = vpack.c.b16 %v2342_v6, %v2342_v6  ;;  %2570 = vrot.lane.b32.xlu1 %v2569_v24, %s8494_s4  ;;  %v2559_v37 = vsel %vm46_vm1, %v2558_v9, %v2557_v10  ;;  %v377_v44 = vsel %vm132_vm6, %v345_v51, %v347_v54  ;;  %v2348_v56 = vrot.slane %v9277_v28, 7  ;;  %v8272_v54 = vld [vmem:[%s12937_s0 + $0x28] ss:$0 sps:$4 sm:$0x44]  }
  0x97   :  { %v2349_v26 = vrot.slane %v9279_v30, 6  ;;  %v2560_v34 = vsel %vm49_vm2, %v2554_v48, %v2559_v37  ;;  %v2331_v39 = vsel %vm43_vm0, %v2330_v36, %v2329_v41  ;;  %v2351_v62 = vrot.slane %v9283_v17, 5 }
  0x98   :  { %2344 = vrot.lane.b32.xlu0 %v2343_v7, %s8494_s4  ;;  %v2353_v2 = vrot.slane %v9285_v5, 4  ;;  %v9342_v51 = vpop.permute.xlu1 %757  ;;  %v9344_v42 = vpack.c.b16 %v2560_v34, %v2560_v34  ;;  %v2332_v1 = vsel %vm46_vm1, %v9283_v17, %v2331_v39  ;;  %v2356_v48 = vrot.slane %v9277_v28, 3  ;;  %v9386_v34 = vld [vmem:[%s12937_s0 + $0x10] ss:$0 sps:$4 sm:$0x44]  }
  0x99   :  { %v2350_v59 = vsel %vm54_vm3, %v2349_v26, %v2348_v56  ;;  %v2334_v33 = vsel %vm49_vm2, %v2333_v38, %v2332_v1  ;;  %v2357_v24 = vrot.slane %v9279_v30, 2  ;;  %v2359_v6 = vrot.slane %v9283_v17, 1  ;;  %v9391_v39 = vld [vmem:[%s12937_s0 + $0x1c] ss:$0 sps:$4 sm:$0x44]  }
  0x9a   :  { %v2352_v0 = vsel %vm57_vm4, %v2351_v62, %v2350_v59  ;;  %2572 = vrot.lane.b32.xlu1 %v9344_v42, %s8493_s30  ;;  %v9356_v9 = vpack.c.b16 %v2334_v33, %v2334_v33  ;;  %v9359_v7 = vunpack.c.l.b16 %v8269_v21  ;;  %v9361_v10 = vunpack.c.l.b16 %v8270_v13  ;;  %v9401_v59 = vld [vmem:[%s12937_s0 + $0x28] ss:$0 sps:$4 sm:$0x44]  }
  0x9b   :  { %v2354_v41 = vsel %vm60_vm5, %v2353_v2, %v2352_v0  ;;  %v2358_v36 = vsel %vm43_vm0, %v2357_v24, %v2356_v48  ;;  %v9366_v38 = vunpack.c.l.b16 %v8271_v50  ;;  %v9368_v30 = vunpack.c.l.b16 %v8272_v54  ;;  %v532_v17 = vpop.permute.xlu0 %531  ;;  %v9381_v50 = vld [vmem:[%s12937_s0 + $0x4] ss:$0 sps:$4 sm:$0x44]  }
  0x9c   :  { %v9363_v28 = vpack.c.b16 %v2354_v41, %v2354_v41  ;;  %v9370_v37 = vpop.permute.xlu1 %759  ;;  %2346 = vrot.lane.b32.xlu0 %v9356_v9, %s8493_s30  ;;  %v2360_v56 = vsel %vm46_vm1, %v2359_v6, %v2358_v36  ;;  %v2611_v21 = vrot.slane %v9361_v10, 7  ;;  %v2601_v13 = vrot.slane %v9359_v7, 4 }
  0x9d   :  { %v2602_v26 = vrot.slane %v9361_v10, 3  ;;  %v2361_v62 = vsel %vm49_vm2, %v9285_v5, %v2360_v56  ;;  %v2613_v2 = vrot.slane %v9366_v38, 6  ;;  %v2615_v54 = vrot.slane %v9368_v30, 5 }
  0x9e   :  { %v2604_v1 = vrot.slane %v9366_v38, 2  ;;  %2365 = vrot.lane.b32.xlu1 %v9363_v28, %s8493_s30  ;;  %v2362_v48 = vpack.c.b16 %v2361_v62, %v2361_v62  ;;  %v2612_v33 = vsel %vm54_vm3, %v2611_v21, %v9359_v7  ;;  %v2606_v0 = vrot.slane %v9368_v30, 1 }
  0x9f   :  { %v2603_v5 = vsel %vm43_vm0, %v2602_v26, %v2601_v13  ;;  %v2614_v24 = vsel %vm57_vm4, %v2613_v2, %v2612_v33  ;;  %v147_v41 = vsel %vm136_vm7, %v9306_v29, %v8683_v22  ;;  %v379_v36 = vsel %vm136_vm7, %v377_v44, %v8679_v18  ;;  %v9416_v56 = vpop.permute.xlu0 %533 }
  0xa0   :  { %v2605_v6 = vsel %vm46_vm1, %v2604_v1, %v2603_v5  ;;  %v9418_v62 = vpop.permute.xlu1 %552  ;;  %2363 = vrot.lane.b32.xlu0 %v2362_v48, %s8494_s4  ;;  %v2616_v21 = vsel %vm60_vm5, %v2615_v54, %v2614_v24  ;;  %v149_v26 = vsel %vm139_vm8, %v147_v41, %v9297_v57  ;;  %v381_v2 = vsel %vm139_vm8, %v379_v36, %v9287_v16 }
  0xa1   :  { %v2607_v13 = vsel %vm49_vm2, %v2606_v0, %v2605_v6  ;;  %v2617_v22 = vpack.c.b16 %v2616_v21, %v2616_v21  ;;  %7854 = vmatpush3.bf16.msra.mxu0 %v149_v26  ;;  %7864 = vmatpush3.bf16.msra.mxu1 %v381_v2  ;;  %v2628_v18 = vrot.slane %v9359_v7, 1  ;;  %v2630_v44 = vrot.slane %v9366_v38, 7 }
  0xa2   :  { %v2608_v29 = vpack.c.b16 %v2607_v13, %v2607_v13  ;;  %7855 = vmatprep.subr.bf16.mxu0 %v12941_v19  ;;  %7865 = vmatprep.subr.bf16.mxu1 %v12941_v19  ;;  %v2632_v54 = vrot.slane %v9368_v30, 6  ;;  %v2391_v1 = vunpack.c.h.b16 %v9381_v50  ;;  %v2392_v57 = vunpack.c.h.b16 %v9386_v34 }
  0xa3   :  { %v2393_v16 = vunpack.c.h.b16 %v9391_v39  ;;  %2618 = vrot.lane.b32.xlu1 %v2617_v22, %s8493_s30  ;;  %v2629_v48 = vsel %vm54_vm3, %v9361_v10, %v2628_v18  ;;  %v2394_v33 = vunpack.c.h.b16 %v9401_v59  ;;  %v161_v5 = vsel %vm132_vm6, %v9324_v27, 0  ;;  %v9443_v24 = vpop.permute.xlu0 %550 }
  0xa4   :  { %v384_v0 = vsel %vm132_vm6, %v9310_v49, 0  ;;  %2609 = vrot.lane.b32.xlu0 %v2608_v29, %s8494_s4  ;;  %v2631_v6 = vsel %vm57_vm4, %v2630_v44, %v2629_v48  ;;  %v2395_v41 = vrot.slane %v2392_v57, 7  ;;  %v828_v21 = vsel %vm132_vm6, %v8709_v58, %v9342_v51  ;;  %v9462_v58 = vld [vmem:[%s12937_s0 + $0x4] ss:$0 sps:$4 sm:$0x44]  }
  0xa5   :  { %v2397_v36 = vrot.slane %v2393_v16, 6  ;;  %v2633_v13 = vsel %vm60_vm5, %v2632_v54, %v2631_v6  ;;  %v2399_v26 = vrot.slane %v2394_v33, 5  ;;  %7856 = vmatpush3.bf16.msra.mxu0 %v161_v5  ;;  %7866 = vmatpush3.bf16.msra.mxu1 %v384_v0  ;;  %v595_v49 = vsel %vm132_vm6, %v8721_v3, %v532_v17  ;;  %v9454_v2 = vpop.permute.xlu1 %805  ;;  %v9467_v3 = vld [vmem:[%s12937_s0 + $0x10] ss:$0 sps:$4 sm:$0x44]  }
  0xa6   :  { %v2620_v27 = vrot.slane %v9359_v7, 5  ;;  %v2634_v22 = vpack.c.b16 %v2633_v13, %v2633_v13  ;;  %v2396_v29 = vsel %vm54_vm3, %v2395_v41, %v2391_v1  ;;  %v2621_v18 = vrot.slane %v9361_v10, 4  ;;  %v9472_v51 = vld [vmem:[%s12937_s0 + $0x1c] ss:$0 sps:$4 sm:$0x44]   ;;  %7871 = vmatprep.subr.bf16.mxu0 %v12941_v19  ;;  %7881 = vmatprep.subr.bf16.mxu1 %v12941_v19 }
  0xa7   :  { %v2623_v44 = vrot.slane %v9366_v38, 3  ;;  %v2398_v7 = vsel %vm57_vm4, %v2397_v36, %v2396_v29  ;;  %v2625_v10 = vrot.slane %v9368_v30, 2  ;;  %v2379_v38 = vunpack.c.l.b16 %v9381_v50  ;;  %v9483_v54 = vld [vmem:[%s12937_s0 + $0x28] ss:$0 sps:$4 sm:$0x44]   ;;  %v9488_v57 = vpop.permute.xlu0 %796 }
  0xa8   :  { %v2380_v17 = vunpack.c.l.b16 %v9386_v34  ;;  %v8281_v1 = vld [vmem:[%s12937_s0 + $0x4] ss:$0 sps:$4 sm:$0x44]   ;;  %2635 = vrot.lane.b32.xlu1 %v2634_v22, %s8494_s4  ;;  %v2400_v16 = vsel %vm60_vm5, %v2399_v26, %v2398_v7  ;;  %v2622_v30 = vsel %vm43_vm0, %v2621_v18, %v2620_v27  ;;  %v2381_v50 = vunpack.c.l.b16 %v9391_v39  ;;  %v8282_v6 = vld [vmem:[%s12937_s0 + $0x10] ss:$0 sps:$4 sm:$0x44]  }
  0xa9   :  { %v2382_v34 = vunpack.c.l.b16 %v9401_v59  ;;  %v2401_v48 = vpack.c.b16 %v2400_v16, %v2400_v16  ;;  %v2624_v33 = vsel %vm46_vm1, %v2623_v44, %v2622_v30  ;;  %v2383_v5 = vrot.slane %v2379_v38, 4  ;;  %v9499_v41 = vpop.permute.xlu1 %822  ;;  %v8283_v59 = vld [vmem:[%s12937_s0 + $0x1c] ss:$0 sps:$4 sm:$0x44]  }
  0xaa   :  { %v2384_v0 = vrot.slane %v2380_v17, 3  ;;  %v2626_v36 = vsel %vm49_vm2, %v2625_v10, %v2624_v33  ;;  %v2386_v13 = vrot.slane %v2381_v50, 2  ;;  %v9504_v39 = vsel %vm136_vm7, %v828_v21, %v9370_v37  ;;  %v8284_v18 = vld [vmem:[%s12937_s0 + $0x28] ss:$0 sps:$4 sm:$0x44]  }
  0xab   :  { %v2388_v26 = vrot.slane %v2382_v34, 1  ;;  %2402 = vrot.lane.b32.xlu0 %v2401_v48, %s8494_s4  ;;  %v9510_v27 = vpack.c.b16 %v2626_v36, %v2626_v36  ;;  %v597_v29 = vsel %vm136_vm7, %v595_v49, %v9416_v56  ;;  %v9518_v44 = vpop.permute.xlu0 %589  ;;  %vm8496_vm9 = vmmov 0   ;;  %v9531_v49 = vld [vmem:[%s12938_s1] sm:$0xf] }
  0xac   :  { %v2385_v22 = vsel %vm43_vm0, %v2384_v0, %v2383_v5  ;;  %7857 = vmatprep.mubr.msk.bf16.mxu0 %vm8496_vm9, %v12941_v19  ;;  %7867 = vmatprep.mubr.msk.bf16.mxu1 %vm8496_vm9, %v12941_v19  ;;  %v3006_v21 = vunpack.c.l.b16 %v9462_v58  ;;  %v3007_v7 = vunpack.c.l.b16 %v9467_v3  ;;  %v3008_v56 = vunpack.c.l.b16 %v9472_v51 }
  0xad   :  { %v2387_v37 = vsel %vm46_vm1, %v2386_v13, %v2385_v22  ;;  %2637 = vrot.lane.b32.xlu1 %v9510_v27, %s8493_s30  ;;  %v3009_v38 = vunpack.c.l.b16 %v9483_v54  ;;  %v9537_v17 = vunpack.c.l.b16 %v8281_v1  ;;  %v9539_v16 = vunpack.c.l.b16 %v8282_v6  ;;  %v9541_v58 = vpop.permute.xlu1 %824  ;;  %v8437_v6 = vld [vmem:[%s12937_s0] ss:$0 sps:$4 sm:$0x44]  }
  0xae   :  { %v2389_v10 = vsel %vm49_vm2, %v2388_v26, %v2387_v37  ;;  %v3018_v51 = vrot.slane %v3006_v21, 1  ;;  %v3020_v30 = vrot.slane %v3008_v56, 7  ;;  %v9545_v50 = vunpack.c.l.b16 %v8283_v59  ;;  %v8439_v37 = vld [vmem:[%s12937_s0 + $0x18] ss:$0 sps:$4 sm:$0x44]  }
  0xaf   :  { %v9543_v3 = vpack.c.b16 %v2389_v10, %v2389_v10  ;;  %v3022_v34 = vrot.slane %v3009_v38, 6  ;;  %v9547_v48 = vunpack.c.l.b16 %v8284_v18  ;;  %v2796_v33 = vrot.slane %v9539_v16, 7 }
  0xb0   :  { %vm156_vm10 = vcmask 293888   ;;  %v9550_v5 = vpop.permute.xlu0 %591  ;;  %v3019_v54 = vsel %vm54_vm3, %v3007_v7, %v3018_v51  ;;  %v2798_v1 = vrot.slane %v9545_v50, 6  ;;  %v599_v0 = vsel %vm139_vm8, %v597_v29, %v8724_v12  ;;  %v8438_v12 = vld [vmem:[%s12937_s0 + $0xc] ss:$0 sps:$4 sm:$0x44]  }
  0xb1   :  { %2404 = vrot.lane.b32.xlu0 %v9543_v3, %s8493_s30  ;;  %7858 = vmatmul.mubr.msk.bf16.vlgmr.msra.gmra.mrb[0].mxu0 %vm156_vm10, %v9531_v49  ;;  %v773_v36 = vunpack.c.h.b16 %v8437_v6  ;;  %v3021_v13 = vsel %vm57_vm4, %v3020_v30, %v3019_v54  ;;  %v2797_v26 = vsel %vm54_vm3, %v2796_v33, %v9537_v17  ;;  %v2800_v59 = vrot.slane %v9547_v48, 5  ;;  %v8440_v51 = vld [vmem:[%s12937_s0 + $0x24] ss:$0 sps:$4 sm:$0x44]  }
  0xb2   :  { %7868 = vmatmul.mubr.msk.bf16.vlgmr.msra.gmra.mrb[0].mxu1 %vm156_vm10, %v9531_v49  ;;  %7872 = vmatpush3.bf16.msra.mxu0 %v599_v0  ;;  %v774_v22 = vunpack.c.h.b16 %v8438_v12  ;;  %v3023_v29 = vsel %vm60_vm5, %v3022_v34, %v3021_v13  ;;  %v2799_v18 = vsel %vm57_vm4, %v2798_v1, %v2797_v26  ;;  %v775_v10 = vunpack.c.h.b16 %v8439_v37 }
  0xb3   :  { %v776_v30 = vunpack.c.h.b16 %v8440_v51  ;;  %7873 = vmatprep.subr.bf16.mxu0 %v12941_v19  ;;  %7877 = vmatprep.mubr.msk.bf16.mxu0 %vm8496_vm9, %v12941_v19  ;;  %v3024_v33 = vpack.c.b16 %v3023_v29, %v3023_v29  ;;  %v2801_v34 = vsel %vm60_vm5, %v2800_v59, %v2799_v18  ;;  %v603_v1 = vsel %vm132_vm6, %v9443_v24, %v9418_v62  ;;  %v9587_v0 = vpop.permute.xlu1 %1212 }
  0xb4   :  { %v777_v54 = vrot.slane %v774_v22, 7  ;;  %7887 = vmatprep.mubr.msk.bf16.mxu1 %vm8496_vm9, %v12941_v19  ;;  %v2802_v6 = vpack.c.b16 %v2801_v34, %v2801_v34  ;;  %v779_v13 = vrot.slane %v775_v10, 6  ;;  %v3010_v12 = vrot.slane %v3006_v21, 5 }
  0xb5   :  { %v781_v26 = vrot.slane %v776_v30, 5  ;;  %3025 = vrot.lane.b32.xlu1 %v3024_v33, %s8494_s4  ;;  %v3011_v37 = vrot.slane %v3007_v7, 4  ;;  %v3013_v59 = vrot.slane %v3008_v56, 3  ;;  %v3015_v22 = vrot.slane %v3009_v38, 2  ;;  %v9593_v18 = vpop.permute.xlu0 %990 }
  0xb6   :  { %v778_v29 = vsel %vm54_vm3, %v777_v54, %v773_v36  ;;  %2803 = vrot.lane.b32.xlu0 %v2802_v6, %s8494_s4  ;;  %v2788_v24 = vrot.slane %v9537_v17, 4  ;;  %v2789_v51 = vrot.slane %v9539_v16, 3  ;;  %v2791_v10 = vrot.slane %v9545_v50, 2  ;;  %v8285_v6 = vld [vmem:[%s12937_s0 + $0x4] ss:$0 sps:$4 sm:$0x88]  }
  0xb7   :  { %v780_v62 = vsel %vm57_vm4, %v779_v13, %v778_v29  ;;  %v3012_v30 = vsel %vm43_vm0, %v3011_v37, %v3010_v12  ;;  %v2793_v7 = vrot.slane %v9547_v48, 1  ;;  %v836_v56 = vsel %vm132_vm6, %v9488_v57, %v9454_v2  ;;  %v9606_v38 = vpop.permute.xlu1 %1214  ;;  %v8286_v57 = vld [vmem:[%s12937_s0 + $0x10] ss:$0 sps:$4 sm:$0x88]  }
  0xb8   :  { %v782_v21 = vsel %vm60_vm5, %v781_v26, %v780_v62  ;;  %v3014_v33 = vsel %vm46_vm1, %v3013_v59, %v3012_v30  ;;  %v2790_v34 = vsel %vm43_vm0, %v2789_v51, %v2788_v24  ;;  %v2807_v54 = vrot.slane %v9537_v17, 1  ;;  %v8287_v24 = vld [vmem:[%s12937_s0 + $0x1c] ss:$0 sps:$4 sm:$0x88]  }
  0xb9   :  { %v783_v36 = vpack.c.b16 %v782_v21, %v782_v21  ;;  %v3016_v13 = vsel %vm49_vm2, %v3015_v22, %v3014_v33  ;;  %v2792_v26 = vsel %vm46_vm1, %v2791_v10, %v2790_v34  ;;  %v2809_v12 = vrot.slane %v9545_v50, 7  ;;  %v9621_v29 = vpop.permute.xlu0 %992  ;;  %v8288_v51 = vld [vmem:[%s12937_s0 + $0x28] ss:$0 sps:$4 sm:$0x88]  }
  0xba   :  { %v2811_v2 = vrot.slane %v9547_v48, 6  ;;  %v9625_v59 = vpack.c.b16 %v3016_v13, %v3016_v13  ;;  %v2794_v62 = vsel %vm49_vm2, %v2793_v7, %v2792_v26  ;;  %v2808_v22 = vsel %vm54_vm3, %v9539_v16, %v2807_v54 }
  0xbb   :  { %v832_v37 = vsel %vm139_vm8, %v9504_v39, %v783_v36  ;;  %v9636_v10 = vpack.c.b16 %v2794_v62, %v2794_v62  ;;  %v2810_v39 = vsel %vm57_vm4, %v2809_v12, %v2808_v22  ;;  %v2814_v21 = vrot.slane %v9537_v17, 5  ;;  %v9641_v7 = vpop.permute.xlu1 %1011 }
  0xbc   :  { %7882 = vmatpush3.bf16.msra.mxu1 %v832_v37  ;;  %v2815_v30 = vrot.slane %v9539_v16, 4  ;;  %3027 = vrot.lane.b32.xlu1 %v9625_v59, %s8493_s30  ;;  %v2812_v36 = vsel %vm60_vm5, %v2811_v2, %v2810_v39  ;;  %v2817_v33 = vrot.slane %v9545_v50, 3  ;;  %v2819_v34 = vrot.slane %v9547_v48, 2  ;;  %v9672_v2 = vld [vmem:[%s12937_s0 + $0x4] ss:$0 sps:$4 sm:$0x88]  }
  0xbd   :  { %v838_v54 = vsel %vm136_vm7, %v836_v56, %v8808_v31  ;;  %7883 = vmatprep.subr.bf16.mxu1 %v12941_v19  ;;  %2805 = vrot.lane.b32.xlu0 %v9636_v10, %s8493_s30  ;;  %v9653_v17 = vpack.c.b16 %v2812_v36, %v2812_v36  ;;  %v605_v50 = vsel %vm136_vm7, %v603_v1, %v8816_v43  ;;  %v9660_v26 = vpop.permute.xlu0 %1009  ;;  %v9665_v56 = vunpack.c.l.b16 %v8285_v6  ;;  %v9677_v43 = vld [vmem:[%s12937_s0 + $0x10] ss:$0 sps:$4 sm:$0x88]   ;;  %v9689_v6 = vld [vmem:[%s12937_s0 + $0x1c] ss:$0 sps:$4 sm:$0x88]  }
  0xbe   :  { %v2816_v16 = vsel %vm43_vm0, %v2815_v30, %v2814_v21  ;;  %v840_v13 = vsel %vm139_vm8, %v838_v54, %v9499_v41  ;;  %v607_v31 = vsel %vm139_vm8, %v605_v50, %v9518_v44  ;;  %v9667_v12 = vunpack.c.l.b16 %v8286_v57 }
  0xbf   :  { %v2818_v48 = vsel %vm46_vm1, %v2817_v33, %v2816_v16  ;;  %v9680_v1 = vunpack.c.l.b16 %v8287_v24  ;;  %v9682_v37 = vunpack.c.l.b16 %v8288_v51  ;;  %7874 = vmatpush3.bf16.msra.mxu0 %v607_v31  ;;  %v843_v44 = vsel %vm132_vm6, %v9541_v58, 0 }
  0xc0   :  { %v2820_v41 = vsel %vm49_vm2, %v2819_v34, %v2818_v48  ;;  %7884 = vmatpush3.bf16.msra.mxu1 %v840_v13  ;;  %2824 = vrot.lane.b32.xlu1 %v9653_v17, %s8493_s30  ;;  %v3045_v62 = vrot.slane %v9665_v56, 2  ;;  %v3046_v22 = vrot.slane %v9667_v12, 1  ;;  %v3052_v24 = vrot.slane %v9665_v56, 6  ;;  %v8292_v13 = vld [vmem:[%s12937_s0 + $0x28] ss:$0 sps:$4 sm:$0x88]  }
  0xc1   :  { %v2821_v57 = vpack.c.b16 %v2820_v41, %v2820_v41  ;;  %7875 = vmatprep.subr.bf16.mxu0 %v12941_v19  ;;  %v9697_v51 = vpop.permute.xlu1 %1249  ;;  %v3049_v58 = vrot.slane %v9682_v37, 7  ;;  %v3053_v39 = vrot.slane %v9667_v12, 5  ;;  %v3055_v21 = vrot.slane %v9680_v1, 4  ;;  %7885 = vmatprep.subr.bf16.mxu1 %v12941_v19  ;;  %v9704_v36 = vpop.permute.xlu0 %1247 }
  0xc2   :  { %v3057_v30 = vrot.slane %v9682_v37, 3  ;;  %v3047_v33 = vsel %vm54_vm3, %v3046_v22, %v3045_v62  ;;  %v610_v34 = vsel %vm132_vm6, %v9550_v5, 0  ;;  %v3072_v54 = vrot.slane %v9665_v56, 3 }
  0xc3   :  { %2822 = vrot.lane.b32.xlu0 %v2821_v57, %s8494_s4  ;;  %v3073_v16 = vrot.slane %v9667_v12, 2  ;;  %v3048_v50 = vsel %vm57_vm4, %v9680_v1, %v3047_v33  ;;  %v3054_v48 = vsel %vm43_vm0, %v3053_v39, %v3052_v24  ;;  %v3075_v31 = vrot.slane %v9680_v1, 1  ;;  %7876 = vmatpush3.bf16.msra.mxu0 %v610_v34 }
  0xc4   :  { %v2838_v41 = vunpack.c.l.b16 %v9672_v2  ;;  %7886 = vmatpush3.bf16.msra.mxu1 %v843_v44  ;;  %v3050_v5 = vsel %vm60_vm5, %v3049_v58, %v3048_v50  ;;  %v3056_v57 = vsel %vm46_vm1, %v3055_v21, %v3054_v48  ;;  %v2839_v22 = vunpack.c.l.b16 %v9677_v43  ;;  %7891 = vmatprep.subr.bf16.mxu0 %v12941_v19  ;;  %v9755_v50 = vld [vmem:[%s12937_s0 + $0x10] ss:$0 sps:$4 sm:$0x88]  }
  0xc5   :  { %v3074_v62 = vsel %vm54_vm3, %v3073_v16, %v3072_v54  ;;  %7901 = vmatprep.subr.bf16.mxu1 %v12941_v19  ;;  %v9726_v33 = vpop.permute.xlu1 %1266  ;;  %v9728_v24 = vpack.c.b16 %v3050_v5, %v3050_v5  ;;  %v3058_v2 = vsel %vm49_vm2, %v3057_v30, %v3056_v57  ;;  %v2840_v58 = vunpack.c.l.b16 %v9689_v6 }
  0xc6   :  { %v3076_v44 = vsel %vm57_vm4, %v3075_v31, %v3074_v62  ;;  %v3059_v39 = vpack.c.b16 %v3058_v2, %v3058_v2  ;;  %v2841_v34 = vunpack.c.l.b16 %v8292_v13  ;;  %v2850_v43 = vrot.slane %v2838_v41, 2  ;;  %7878 = vmatmul.mubr.msk.bf16.vlgmr.msra.gmra.mrb[4].mxu0 %vm156_vm10, %v9531_v49  ;;  %v9750_v13 = vld [vmem:[%s12937_s0 + $0x4] ss:$0 sps:$4 sm:$0x88]  }
  0xc7   :  { %v3077_v21 = vsel %vm60_vm5, %v9682_v37, %v3076_v44  ;;  %7888 = vmatmul.mubr.msk.bf16.vlgmr.msra.gmra.mrb[4].mxu1 %vm156_vm10, %v9531_v49  ;;  %3062 = vrot.lane.b32.xlu1 %v9728_v24, %s8493_s30  ;;  %v2851_v54 = vrot.slane %v2839_v22, 1  ;;  %v1272_v6 = vsel %vm132_vm6, %v8843_v23, %v9587_v0  ;;  %v1050_v16 = vsel %vm132_vm6, %v8849_v32, %v9593_v18  ;;  %v9757_v48 = vpop.permute.xlu0 %1044  ;;  %v8295_v31 = vld [vmem:[%s12937_s0 + $0x1c] ss:$0 sps:$4 sm:$0x88]  }
  0xc8   :  { %v3078_v30 = vpack.c.b16 %v3077_v21, %v3077_v21  ;;  %7897 = vmatprep.mubr.msk.bf16.mxu0 %vm8496_vm9, %v12941_v19  ;;  %3060 = vrot.lane.b32.xlu0 %v3059_v39, %s8494_s4  ;;  %v2854_v23 = vrot.slane %v2841_v34, 7  ;;  %v3064_v32 = vrot.slane %v9665_v56, 7  ;;  %v3065_v0 = vrot.slane %v9667_v12, 6  ;;  %v8296_v56 = vld [vmem:[%s12937_s0 + $0x28] ss:$0 sps:$4 sm:$0x88]  }
  0xc9   :  { %v3067_v18 = vrot.slane %v9680_v1, 5  ;;  %v9768_v5 = vpop.permute.xlu1 %1268  ;;  %7907 = vmatprep.mubr.msk.bf16.mxu1 %vm8496_vm9, %v12941_v19  ;;  %v2852_v57 = vsel %vm54_vm3, %v2851_v54, %v2850_v43  ;;  %v3069_v62 = vrot.slane %v9682_v37, 4  ;;  %v2842_v2 = vrot.slane %v2838_v41, 6  ;;  %v8297_v19 = vld [vmem:[%s12937_s0 + $0x4] ss:$0 sps:$4 sm:$0x88]  }
  0xca   :  { %v2843_v44 = vrot.slane %v2839_v22, 5  ;;  %v2853_v12 = vsel %vm57_vm4, %v2840_v58, %v2852_v57  ;;  %v3066_v1 = vsel %vm43_vm0, %v3065_v0, %v3064_v32  ;;  %v2845_v39 = vrot.slane %v2840_v58, 4  ;;  %v8298_v58 = vld [vmem:[%s12937_s0 + $0x10] ss:$0 sps:$4 sm:$0x88]  }
  0xcb   :  { %v2847_v21 = vrot.slane %v2841_v34, 3  ;;  %3079 = vrot.lane.b32.xlu1 %v3078_v30, %s8494_s4  ;;  %v2855_v37 = vsel %vm60_vm5, %v2854_v23, %v2853_v12  ;;  %v3068_v41 = vsel %vm46_vm1, %v3067_v18, %v3066_v1  ;;  %v1274_v43 = vsel %vm136_vm7, %v1272_v6, %v9606_v38  ;;  %v8299_v34 = vld [vmem:[%s12937_s0 + $0x1c] ss:$0 sps:$4 sm:$0x88]   ;;  %v9794_v54 = vpop.permute.xlu0 %1046 }
  0xcc   :  { %v2844_v22 = vsel %vm43_vm0, %v2843_v44, %v2842_v2  ;;  %v2856_v30 = vpack.c.b16 %v2855_v37, %v2855_v37  ;;  %v3070_v23 = vsel %vm49_vm2, %v3069_v62, %v3068_v41  ;;  %v1052_v0 = vsel %vm136_vm7, %v1050_v16, %v9621_v29  ;;  %v8300_v38 = vld [vmem:[%s12937_s0 + $0x28] ss:$0 sps:$4 sm:$0x88]  }
  0xcd   :  { %v2846_v32 = vsel %vm46_vm1, %v2845_v39, %v2844_v22  ;;  %v9803_v6 = vpack.c.b16 %v3070_v23, %v3070_v23  ;;  %v3461_v57 = vunpack.c.l.b16 %v9750_v13  ;;  %v3462_v2 = vunpack.c.l.b16 %v9755_v50 }
  0xce   :  { %v2848_v18 = vsel %vm49_vm2, %v2847_v21, %v2846_v32  ;;  %v9808_v44 = vpop.permute.xlu1 %1667  ;;  %2857 = vrot.lane.b32.xlu0 %v2856_v30, %s8494_s4  ;;  %v3463_v12 = vunpack.c.l.b16 %v8295_v31  ;;  %v3464_v29 = vunpack.c.l.b16 %v8296_v56  ;;  %v9813_v16 = vunpack.c.l.b16 %v8297_v19 }
  0xcf   :  { %v9811_v62 = vpack.c.b16 %v2848_v18, %v2848_v18  ;;  %3081 = vrot.lane.b32.xlu1 %v9803_v6, %s8493_s30  ;;  %v3473_v1 = vrot.slane %v3461_v57, 3  ;;  %v3474_v39 = vrot.slane %v3462_v2, 2  ;;  %v9817_v21 = vunpack.c.l.b16 %v8298_v58 }
  0xd0   :  { %v9819_v13 = vunpack.c.l.b16 %v8299_v34  ;;  %v3476_v50 = vrot.slane %v3463_v12, 1  ;;  %v9821_v37 = vunpack.c.l.b16 %v8300_v38  ;;  %v3240_v41 = vrot.slane %v9813_v16, 2 }
  0xd1   :  { %12958 = vst [vmem:[#allocation5_spill] sm:$0xff] %v9811_v62  ;;  %v1054_v31 = vsel %vm139_vm8, %v1052_v0, %v8859_v40  ;;  %v9826_v56 = vpop.permute.xlu0 %1434  ;;  %v3475_v19 = vsel %vm54_vm3, %v3474_v39, %v3473_v1  ;;  %v3241_v22 = vrot.slane %v9817_v21, 1  ;;  %v1276_v58 = vsel %vm139_vm8, %v1274_v43, %v8887_v15 }
  0xd2   :  { %7892 = vmatpush3.bf16.msra.mxu0 %v1054_v31  ;;  %v1058_v34 = vsel %vm132_vm6, %v9660_v26, %v9641_v7  ;;  %v9835_v30 = vpop.permute.xlu1 %1669  ;;  %2859 = vrot.lane.b32.xlu0 %v9811_v62, %s8493_s30  ;;  %v3477_v40 = vsel %vm57_vm4, %v3476_v50, %v3475_v19  ;;  %v3244_v23 = vrot.slane %v9821_v37, 7  ;;  %v3465_v32 = vrot.slane %v3461_v57, 7 }
  0xd3   :  { %7902 = vmatpush3.bf16.msra.mxu1 %v1276_v58  ;;  %v3466_v0 = vrot.slane %v3462_v2, 6  ;;  %v3478_v38 = vsel %vm60_vm5, %v3464_v29, %v3477_v40  ;;  %v3242_v15 = vsel %vm54_vm3, %v3241_v22, %v3240_v41  ;;  %v3468_v43 = vrot.slane %v3463_v12, 5 }
  0xd4   :  { %v3470_v18 = vrot.slane %v3464_v29, 4  ;;  %v12959_v1 = vmov 0.0   ;;  %v3479_v7 = vpack.c.b16 %v3478_v38, %v3478_v38  ;;  %v3243_v26 = vsel %vm57_vm4, %v9819_v13, %v3242_v15 }
  0xd5   :  { %7893 = vmatprep.subr.bf16.mxu0 %v12959_v1  ;;  %7903 = vmatprep.subr.bf16.mxu1 %v12959_v1  ;;  %v3467_v39 = vsel %vm43_vm0, %v3466_v0, %v3465_v32  ;;  %v3232_v50 = vrot.slane %v9813_v16, 6  ;;  %v9849_v57 = vpop.permute.xlu0 %1436  ;;  %v3245_v2 = vsel %vm60_vm5, %v3244_v23, %v3243_v26  ;;  %v3233_v12 = vrot.slane %v9817_v21, 5  ;;  %v8301_v23 = vld [vmem:[%s12937_s0 + $0x8] ss:$0 sps:$4 sm:$0x11]  }
  0xd6   :  { %v3469_v41 = vsel %vm46_vm1, %v3468_v43, %v3467_v39  ;;  %v3235_v29 = vrot.slane %v9819_v13, 4  ;;  %v9855_v31 = vpop.permute.xlu1 %1455  ;;  %3480 = vrot.lane.b32.xlu1 %v3479_v7, %s8494_s4  ;;  %v3246_v19 = vpack.c.b16 %v3245_v2, %v3245_v2  ;;  %v3237_v58 = vrot.slane %v9821_v37, 3  ;;  %v8302_v43 = vld [vmem:[%s12937_s0 + $0x14] ss:$0 sps:$4 sm:$0x11]  }
  0xd7   :  { %v3471_v22 = vsel %vm49_vm2, %v3470_v18, %v3469_v41  ;;  %v1280_v40 = vsel %vm132_vm6, %v9704_v36, %v9697_v51  ;;  %v3234_v0 = vsel %vm43_vm0, %v3233_v12, %v3232_v50  ;;  %v3251_v38 = vrot.slane %v9813_v16, 3  ;;  %v8303_v51 = vld [vmem:[%s12937_s0 + $0x20] ss:$0 sps:$4 sm:$0x11]  }
  0xd8   :  { %v9866_v32 = vpack.c.b16 %v3471_v22, %v3471_v22  ;;  %v3252_v15 = vrot.slane %v9817_v21, 2  ;;  %v8304_v36 = vld [vmem:[%s12937_s0 + $0x2c] ss:$0 sps:$4 sm:$0x11]   ;;  %3247 = vrot.lane.b32.xlu0 %v3246_v19, %s8494_s4  ;;  %v3236_v18 = vsel %vm46_vm1, %v3235_v29, %v3234_v0  ;;  %v3254_v7 = vrot.slane %v9819_v13, 1 }
  0xd9   :  { %v3258_v26 = vrot.slane %v9813_v16, 7  ;;  %v3259_v39 = vrot.slane %v9817_v21, 6  ;;  %v9885_v50 = vpop.permute.xlu0 %1453  ;;  %v3238_v2 = vsel %vm49_vm2, %v3237_v58, %v3236_v18  ;;  %v3261_v12 = vrot.slane %v9819_v13, 5 }
  0xda   :  { %12960 = vst [vmem:[#allocation6_spill] sm:$0xff] %v9866_v32  ;;  %v3253_v41 = vsel %vm54_vm3, %v3252_v15, %v3251_v38  ;;  %v3263_v22 = vrot.slane %v9821_v37, 4  ;;  %3482 = vrot.lane.b32.xlu1 %v9866_v32, %s8493_s30  ;;  %v9893_v29 = vpack.c.b16 %v3238_v2, %v3238_v2  ;;  %v1282_v21 = vsel %vm136_vm7, %v1280_v40, %v8929_v61  ;;  %v9909_v15 = vld [vmem:[%s12937_s0 + $0x8] ss:$0 sps:$4 sm:$0x11]  }
  0xdb   :  { %v3255_v19 = vsel %vm57_vm4, %v3254_v7, %v3253_v41  ;;  %v3260_v16 = vsel %vm43_vm0, %v3259_v39, %v3258_v26  ;;  %v1284_v13 = vsel %vm139_vm8, %v1282_v21, %v9726_v33  ;;  %v1060_v38 = vsel %vm136_vm7, %v1058_v34, %v8934_v8  ;;  %v9911_v18 = vpop.permute.xlu1 %1704  ;;  %v9934_v2 = vld [vmem:[%s12937_s0 + $0x14] ss:$0 sps:$4 sm:$0x11]   ;;  %v8308_v41 = vld [vmem:[%s12937_s0 + $0x2c] ss:$0 sps:$4 sm:$0x11]  }
  0xdc   :  { %12961 = vst [vmem:[#allocation7_spill] sm:$0xff] %v9893_v29  ;;  %v3256_v58 = vsel %vm60_vm5, %v9821_v37, %v3255_v19  ;;  %v3262_v0 = vsel %vm46_vm1, %v3261_v12, %v3260_v16  ;;  %3249 = vrot.lane.b32.xlu0 %v9893_v29, %s8493_s30  ;;  %v1062_v33 = vsel %vm139_vm8, %v1060_v38, %v9757_v48  ;;  %v9920_v40 = vunpack.c.l.b16 %v8301_v23  ;;  %v9939_v48 = vld [vmem:[%s12937_s0 + $0x20] ss:$0 sps:$4 sm:$0x11]  }
  0xdd   :  { %v9915_v61 = vpack.c.b16 %v3256_v58, %v3256_v58  ;;  %v3264_v37 = vsel %vm49_vm2, %v3263_v22, %v3262_v0  ;;  %7904 = vmatpush3.bf16.msra.mxu1 %v1284_v13  ;;  %v9922_v8 = vpop.permute.xlu0 %1702  ;;  %v9924_v7 = vunpack.c.l.b16 %v8302_v43  ;;  %v9926_v26 = vunpack.c.l.b16 %v8303_v51  ;;  %7894 = vmatpush3.bf16.msra.mxu0 %v1062_v33 }
  0xde   :  { %v3265_v34 = vpack.c.b16 %v3264_v37, %v3264_v37  ;;  %v9928_v39 = vunpack.c.l.b16 %v8304_v36  ;;  %7905 = vmatprep.subr.bf16.mxu1 %v12959_v1  ;;  %v3500_v23 = vrot.slane %v9920_v40, 4  ;;  %v1287_v43 = vsel %vm132_vm6, %v9768_v5, 0  ;;  %7895 = vmatprep.subr.bf16.mxu0 %v12959_v1 }
  0xdf   :  { %12962 = vst [vmem:[#allocation8_spill] sm:$0xff] %v9915_v61  ;;  %3268 = vrot.lane.b32.xlu1 %v9915_v61, %s8493_s30  ;;  %v1065_v51 = vsel %vm132_vm6, %v9794_v54, 0  ;;  %v3526_v36 = vrot.slane %v9920_v40, 5  ;;  %v3501_v12 = vrot.slane %v9924_v7, 3  ;;  %v3503_v22 = vrot.slane %v9926_v26, 2  ;;  %v9957_v5 = vpop.permute.xlu1 %1721 }
  0xe0   :  { %v3505_v19 = vrot.slane %v9928_v39, 1  ;;  %v3508_v16 = vrot.slane %v9924_v7, 7  ;;  %3266 = vrot.lane.b32.xlu0 %v3265_v34, %s8494_s4  ;;  %v3510_v54 = vrot.slane %v9926_v26, 6  ;;  %v3512_v21 = vrot.slane %v9928_v39, 5 }
  0xe1   :  { %v3527_v58 = vrot.slane %v9924_v7, 4  ;;  %v3529_v0 = vrot.slane %v9926_v26, 3  ;;  %7906 = vmatpush3.bf16.msra.mxu1 %v1287_v43  ;;  %v3502_v13 = vsel %vm54_vm3, %v3501_v12, %v3500_v23  ;;  %v3531_v37 = vrot.slane %v9928_v39, 2  ;;  %7896 = vmatpush3.bf16.msra.mxu0 %v1065_v51 }
  0xe2   :  { %v3509_v38 = vsel %vm43_vm0, %v3508_v16, %v9920_v40  ;;  %v3293_v33 = vunpack.c.l.b16 %v9909_v15  ;;  %7921 = vmatprep.subr.bf16.mxu1 %v12959_v1  ;;  %v9970_v34 = vpop.permute.xlu0 %1492  ;;  %v3504_v61 = vsel %vm57_vm4, %v3503_v22, %v3502_v13  ;;  %v3294_v23 = vunpack.c.l.b16 %v9934_v2  ;;  %7911 = vmatprep.subr.bf16.mxu0 %v12959_v1 }
  0xe3   :  { %v3511_v29 = vsel %vm46_vm1, %v3510_v54, %v3509_v38  ;;  %v3528_v43 = vsel %vm54_vm3, %v3527_v58, %v3526_v36  ;;  %v3506_v12 = vsel %vm60_vm5, %v3505_v19, %v3504_v61  ;;  %v3295_v51 = vunpack.c.l.b16 %v9939_v48  ;;  %v9983_v22 = vpop.permute.xlu1 %1723 }
  0xe4   :  { %v3513_v16 = vsel %vm49_vm2, %v3512_v21, %v3511_v29  ;;  %v3530_v15 = vsel %vm57_vm4, %v3529_v0, %v3528_v43  ;;  %7908 = vmatmul.mubr.msk.bf16.vlgmr.msra.gmra.mrb[8].mxu1 %vm156_vm10, %v9531_v49  ;;  %v9985_v54 = vpack.c.b16 %v3506_v12, %v3506_v12  ;;  %v3296_v58 = vunpack.c.l.b16 %v8308_v41  ;;  %7898 = vmatmul.mubr.msk.bf16.vlgmr.msra.gmra.mrb[8].mxu0 %vm156_vm10, %v9531_v49  ;;  %v9995_v21 = vld [vmem:[%s12937_s0 + $0x30] ss:$0 sps:$4 sm:$0x11]   ;;  %v10000_v0 = vld [vmem:[%s12937_s0 + $0x3c] ss:$0 sps:$4 sm:$0x11]  }
  0xe5   :  { %v3514_v36 = vpack.c.b16 %v3513_v16, %v3513_v16  ;;  %v3532_v2 = vsel %vm60_vm5, %v3531_v37, %v3530_v15  ;;  %7927 = vmatprep.mubr.msk.bf16.mxu1 %vm8496_vm9, %v12959_v1  ;;  %v3297_v61 = vrot.slane %v3293_v33, 4  ;;  %v3298_v48 = vrot.slane %v3294_v23, 3  ;;  %7917 = vmatprep.mubr.msk.bf16.mxu0 %vm8496_vm9, %v12959_v1  ;;  %v8311_v43 = vld [vmem:[%s12937_s0 + $0x48] ss:$0 sps:$4 sm:$0x11]  }
  0xe6   :  { %12963 = vst [vmem:[#allocation9_spill] sm:$0xff] %v9985_v54  ;;  %v3533_v29 = vpack.c.b16 %v3532_v2, %v3532_v2  ;;  %v3300_v19 = vrot.slane %v3295_v51, 2  ;;  %v10002_v41 = vpop.permute.xlu0 %1501  ;;  %3517 = vrot.lane.b32.xlu1 %v9985_v54, %s8493_s30  ;;  %v3302_v49 = vrot.slane %v3296_v58, 1  ;;  %v1727_v13 = vsel %vm132_vm6, %v8956_v45, %v9808_v44  ;;  %v10022_v12 = vld [vmem:[%s12937_s0 + $0x54] ss:$0 sps:$4 sm:$0x11]  }
  0xe7   :  { %3515 = vrot.lane.b32.xlu0 %v3514_v36, %s8494_s4  ;;  %v1505_v38 = vsel %vm132_vm6, %v8971_v4, %v9826_v56  ;;  %v3519_v37 = vrot.slane %v9920_v40, 1  ;;  %v10027_v16 = vld [vmem:[%s12937_s0 + $0x30] ss:$0 sps:$4 sm:$0x11]   ;;  %v3299_v45 = vsel %vm54_vm3, %v3298_v48, %v3297_v61  ;;  %v3521_v4 = vrot.slane %v9926_v26, 7 }
  0xe8   :  { %v3523_v44 = vrot.slane %v9928_v39, 6  ;;  %v3307_v56 = vrot.slane %v3294_v23, 7  ;;  %v10035_v40 = vld [vmem:[%s12937_s0 + $0x3c] ss:$0 sps:$4 sm:$0x11]   ;;  %v3301_v36 = vsel %vm57_vm4, %v3300_v19, %v3299_v45  ;;  %v3309_v61 = vrot.slane %v3295_v51, 6  ;;  %v10045_v48 = vpop.permute.xlu1 %2122 }
  0xe9   :  { %v10040_v15 = vld [vmem:[%s12937_s0 + $0x48] ss:$0 sps:$4 sm:$0x11]   ;;  %v3520_v2 = vsel %vm43_vm0, %v9924_v7, %v3519_v37  ;;  %v3311_v26 = vrot.slane %v3296_v58, 5  ;;  %v3303_v39 = vsel %vm60_vm5, %v3302_v49, %v3301_v36  ;;  %v1729_v32 = vsel %vm136_vm7, %v1727_v13, %v9835_v30 }
  0xea   :  { %v3522_v23 = vsel %vm46_vm1, %v3521_v4, %v3520_v2  ;;  %v3308_v54 = vsel %vm43_vm0, %v3307_v56, %v3293_v33  ;;  %3534 = vrot.lane.b32.xlu1 %v3533_v29, %s8494_s4  ;;  %v3304_v62 = vpack.c.b16 %v3303_v39, %v3303_v39  ;;  %v1507_v51 = vsel %vm136_vm7, %v1505_v38, %v9849_v57  ;;  %v8316_v58 = vld [vmem:[%s12937_s0 + $0x54] ss:$0 sps:$4 sm:$0x11]  }
  0xeb   :  { %v3524_v19 = vsel %vm49_vm2, %v3523_v44, %v3522_v23  ;;  %v3310_v7 = vsel %vm46_vm1, %v3309_v61, %v3308_v54  ;;  %v3918_v30 = vunpack.c.l.b16 %v9995_v21  ;;  %v3919_v29 = vunpack.c.l.b16 %v10000_v0  ;;  %v10065_v13 = vpop.permute.xlu0 %1889 }
  0xec   :  { %v10060_v49 = vpack.c.b16 %v3524_v19, %v3524_v19  ;;  %v3312_v33 = vsel %vm49_vm2, %v3311_v26, %v3310_v7  ;;  %3305 = vrot.lane.b32.xlu0 %v3304_v62, %s8494_s4  ;;  %v3920_v37 = vunpack.c.l.b16 %v8311_v43  ;;  %v3921_v57 = vunpack.c.l.b16 %v10022_v12  ;;  %v10072_v45 = vpop.permute.xlu1 %2124 }
  0xed   :  { %v3313_v54 = vpack.c.b16 %v3312_v33, %v3312_v33  ;;  %v10070_v38 = vunpack.c.l.b16 %v10027_v16  ;;  %v3929_v4 = vrot.slane %v3918_v30, 5  ;;  %v3930_v44 = vrot.slane %v3919_v29, 4 }
  0xee   :  { %v10075_v56 = vunpack.c.l.b16 %v10035_v40  ;;  %v10078_v21 = vunpack.c.l.b16 %v10040_v15  ;;  %3536 = vrot.lane.b32.xlu1 %v10060_v49, %s8493_s30  ;;  %v3932_v62 = vrot.slane %v3920_v37, 3  ;;  %v3934_v0 = vrot.slane %v3921_v57, 2 }
  0xef   :  { %v10082_v43 = vunpack.c.l.b16 %v8316_v58  ;;  %v3695_v12 = vrot.slane %v10070_v38, 4  ;;  %v3931_v36 = vsel %vm54_vm3, %v3930_v44, %v3929_v4  ;;  %v1509_v26 = vsel %vm139_vm8, %v1507_v51, %v8989_v25 }
  0xf0   :  { %v3696_v2 = vrot.slane %v10075_v56, 3  ;;  %v3698_v61 = vrot.slane %v10078_v21, 2  ;;  %3314 = vrot.lane.b32.xlu0 %v3313_v54, %s8493_s30  ;;  %v3933_v39 = vsel %vm57_vm4, %v3932_v62, %v3931_v36  ;;  %7912 = vmatpush3.bf16.msra.mxu0 %v1509_v26  ;;  %v1731_v19 = vsel %vm139_vm8, %v1729_v32, %v9025_v60  ;;  %v10100_v33 = vpop.permute.xlu0 %1902 }
  0xf1   :  { %12964 = vst [vmem:[#allocation10_spill] sm:$0xff] %v10082_v43  ;;  %v3700_v23 = vrot.slane %v10082_v43, 1  ;;  %v10098_v7 = vsel %vm132_vm6, %v9885_v50, %v9855_v31  ;;  %v10102_v4 = vpop.permute.xlu1 %1921  ;;  %v3935_v25 = vsel %vm60_vm5, %v3934_v0, %v3933_v39  ;;  %7922 = vmatpush3.bf16.msra.mxu1 %v1731_v19  ;;  %v3922_v54 = vrot.slane %v3918_v30, 1  ;;  %7913 = vmatprep.subr.bf16.mxu0 %v12959_v1 }
  0xf2   :  { %v3697_v51 = vsel %vm54_vm3, %v3696_v2, %v3695_v12  ;;  %v3924_v44 = vrot.slane %v3920_v37, 7  ;;  %v3936_v62 = vpack.c.b16 %v3935_v25, %v3935_v25  ;;  %v3926_v32 = vrot.slane %v3921_v57, 6  ;;  %7923 = vmatprep.subr.bf16.mxu1 %v12959_v1 }
  0xf3   :  { %v3699_v60 = vsel %vm57_vm4, %v3698_v61, %v3697_v51  ;;  %v3705_v31 = vunpack.c.h.b16 %v10027_v16  ;;  %v3923_v36 = vsel %vm43_vm0, %v3919_v29, %v3922_v54  ;;  %v3706_v0 = vunpack.c.h.b16 %v10035_v40 }
  0xf4   :  { %v3701_v50 = vsel %vm60_vm5, %v3700_v23, %v3699_v60  ;;  %v3707_v12 = vunpack.c.h.b16 %v10040_v15  ;;  %3937 = vrot.lane.b32.xlu1 %v3936_v62, %s8494_s4  ;;  %v3925_v37 = vsel %vm46_vm1, %v3924_v44, %v3923_v36  ;;  %v3708_v2 = vunpack.c.h.b16 %v8316_v58  ;;  %v10119_v57 = vpop.permute.xlu0 %1919  ;;  %v8319_v62 = vld [vmem:[%s12937_s0 + $0x48] ss:$0 sps:$4 sm:$0x22]   ;;  %v8320_v60 = vld [vmem:[%s12937_s0 + $0x54] ss:$0 sps:$4 sm:$0x22]  }
  0xf5   :  { %v3702_v30 = vpack.c.b16 %v3701_v50, %v3701_v50  ;;  %v1735_v16 = vsel %vm132_vm6, %v9922_v8, %v9911_v18  ;;  %v3927_v61 = vsel %vm49_vm2, %v3926_v32, %v3925_v37  ;;  %v3709_v26 = vrot.slane %v3706_v0, 7  ;;  %v8317_v18 = vld [vmem:[%s12937_s0 + $0x30] ss:$0 sps:$4 sm:$0x22]  }
  0xf6   :  { %v3711_v29 = vrot.slane %v3707_v12, 6  ;;  %v3718_v40 = vrot.slane %v10070_v38, 5  ;;  %v10124_v15 = vpack.c.b16 %v3927_v61, %v3927_v61  ;;  %v3713_v39 = vrot.slane %v3708_v2, 5  ;;  %v8318_v8 = vld [vmem:[%s12937_s0 + $0x3c] ss:$0 sps:$4 sm:$0x22]   ;;  %v10134_v19 = vpop.permute.xlu1 %2159 }
  0xf7   :  { %3703 = vrot.lane.b32.xlu0 %v3702_v30, %s8494_s4  ;;  %v3719_v23 = vrot.slane %v10075_v56, 4  ;;  %v3721_v58 = vrot.slane %v10078_v21, 3  ;;  %v3710_v25 = vsel %vm43_vm0, %v3709_v26, %v3705_v31  ;;  %v3723_v51 = vrot.slane %v10082_v43, 2 }
  0xf8   :  { %v3726_v54 = vrot.slane %v10070_v38, 1  ;;  %v3728_v44 = vrot.slane %v10078_v21, 7  ;;  %3939 = vrot.lane.b32.xlu1 %v10124_v15, %s8493_s30  ;;  %v3712_v32 = vsel %vm46_vm1, %v3711_v29, %v3710_v25  ;;  %v3730_v50 = vrot.slane %v10082_v43, 6  ;;  %v10153_v0 = vpop.permute.xlu0 %2157 }
  0xf9   :  { %v3720_v31 = vsel %vm54_vm3, %v3719_v23, %v3718_v40  ;;  %v1737_v36 = vsel %vm136_vm7, %v1735_v16, %v9067_v53  ;;  %v3714_v12 = vsel %vm49_vm2, %v3713_v39, %v3712_v32  ;;  %v8441_v53 = vld [vmem:[%s12937_s0 + $0x4] ss:$0 sps:$4 sm:$0x11]   ;;  %v8442_v23 = vld [vmem:[%s12937_s0 + $0x10] ss:$0 sps:$4 sm:$0x11]   ;;  %v10180_v32 = vunpack.c.l.b16 %v8317_v18 }
  0xfa   :  { %v3722_v30 = vsel %vm57_vm4, %v3721_v58, %v3720_v31  ;;  %v3727_v37 = vsel %vm43_vm0, %v10075_v56, %v3726_v54  ;;  %v1739_v2 = vsel %vm139_vm8, %v1737_v36, %v9957_v5  ;;  %v3715_v61 = vpack.c.b16 %v3714_v12, %v3714_v12  ;;  %v8443_v58 = vld [vmem:[%s12937_s0 + $0x1c] ss:$0 sps:$4 sm:$0x11]   ;;  %v8444_v54 = vld [vmem:[%s12937_s0 + $0x28] ss:$0 sps:$4 sm:$0x11]  }
  0xfb   :  { %v3724_v26 = vsel %vm60_vm5, %v3723_v51, %v3722_v30  ;;  %v3729_v29 = vsel %vm46_vm1, %v3728_v44, %v3727_v37  ;;  %v1469_v16 = vunpack.c.h.b16 %v8441_v53  ;;  %7924 = vmatpush3.bf16.msra.mxu1 %v1739_v2  ;;  %v1470_v5 = vunpack.c.h.b16 %v8442_v23  ;;  %v10209_v23 = vld [vmem:[%s12937_s0 + $0x3c] ss:$0 sps:$4 sm:$0x22]  }
  0xfc   :  { %v10166_v40 = vpack.c.b16 %v3724_v26, %v3724_v26  ;;  %v3731_v39 = vsel %vm49_vm2, %v3730_v50, %v3729_v29  ;;  %v1471_v25 = vunpack.c.h.b16 %v8443_v58  ;;  %7925 = vmatprep.subr.bf16.mxu1 %v12959_v1  ;;  %3716 = vrot.lane.b32.xlu0 %v3715_v61, %s8493_s30  ;;  %v1472_v44 = vunpack.c.h.b16 %v8444_v54  ;;  %v10184_v50 = vpop.permute.xlu1 %2176  ;;  %v10200_v29 = vld [vmem:[%s12937_s0 + $0x30] ss:$0 sps:$4 sm:$0x22]  }
  0xfd   :  { %v3732_v51 = vpack.c.b16 %v3731_v39, %v3731_v39  ;;  %v10182_v31 = vunpack.c.l.b16 %v8318_v8  ;;  %v1473_v36 = vrot.slane %v1470_v5, 7  ;;  %v10188_v30 = vunpack.c.l.b16 %v8319_v62  ;;  %v10192_v2 = vpop.permute.xlu0 %1954  ;;  %v10214_v5 = vld [vmem:[%s12937_s0 + $0x48] ss:$0 sps:$4 sm:$0x22]  }
  0xfe   :  { %12965 = vst [vmem:[#allocation11_spill] sm:$0xff] %v10166_v40  ;;  %3735 = vrot.lane.b32.xlu1 %v10166_v40, %s8493_s30  ;;  %v1475_v12 = vrot.slane %v1471_v25, 6  ;;  %v10190_v37 = vunpack.c.l.b16 %v8320_v60  ;;  %v1477_v61 = vrot.slane %v1472_v44, 5  ;;  %v3957_v26 = vrot.slane %v10180_v32, 6 }
  0xff   :  { %v3958_v18 = vrot.slane %v10182_v31, 5  ;;  %v3965_v8 = vrot.slane %v10180_v32, 2  ;;  %v1474_v53 = vsel %vm43_vm0, %v1473_v36, %v1469_v16  ;;  %v3960_v62 = vrot.slane %v10188_v30, 4 }
 0x100   :  { %v3962_v60 = vrot.slane %v10190_v37, 3  ;;  %v3966_v39 = vrot.slane %v10182_v31, 1  ;;  %3733 = vrot.lane.b32.xlu0 %v3732_v51, %s8494_s4  ;;  %v1476_v16 = vsel %vm46_vm1, %v1475_v12, %v1474_v53  ;;  %v3969_v25 = vrot.slane %v10190_v37, 7 }
 0x101   :  { %v3959_v58 = vsel %vm54_vm3, %v3958_v18, %v3957_v26  ;;  %v1742_v54 = vsel %vm132_vm6, %v9983_v22, 0  ;;  %v1478_v44 = vsel %vm49_vm2, %v1477_v61, %v1476_v16  ;;  %v1520_v43 = vsel %vm132_vm6, %v10002_v41, 0  ;;  %v10234_v22 = vld [vmem:[%s12937_s0 + $0x54] ss:$0 sps:$4 sm:$0x22]   ;;  %v10237_v61 = vpop.permute.xlu1 %2178 }
 0x102   :  { %v3961_v36 = vsel %vm57_vm4, %v3960_v62, %v3959_v58  ;;  %v3967_v40 = vsel %vm43_vm0, %v3966_v39, %v3965_v8  ;;  %7926 = vmatpush3.bf16.msra.mxu1 %v1742_v54  ;;  %v1479_v51 = vpack.c.b16 %v1478_v44, %v1478_v44  ;;  %v3983_v18 = vrot.slane %v10180_v32, 7  ;;  %v10253_v54 = vld [vmem:[%s12938_s1] sm:$0xf] }
 0x103   :  { %v3963_v12 = vsel %vm60_vm5, %v3962_v60, %v3961_v36  ;;  %v3968_v26 = vsel %vm46_vm1, %v10188_v30, %v3967_v40  ;;  %7941 = vmatprep.subr.bf16.mxu1 %v12959_v1  ;;  %v3984_v53 = vrot.slane %v10182_v31, 6  ;;  %v3986_v62 = vrot.slane %v10188_v30, 5  ;;  %v10244_v40 = vpop.permute.xlu0 %1956 }
 0x104   :  { %v10239_v8 = vpack.c.b16 %v3963_v12, %v3963_v12  ;;  %v3970_v41 = vsel %vm49_vm2, %v3969_v25, %v3968_v26  ;;  %v1515_v60 = vsel %vm136_vm7, %v10098_v7, %v1479_v51  ;;  %v3988_v16 = vrot.slane %v10190_v37, 4 }
 0x105   :  { %v3971_v39 = vpack.c.b16 %v3970_v41, %v3970_v41  ;;  %v3749_v58 = vunpack.c.l.b16 %v10200_v29  ;;  %7928 = vmatmul.mubr.msk.bf16.vlgmr.msra.gmra.mrb[12].mxu1 %vm156_vm10, %v10253_v54  ;;  %v1517_v25 = vsel %vm139_vm8, %v1515_v60, %v9970_v34  ;;  %v3985_v7 = vsel %vm54_vm3, %v3984_v53, %v3983_v18  ;;  %v10278_v41 = vld [vmem:[%s12937_s0 + $0x30] ss:$0 sps:$4 sm:$0x22]  }
 0x106   :  { %12966 = vst [vmem:[#allocation12_spill] sm:$0xff] %v10239_v8  ;;  %3974 = vrot.lane.b32.xlu1 %v10239_v8, %s8493_s30  ;;  %v3750_v44 = vunpack.c.l.b16 %v10209_v23  ;;  %v3751_v29 = vunpack.c.l.b16 %v10214_v5  ;;  %7947 = vmatprep.mubr.msk.bf16.mxu1 %vm8496_vm9, %v12959_v1  ;;  %v3987_v36 = vsel %vm57_vm4, %v3986_v62, %v3985_v7  ;;  %v3752_v51 = vunpack.c.l.b16 %v10234_v22 }
 0x107   :  { %3972 = vrot.lane.b32.xlu0 %v3971_v39, %s8494_s4  ;;  %7914 = vmatpush3.bf16.msra.mxu0 %v1517_v25  ;;  %v3760_v34 = vrot.slane %v3749_v58, 6  ;;  %v2182_v12 = vsel %vm132_vm6, %v9104_v52, %v10045_v48  ;;  %v3989_v23 = vsel %vm60_vm5, %v3988_v16, %v3987_v36  ;;  %v1874_v18 = vrot.slane %v9074_v11, 7  ;;  %v10285_v52 = vld [vmem:[%s12937_s0 + $0x3c] ss:$0 sps:$4 sm:$0x22]  }
 0x108   :  { %7915 = vmatprep.subr.bf16.mxu0 %v12959_v1  ;;  %v3761_v5 = vrot.slane %v3750_v44, 5  ;;  %v3763_v26 = vrot.slane %v3751_v29, 4  ;;  %v3990_v53 = vpack.c.b16 %v3989_v23, %v3989_v23  ;;  %v3765_v22 = vrot.slane %v3752_v51, 3  ;;  %v10287_v48 = vpop.permute.xlu1 %2570 }
 0x109   :  { %v1876_v62 = vrot.slane %v9076_v14, 6  ;;  %v1878_v60 = vrot.slane %v9081_v20, 5  ;;  %v1875_v39 = vsel %vm43_vm0, %v1874_v18, %v9072_v63  ;;  %v3976_v16 = vrot.slane %v10180_v32, 3  ;;  %v10297_v14 = vld [vmem:[%s12937_s0 + $0x48] ss:$0 sps:$4 sm:$0x22]  }
 0x10a   :  { %v3762_v11 = vsel %vm54_vm3, %v3761_v5, %v3760_v34  ;;  %v3977_v25 = vrot.slane %v10182_v31, 2  ;;  %v10302_v20 = vld [vmem:[%s12937_s0 + $0x54] ss:$0 sps:$4 sm:$0x22]   ;;  %v10304_v7 = vpop.permute.xlu0 %2344  ;;  %3991 = vrot.lane.b32.xlu1 %v3990_v53, %s8494_s4  ;;  %v3979_v31 = vrot.slane %v10188_v30, 1  ;;  %v3753_v36 = vrot.slane %v3749_v58, 2 }
 0x10b   :  { %v3764_v63 = vsel %vm57_vm4, %v3763_v26, %v3762_v11  ;;  %7916 = vmatpush3.bf16.msra.mxu0 %v1520_v43  ;;  %v1877_v32 = vsel %vm46_vm1, %v1876_v62, %v1875_v39  ;;  %v8329_v34 = vld [vmem:[%s12937_s0 + $0x30] ss:$0 sps:$4 sm:$0x22]   ;;  %v3754_v8 = vrot.slane %v3750_v44, 1  ;;  %v2184_v11 = vsel %vm136_vm7, %v2182_v12, %v10072_v45 }
 0x10c   :  { %v3766_v23 = vsel %vm60_vm5, %v3765_v22, %v3764_v63  ;;  %v1879_v5 = vsel %vm49_vm2, %v1878_v60, %v1877_v32  ;;  %v3978_v18 = vsel %vm43_vm0, %v3977_v25, %v3976_v16  ;;  %v8330_v43 = vld [vmem:[%s12937_s0 + $0x3c] ss:$0 sps:$4 sm:$0x22]   ;;  %v8331_v30 = vld [vmem:[%s12937_s0 + $0x48] ss:$0 sps:$4 sm:$0x22]   ;;  %7931 = vmatprep.subr.bf16.mxu0 %v12959_v1  ;;  %v10324_v62 = vpop.permute.xlu1 %2572  ;;  %v4366_v39 = vunpack.c.l.b16 %v10278_v41 }
 0x10d   :  { %v3767_v58 = vpack.c.b16 %v3766_v23, %v3766_v23  ;;  %v1880_v26 = vpack.c.b16 %v1879_v5, %v1879_v5  ;;  %v3980_v53 = vsel %vm46_vm1, %v3979_v31, %v3978_v18  ;;  %v3757_v22 = vrot.slane %v3752_v51, 7  ;;  %v8332_v45 = vld [vmem:[%s12937_s0 + $0x54] ss:$0 sps:$4 sm:$0x22]  }
 0x10e   :  { %v3981_v44 = vsel %vm49_vm2, %v10190_v37, %v3980_v53  ;;  %v3755_v60 = vsel %vm43_vm0, %v3754_v8, %v3753_v36  ;;  %7918 = vmatmul.mubr.msk.bf16.vlgmr.msra.gmra.mrb[12].mxu0 %vm156_vm10, %v10253_v54  ;;  %v4367_v37 = vunpack.c.l.b16 %v10285_v52  ;;  %v10344_v8 = vpop.permute.xlu0 %2346  ;;  %v4368_v41 = vunpack.c.l.b16 %v10297_v14 }
 0x10f   :  { %3768 = vrot.lane.b32.xlu0 %v3767_v58, %s8494_s4  ;;  %v1960_v51 = vsel %vm132_vm6, %v1880_v26, %v10065_v13  ;;  %v10337_v16 = vpack.c.b16 %v3981_v44, %v3981_v44  ;;  %v3756_v25 = vsel %vm46_vm1, %v3751_v29, %v3755_v60  ;;  %7937 = vmatprep.mubr.msk.bf16.mxu0 %vm8496_vm9, %v12959_v1  ;;  %v4369_v29 = vunpack.c.l.b16 %v10302_v20 }
 0x110   :  { %v3758_v12 = vsel %vm49_vm2, %v3757_v22, %v3756_v25  ;;  %v1962_v13 = vsel %vm136_vm7, %v1960_v51, %v10100_v33  ;;  %v4377_v63 = vrot.slane %v4366_v39, 7  ;;  %v4378_v32 = vrot.slane %v4367_v37, 6  ;;  %v10359_v36 = vpop.permute.xlu1 %2365 }
 0x111   :  { %3993 = vrot.lane.b32.xlu1 %v10337_v16, %s8493_s30  ;;  %v10355_v52 = vpack.c.b16 %v3758_v12, %v3758_v12  ;;  %v10357_v31 = vunpack.c.l.b16 %v8329_v34  ;;  %v4380_v23 = vrot.slane %v4368_v41, 5  ;;  %v4382_v5 = vrot.slane %v4369_v29, 4 }
 0x112   :  { %v10361_v18 = vunpack.c.l.b16 %v8330_v43  ;;  %v10363_v33 = vunpack.c.l.b16 %v8331_v30  ;;  %v4379_v14 = vsel %vm54_vm3, %v4378_v32, %v4377_v63  ;;  %v10368_v20 = vunpack.c.l.b16 %v8332_v45  ;;  %v10373_v26 = vpop.permute.xlu0 %2363 }
 0x113   :  { %3770 = vrot.lane.b32.xlu0 %v10355_v52, %s8493_s30  ;;  %v4151_v58 = vrot.slane %v10357_v31, 6  ;;  %v1964_v34 = vsel %vm139_vm8, %v1962_v13, %v9140_v46  ;;  %v4381_v53 = vsel %vm57_vm4, %v4380_v23, %v4379_v14  ;;  %v2186_v22 = vsel %vm139_vm8, %v2184_v11, %v9187_v35 }
 0x114   :  { %v4152_v43 = vrot.slane %v10361_v18, 5  ;;  %v4154_v30 = vrot.slane %v10363_v33, 4  ;;  %7932 = vmatpush3.bf16.msra.mxu0 %v1964_v34  ;;  %v4383_v44 = vsel %vm60_vm5, %v4382_v5, %v4381_v53  ;;  %v4156_v60 = vrot.slane %v10368_v20, 3  ;;  %7942 = vmatpush3.bf16.msra.mxu1 %v2186_v22 }
 0x115   :  { %v1968_v46 = vsel %vm132_vm6, %v10119_v57, %v10102_v4  ;;  %v4370_v51 = vrot.slane %v4366_v39, 3  ;;  %7933 = vmatprep.subr.bf16.mxu0 %v12959_v1 }
 0x116   :  { %8 = vsyncpa [#allocation3], 0  ;;  %v4384_v25 = vpack.c.b16 %v4383_v44, %v4383_v44  ;;  %v4153_v45 = vsel %vm54_vm3, %v4152_v43, %v4151_v58  ;;  %v4371_v12 = vrot.slane %v4367_v37, 2  ;;  %v4373_v13 = vrot.slane %v4368_v41, 1  ;;  %7943 = vmatprep.subr.bf16.mxu1 %v12959_v1  ;;  %v10392_v4 = vpop.permute.xlu1 %2618  ;;  %v10404_v5 = vpop.permute.xlu0 %2609 }
 0x117   :  { %v4155_v35 = vsel %vm57_vm4, %v4154_v30, %v4153_v45  ;;  %v4144_v11 = vrot.slane %v10357_v31, 2  ;;  %v4145_v63 = vrot.slane %v10361_v18, 1  ;;  %v4148_v32 = vrot.slane %v10368_v20, 7  ;;  %v8333_v23 = vld [vmem:[%s12937_s0 + $0x30] ss:$0 sps:$4 sm:$0x44]  }
 0x118   :  { %4385 = vrot.lane.b32.xlu1 %v4384_v25, %s8494_s4  ;;  %v4157_v57 = vsel %vm60_vm5, %v4156_v60, %v4155_v35  ;;  %v4372_v39 = vsel %vm43_vm0, %v4371_v12, %v4370_v51  ;;  %v2190_v37 = vsel %vm132_vm6, %v10153_v0, %v10134_v19  ;;  %v4163_v41 = vrot.slane %v10357_v31, 7  ;;  %v8334_v43 = vld [vmem:[%s12937_s0 + $0x3c] ss:$0 sps:$4 sm:$0x44]  }
 0x119   :  { %v4158_v14 = vpack.c.b16 %v4157_v57, %v4157_v57  ;;  %v4374_v58 = vsel %vm46_vm1, %v4373_v13, %v4372_v39  ;;  %v4146_v34 = vsel %vm43_vm0, %v4145_v63, %v4144_v11  ;;  %v4164_v53 = vrot.slane %v10361_v18, 6  ;;  %v8335_v44 = vld [vmem:[%s12937_s0 + $0x48] ss:$0 sps:$4 sm:$0x44]  }
 0x11a   :  { %v4375_v19 = vsel %vm49_vm2, %v4369_v29, %v4374_v58  ;;  %v4147_v0 = vsel %vm46_vm1, %v10363_v33, %v4146_v34  ;;  %v4166_v30 = vrot.slane %v10363_v33, 5  ;;  %v4168_v22 = vrot.slane %v10368_v20, 4  ;;  %v8336_v45 = vld [vmem:[%s12937_s0 + $0x54] ss:$0 sps:$4 sm:$0x44]   ;;  %v10443_v39 = vpop.permute.xlu1 %2635 }
 0x11b   :  { %4159 = vrot.lane.b32.xlu0 %v4158_v14, %s8494_s4  ;;  %v10421_v60 = vpack.c.b16 %v4375_v19, %v4375_v19  ;;  %v4149_v51 = vsel %vm49_vm2, %v4148_v32, %v4147_v0  ;;  %v4165_v25 = vsel %vm54_vm3, %v4164_v53, %v4163_v41  ;;  %v4171_v29 = vrot.slane %v10357_v31, 3  ;;  %v10484_v19 = vld [vmem:[%s12937_s0 + $0x48] ss:$0 sps:$4 sm:$0x44]  }
 0x11c   :  { %v10429_v12 = vpack.c.b16 %v4149_v51, %v4149_v51  ;;  %v4167_v13 = vsel %vm57_vm4, %v4166_v30, %v4165_v25  ;;  %v4172_v35 = vrot.slane %v10361_v18, 2  ;;  %v4174_v11 = vrot.slane %v10363_v33, 1 }
 0x11d   :  { %4387 = vrot.lane.b32.xlu1 %v10421_v60, %s8493_s30  ;;  %v4169_v63 = vsel %vm60_vm5, %v4168_v22, %v4167_v13  ;;  %v2192_v31 = vsel %vm136_vm7, %v2190_v37, %v9261_v55  ;;  %v1970_v32 = vsel %vm136_vm7, %v1968_v46, %v9267_v47  ;;  %v10441_v57 = vunpack.c.l.b16 %v8333_v23  ;;  %v10452_v58 = vpop.permute.xlu0 %2402 }
 0x11e   :  { %v10445_v41 = vpack.c.b16 %v4169_v63, %v4169_v63  ;;  %v4173_v18 = vsel %vm43_vm0, %v4172_v35, %v4171_v29  ;;  %v2194_v33 = vsel %vm139_vm8, %v2192_v31, %v10184_v50  ;;  %v1972_v14 = vsel %vm139_vm8, %v1970_v32, %v10192_v2  ;;  %v10466_v50 = vld [vmem:[%s12937_s0 + $0x30] ss:$0 sps:$4 sm:$0x44]   ;;  %v10471_v2 = vld [vmem:[%s12937_s0 + $0x3c] ss:$0 sps:$4 sm:$0x44]  }
 0x11f   :  { %4161 = vrot.lane.b32.xlu0 %v10429_v12, %s8493_s30  ;;  %v4175_v55 = vsel %vm46_vm1, %v4174_v11, %v4173_v18  ;;  %v10457_v47 = vunpack.c.l.b16 %v8334_v43  ;;  %v10459_v46 = vunpack.c.l.b16 %v8335_v44  ;;  %v10461_v37 = vunpack.c.l.b16 %v8336_v45  ;;  %7934 = vmatpush3.bf16.msra.mxu0 %v1972_v14  ;;  %v10507_v11 = vpop.permute.xlu1 %2637 }
 0x120   :  { %v4176_v23 = vsel %vm49_vm2, %v10368_v20, %v4175_v55  ;;  %v4416_v34 = vrot.slane %v10441_v57, 4  ;;  %7944 = vmatpush3.bf16.msra.mxu1 %v2194_v33  ;;  %v2197_v53 = vsel %vm132_vm6, %v10237_v61, 0  ;;  %v1975_v43 = vsel %vm132_vm6, %v10244_v40, 0  ;;  %7935 = vmatprep.subr.bf16.mxu0 %v12959_v1  ;;  %v10495_v40 = vld [vmem:[%s12937_s0 + $0x54] ss:$0 sps:$4 sm:$0x44]  }
 0x121   :  { %4180 = vrot.lane.b32.xlu1 %v10445_v41, %s8493_s30  ;;  %v4177_v20 = vpack.c.b16 %v4176_v23, %v4176_v23  ;;  %v4426_v0 = vrot.slane %v10457_v47, 7  ;;  %v4428_v30 = vrot.slane %v10459_v46, 6  ;;  %v4430_v61 = vrot.slane %v10461_v37, 5  ;;  %7945 = vmatprep.subr.bf16.mxu1 %v12959_v1 }
 0x122   :  { %v4417_v22 = vrot.slane %v10457_v47, 3  ;;  %v4419_v44 = vrot.slane %v10459_v46, 2  ;;  %v4421_v51 = vrot.slane %v10461_v37, 1  ;;  %v4443_v25 = vrot.slane %v10441_v57, 1 }
 0x123   :  { %4178 = vrot.lane.b32.xlu0 %v4177_v20, %s8494_s4  ;;  %v4427_v29 = vsel %vm54_vm3, %v4426_v0, %v10441_v57  ;;  %v4445_v45 = vrot.slane %v10459_v46, 7  ;;  %v4447_v13 = vrot.slane %v10461_v37, 6  ;;  %v4206_v35 = vunpack.c.h.b16 %v10466_v50  ;;  %7936 = vmatpush3.bf16.msra.mxu0 %v1975_v43  ;;  %v10515_v33 = vpop.permute.xlu0 %2404 }
 0x124   :  { %v4429_v63 = vsel %vm57_vm4, %v4428_v30, %v4427_v29  ;;  %v4418_v31 = vsel %vm43_vm0, %v4417_v22, %v4416_v34  ;;  %v4444_v32 = vsel %vm54_vm3, %v10457_v47, %v4443_v25  ;;  %v4207_v18 = vunpack.c.h.b16 %v10471_v2  ;;  %7946 = vmatpush3.bf16.msra.mxu1 %v2197_v53  ;;  %7951 = vmatprep.subr.bf16.mxu0 %v12959_v1 }
 0x125   :  { %v4431_v14 = vsel %vm60_vm5, %v4430_v61, %v4429_v63  ;;  %v4420_v55 = vsel %vm46_vm1, %v4419_v44, %v4418_v31  ;;  %v4446_v23 = vsel %vm57_vm4, %v4445_v45, %v4444_v32  ;;  %v4208_v43 = vunpack.c.h.b16 %v10484_v19  ;;  %7961 = vmatprep.subr.bf16.mxu1 %v12959_v1 }
 0x126   :  { %v4432_v34 = vpack.c.b16 %v4431_v14, %v4431_v14  ;;  %v4422_v20 = vsel %vm49_vm2, %v4421_v51, %v4420_v55  ;;  %v4448_v0 = vsel %vm60_vm5, %v4447_v13, %v4446_v23  ;;  %v4209_v53 = vunpack.c.h.b16 %v10495_v40  ;;  %7938 = vmatmul.mubr.msk.bf16.vlgmr.msra.gmra.mrb[16].mxu0 %vm156_vm10, %v10253_v54  ;;  %v10542_v13 = vld [vmem:[%s12937_s0 + $0x30] ss:$0 sps:$4 sm:$0x44]   ;;  %v8346_v23 = vld [vmem:[%s12937_s0 + $0x3c] ss:$0 sps:$4 sm:$0x44]  }
 0x127   :  { %v4423_v30 = vpack.c.b16 %v4422_v20, %v4422_v20  ;;  %v4449_v61 = vpack.c.b16 %v4448_v0, %v4448_v0  ;;  %v4210_v22 = vrot.slane %v4207_v18, 7  ;;  %v4212_v44 = vrot.slane %v4208_v43, 6  ;;  %7948 = vmatmul.mubr.msk.bf16.vlgmr.msra.gmra.mrb[16].mxu1 %vm156_vm10, %v10253_v54  ;;  %7957 = vmatprep.mubr.msk.bf16.mxu0 %vm8496_vm9, %v12959_v1  ;;  %v8345_v55 = vld [vmem:[%s12937_s0 + $0x30] ss:$0 sps:$4 sm:$0x44]  }
 0x128   :  { %4433 = vrot.lane.b32.xlu1 %v4432_v34, %s8493_s30  ;;  %v4214_v51 = vrot.slane %v4209_v53, 5  ;;  %v2641_v25 = vsel %vm132_vm6, %v9344_v42, %v10287_v48  ;;  %v2408_v29 = vsel %vm132_vm6, %v9356_v9, %v10304_v7  ;;  %v4435_v45 = vrot.slane %v10441_v57, 5  ;;  %7967 = vmatprep.mubr.msk.bf16.mxu1 %vm8496_vm9, %v12959_v1  ;;  %v10554_v7 = vld [vmem:[%s12937_s0 + $0x3c] ss:$0 sps:$4 sm:$0x44]   ;;  %v10556_v57 = vpop.permute.xlu1 %3025 }
 0x129   :  { %4424 = vrot.lane.b32.xlu0 %v4423_v30, %s8494_s4  ;;  %v4211_v63 = vsel %vm54_vm3, %v4210_v22, %v4206_v35  ;;  %v4436_v42 = vrot.slane %v10457_v47, 4  ;;  %v4438_v48 = vrot.slane %v10459_v46, 3  ;;  %v4440_v9 = vrot.slane %v10461_v37, 2  ;;  %v10565_v47 = vld [vmem:[%s12937_s0 + $0x48] ss:$0 sps:$4 sm:$0x44]   ;;  %v10572_v37 = vpop.permute.xlu0 %2803 }
 0x12a   :  { %v4213_v31 = vsel %vm57_vm4, %v4212_v44, %v4211_v63  ;;  %v4194_v32 = vunpack.c.l.b16 %v10466_v50  ;;  %v4195_v18 = vunpack.c.l.b16 %v10471_v2  ;;  %v4196_v35 = vunpack.c.l.b16 %v10484_v19  ;;  %v10570_v46 = vld [vmem:[%s12937_s0 + $0x54] ss:$0 sps:$4 sm:$0x44]  }
 0x12b   :  { %v4215_v14 = vsel %vm60_vm5, %v4214_v51, %v4213_v31  ;;  %v4437_v50 = vsel %vm43_vm0, %v4436_v42, %v4435_v45  ;;  %v4197_v2 = vunpack.c.l.b16 %v10495_v40  ;;  %v10579_v19 = vsel %vm136_vm7, %v2641_v25, %v10324_v62  ;;  %v8347_v62 = vld [vmem:[%s12937_s0 + $0x48] ss:$0 sps:$4 sm:$0x44]  }
 0x12c   :  { %4450 = vrot.lane.b32.xlu1 %v4449_v61, %s8494_s4  ;;  %v4216_v43 = vpack.c.b16 %v4215_v14, %v4215_v14  ;;  %v4439_v34 = vsel %vm46_vm1, %v4438_v48, %v4437_v50  ;;  %v4198_v20 = vrot.slane %v4194_v32, 4  ;;  %v4199_v0 = vrot.slane %v4195_v18, 3  ;;  %v8348_v61 = vld [vmem:[%s12937_s0 + $0x54] ss:$0 sps:$4 sm:$0x44]  }
 0x12d   :  { %v4441_v40 = vsel %vm49_vm2, %v4440_v9, %v4439_v34  ;;  %v4201_v53 = vrot.slane %v4196_v35, 2  ;;  %v4203_v30 = vrot.slane %v4197_v2, 1  ;;  %v2410_v22 = vsel %vm136_vm7, %v2408_v29, %v10344_v8  ;;  %v8446_v34 = vld [vmem:[%s12937_s0 + $0x4] ss:$0 sps:$4 sm:$0x44]  }
 0x12e   :  { %4217 = vrot.lane.b32.xlu0 %v4216_v43, %s8494_s4  ;;  %v10599_v44 = vpack.c.b16 %v4441_v40, %v4441_v40  ;;  %v4200_v51 = vsel %vm43_vm0, %v4199_v0, %v4198_v20  ;;  %v4821_v25 = vunpack.c.l.b16 %v10542_v13  ;;  %v4822_v45 = vunpack.c.l.b16 %v10554_v7  ;;  %v10609_v48 = vpop.permute.xlu1 %3027  ;;  %v8447_v0 = vld [vmem:[%s12937_s0 + $0x10] ss:$0 sps:$4 sm:$0x44]  }
 0x12f   :  { %v4202_v63 = vsel %vm46_vm1, %v4201_v53, %v4200_v51  ;;  %v4823_v42 = vunpack.c.l.b16 %v10565_v47  ;;  %v4824_v8 = vunpack.c.l.b16 %v10570_v46  ;;  %v10607_v29 = vunpack.c.l.b16 %v8345_v55  ;;  %v10618_v7 = vpop.permute.xlu0 %2805  ;;  %v8448_v53 = vld [vmem:[%s12937_s0 + $0x1c] ss:$0 sps:$4 sm:$0x44]  }
 0x130   :  { %4452 = vrot.lane.b32.xlu1 %v10599_v44, %s8493_s30  ;;  %v4204_v9 = vsel %vm49_vm2, %v4203_v30, %v4202_v63  ;;  %v4833_v31 = vrot.slane %v4821_v25, 1  ;;  %v10614_v32 = vunpack.c.l.b16 %v8346_v23  ;;  %v10616_v13 = vunpack.c.l.b16 %v8347_v62 }
 0x131   :  { %v10620_v18 = vpack.c.b16 %v4204_v9, %v4204_v9  ;;  %v4835_v35 = vrot.slane %v4823_v42, 7  ;;  %v4837_v47 = vrot.slane %v4824_v8, 6  ;;  %v10622_v46 = vunpack.c.l.b16 %v8348_v61 }
 0x132   :  { %v4834_v14 = vsel %vm54_vm3, %v4822_v45, %v4833_v31  ;;  %v4611_v50 = vrot.slane %v10614_v32, 7  ;;  %v4613_v2 = vrot.slane %v10616_v13, 6  ;;  %v2412_v55 = vsel %vm139_vm8, %v2410_v22, %v9363_v28  ;;  %v8449_v22 = vld [vmem:[%s12937_s0 + $0x28] ss:$0 sps:$4 sm:$0x44]   ;;  %v10649_v51 = vpop.permute.xlu1 %2824 }
 0x133   :  { %4219 = vrot.lane.b32.xlu0 %v10620_v18, %s8493_s30  ;;  %v4836_v23 = vsel %vm57_vm4, %v4835_v35, %v4834_v14  ;;  %v4615_v43 = vrot.slane %v10622_v46, 5  ;;  %7952 = vmatpush3.bf16.msra.mxu0 %v2412_v55  ;;  %v2586_v20 = vunpack.c.h.b16 %v8446_v34  ;;  %v2587_v62 = vunpack.c.h.b16 %v8447_v0 }
 0x134   :  { %v4838_v28 = vsel %vm60_vm5, %v4837_v47, %v4836_v23  ;;  %v4612_v40 = vsel %vm54_vm3, %v4611_v50, %v10607_v29  ;;  %v2588_v30 = vunpack.c.h.b16 %v8448_v53  ;;  %v2589_v61 = vunpack.c.h.b16 %v8449_v22  ;;  %7953 = vmatprep.subr.bf16.mxu0 %v12959_v1  ;;  %v8349_v22 = vld [vmem:[%s12937_s0 + $0x30] ss:$0 sps:$4 sm:$0x88]  }
 0x135   :  { %v4839_v63 = vpack.c.b16 %v4838_v28, %v4838_v28  ;;  %v4614_v9 = vsel %vm57_vm4, %v4613_v2, %v4612_v40  ;;  %v2590_v31 = vrot.slane %v2587_v62, 7  ;;  %v2416_v35 = vsel %vm132_vm6, %v10373_v26, %v10359_v36  ;;  %v10655_v47 = vpop.permute.xlu0 %2822 }
 0x136   :  { %v4616_v14 = vsel %vm60_vm5, %v4615_v43, %v4614_v9  ;;  %v2592_v50 = vrot.slane %v2588_v30, 6  ;;  %v2594_v55 = vrot.slane %v2589_v61, 5  ;;  %v4825_v23 = vrot.slane %v4821_v25, 5 }
 0x137   :  { %4840 = vrot.lane.b32.xlu1 %v4839_v63, %s8494_s4  ;;  %v4617_v34 = vpack.c.b16 %v4616_v14, %v4616_v14  ;;  %v2591_v0 = vsel %vm54_vm3, %v2590_v31, %v2586_v20  ;;  %v4826_v28 = vrot.slane %v4822_v45, 4  ;;  %v4828_v53 = vrot.slane %v4823_v42, 3 }
 0x138   :  { %v2593_v2 = vsel %vm57_vm4, %v2592_v50, %v2591_v0  ;;  %v4830_v62 = vrot.slane %v4824_v8, 2  ;;  %v4603_v40 = vrot.slane %v10607_v29, 4  ;;  %v4604_v36 = vrot.slane %v10614_v32, 3  ;;  %v8350_v50 = vld [vmem:[%s12937_s0 + $0x3c] ss:$0 sps:$4 sm:$0x88]  }
 0x139   :  { %4618 = vrot.lane.b32.xlu0 %v4617_v34, %s8494_s4  ;;  %v2595_v26 = vsel %vm60_vm5, %v2594_v55, %v2593_v2  ;;  %v4827_v25 = vsel %vm43_vm0, %v4826_v28, %v4825_v23  ;;  %v4606_v43 = vrot.slane %v10616_v13, 2  ;;  %v4608_v30 = vrot.slane %v10622_v46, 1  ;;  %v10676_v61 = vpop.permute.xlu1 %3062  ;;  %v8351_v0 = vld [vmem:[%s12937_s0 + $0x48] ss:$0 sps:$4 sm:$0x88]  }
 0x13a   :  { %v2596_v20 = vpack.c.b16 %v2595_v26, %v2595_v26  ;;  %v4829_v45 = vsel %vm46_vm1, %v4828_v53, %v4827_v25  ;;  %v4605_v42 = vsel %vm43_vm0, %v4604_v36, %v4603_v40  ;;  %v2649_v8 = vsel %vm132_vm6, %v10404_v5, %v10392_v4  ;;  %v10685_v55 = vpop.permute.xlu0 %3060 }
 0x13b   :  { %v4831_v63 = vsel %vm49_vm2, %v4830_v62, %v4829_v45  ;;  %v4607_v9 = vsel %vm46_vm1, %v4606_v43, %v4605_v42  ;;  %v4622_v31 = vrot.slane %v10607_v29, 1  ;;  %v4624_v14 = vrot.slane %v10616_v13, 7  ;;  %v8352_v62 = vld [vmem:[%s12937_s0 + $0x54] ss:$0 sps:$4 sm:$0x88]  }
 0x13c   :  { %v2645_v4 = vsel %vm139_vm8, %v10579_v19, %v2596_v20  ;;  %v10689_v5 = vpack.c.b16 %v4831_v63, %v4831_v63  ;;  %v4609_v23 = vsel %vm49_vm2, %v4608_v30, %v4607_v9  ;;  %v4626_v34 = vrot.slane %v10622_v46, 6  ;;  %v10733_v42 = vld [vmem:[%s12937_s0 + $0x30] ss:$0 sps:$4 sm:$0x88]  }
 0x13d   :  { %7962 = vmatpush3.bf16.msra.mxu1 %v2645_v4  ;;  %v10696_v28 = vpack.c.b16 %v4609_v23, %v4609_v23  ;;  %v4623_v53 = vsel %vm54_vm3, %v10614_v32, %v4622_v31  ;;  %v4629_v2 = vrot.slane %v10607_v29, 5  ;;  %v4630_v19 = vrot.slane %v10614_v32, 4  ;;  %v10713_v29 = vpop.permute.xlu1 %3079  ;;  %v10764_v4 = vld [vmem:[%s12937_s0 + $0x54] ss:$0 sps:$4 sm:$0x88]  }
 0x13e   :  { %4842 = vrot.lane.b32.xlu1 %v10689_v5, %s8493_s30  ;;  %v4625_v40 = vsel %vm57_vm4, %v4624_v14, %v4623_v53  ;;  %v4632_v36 = vrot.slane %v10616_v13, 3  ;;  %v4634_v26 = vrot.slane %v10622_v46, 2  ;;  %v2651_v25 = vsel %vm136_vm7, %v2649_v8, %v9510_v27  ;;  %7963 = vmatprep.subr.bf16.mxu1 %v12959_v1 }
 0x13f   :  { %4620 = vrot.lane.b32.xlu0 %v10696_v28, %s8493_s30  ;;  %v4627_v32 = vsel %vm60_vm5, %v4626_v34, %v4625_v40  ;;  %v4631_v43 = vsel %vm43_vm0, %v4630_v19, %v4629_v2  ;;  %v2653_v30 = vsel %vm139_vm8, %v2651_v25, %v10443_v39  ;;  %v2418_v13 = vsel %vm136_vm7, %v2416_v35, %v9543_v3  ;;  %v10750_v35 = vld [vmem:[%s12937_s0 + $0x48] ss:$0 sps:$4 sm:$0x88]  }
 0x140   :  { %v10723_v46 = vpack.c.b16 %v4627_v32, %v4627_v32  ;;  %v4633_v27 = vsel %vm46_vm1, %v4632_v36, %v4631_v43  ;;  %v2420_v20 = vsel %vm139_vm8, %v2418_v13, %v10452_v58  ;;  %v10728_v45 = vunpack.c.l.b16 %v8349_v22  ;;  %v10745_v58 = vld [vmem:[%s12937_s0 + $0x3c] ss:$0 sps:$4 sm:$0x88]   ;;  %v10752_v22 = vpop.permute.xlu0 %2857 }
 0x141   :  { %v4635_v8 = vsel %vm49_vm2, %v4634_v26, %v4633_v27  ;;  %v10736_v39 = vunpack.c.l.b16 %v8350_v50  ;;  %v10738_v63 = vunpack.c.l.b16 %v8351_v0  ;;  %v10740_v3 = vunpack.c.l.b16 %v8352_v62  ;;  %7954 = vmatpush3.bf16.msra.mxu0 %v2420_v20  ;;  %7964 = vmatpush3.bf16.msra.mxu1 %v2653_v30  ;;  %v10771_v2 = vpop.permute.xlu1 %3081 }
 0x142   :  { %4639 = vrot.lane.b32.xlu1 %v10723_v46, %s8493_s30  ;;  %v4636_v9 = vpack.c.b16 %v4635_v8, %v4635_v8  ;;  %v4860_v31 = vrot.slane %v10728_v45, 2  ;;  %v4867_v14 = vrot.slane %v10728_v45, 6  ;;  %v2656_v50 = vsel %vm132_vm6, %v10507_v11, 0  ;;  %7955 = vmatprep.subr.bf16.mxu0 %v12959_v1 }
 0x143   :  { %v4861_v23 = vrot.slane %v10736_v39, 1  ;;  %v4864_v34 = vrot.slane %v10740_v3, 7  ;;  %v4868_v0 = vrot.slane %v10736_v39, 5  ;;  %v4870_v53 = vrot.slane %v10738_v63, 4  ;;  %7965 = vmatprep.subr.bf16.mxu1 %v12959_v1 }
 0x144   :  { %4637 = vrot.lane.b32.xlu0 %v4636_v9, %s8494_s4  ;;  %v4872_v11 = vrot.slane %v10740_v3, 3  ;;  %v2423_v19 = vsel %vm132_vm6, %v10515_v33, 0  ;;  %v4887_v62 = vrot.slane %v10728_v45, 3  ;;  %v4888_v40 = vrot.slane %v10736_v39, 2  ;;  %v10783_v43 = vpop.permute.xlu0 %2859 }
 0x145   :  { %v4862_v36 = vsel %vm54_vm3, %v4861_v23, %v4860_v31  ;;  %v4869_v26 = vsel %vm43_vm0, %v4868_v0, %v4867_v14  ;;  %v4890_v25 = vrot.slane %v10738_v63, 1  ;;  %v4653_v32 = vunpack.c.l.b16 %v10733_v42  ;;  %7956 = vmatpush3.bf16.msra.mxu0 %v2423_v19  ;;  %7966 = vmatpush3.bf16.msra.mxu1 %v2656_v50 }
 0x146   :  { %v4863_v30 = vsel %vm57_vm4, %v10738_v63, %v4862_v36  ;;  %v4871_v33 = vsel %vm46_vm1, %v4870_v53, %v4869_v26  ;;  %v4889_v13 = vsel %vm54_vm3, %v4888_v40, %v4887_v62  ;;  %v4654_v27 = vunpack.c.l.b16 %v10745_v58  ;;  %7971 = vmatprep.subr.bf16.mxu0 %v12959_v1  ;;  %7981 = vmatprep.subr.bf16.mxu1 %v12959_v1  ;;  %v10811_v53 = vld [vmem:[%s12937_s0 + $0x30] ss:$0 sps:$4 sm:$0x88]   ;;  %v8359_v62 = vld [vmem:[%s12937_s0 + $0x48] ss:$0 sps:$4 sm:$0x88]  }
 0x147   :  { %v4865_v20 = vsel %vm60_vm5, %v4864_v34, %v4863_v30  ;;  %v4873_v42 = vsel %vm49_vm2, %v4872_v11, %v4871_v33  ;;  %v4891_v8 = vsel %vm57_vm4, %v4890_v25, %v4889_v13  ;;  %v4655_v9 = vunpack.c.l.b16 %v10750_v35  ;;  %v8360_v30 = vld [vmem:[%s12937_s0 + $0x54] ss:$0 sps:$4 sm:$0x88]   ;;  %v8361_v13 = vld [vmem:[%s12937_s0 + $0x30] ss:$0 sps:$4 sm:$0x88]  }
 0x148   :  { %v10796_v31 = vpack.c.b16 %v4865_v20, %v4865_v20  ;;  %v4874_v14 = vpack.c.b16 %v4873_v42, %v4873_v42  ;;  %v4892_v50 = vsel %vm60_vm5, %v10740_v3, %v4891_v8  ;;  %v4656_v58 = vunpack.c.l.b16 %v10764_v4  ;;  %7958 = vmatmul.mubr.msk.bf16.vlgmr.msra.gmra.mrb[20].mxu0 %vm156_vm10, %v10253_v54  ;;  %7968 = vmatmul.mubr.msk.bf16.vlgmr.msra.gmra.mrb[20].mxu1 %vm156_vm10, %v10253_v54  ;;  %v10816_v4 = vld [vmem:[%s12937_s0 + $0x3c] ss:$0 sps:$4 sm:$0x88]   ;;  %v10818_v11 = vpop.permute.xlu1 %3480 }
 0x149   :  { %v4893_v23 = vpack.c.b16 %v4892_v50, %v4892_v50  ;;  %v4665_v34 = vrot.slane %v4653_v32, 2  ;;  %v4666_v0 = vrot.slane %v4654_v27, 1  ;;  %v3085_v35 = vsel %vm132_vm6, %v9625_v59, %v10556_v57  ;;  %7977 = vmatprep.mubr.msk.bf16.mxu0 %vm8496_vm9, %v12959_v1  ;;  %7987 = vmatprep.mubr.msk.bf16.mxu1 %vm8496_vm9, %v12959_v1  ;;  %v8362_v42 = vld [vmem:[%s12937_s0 + $0x3c] ss:$0 sps:$4 sm:$0x88]  }
 0x14a   :  { %4877 = vrot.lane.b32.xlu1 %v10796_v31, %s8493_s30  ;;  %4875 = vrot.lane.b32.xlu0 %v4874_v14, %s8494_s4  ;;  %v4669_v59 = vrot.slane %v4656_v58, 7  ;;  %v2863_v54 = vsel %vm132_vm6, %v9636_v10, %v10572_v37  ;;  %v4879_v57 = vrot.slane %v10728_v45, 7  ;;  %v4880_v19 = vrot.slane %v10736_v39, 6  ;;  %v10841_v10 = vpop.permute.xlu0 %3247 }
 0x14b   :  { %v4667_v40 = vsel %vm54_vm3, %v4666_v0, %v4665_v34  ;;  %v4882_v36 = vrot.slane %v10738_v63, 5  ;;  %v4884_v26 = vrot.slane %v10740_v3, 4  ;;  %v4657_v25 = vrot.slane %v4653_v32, 6 }
 0x14c   :  { %v4668_v37 = vsel %vm57_vm4, %v4655_v9, %v4667_v40  ;;  %v4881_v45 = vsel %vm43_vm0, %v4880_v19, %v4879_v57  ;;  %v4658_v39 = vrot.slane %v4654_v27, 5  ;;  %v4660_v33 = vrot.slane %v4655_v9, 4  ;;  %v10855_v8 = vpop.permute.xlu1 %3482 }
 0x14d   :  { %v4670_v63 = vsel %vm60_vm5, %v4669_v59, %v4668_v37  ;;  %v4883_v3 = vsel %vm46_vm1, %v4882_v36, %v4881_v45  ;;  %v4662_v32 = vrot.slane %v4656_v58, 3  ;;  %v3087_v20 = vsel %vm136_vm7, %v3085_v35, %v10609_v48  ;;  %v8363_v48 = vld [vmem:[%s12937_s0 + $0x48] ss:$0 sps:$4 sm:$0x88]  }
 0x14e   :  { %4894 = vrot.lane.b32.xlu1 %v4893_v23, %s8494_s4  ;;  %v4671_v27 = vpack.c.b16 %v4670_v63, %v4670_v63  ;;  %v4885_v9 = vsel %vm49_vm2, %v4884_v26, %v4883_v3  ;;  %v4659_v14 = vsel %vm43_vm0, %v4658_v39, %v4657_v25  ;;  %v2865_v50 = vsel %vm136_vm7, %v2863_v54, %v10618_v7  ;;  %v8364_v58 = vld [vmem:[%s12937_s0 + $0x54] ss:$0 sps:$4 sm:$0x88]   ;;  %v10873_v59 = vpop.permute.xlu0 %3249 }
 0x14f   :  { %v10868_v34 = vpack.c.b16 %v4885_v9, %v4885_v9  ;;  %v4661_v23 = vsel %vm46_vm1, %v4660_v33, %v4659_v14  ;;  %v5276_v0 = vunpack.c.l.b16 %v10811_v53  ;;  %v5277_v35 = vunpack.c.l.b16 %v10816_v4 }
 0x150   :  { %4672 = vrot.lane.b32.xlu0 %v4671_v27, %s8494_s4  ;;  %v4663_v7 = vsel %vm49_vm2, %v4662_v32, %v4661_v23  ;;  %v5278_v54 = vunpack.c.l.b16 %v8359_v62  ;;  %v5279_v57 = vunpack.c.l.b16 %v8360_v30  ;;  %v10877_v19 = vunpack.c.l.b16 %v8361_v13 }
 0x151   :  { %v10879_v40 = vpack.c.b16 %v4663_v7, %v4663_v7  ;;  %v5288_v36 = vrot.slane %v5276_v0, 3  ;;  %v5289_v26 = vrot.slane %v5277_v35, 2  ;;  %v10881_v25 = vunpack.c.l.b16 %v8362_v42  ;;  %v10896_v13 = vpop.permute.xlu1 %3268 }
 0x152   :  { %4896 = vrot.lane.b32.xlu1 %v10868_v34, %s8493_s30  ;;  %v5291_v53 = vrot.slane %v5278_v54, 1  ;;  %v10885_v4 = vunpack.c.l.b16 %v8363_v48  ;;  %v10887_v37 = vunpack.c.l.b16 %v8364_v58  ;;  %v5055_v45 = vrot.slane %v10877_v19, 2  ;;  %v10898_v63 = vpop.permute.xlu0 %3266 }
 0x153   :  { %v5290_v62 = vsel %vm54_vm3, %v5289_v26, %v5288_v36  ;;  %v5056_v30 = vrot.slane %v10881_v25, 1  ;;  %v2867_v39 = vsel %vm139_vm8, %v2865_v50, %v9653_v17  ;;  %v3089_v33 = vsel %vm139_vm8, %v3087_v20, %v9728_v24  ;;  %v8365_v36 = vld [vmem:[%s12937_s0 + $0x34] ss:$0 sps:$4 sm:$0x11]  }
 0x154   :  { %4674 = vrot.lane.b32.xlu0 %v10879_v40, %s8493_s30  ;;  %v5292_v3 = vsel %vm57_vm4, %v5291_v53, %v5290_v62  ;;  %v5059_v32 = vrot.slane %v10887_v37, 7  ;;  %7972 = vmatpush3.bf16.msra.mxu0 %v2867_v39  ;;  %v2871_v42 = vsel %vm132_vm6, %v10655_v47, %v10649_v51  ;;  %v5280_v17 = vrot.slane %v5276_v0, 7 }
 0x155   :  { %v5293_v27 = vsel %vm60_vm5, %v5279_v57, %v5292_v3  ;;  %v5057_v24 = vsel %vm54_vm3, %v5056_v30, %v5055_v45  ;;  %7982 = vmatpush3.bf16.msra.mxu1 %v3089_v33  ;;  %v5281_v20 = vrot.slane %v5277_v35, 6  ;;  %v5283_v9 = vrot.slane %v5278_v54, 5  ;;  %7973 = vmatprep.subr.bf16.mxu0 %v12959_v1  ;;  %v8366_v30 = vld [vmem:[%s12937_s0 + $0x40] ss:$0 sps:$4 sm:$0x11]  }
 0x156   :  { %v5294_v14 = vpack.c.b16 %v5293_v27, %v5293_v27  ;;  %v5058_v50 = vsel %vm57_vm4, %v10885_v4, %v5057_v24  ;;  %v5285_v48 = vrot.slane %v5279_v57, 4  ;;  %v5047_v58 = vrot.slane %v10877_v19, 6  ;;  %7983 = vmatprep.subr.bf16.mxu1 %v12959_v1 }
 0x157   :  { %v5060_v51 = vsel %vm60_vm5, %v5059_v32, %v5058_v50  ;;  %v5282_v47 = vsel %vm43_vm0, %v5281_v20, %v5280_v17  ;;  %v5048_v23 = vrot.slane %v10881_v25, 5  ;;  %v5050_v0 = vrot.slane %v10885_v4, 4  ;;  %v8367_v17 = vld [vmem:[%s12937_s0 + $0x4c] ss:$0 sps:$4 sm:$0x11]  }
 0x158   :  { %5295 = vrot.lane.b32.xlu1 %v5294_v14, %s8494_s4  ;;  %v5061_v35 = vpack.c.b16 %v5060_v51, %v5060_v51  ;;  %v5284_v7 = vsel %vm46_vm1, %v5283_v9, %v5282_v47  ;;  %v5052_v54 = vrot.slane %v10887_v37, 3  ;;  %v3093_v57 = vsel %vm132_vm6, %v10685_v55, %v10676_v61  ;;  %v10934_v39 = vpop.permute.xlu1 %3517  ;;  %v8368_v14 = vld [vmem:[%s12937_s0 + $0x58] ss:$0 sps:$4 sm:$0x11]   ;;  %v12967_v47 = vld [vmem:[#allocation5_spill] sm:$0xff] }
 0x159   :  { %v5286_v26 = vsel %vm49_vm2, %v5285_v48, %v5284_v7  ;;  %v5049_v53 = vsel %vm43_vm0, %v5048_v23, %v5047_v58  ;;  %v5066_v45 = vrot.slane %v10877_v19, 3  ;;  %v5067_v62 = vrot.slane %v10881_v25, 2  ;;  %v10936_v33 = vpop.permute.xlu0 %3515 }
 0x15a   :  { %5062 = vrot.lane.b32.xlu0 %v5061_v35, %s8494_s4  ;;  %v10939_v61 = vpack.c.b16 %v5286_v26, %v5286_v26  ;;  %v5051_v55 = vsel %vm46_vm1, %v5050_v0, %v5049_v53  ;;  %v5069_v3 = vrot.slane %v10885_v4, 1  ;;  %v5073_v32 = vrot.slane %v10877_v19, 7  ;;  %v10991_v26 = vld [vmem:[%s12937_s0 + $0x34] ss:$0 sps:$4 sm:$0x11]  }
 0x15b   :  { %v5053_v27 = vsel %vm49_vm2, %v5052_v54, %v5051_v55  ;;  %v5068_v24 = vsel %vm54_vm3, %v5067_v62, %v5066_v45  ;;  %v5074_v20 = vrot.slane %v10881_v25, 6  ;;  %v5076_v9 = vrot.slane %v10885_v4, 5  ;;  %v8371_v55 = vld [vmem:[%s12937_s0 + $0x4c] ss:$0 sps:$4 sm:$0x11]  }
 0x15c   :  { %5297 = vrot.lane.b32.xlu1 %v10939_v61, %s8493_s30  ;;  %v10956_v19 = vpack.c.b16 %v5053_v27, %v5053_v27  ;;  %v5070_v50 = vsel %vm57_vm4, %v5069_v3, %v5068_v24  ;;  %v5078_v48 = vrot.slane %v10887_v37, 4  ;;  %v3095_v58 = vsel %vm136_vm7, %v3093_v57, %v9803_v6  ;;  %v10969_v0 = vpop.permute.xlu1 %3534 }
 0x15d   :  { %v5071_v25 = vsel %vm60_vm5, %v10887_v37, %v5070_v50  ;;  %v5075_v4 = vsel %vm43_vm0, %v5074_v20, %v5073_v32  ;;  %v3097_v51 = vsel %vm139_vm8, %v3095_v58, %v10713_v29  ;;  %v2873_v23 = vsel %vm136_vm7, %v2871_v42, %v12967_v47 }
 0x15e   :  { %5064 = vrot.lane.b32.xlu0 %v10956_v19, %s8493_s30  ;;  %v10973_v35 = vpack.c.b16 %v5071_v25, %v5071_v25  ;;  %v5077_v6 = vsel %vm46_vm1, %v5076_v9, %v5075_v4  ;;  %v2875_v37 = vsel %vm139_vm8, %v2873_v23, %v10752_v22  ;;  %v10978_v7 = vunpack.c.l.b16 %v8365_v36  ;;  %7984 = vmatpush3.bf16.msra.mxu1 %v3097_v51  ;;  %v10996_v22 = vld [vmem:[%s12937_s0 + $0x40] ss:$0 sps:$4 sm:$0x11]   ;;  %v10998_v36 = vpop.permute.xlu0 %3305  ;;  %v8372_v25 = vld [vmem:[%s12937_s0 + $0x58] ss:$0 sps:$4 sm:$0x11]  }
 0x15f   :  { %v5079_v29 = vsel %vm49_vm2, %v5078_v48, %v5077_v6  ;;  %v10981_v54 = vunpack.c.l.b16 %v8366_v30  ;;  %v10983_v42 = vunpack.c.l.b16 %v8367_v17  ;;  %v10985_v57 = vunpack.c.l.b16 %v8368_v14  ;;  %7974 = vmatpush3.bf16.msra.mxu0 %v2875_v37  ;;  %7985 = vmatprep.subr.bf16.mxu1 %v12959_v1 }
 0x160   :  { %12968 = vst [vmem:[#allocation5_spill] sm:$0xff] %v10973_v35  ;;  %5083 = vrot.lane.b32.xlu1 %v10973_v35, %s8493_s30  ;;  %v5080_v53 = vpack.c.b16 %v5079_v29, %v5079_v29  ;;  %v5315_v45 = vrot.slane %v10978_v7, 4  ;;  %v3100_v62 = vsel %vm132_vm6, %v10771_v2, 0  ;;  %v2878_v30 = vsel %vm132_vm6, %v10783_v43, 0  ;;  %7975 = vmatprep.subr.bf16.mxu0 %v12959_v1  ;;  %v11015_v24 = vpop.permute.xlu1 %3536 }
 0x161   :  { %v5316_v3 = vrot.slane %v10981_v54, 3  ;;  %v5318_v32 = vrot.slane %v10983_v42, 2  ;;  %v5320_v17 = vrot.slane %v10985_v57, 1  ;;  %v5323_v27 = vrot.slane %v10981_v54, 7 }
 0x162   :  { %5081 = vrot.lane.b32.xlu0 %v5080_v53, %s8494_s4  ;;  %v5325_v2 = vrot.slane %v10983_v42, 6  ;;  %v5327_v43 = vrot.slane %v10985_v57, 5  ;;  %v5341_v20 = vrot.slane %v10978_v7, 5  ;;  %v5342_v9 = vrot.slane %v10981_v54, 4  ;;  %7986 = vmatpush3.bf16.msra.mxu1 %v3100_v62  ;;  %v11031_v4 = vpop.permute.xlu0 %3314  ;;  %v11045_v62 = vld [vmem:[%s12938_s1] sm:$0xf] }
 0x163   :  { %v5317_v14 = vsel %vm54_vm3, %v5316_v3, %v5315_v45  ;;  %v5324_v50 = vsel %vm43_vm0, %v5323_v27, %v10978_v7  ;;  %v5344_v48 = vrot.slane %v10983_v42, 3  ;;  %v5346_v58 = vrot.slane %v10985_v57, 2  ;;  %7976 = vmatpush3.bf16.msra.mxu0 %v2878_v30  ;;  %8001 = vmatprep.subr.bf16.mxu1 %v12959_v1 }
 0x164   :  { %v5319_v51 = vsel %vm57_vm4, %v5318_v32, %v5317_v14  ;;  %v5326_v47 = vsel %vm46_vm1, %v5325_v2, %v5324_v50  ;;  %v5343_v23 = vsel %vm54_vm3, %v5342_v9, %v5341_v20  ;;  %v5108_v6 = vunpack.c.l.b16 %v10991_v26  ;;  %7991 = vmatprep.subr.bf16.mxu0 %v12959_v1  ;;  %v11064_v20 = vld [vmem:[%s12937_s0 + $0x40] ss:$0 sps:$4 sm:$0x11]   ;;  %v12970_v14 = vld [vmem:[#allocation6_spill] sm:$0xff] }
 0x165   :  { %v5321_v37 = vsel %vm60_vm5, %v5320_v17, %v5319_v51  ;;  %v5328_v29 = vsel %vm49_vm2, %v5327_v43, %v5326_v47  ;;  %v5345_v53 = vsel %vm57_vm4, %v5344_v48, %v5343_v23  ;;  %v5109_v45 = vunpack.c.l.b16 %v10996_v22  ;;  %7988 = vmatmul.mubr.msk.bf16.vlgmr.msra.gmra.mrb[24].mxu1 %vm156_vm10, %v11045_v62  ;;  %v11059_v43 = vld [vmem:[%s12937_s0 + $0x34] ss:$0 sps:$4 sm:$0x11]   ;;  %v11083_v51 = vld [vmem:[%s12937_s0 + $0x4c] ss:$0 sps:$4 sm:$0x11]  }
 0x166   :  { %v11049_v30 = vpack.c.b16 %v5321_v37, %v5321_v37  ;;  %v5329_v26 = vpack.c.b16 %v5328_v29, %v5328_v29  ;;  %v5347_v3 = vsel %vm60_vm5, %v5346_v58, %v5345_v53  ;;  %v5110_v32 = vunpack.c.l.b16 %v8371_v55  ;;  %7978 = vmatmul.mubr.msk.bf16.vlgmr.msra.gmra.mrb[24].mxu0 %vm156_vm10, %v11045_v62  ;;  %8007 = vmatprep.mubr.msk.bf16.mxu1 %vm8496_vm9, %v12959_v1  ;;  %v11066_v55 = vpop.permute.xlu1 %3937  ;;  %v12971_v48 = vld [vmem:[#allocation7_spill] sm:$0xff] }
 0x167   :  { %v5348_v22 = vpack.c.b16 %v5347_v3, %v5347_v3  ;;  %v5111_v17 = vunpack.c.l.b16 %v8372_v25  ;;  %v5112_v27 = vrot.slane %v5108_v6, 4  ;;  %v5113_v2 = vrot.slane %v5109_v45, 3  ;;  %7997 = vmatprep.mubr.msk.bf16.mxu0 %vm8496_vm9, %v12959_v1 }
 0x168   :  { %12969 = vst [vmem:[#allocation13_spill] sm:$0xff] %v11049_v30  ;;  %5332 = vrot.lane.b32.xlu1 %v11049_v30, %s8493_s30  ;;  %5330 = vrot.lane.b32.xlu0 %v5329_v26, %s8494_s4  ;;  %v5115_v9 = vrot.slane %v5110_v32, 2  ;;  %v3540_v50 = vsel %vm132_vm6, %v12970_v14, %v10818_v11  ;;  %v3318_v58 = vsel %vm132_vm6, %v12971_v48, %v10841_v10  ;;  %v5334_v25 = vrot.slane %v10978_v7, 1  ;;  %v11091_v11 = vld [vmem:[%s12937_s0 + $0x34] ss:$0 sps:$4 sm:$0x11]  }
 0x169   :  { %v5114_v47 = vsel %vm54_vm3, %v5113_v2, %v5112_v27  ;;  %v5117_v23 = vrot.slane %v5111_v17, 1  ;;  %v5336_v37 = vrot.slane %v10983_v42, 7  ;;  %v5338_v29 = vrot.slane %v10985_v57, 6  ;;  %v11093_v10 = vpop.permute.xlu0 %3703  ;;  %v8376_v42 = vld [vmem:[%s12937_s0 + $0x58] ss:$0 sps:$4 sm:$0x11]  }
 0x16a   :  { %v5116_v7 = vsel %vm57_vm4, %v5115_v9, %v5114_v47  ;;  %v5335_v53 = vsel %vm43_vm0, %v10981_v54, %v5334_v25  ;;  %v5122_v26 = vrot.slane %v5109_v45, 7  ;;  %v5124_v3 = vrot.slane %v5110_v32, 6  ;;  %v8378_v9 = vld [vmem:[%s12937_s0 + $0x40] ss:$0 sps:$4 sm:$0x11]  }
 0x16b   :  { %v5118_v57 = vsel %vm60_vm5, %v5117_v23, %v5116_v7  ;;  %v5337_v27 = vsel %vm46_vm1, %v5336_v37, %v5335_v53  ;;  %v5126_v2 = vrot.slane %v5111_v17, 5  ;;  %v3542_v14 = vsel %vm136_vm7, %v3540_v50, %v10855_v8  ;;  %v8379_v17 = vld [vmem:[%s12937_s0 + $0x4c] ss:$0 sps:$4 sm:$0x11]   ;;  %v11119_v50 = vpop.permute.xlu1 %3939 }
 0x16c   :  { %5349 = vrot.lane.b32.xlu1 %v5348_v22, %s8494_s4  ;;  %v5119_v54 = vpack.c.b16 %v5118_v57, %v5118_v57  ;;  %v5339_v45 = vsel %vm49_vm2, %v5338_v29, %v5337_v27  ;;  %v5123_v32 = vsel %vm43_vm0, %v5122_v26, %v5108_v6  ;;  %v3320_v48 = vsel %vm136_vm7, %v3318_v58, %v10873_v59  ;;  %v8380_v8 = vld [vmem:[%s12937_s0 + $0x58] ss:$0 sps:$4 sm:$0x11]  }
 0x16d   :  { %v11121_v25 = vpack.c.b16 %v5339_v45, %v5339_v45  ;;  %v5125_v22 = vsel %vm46_vm1, %v5124_v3, %v5123_v32  ;;  %v5731_v47 = vunpack.c.l.b16 %v11059_v43  ;;  %v5732_v6 = vunpack.c.l.b16 %v11064_v20 }
 0x16e   :  { %5120 = vrot.lane.b32.xlu0 %v5119_v54, %s8494_s4  ;;  %v5127_v59 = vsel %vm49_vm2, %v5126_v2, %v5125_v22  ;;  %v5733_v58 = vunpack.c.l.b16 %v11083_v51  ;;  %v5734_v23 = vunpack.c.l.b16 %v8376_v42  ;;  %v11130_v37 = vunpack.c.l.b16 %v11091_v11  ;;  %v11134_v3 = vpop.permute.xlu0 %3716  ;;  %v12974_v54 = vld [vmem:[#allocation8_spill] sm:$0xff] }
 0x16f   :  { %12972 = vst [vmem:[#allocation6_spill] sm:$0xff] %v11121_v25  ;;  %v5128_v29 = vpack.c.b16 %v5127_v59, %v5127_v59  ;;  %v5742_v7 = vrot.slane %v5731_v47, 5  ;;  %v5743_v53 = vrot.slane %v5732_v6, 4  ;;  %v11132_v26 = vunpack.c.l.b16 %v8378_v9 }
 0x170   :  { %12973 = vst [vmem:[#allocation7_spill] sm:$0xff] %v11130_v37  ;;  %5351 = vrot.lane.b32.xlu1 %v11121_v25, %s8493_s30  ;;  %v5745_v43 = vrot.slane %v5733_v58, 3  ;;  %v5747_v20 = vrot.slane %v5734_v23, 2  ;;  %v11138_v57 = vunpack.c.l.b16 %v8379_v17  ;;  %v11140_v27 = vunpack.c.l.b16 %v8380_v8  ;;  %v12975_v25 = vld [vmem:[#allocation9_spill] sm:$0xff] }
 0x171   :  { %v5744_v51 = vsel %vm54_vm3, %v5743_v53, %v5742_v7  ;;  %v5509_v42 = vrot.slane %v11130_v37, 4  ;;  %v5510_v2 = vrot.slane %v11132_v26, 3  ;;  %v3322_v45 = vsel %vm139_vm8, %v3320_v48, %v12974_v54  ;;  %v11153_v7 = vpop.permute.xlu1 %3735 }
 0x172   :  { %5129 = vrot.lane.b32.xlu0 %v5128_v29, %s8493_s30  ;;  %v5746_v32 = vsel %vm57_vm4, %v5745_v43, %v5744_v51  ;;  %v5512_v22 = vrot.slane %v11138_v57, 2  ;;  %v5514_v59 = vrot.slane %v11140_v27, 1  ;;  %7992 = vmatpush3.bf16.msra.mxu0 %v3322_v45  ;;  %v3544_v30 = vsel %vm139_vm8, %v3542_v14, %v12975_v25 }
 0x173   :  { %v5748_v53 = vsel %vm60_vm5, %v5747_v20, %v5746_v32  ;;  %v5511_v35 = vsel %vm54_vm3, %v5510_v2, %v5509_v42  ;;  %8002 = vmatpush3.bf16.msra.mxu1 %v3544_v30  ;;  %v11160_v48 = vsel %vm132_vm6, %v10898_v63, %v10896_v13  ;;  %v5735_v29 = vrot.slane %v5731_v47, 1  ;;  %7993 = vmatprep.subr.bf16.mxu0 %v12959_v1  ;;  %v11168_v2 = vpop.permute.xlu0 %3733 }
 0x174   :  { %v5749_v43 = vpack.c.b16 %v5748_v53, %v5748_v53  ;;  %v5513_v51 = vsel %vm57_vm4, %v5512_v22, %v5511_v35  ;;  %v5737_v54 = vrot.slane %v5733_v58, 7  ;;  %v5739_v14 = vrot.slane %v5734_v23, 6  ;;  %8003 = vmatprep.subr.bf16.mxu1 %v12959_v1 }
 0x175   :  { %v5515_v25 = vsel %vm60_vm5, %v5514_v59, %v5513_v51  ;;  %v5736_v20 = vsel %vm43_vm0, %v5732_v6, %v5735_v29  ;;  %v5519_v30 = vunpack.c.h.b16 %v11091_v11  ;;  %v5520_v42 = vunpack.c.h.b16 %v8378_v9 }
 0x176   :  { %5750 = vrot.lane.b32.xlu1 %v5749_v43, %s8494_s4  ;;  %v5516_v13 = vpack.c.b16 %v5515_v25, %v5515_v25  ;;  %v5738_v63 = vsel %vm46_vm1, %v5737_v54, %v5736_v20  ;;  %v5521_v47 = vunpack.c.h.b16 %v8379_v17  ;;  %v5522_v35 = vunpack.c.h.b16 %v8380_v8 }
 0x177   :  { %v5740_v58 = vsel %vm49_vm2, %v5739_v14, %v5738_v63  ;;  %v5523_v23 = vrot.slane %v5520_v42, 7  ;;  %v3548_v45 = vsel %vm132_vm6, %v10936_v33, %v10934_v39  ;;  %v5532_v6 = vrot.slane %v11130_v37, 5  ;;  %v8381_v33 = vld [vmem:[%s12937_s0 + $0x34] ss:$0 sps:$4 sm:$0x22]  }
 0x178   :  { %5517 = vrot.lane.b32.xlu0 %v5516_v13, %s8494_s4  ;;  %v11178_v11 = vpack.c.b16 %v5740_v58, %v5740_v58  ;;  %v5525_v9 = vrot.slane %v5521_v47, 6  ;;  %v5527_v32 = vrot.slane %v5522_v35, 5  ;;  %v5533_v22 = vrot.slane %v11132_v26, 4  ;;  %v11181_v59 = vpop.permute.xlu1 %3974  ;;  %v8382_v14 = vld [vmem:[%s12937_s0 + $0x40] ss:$0 sps:$4 sm:$0x22]  }
 0x179   :  { %v5524_v17 = vsel %vm43_vm0, %v5523_v23, %v5519_v30  ;;  %v5535_v8 = vrot.slane %v11138_v57, 3  ;;  %v5537_v53 = vrot.slane %v11140_v27, 2  ;;  %v5540_v39 = vrot.slane %v11130_v37, 1  ;;  %v8383_v13 = vld [vmem:[%s12937_s0 + $0x4c] ss:$0 sps:$4 sm:$0x22]   ;;  %v11211_v47 = vpop.permute.xlu0 %3972 }
 0x17a   :  { %5752 = vrot.lane.b32.xlu1 %v11178_v11, %s8493_s30  ;;  %v5526_v29 = vsel %vm46_vm1, %v5525_v9, %v5524_v17  ;;  %v5534_v43 = vsel %vm54_vm3, %v5533_v22, %v5532_v6  ;;  %v5542_v51 = vrot.slane %v11138_v57, 7  ;;  %v5544_v54 = vrot.slane %v11140_v27, 6  ;;  %v8384_v63 = vld [vmem:[%s12937_s0 + $0x58] ss:$0 sps:$4 sm:$0x22]  }
 0x17b   :  { %v5528_v25 = vsel %vm49_vm2, %v5527_v32, %v5526_v29  ;;  %v5536_v20 = vsel %vm57_vm4, %v5535_v8, %v5534_v43  ;;  %v5541_v30 = vsel %vm43_vm0, %v11132_v26, %v5540_v39  ;;  %v3550_v42 = vsel %vm136_vm7, %v3548_v45, %v10060_v49  ;;  %v8451_v45 = vld [vmem:[%s12937_s0 + $0x8] ss:$0 sps:$4 sm:$0x11]   ;;  %v8452_v22 = vld [vmem:[%s12937_s0 + $0x14] ss:$0 sps:$4 sm:$0x11]  }
 0x17c   :  { %v5529_v35 = vpack.c.b16 %v5528_v25, %v5528_v25  ;;  %v5538_v58 = vsel %vm60_vm5, %v5537_v53, %v5536_v20  ;;  %v5543_v23 = vsel %vm46_vm1, %v5542_v51, %v5541_v30  ;;  %v3552_v6 = vsel %vm139_vm8, %v3550_v42, %v10969_v0  ;;  %v8453_v0 = vld [vmem:[%s12937_s0 + $0x20] ss:$0 sps:$4 sm:$0x11]   ;;  %v8454_v39 = vld [vmem:[%s12937_s0 + $0x2c] ss:$0 sps:$4 sm:$0x11]   ;;  %v11236_v51 = vpop.permute.xlu1 %3991 }
 0x17d   :  { %v11217_v9 = vpack.c.b16 %v5538_v58, %v5538_v58  ;;  %v5545_v49 = vsel %vm49_vm2, %v5544_v54, %v5543_v23  ;;  %v3282_v32 = vunpack.c.h.b16 %v8451_v45  ;;  %v3283_v17 = vunpack.c.h.b16 %v8452_v22  ;;  %8004 = vmatpush3.bf16.msra.mxu1 %v3552_v6 }
 0x17e   :  { %5530 = vrot.lane.b32.xlu0 %v5529_v35, %s8493_s30  ;;  %v5546_v8 = vpack.c.b16 %v5545_v49, %v5545_v49  ;;  %v3284_v53 = vunpack.c.h.b16 %v8453_v0  ;;  %v3285_v29 = vunpack.c.h.b16 %v8454_v39  ;;  %v11233_v43 = vunpack.c.l.b16 %v8381_v33  ;;  %8005 = vmatprep.subr.bf16.mxu1 %v12959_v1  ;;  %v11268_v0 = vld [vmem:[%s12937_s0 + $0x40] ss:$0 sps:$4 sm:$0x22]  }
 0x17f   :  { %12976 = vst [vmem:[#allocation8_spill] sm:$0xff] %v11217_v9  ;;  %5549 = vrot.lane.b32.xlu1 %v11217_v9, %s8493_s30  ;;  %v3286_v54 = vrot.slane %v3283_v17, 7  ;;  %v11240_v25 = vunpack.c.l.b16 %v8382_v14  ;;  %v11242_v20 = vunpack.c.l.b16 %v8383_v13  ;;  %v11244_v30 = vunpack.c.l.b16 %v8384_v63  ;;  %v11255_v14 = vld [vmem:[%s12937_s0 + $0x34] ss:$0 sps:$4 sm:$0x22]  }
 0x180   :  { %v3288_v42 = vrot.slane %v3284_v53, 6  ;;  %v3290_v35 = vrot.slane %v3285_v29, 5  ;;  %v5770_v58 = vrot.slane %v11233_v43, 6  ;;  %v5778_v33 = vrot.slane %v11233_v43, 2 }
 0x181   :  { %v3287_v23 = vsel %vm43_vm0, %v3286_v54, %v3282_v32  ;;  %v5771_v6 = vrot.slane %v11240_v25, 5  ;;  %v5773_v49 = vrot.slane %v11242_v20, 4  ;;  %v5775_v45 = vrot.slane %v11244_v30, 3  ;;  %v11257_v13 = vpop.permute.xlu0 %3768  ;;  %v11278_v54 = vld [vmem:[%s12937_s0 + $0x4c] ss:$0 sps:$4 sm:$0x22]  }
 0x182   :  { %5547 = vrot.lane.b32.xlu0 %v5546_v8, %s8494_s4  ;;  %v3289_v63 = vsel %vm46_vm1, %v3288_v42, %v3287_v23  ;;  %v5779_v22 = vrot.slane %v11240_v25, 1  ;;  %v5782_v32 = vrot.slane %v11244_v30, 7  ;;  %v3555_v17 = vsel %vm132_vm6, %v11015_v24, 0 }
 0x183   :  { %v3291_v53 = vsel %vm49_vm2, %v3290_v35, %v3289_v63  ;;  %v5772_v39 = vsel %vm54_vm3, %v5771_v6, %v5770_v58  ;;  %v3333_v8 = vsel %vm132_vm6, %v11031_v4, 0  ;;  %v5796_v29 = vrot.slane %v11233_v43, 7  ;;  %8006 = vmatpush3.bf16.msra.mxu1 %v3555_v17  ;;  %v8388_v58 = vld [vmem:[%s12937_s0 + $0x58] ss:$0 sps:$4 sm:$0x22]   ;;  %v11287_v4 = vpop.permute.xlu1 %3993 }
 0x184   :  { %v3292_v24 = vpack.c.b16 %v3291_v53, %v3291_v53  ;;  %v5774_v42 = vsel %vm57_vm4, %v5773_v49, %v5772_v39  ;;  %v5780_v23 = vsel %vm43_vm0, %v5779_v22, %v5778_v33  ;;  %v5797_v35 = vrot.slane %v11240_v25, 6  ;;  %8021 = vmatprep.subr.bf16.mxu1 %v12959_v1 }
 0x185   :  { %v5776_v6 = vsel %vm60_vm5, %v5775_v45, %v5774_v42  ;;  %v5781_v63 = vsel %vm46_vm1, %v11242_v20, %v5780_v23  ;;  %v5799_v17 = vrot.slane %v11242_v20, 5  ;;  %v5801_v49 = vrot.slane %v11244_v30, 4  ;;  %v11306_v37 = vpop.permute.xlu0 %3770 }
 0x186   :  { %v3328_v33 = vsel %vm136_vm7, %v11160_v48, %v3292_v24  ;;  %v11296_v22 = vpack.c.b16 %v5776_v6, %v5776_v6  ;;  %v5783_v53 = vsel %vm49_vm2, %v5782_v32, %v5781_v63  ;;  %v5798_v39 = vsel %vm54_vm3, %v5797_v35, %v5796_v29  ;;  %8008 = vmatmul.mubr.msk.bf16.vlgmr.msra.gmra.mrb[28].mxu1 %vm156_vm10, %v11045_v62 }
 0x187   :  { %v3330_v45 = vsel %vm139_vm8, %v3328_v33, %v10998_v36  ;;  %v5784_v42 = vpack.c.b16 %v5783_v53, %v5783_v53  ;;  %v5800_v23 = vsel %vm57_vm4, %v5799_v17, %v5798_v39  ;;  %v5563_v9 = vunpack.c.l.b16 %v11255_v14  ;;  %8027 = vmatprep.mubr.msk.bf16.mxu1 %vm8496_vm9, %v12959_v1  ;;  %v12977_v53 = vld [vmem:[#allocation10_spill] sm:$0xff] }
 0x188   :  { %5787 = vrot.lane.b32.xlu1 %v11296_v22, %s8493_s30  ;;  %7994 = vmatpush3.bf16.msra.mxu0 %v3330_v45  ;;  %v5802_v48 = vsel %vm60_vm5, %v5801_v49, %v5800_v23  ;;  %v5564_v32 = vunpack.c.l.b16 %v11268_v0  ;;  %v5565_v36 = vunpack.c.l.b16 %v11278_v54  ;;  %v5566_v29 = vunpack.c.l.b16 %v8388_v58  ;;  %v11325_v54 = vld [vmem:[%s12937_s0 + $0x34] ss:$0 sps:$4 sm:$0x22]  }
 0x189   :  { %5785 = vrot.lane.b32.xlu0 %v5784_v42, %s8494_s4  ;;  %7995 = vmatprep.subr.bf16.mxu0 %v12959_v1  ;;  %v5803_v14 = vpack.c.b16 %v5802_v48, %v5802_v48  ;;  %v5574_v24 = vrot.slane %v5563_v9, 6  ;;  %v3997_v35 = vsel %vm132_vm6, %v10124_v15, %v11066_v55  ;;  %v3688_v6 = vrot.slane %v10075_v56, 7 }
 0x18a   :  { %v5575_v63 = vrot.slane %v5564_v32, 5  ;;  %v5577_v17 = vrot.slane %v5565_v36, 4  ;;  %v5579_v49 = vrot.slane %v5566_v29, 3  ;;  %v3690_v0 = vrot.slane %v10078_v21, 6  ;;  %v11327_v58 = vpop.permute.xlu1 %4385 }
 0x18b   :  { %v3689_v33 = vsel %vm43_vm0, %v3688_v6, %v10070_v38  ;;  %v3692_v39 = vrot.slane %v12977_v53, 5  ;;  %v5789_v15 = vrot.slane %v11233_v43, 3  ;;  %v5790_v56 = vrot.slane %v11240_v25, 2  ;;  %v11337_v21 = vld [vmem:[%s12937_s0 + $0x40] ss:$0 sps:$4 sm:$0x22]  }
 0x18c   :  { %5804 = vrot.lane.b32.xlu1 %v5803_v14, %s8494_s4  ;;  %v5576_v55 = vsel %vm54_vm3, %v5575_v63, %v5574_v24  ;;  %7996 = vmatpush3.bf16.msra.mxu0 %v3333_v8  ;;  %v3691_v45 = vsel %vm46_vm1, %v3690_v0, %v3689_v33  ;;  %v5792_v38 = vrot.slane %v11242_v20, 1  ;;  %v5567_v42 = vrot.slane %v5563_v9, 2  ;;  %v11346_v43 = vld [vmem:[%s12937_s0 + $0x4c] ss:$0 sps:$4 sm:$0x22]  }
 0x18d   :  { %v5578_v25 = vsel %vm57_vm4, %v5577_v17, %v5576_v55  ;;  %v3693_v23 = vsel %vm49_vm2, %v3692_v39, %v3691_v45  ;;  %v5791_v48 = vsel %vm43_vm0, %v5790_v56, %v5789_v15  ;;  %v5568_v14 = vrot.slane %v5564_v32, 1  ;;  %v8393_v8 = vld [vmem:[%s12937_s0 + $0x34] ss:$0 sps:$4 sm:$0x22]   ;;  %8011 = vmatprep.subr.bf16.mxu0 %v12959_v1  ;;  %v11355_v20 = vpop.permute.xlu0 %4159 }
 0x18e   :  { %v5580_v9 = vsel %vm60_vm5, %v5579_v49, %v5578_v25  ;;  %v3694_v24 = vpack.c.b16 %v3693_v23, %v3693_v23  ;;  %v5793_v6 = vsel %vm46_vm1, %v5792_v38, %v5791_v48  ;;  %v5571_v63 = vrot.slane %v5566_v29, 7  ;;  %v11362_v17 = vld [vmem:[%s12937_s0 + $0x58] ss:$0 sps:$4 sm:$0x22]  }
 0x18f   :  { %v5581_v32 = vpack.c.b16 %v5580_v9, %v5580_v9  ;;  %v5794_v0 = vsel %vm49_vm2, %v11244_v30, %v5793_v6  ;;  %v5569_v33 = vsel %vm43_vm0, %v5568_v14, %v5567_v42  ;;  %v3999_v53 = vsel %vm136_vm7, %v3997_v35, %v11119_v50  ;;  %v8394_v49 = vld [vmem:[%s12937_s0 + $0x40] ss:$0 sps:$4 sm:$0x22]   ;;  %v8395_v29 = vld [vmem:[%s12937_s0 + $0x4c] ss:$0 sps:$4 sm:$0x22]   ;;  %7998 = vmatmul.mubr.msk.bf16.vlgmr.msra.gmra.mrb[28].mxu0 %vm156_vm10, %v11045_v62  ;;  %v11377_v39 = vpop.permute.xlu1 %4387 }
 0x190   :  { %v3774_v30 = vsel %vm132_vm6, %v3694_v24, %v11093_v10  ;;  %v11381_v15 = vpack.c.b16 %v5794_v0, %v5794_v0  ;;  %v5570_v50 = vsel %vm46_vm1, %v5565_v36, %v5569_v33  ;;  %v6179_v35 = vunpack.c.l.b16 %v11325_v54  ;;  %v8396_v56 = vld [vmem:[%s12937_s0 + $0x58] ss:$0 sps:$4 sm:$0x22]   ;;  %8017 = vmatprep.mubr.msk.bf16.mxu0 %vm8496_vm9, %v12959_v1  ;;  %v12978_v6 = vld [vmem:[#allocation11_spill] sm:$0xff] }
 0x191   :  { %5582 = vrot.lane.b32.xlu0 %v5581_v32, %s8494_s4  ;;  %v5572_v55 = vsel %vm49_vm2, %v5571_v63, %v5570_v50  ;;  %v3776_v10 = vsel %vm136_vm7, %v3774_v30, %v11134_v3  ;;  %v6180_v45 = vunpack.c.l.b16 %v11337_v21  ;;  %v6181_v36 = vunpack.c.l.b16 %v11346_v43  ;;  %v11396_v38 = vpop.permute.xlu0 %4161  ;;  %v12979_v33 = vld [vmem:[#allocation12_spill] sm:$0xff] }
 0x192   :  { %5806 = vrot.lane.b32.xlu1 %v11381_v15, %s8493_s30  ;;  %v11400_v54 = vpack.c.b16 %v5572_v55, %v5572_v55  ;;  %v6182_v42 = vunpack.c.l.b16 %v11362_v17  ;;  %v6190_v25 = vrot.slane %v6179_v35, 7  ;;  %v11403_v23 = vunpack.c.l.b16 %v8393_v8 }
 0x193   :  { %v6191_v48 = vrot.slane %v6180_v45, 6  ;;  %v6193_v14 = vrot.slane %v6181_v36, 5  ;;  %v11405_v9 = vunpack.c.l.b16 %v8394_v49  ;;  %v11407_v3 = vunpack.c.l.b16 %v8395_v29  ;;  %v11414_v32 = vpop.permute.xlu1 %4180 }
 0x194   :  { %v6195_v21 = vrot.slane %v6182_v42, 4  ;;  %v11409_v43 = vunpack.c.l.b16 %v8396_v56  ;;  %v5964_v24 = vrot.slane %v11403_v23, 6  ;;  %v3778_v63 = vsel %vm139_vm8, %v3776_v10, %v12978_v6 }
 0x195   :  { %5584 = vrot.lane.b32.xlu0 %v11400_v54, %s8493_s30  ;;  %v6192_v8 = vsel %vm54_vm3, %v6191_v48, %v6190_v25  ;;  %v5965_v17 = vrot.slane %v11405_v9, 5  ;;  %v5967_v0 = vrot.slane %v11407_v3, 4  ;;  %8012 = vmatpush3.bf16.msra.mxu0 %v3778_v63  ;;  %v4001_v49 = vsel %vm139_vm8, %v3999_v53, %v12979_v33  ;;  %v11423_v29 = vpop.permute.xlu0 %4178 }
 0x196   :  { %v6194_v30 = vsel %vm57_vm4, %v6193_v14, %v6192_v8  ;;  %v5969_v50 = vrot.slane %v11409_v43, 3  ;;  %8022 = vmatpush3.bf16.msra.mxu1 %v4001_v49  ;;  %v3782_v56 = vsel %vm132_vm6, %v11168_v2, %v11153_v7  ;;  %v6183_v55 = vrot.slane %v6179_v35, 3  ;;  %8013 = vmatprep.subr.bf16.mxu0 %v12959_v1 }
 0x197   :  { %v6196_v10 = vsel %vm60_vm5, %v6195_v21, %v6194_v30  ;;  %v5966_v25 = vsel %vm54_vm3, %v5965_v17, %v5964_v24  ;;  %v6184_v48 = vrot.slane %v6180_v45, 2  ;;  %v6186_v53 = vrot.slane %v6181_v36, 1  ;;  %8023 = vmatprep.subr.bf16.mxu1 %v12959_v1 }
 0x198   :  { %v6197_v6 = vpack.c.b16 %v6196_v10, %v6196_v10  ;;  %v5968_v14 = vsel %vm57_vm4, %v5967_v0, %v5966_v25  ;;  %v5957_v63 = vrot.slane %v11403_v23, 2  ;;  %v5958_v8 = vrot.slane %v11405_v9, 1  ;;  %v8397_v0 = vld [vmem:[%s12937_s0 + $0x34] ss:$0 sps:$4 sm:$0x44]  }
 0x199   :  { %v5970_v7 = vsel %vm60_vm5, %v5969_v50, %v5968_v14  ;;  %v6185_v2 = vsel %vm43_vm0, %v6184_v48, %v6183_v55  ;;  %v5961_v35 = vrot.slane %v11409_v43, 7  ;;  %v4005_v45 = vsel %vm132_vm6, %v11211_v47, %v11181_v59  ;;  %v8398_v50 = vld [vmem:[%s12937_s0 + $0x40] ss:$0 sps:$4 sm:$0x44]  }
 0x19a   :  { %6198 = vrot.lane.b32.xlu1 %v6197_v6, %s8494_s4  ;;  %v5971_v36 = vpack.c.b16 %v5970_v7, %v5970_v7  ;;  %v6187_v21 = vsel %vm46_vm1, %v6186_v53, %v6185_v2  ;;  %v5959_v24 = vsel %vm43_vm0, %v5958_v8, %v5957_v63  ;;  %v5976_v17 = vrot.slane %v11403_v23, 7  ;;  %v11450_v33 = vpop.permute.xlu1 %4433  ;;  %v8399_v53 = vld [vmem:[%s12937_s0 + $0x4c] ss:$0 sps:$4 sm:$0x44]  }
 0x19b   :  { %v6188_v49 = vsel %vm49_vm2, %v6182_v42, %v6187_v21  ;;  %v5960_v59 = vsel %vm46_vm1, %v11407_v3, %v5959_v24  ;;  %v5977_v47 = vrot.slane %v11405_v9, 6  ;;  %v5979_v30 = vrot.slane %v11407_v3, 5  ;;  %v11460_v55 = vpop.permute.xlu0 %4424  ;;  %v8400_v7 = vld [vmem:[%s12937_s0 + $0x58] ss:$0 sps:$4 sm:$0x44]  }
 0x19c   :  { %5972 = vrot.lane.b32.xlu0 %v5971_v36, %s8494_s4  ;;  %v11463_v10 = vpack.c.b16 %v6188_v49, %v6188_v49  ;;  %v5962_v25 = vsel %vm49_vm2, %v5961_v35, %v5960_v59  ;;  %v5981_v42 = vrot.slane %v11409_v43, 4  ;;  %v5984_v48 = vrot.slane %v11403_v23, 3 }
 0x19d   :  { %v11471_v6 = vpack.c.b16 %v5962_v25, %v5962_v25  ;;  %v5978_v14 = vsel %vm54_vm3, %v5977_v47, %v5976_v17  ;;  %v5985_v63 = vrot.slane %v11405_v9, 2  ;;  %v5987_v8 = vrot.slane %v11407_v3, 1 }
 0x19e   :  { %6200 = vrot.lane.b32.xlu1 %v11463_v10, %s8493_s30  ;;  %v5980_v23 = vsel %vm57_vm4, %v5979_v30, %v5978_v14  ;;  %v4007_v2 = vsel %vm136_vm7, %v4005_v45, %v10337_v16  ;;  %v3784_v35 = vsel %vm136_vm7, %v3782_v56, %v10355_v52  ;;  %v11486_v36 = vunpack.c.l.b16 %v8397_v0  ;;  %v11488_v9 = vpop.permute.xlu1 %4450  ;;  %v11508_v0 = vld [vmem:[%s12937_s0 + $0x40] ss:$0 sps:$4 sm:$0x44]   ;;  %v11523_v30 = vld [vmem:[%s12937_s0 + $0x34] ss:$0 sps:$4 sm:$0x44]  }
 0x19f   :  { %v5982_v3 = vsel %vm60_vm5, %v5981_v42, %v5980_v23  ;;  %v5986_v21 = vsel %vm43_vm0, %v5985_v63, %v5984_v48  ;;  %v4009_v24 = vsel %vm139_vm8, %v4007_v2, %v11236_v51  ;;  %v3786_v17 = vsel %vm139_vm8, %v3784_v35, %v11257_v13  ;;  %v8404_v35 = vld [vmem:[%s12937_s0 + $0x58] ss:$0 sps:$4 sm:$0x44]  }
 0x1a0   :  { %5974 = vrot.lane.b32.xlu0 %v11471_v6, %s8493_s30  ;;  %v11498_v16 = vpack.c.b16 %v5982_v3, %v5982_v3  ;;  %v5988_v52 = vsel %vm46_vm1, %v5987_v8, %v5986_v21  ;;  %v11501_v56 = vunpack.c.l.b16 %v8398_v50  ;;  %v11503_v45 = vunpack.c.l.b16 %v8399_v53  ;;  %8014 = vmatpush3.bf16.msra.mxu0 %v3786_v17  ;;  %v11510_v51 = vpop.permute.xlu0 %4217 }
 0x1a1   :  { %v5989_v13 = vsel %vm49_vm2, %v11409_v43, %v5988_v52  ;;  %v11514_v49 = vunpack.c.l.b16 %v8400_v7  ;;  %v6229_v59 = vrot.slane %v11486_v36, 4  ;;  %8024 = vmatpush3.bf16.msra.mxu1 %v4009_v24  ;;  %v4012_v47 = vsel %vm132_vm6, %v11287_v4, 0  ;;  %8015 = vmatprep.subr.bf16.mxu0 %v12959_v1  ;;  %v11534_v4 = vld [vmem:[%s12937_s0 + $0x4c] ss:$0 sps:$4 sm:$0x44]  }
 0x1a2   :  { %5993 = vrot.lane.b32.xlu1 %v11498_v16, %s8493_s30  ;;  %v5990_v50 = vpack.c.b16 %v5989_v13, %v5989_v13  ;;  %v6239_v43 = vrot.slane %v11501_v56, 7  ;;  %v6241_v25 = vrot.slane %v11503_v45, 6  ;;  %v6230_v42 = vrot.slane %v11501_v56, 3  ;;  %8025 = vmatprep.subr.bf16.mxu1 %v12959_v1  ;;  %v11550_v3 = vpop.permute.xlu1 %4452 }
 0x1a3   :  { %v6243_v48 = vrot.slane %v11514_v49, 5  ;;  %v6232_v53 = vrot.slane %v11503_v45, 2  ;;  %v6234_v14 = vrot.slane %v11514_v49, 1  ;;  %v3789_v63 = vsel %vm132_vm6, %v11306_v37, 0 }
 0x1a4   :  { %5991 = vrot.lane.b32.xlu0 %v5990_v50, %s8494_s4  ;;  %v6240_v8 = vsel %vm54_vm3, %v6239_v43, %v11486_v36  ;;  %v6231_v7 = vsel %vm43_vm0, %v6230_v42, %v6229_v59  ;;  %v6256_v23 = vrot.slane %v11486_v36, 1  ;;  %v6258_v2 = vrot.slane %v11503_v45, 7  ;;  %8016 = vmatpush3.bf16.msra.mxu0 %v3789_v63 }
 0x1a5   :  { %v6242_v37 = vsel %vm57_vm4, %v6241_v25, %v6240_v8  ;;  %v6233_v21 = vsel %vm46_vm1, %v6232_v53, %v6231_v7  ;;  %v6260_v24 = vrot.slane %v11514_v49, 6  ;;  %v6019_v17 = vunpack.c.h.b16 %v11523_v30  ;;  %8026 = vmatpush3.bf16.msra.mxu1 %v4012_v47  ;;  %8031 = vmatprep.subr.bf16.mxu0 %v12959_v1  ;;  %v11557_v52 = vpop.permute.xlu0 %4219 }
 0x1a6   :  { %v6244_v13 = vsel %vm60_vm5, %v6243_v48, %v6242_v37  ;;  %v6235_v59 = vsel %vm49_vm2, %v6234_v14, %v6233_v21  ;;  %v6257_v50 = vsel %vm54_vm3, %v11501_v56, %v6256_v23  ;;  %v6020_v43 = vunpack.c.h.b16 %v11508_v0  ;;  %8041 = vmatprep.subr.bf16.mxu1 %v12959_v1 }
 0x1a7   :  { %v6245_v25 = vpack.c.b16 %v6244_v13, %v6244_v13  ;;  %v6236_v42 = vpack.c.b16 %v6235_v59, %v6235_v59  ;;  %v6259_v53 = vsel %vm57_vm4, %v6258_v2, %v6257_v50  ;;  %v6021_v47 = vunpack.c.h.b16 %v11534_v4  ;;  %8018 = vmatmul.mubr.msk.bf16.vlgmr.msra.gmra.mrb[32].mxu0 %vm156_vm10, %v11045_v62  ;;  %v11594_v13 = vld [vmem:[%s12937_s0 + $0x4c] ss:$0 sps:$4 sm:$0x44]  }
 0x1a8   :  { %v6261_v48 = vsel %vm60_vm5, %v6260_v24, %v6259_v53  ;;  %v6022_v63 = vunpack.c.h.b16 %v8404_v35  ;;  %v6023_v14 = vrot.slane %v6020_v43, 7  ;;  %v4456_v8 = vsel %vm132_vm6, %v10421_v60, %v11327_v58  ;;  %8028 = vmatmul.mubr.msk.bf16.vlgmr.msra.gmra.mrb[32].mxu1 %vm156_vm10, %v11045_v62  ;;  %8037 = vmatprep.mubr.msk.bf16.mxu0 %vm8496_vm9, %v12959_v1  ;;  %v11586_v60 = vld [vmem:[%s12937_s0 + $0x34] ss:$0 sps:$4 sm:$0x44]  }
 0x1a9   :  { %6246 = vrot.lane.b32.xlu1 %v6245_v25, %s8493_s30  ;;  %6237 = vrot.lane.b32.xlu0 %v6236_v42, %s8494_s4  ;;  %v6262_v7 = vpack.c.b16 %v6261_v48, %v6261_v48  ;;  %v6025_v23 = vrot.slane %v6021_v47, 6  ;;  %v4223_v2 = vsel %vm132_vm6, %v10429_v12, %v11355_v20  ;;  %v6248_v37 = vrot.slane %v11486_v36, 5  ;;  %v11596_v12 = vpop.permute.xlu1 %4840 }
 0x1aa   :  { %v6024_v62 = vsel %vm54_vm3, %v6023_v14, %v6019_v17  ;;  %v6027_v58 = vrot.slane %v6022_v63, 5  ;;  %v6249_v21 = vrot.slane %v11501_v56, 4  ;;  %v6251_v24 = vrot.slane %v11503_v45, 3  ;;  %8047 = vmatprep.mubr.msk.bf16.mxu1 %vm8496_vm9, %v12959_v1  ;;  %v8410_v45 = vld [vmem:[%s12937_s0 + $0x40] ss:$0 sps:$4 sm:$0x44]  }
 0x1ab   :  { %v6026_v20 = vsel %vm57_vm4, %v6025_v23, %v6024_v62  ;;  %v6253_v36 = vrot.slane %v11514_v49, 2  ;;  %v6007_v17 = vunpack.c.l.b16 %v11523_v30  ;;  %v6008_v56 = vunpack.c.l.b16 %v11508_v0  ;;  %v11607_v59 = vpop.permute.xlu0 %4618  ;;  %v11615_v49 = vld [vmem:[%s12937_s0 + $0x40] ss:$0 sps:$4 sm:$0x44]  }
 0x1ac   :  { %v6028_v50 = vsel %vm60_vm5, %v6027_v58, %v6026_v20  ;;  %v6250_v43 = vsel %vm43_vm0, %v6249_v21, %v6248_v37  ;;  %v6009_v25 = vunpack.c.l.b16 %v11534_v4  ;;  %v6010_v42 = vunpack.c.l.b16 %v8404_v35  ;;  %v11620_v0 = vld [vmem:[%s12937_s0 + $0x58] ss:$0 sps:$4 sm:$0x44]   ;;  %v8409_v4 = vld [vmem:[%s12937_s0 + $0x34] ss:$0 sps:$4 sm:$0x44]  }
 0x1ad   :  { %6263 = vrot.lane.b32.xlu1 %v6262_v7, %s8494_s4  ;;  %v6029_v30 = vpack.c.b16 %v6028_v50, %v6028_v50  ;;  %v6252_v53 = vsel %vm46_vm1, %v6251_v24, %v6250_v43  ;;  %v6011_v47 = vrot.slane %v6007_v17, 4  ;;  %v6012_v48 = vrot.slane %v6008_v56, 3  ;;  %v8411_v7 = vld [vmem:[%s12937_s0 + $0x4c] ss:$0 sps:$4 sm:$0x44]  }
 0x1ae   :  { %v6254_v35 = vsel %vm49_vm2, %v6253_v36, %v6252_v53  ;;  %v6014_v63 = vrot.slane %v6009_v25, 2  ;;  %v6016_v14 = vrot.slane %v6010_v42, 1  ;;  %v11630_v23 = vsel %vm136_vm7, %v4456_v8, %v11377_v39  ;;  %v8412_v39 = vld [vmem:[%s12937_s0 + $0x58] ss:$0 sps:$4 sm:$0x44]  }
 0x1af   :  { %6030 = vrot.lane.b32.xlu0 %v6029_v30, %s8494_s4  ;;  %v11636_v37 = vpack.c.b16 %v6254_v35, %v6254_v35  ;;  %v6013_v62 = vsel %vm43_vm0, %v6012_v48, %v6011_v47  ;;  %v4225_v58 = vsel %vm136_vm7, %v4223_v2, %v11396_v38  ;;  %v6634_v21 = vunpack.c.l.b16 %v11586_v60  ;;  %v8455_v48 = vld [vmem:[%s12937_s0 + $0x30] ss:$0 sps:$4 sm:$0x44]   ;;  %v8456_v35 = vld [vmem:[%s12937_s0 + $0x3c] ss:$0 sps:$4 sm:$0x44]  }
 0x1b0   :  { %v6015_v8 = vsel %vm46_vm1, %v6014_v63, %v6013_v62  ;;  %v6635_v24 = vunpack.c.l.b16 %v11615_v49  ;;  %v6636_v20 = vunpack.c.l.b16 %v11594_v13  ;;  %v6637_v36 = vunpack.c.l.b16 %v11620_v0  ;;  %v11649_v17 = vpop.permute.xlu1 %4842  ;;  %v8457_v62 = vld [vmem:[%s12937_s0 + $0x48] ss:$0 sps:$4 sm:$0x44]  }
 0x1b1   :  { %6265 = vrot.lane.b32.xlu1 %v11636_v37, %s8493_s30  ;;  %v6017_v38 = vsel %vm49_vm2, %v6016_v14, %v6015_v8  ;;  %v6646_v2 = vrot.slane %v6634_v21, 1  ;;  %v11654_v60 = vunpack.c.l.b16 %v8409_v4  ;;  %v11656_v56 = vunpack.c.l.b16 %v8410_v45  ;;  %v11658_v50 = vpop.permute.xlu0 %4620 }
 0x1b2   :  { %v11660_v43 = vpack.c.b16 %v6017_v38, %v6017_v38  ;;  %v6648_v25 = vrot.slane %v6636_v20, 7  ;;  %v6650_v13 = vrot.slane %v6637_v36, 6  ;;  %v11662_v42 = vunpack.c.l.b16 %v8411_v7  ;;  %v8458_v38 = vld [vmem:[%s12937_s0 + $0x54] ss:$0 sps:$4 sm:$0x44]  }
 0x1b3   :  { %v6647_v49 = vsel %vm54_vm3, %v6635_v24, %v6646_v2  ;;  %v11665_v0 = vunpack.c.l.b16 %v8412_v39  ;;  %v6424_v30 = vrot.slane %v11656_v56, 7  ;;  %v4227_v53 = vsel %vm139_vm8, %v4225_v58, %v10445_v41 }
 0x1b4   :  { %12980 = vst [vmem:[#allocation9_spill] sm:$0xff] %v11660_v43  ;;  %6032 = vrot.lane.b32.xlu0 %v11660_v43, %s8493_s30  ;;  %v6649_v45 = vsel %vm57_vm4, %v6648_v25, %v6647_v49  ;;  %v6426_v47 = vrot.slane %v11662_v42, 6  ;;  %8032 = vmatpush3.bf16.msra.mxu0 %v4227_v53  ;;  %v4401_v4 = vunpack.c.h.b16 %v8455_v48  ;;  %v4402_v63 = vunpack.c.h.b16 %v8456_v35 }
 0x1b5   :  { %v6651_v41 = vsel %vm60_vm5, %v6650_v13, %v6649_v45  ;;  %v6425_v14 = vsel %vm54_vm3, %v6424_v30, %v11654_v60  ;;  %v6428_v7 = vrot.slane %v11665_v0, 5  ;;  %v4403_v58 = vunpack.c.h.b16 %v8457_v62  ;;  %8033 = vmatprep.subr.bf16.mxu0 %v12959_v1  ;;  %v11692_v13 = vpop.permute.xlu1 %4639 }
 0x1b6   :  { %v6652_v39 = vpack.c.b16 %v6651_v41, %v6651_v41  ;;  %v6427_v8 = vsel %vm57_vm4, %v6426_v47, %v6425_v14  ;;  %v4404_v2 = vunpack.c.h.b16 %v8458_v38  ;;  %v4405_v25 = vrot.slane %v4402_v63, 7  ;;  %v11694_v49 = vpop.permute.xlu0 %4637 }
 0x1b7   :  { %v6429_v30 = vsel %vm60_vm5, %v6428_v7, %v6427_v8  ;;  %v4407_v53 = vrot.slane %v4403_v58, 6  ;;  %v4231_v45 = vsel %vm132_vm6, %v11423_v29, %v11414_v32  ;;  %v6638_v48 = vrot.slane %v6634_v21, 5 }
 0x1b8   :  { %6653 = vrot.lane.b32.xlu1 %v6652_v39, %s8494_s4  ;;  %v6430_v47 = vpack.c.b16 %v6429_v30, %v6429_v30  ;;  %v4406_v35 = vsel %vm54_vm3, %v4405_v25, %v4401_v4  ;;  %v4409_v41 = vrot.slane %v4404_v2, 5  ;;  %v6639_v14 = vrot.slane %v6635_v24, 4  ;;  %v8413_v25 = vld [vmem:[%s12937_s0 + $0x34] ss:$0 sps:$4 sm:$0x88]  }
 0x1b9   :  { %v4408_v63 = vsel %vm57_vm4, %v4407_v53, %v4406_v35  ;;  %v6641_v62 = vrot.slane %v6636_v20, 3  ;;  %v6643_v38 = vrot.slane %v6637_v36, 2  ;;  %v6416_v43 = vrot.slane %v11654_v60, 4 }
 0x1ba   :  { %6431 = vrot.lane.b32.xlu0 %v6430_v47, %s8494_s4  ;;  %v4410_v7 = vsel %vm60_vm5, %v4409_v41, %v4408_v63  ;;  %v6640_v32 = vsel %vm43_vm0, %v6639_v14, %v6638_v48  ;;  %v6417_v29 = vrot.slane %v11656_v56, 3  ;;  %v6419_v21 = vrot.slane %v11662_v42, 2  ;;  %v8414_v47 = vld [vmem:[%s12937_s0 + $0x40] ss:$0 sps:$4 sm:$0x88]  }
 0x1bb   :  { %v4411_v58 = vpack.c.b16 %v4410_v7, %v4410_v7  ;;  %v6642_v4 = vsel %vm46_vm1, %v6641_v62, %v6640_v32  ;;  %v6421_v24 = vrot.slane %v11665_v0, 1  ;;  %v4464_v20 = vsel %vm132_vm6, %v11460_v55, %v11450_v33  ;;  %v8415_v63 = vld [vmem:[%s12937_s0 + $0x4c] ss:$0 sps:$4 sm:$0x88]  }
 0x1bc   :  { %v6644_v36 = vsel %vm49_vm2, %v6643_v38, %v6642_v4  ;;  %v6418_v39 = vsel %vm43_vm0, %v6417_v29, %v6416_v43  ;;  %v6435_v8 = vrot.slane %v11654_v60, 1  ;;  %v6437_v2 = vrot.slane %v11662_v42, 7  ;;  %v11721_v30 = vpop.permute.xlu1 %4877  ;;  %v11723_v53 = vpop.permute.xlu0 %4875 }
 0x1bd   :  { %v4460_v48 = vsel %vm139_vm8, %v11630_v23, %v4411_v58  ;;  %v11727_v33 = vpack.c.b16 %v6644_v36, %v6644_v36  ;;  %v6420_v55 = vsel %vm46_vm1, %v6419_v21, %v6418_v39  ;;  %v6439_v43 = vrot.slane %v11665_v0, 6  ;;  %v11780_v39 = vld [vmem:[%s12937_s0 + $0x34] ss:$0 sps:$4 sm:$0x88]  }
 0x1be   :  { %8042 = vmatpush3.bf16.msra.mxu1 %v4460_v48  ;;  %v6422_v35 = vsel %vm49_vm2, %v6421_v24, %v6420_v55  ;;  %v6436_v41 = vsel %vm54_vm3, %v11656_v56, %v6435_v8  ;;  %v6442_v14 = vrot.slane %v11654_v60, 5  ;;  %v6443_v23 = vrot.slane %v11656_v56, 4  ;;  %v8416_v60 = vld [vmem:[%s12937_s0 + $0x58] ss:$0 sps:$4 sm:$0x88]  }
 0x1bf   :  { %6655 = vrot.lane.b32.xlu1 %v11727_v33, %s8493_s30  ;;  %v11744_v62 = vpack.c.b16 %v6422_v35, %v6422_v35  ;;  %v6438_v38 = vsel %vm57_vm4, %v6437_v2, %v6436_v41  ;;  %v6445_v7 = vrot.slane %v11662_v42, 3  ;;  %v6447_v32 = vrot.slane %v11665_v0, 2  ;;  %8043 = vmatprep.subr.bf16.mxu1 %v12959_v1  ;;  %v8419_v55 = vld [vmem:[%s12937_s0 + $0x4c] ss:$0 sps:$4 sm:$0x88]  }
 0x1c0   :  { %v6440_v56 = vsel %vm60_vm5, %v6439_v43, %v6438_v38  ;;  %v6444_v29 = vsel %vm43_vm0, %v6443_v23, %v6442_v14  ;;  %v4466_v21 = vsel %vm136_vm7, %v4464_v20, %v10599_v44  ;;  %v4233_v58 = vsel %vm136_vm7, %v4231_v45, %v10620_v18  ;;  %v11759_v4 = vpop.permute.xlu1 %4894  ;;  %v11804_v43 = vld [vmem:[%s12937_s0 + $0x58] ss:$0 sps:$4 sm:$0x88]  }
 0x1c1   :  { %6433 = vrot.lane.b32.xlu0 %v11744_v62, %s8493_s30  ;;  %v11763_v42 = vpack.c.b16 %v6440_v56, %v6440_v56  ;;  %v6446_v0 = vsel %vm46_vm1, %v6445_v7, %v6444_v29  ;;  %v4468_v24 = vsel %vm139_vm8, %v4466_v21, %v11488_v9  ;;  %v4235_v36 = vsel %vm139_vm8, %v4233_v58, %v11510_v51  ;;  %v11785_v9 = vld [vmem:[%s12937_s0 + $0x40] ss:$0 sps:$4 sm:$0x88]  }
 0x1c2   :  { %v6448_v44 = vsel %vm49_vm2, %v6447_v32, %v6446_v0  ;;  %v11771_v20 = vunpack.c.l.b16 %v8413_v25  ;;  %v11773_v18 = vunpack.c.l.b16 %v8414_v47  ;;  %v11775_v45 = vunpack.c.l.b16 %v8415_v63  ;;  %8034 = vmatpush3.bf16.msra.mxu0 %v4235_v36  ;;  %8044 = vmatpush3.bf16.msra.mxu1 %v4468_v24  ;;  %v11787_v51 = vpop.permute.xlu0 %4672 }
 0x1c3   :  { %6452 = vrot.lane.b32.xlu1 %v11763_v42, %s8493_s30  ;;  %v6449_v8 = vpack.c.b16 %v6448_v44, %v6448_v44  ;;  %v11791_v2 = vunpack.c.l.b16 %v8416_v60  ;;  %v4471_v25 = vsel %vm132_vm6, %v11550_v3, 0  ;;  %v4238_v48 = vsel %vm132_vm6, %v11557_v52, 0  ;;  %8035 = vmatprep.subr.bf16.mxu0 %v12959_v1 }
 0x1c4   :  { %v6673_v47 = vrot.slane %v11771_v20, 2  ;;  %v6674_v35 = vrot.slane %v11773_v18, 1  ;;  %v6680_v3 = vrot.slane %v11771_v20, 6  ;;  %v6681_v41 = vrot.slane %v11773_v18, 5  ;;  %8045 = vmatprep.subr.bf16.mxu1 %v12959_v1  ;;  %v11811_v52 = vpop.permute.xlu1 %4896 }
 0x1c5   :  { %6450 = vrot.lane.b32.xlu0 %v6449_v8, %s8494_s4  ;;  %v6677_v14 = vrot.slane %v11791_v2, 7  ;;  %v6683_v23 = vrot.slane %v11775_v45, 4  ;;  %v6685_v63 = vrot.slane %v11791_v2, 3  ;;  %v6700_v38 = vrot.slane %v11771_v20, 3 }
 0x1c6   :  { %v6675_v7 = vsel %vm54_vm3, %v6674_v35, %v6673_v47  ;;  %v6682_v32 = vsel %vm43_vm0, %v6681_v41, %v6680_v3  ;;  %v6701_v60 = vrot.slane %v11773_v18, 2  ;;  %v6703_v56 = vrot.slane %v11775_v45, 1  ;;  %8036 = vmatpush3.bf16.msra.mxu0 %v4238_v48  ;;  %8046 = vmatpush3.bf16.msra.mxu1 %v4471_v25  ;;  %v11822_v29 = vpop.permute.xlu0 %4674 }
 0x1c7   :  { %v6676_v21 = vsel %vm57_vm4, %v11775_v45, %v6675_v7  ;;  %v6684_v58 = vsel %vm46_vm1, %v6683_v23, %v6682_v32  ;;  %v6466_v0 = vunpack.c.l.b16 %v11780_v39  ;;  %v6467_v24 = vunpack.c.l.b16 %v11785_v9  ;;  %8051 = vmatprep.subr.bf16.mxu0 %v12959_v1  ;;  %8061 = vmatprep.subr.bf16.mxu1 %v12959_v1  ;;  %v11841_v9 = vld [vmem:[%s12938_s1] sm:$0xf]  ;;  %v8423_v32 = vld [vmem:[%s12937_s0 + $0x4c] ss:$0 sps:$4 sm:$0x88]  }
 0x1c8   :  { %v6678_v36 = vsel %vm60_vm5, %v6677_v14, %v6676_v21  ;;  %v6686_v44 = vsel %vm49_vm2, %v6685_v63, %v6684_v58  ;;  %v6702_v8 = vsel %vm54_vm3, %v6701_v60, %v6700_v38  ;;  %v6468_v25 = vunpack.c.l.b16 %v8419_v55  ;;  %v11855_v14 = vld [vmem:[%s12937_s0 + $0x34] ss:$0 sps:$4 sm:$0x88]   ;;  %v11860_v23 = vld [vmem:[%s12937_s0 + $0x40] ss:$0 sps:$4 sm:$0x88]  }
 0x1c9   :  { %v11834_v48 = vpack.c.b16 %v6678_v36, %v6678_v36  ;;  %v6687_v47 = vpack.c.b16 %v6686_v44, %v6686_v44  ;;  %v6704_v35 = vsel %vm57_vm4, %v6703_v56, %v6702_v8  ;;  %v6469_v39 = vunpack.c.l.b16 %v11804_v43  ;;  %8038 = vmatmul.mubr.msk.bf16.vlgmr.msra.gmra.mrb[36].mxu0 %vm156_vm10, %v11841_v9  ;;  %8048 = vmatmul.mubr.msk.bf16.vlgmr.msra.gmra.mrb[36].mxu1 %vm156_vm10, %v11841_v9  ;;  %v8425_v36 = vld [vmem:[%s12937_s0 + $0x34] ss:$0 sps:$4 sm:$0x88]  }
 0x1ca   :  { %v6705_v55 = vsel %vm60_vm5, %v11791_v2, %v6704_v35  ;;  %v6478_v3 = vrot.slane %v6466_v0, 2  ;;  %v6479_v41 = vrot.slane %v6467_v24, 1  ;;  %v4900_v43 = vsel %vm132_vm6, %v10689_v5, %v11596_v12  ;;  %v11862_v63 = vpop.permute.xlu1 %5295  ;;  %8057 = vmatprep.mubr.msk.bf16.mxu0 %vm8496_vm9, %v12959_v1  ;;  %8067 = vmatprep.mubr.msk.bf16.mxu1 %vm8496_vm9, %v12959_v1 }
 0x1cb   :  { %6690 = vrot.lane.b32.xlu1 %v11834_v48, %s8493_s30  ;;  %6688 = vrot.lane.b32.xlu0 %v6687_v47, %s8494_s4  ;;  %v6706_v5 = vpack.c.b16 %v6705_v55, %v6705_v55  ;;  %v6482_v12 = vrot.slane %v6469_v39, 7  ;;  %v4678_v38 = vsel %vm132_vm6, %v10696_v28, %v11607_v59  ;;  %v6692_v7 = vrot.slane %v11771_v20, 7  ;;  %v8424_v47 = vld [vmem:[%s12937_s0 + $0x58] ss:$0 sps:$4 sm:$0x88]  }
 0x1cc   :  { %v6480_v60 = vsel %vm54_vm3, %v6479_v41, %v6478_v3  ;;  %v6693_v56 = vrot.slane %v11773_v18, 6  ;;  %v6695_v21 = vrot.slane %v11775_v45, 5  ;;  %v6697_v58 = vrot.slane %v11791_v2, 4  ;;  %v11885_v44 = vpop.permute.xlu0 %5062  ;;  %v8426_v55 = vld [vmem:[%s12937_s0 + $0x40] ss:$0 sps:$4 sm:$0x88]  }
 0x1cd   :  { %v6481_v28 = vsel %vm57_vm4, %v6468_v25, %v6480_v60  ;;  %v6470_v59 = vrot.slane %v6466_v0, 6  ;;  %v6471_v20 = vrot.slane %v6467_v24, 5  ;;  %v6473_v8 = vrot.slane %v6468_v25, 4 }
 0x1ce   :  { %v6483_v18 = vsel %vm60_vm5, %v6482_v12, %v6481_v28  ;;  %v6694_v45 = vsel %vm43_vm0, %v6693_v56, %v6692_v7  ;;  %v6475_v2 = vrot.slane %v6469_v39, 3  ;;  %v4902_v35 = vsel %vm136_vm7, %v4900_v43, %v11649_v17  ;;  %v11898_v3 = vpop.permute.xlu1 %5297  ;;  %v8427_v17 = vld [vmem:[%s12937_s0 + $0x4c] ss:$0 sps:$4 sm:$0x88]  }
 0x1cf   :  { %6707 = vrot.lane.b32.xlu1 %v6706_v5, %s8494_s4  ;;  %v6484_v0 = vpack.c.b16 %v6483_v18, %v6483_v18  ;;  %v6696_v24 = vsel %vm46_vm1, %v6695_v21, %v6694_v45  ;;  %v6472_v25 = vsel %vm43_vm0, %v6471_v20, %v6470_v59  ;;  %v4680_v41 = vsel %vm136_vm7, %v4678_v38, %v11658_v50  ;;  %v8428_v39 = vld [vmem:[%s12937_s0 + $0x58] ss:$0 sps:$4 sm:$0x88]  }
 0x1d0   :  { %v6698_v43 = vsel %vm49_vm2, %v6697_v58, %v6696_v24  ;;  %v6474_v5 = vsel %vm46_vm1, %v6473_v8, %v6472_v25  ;;  %v7089_v12 = vunpack.c.l.b16 %v11855_v14  ;;  %v7090_v7 = vunpack.c.l.b16 %v11860_v23  ;;  %v11915_v60 = vpop.permute.xlu0 %5064 }
 0x1d1   :  { %6485 = vrot.lane.b32.xlu0 %v6484_v0, %s8494_s4  ;;  %v11918_v50 = vpack.c.b16 %v6698_v43, %v6698_v43  ;;  %v6476_v38 = vsel %vm49_vm2, %v6475_v2, %v6474_v5  ;;  %v7091_v56 = vunpack.c.l.b16 %v8423_v32  ;;  %v7092_v21 = vunpack.c.l.b16 %v8424_v47 }
 0x1d2   :  { %v11921_v28 = vpack.c.b16 %v6476_v38, %v6476_v38  ;;  %v7101_v59 = vrot.slane %v7089_v12, 3  ;;  %v7102_v58 = vrot.slane %v7090_v7, 2  ;;  %v11923_v20 = vunpack.c.l.b16 %v8425_v36  ;;  %v11937_v2 = vpop.permute.xlu1 %5083 }
 0x1d3   :  { %6709 = vrot.lane.b32.xlu1 %v11918_v50, %s8493_s30  ;;  %v7104_v14 = vrot.slane %v7091_v56, 1  ;;  %v6857_v23 = vunpack.c.l.b16 %v8426_v55  ;;  %v11927_v8 = vunpack.c.l.b16 %v8427_v17  ;;  %v11929_v18 = vunpack.c.l.b16 %v8428_v39 }
 0x1d4   :  { %v7103_v45 = vsel %vm54_vm3, %v7102_v58, %v7101_v59  ;;  %v6868_v32 = vrot.slane %v11923_v20, 2  ;;  %v4682_v47 = vsel %vm139_vm8, %v4680_v41, %v10723_v46  ;;  %v4904_v36 = vsel %vm139_vm8, %v4902_v35, %v10796_v31  ;;  %v11939_v0 = vpop.permute.xlu0 %5081 }
 0x1d5   :  { %6487 = vrot.lane.b32.xlu0 %v11921_v28, %s8493_s30  ;;  %v7105_v55 = vsel %vm57_vm4, %v7104_v14, %v7103_v45  ;;  %v6869_v24 = vrot.slane %v6857_v23, 1  ;;  %v6872_v25 = vrot.slane %v11929_v18, 7  ;;  %8052 = vmatpush3.bf16.msra.mxu0 %v4682_v47  ;;  %v4686_v46 = vsel %vm132_vm6, %v11694_v49, %v11692_v13 }
 0x1d6   :  { %v7106_v41 = vsel %vm60_vm5, %v7092_v21, %v7105_v55  ;;  %8062 = vmatpush3.bf16.msra.mxu1 %v4904_v36  ;;  %v7093_v31 = vrot.slane %v7089_v12, 7  ;;  %v7094_v35 = vrot.slane %v7090_v7, 6  ;;  %v7096_v17 = vrot.slane %v7091_v56, 5  ;;  %8053 = vmatprep.subr.bf16.mxu0 %v12959_v1  ;;  %v8429_v36 = vld [vmem:[%s12937_s0 + $0x38] ss:$0 sps:$4 sm:$0x11]  }
 0x1d7   :  { %v7107_v39 = vpack.c.b16 %v7106_v41, %v7106_v41  ;;  %v6870_v43 = vsel %vm54_vm3, %v6869_v24, %v6868_v32  ;;  %v7098_v5 = vrot.slane %v7092_v21, 4  ;;  %v6860_v38 = vrot.slane %v11923_v20, 6  ;;  %8063 = vmatprep.subr.bf16.mxu1 %v12959_v1 }
 0x1d8   :  { %v6871_v59 = vsel %vm57_vm4, %v11927_v8, %v6870_v43  ;;  %v7095_v13 = vsel %vm43_vm0, %v7094_v35, %v7093_v31  ;;  %v6861_v49 = vrot.slane %v6857_v23, 5  ;;  %v6863_v12 = vrot.slane %v11927_v8, 4  ;;  %v8430_v31 = vld [vmem:[%s12937_s0 + $0x44] ss:$0 sps:$4 sm:$0x11]  }
 0x1d9   :  { %7108 = vrot.lane.b32.xlu1 %v7107_v39, %s8494_s4  ;;  %v6873_v7 = vsel %vm60_vm5, %v6872_v25, %v6871_v59  ;;  %v7097_v56 = vsel %vm46_vm1, %v7096_v17, %v7095_v13  ;;  %v6865_v21 = vrot.slane %v11929_v18, 3  ;;  %v4908_v58 = vsel %vm132_vm6, %v11723_v53, %v11721_v30 }
 0x1da   :  { %v6874_v14 = vpack.c.b16 %v6873_v7, %v6873_v7  ;;  %v7099_v45 = vsel %vm49_vm2, %v7098_v5, %v7097_v56  ;;  %v6862_v32 = vsel %vm43_vm0, %v6861_v49, %v6860_v38  ;;  %v6879_v47 = vrot.slane %v11923_v20, 3  ;;  %v11970_v55 = vpop.permute.xlu1 %5332  ;;  %v11972_v24 = vpop.permute.xlu0 %5330  ;;  %v8431_v5 = vld [vmem:[%s12937_s0 + $0x50] ss:$0 sps:$4 sm:$0x11]  }
 0x1db   :  { %v11974_v25 = vpack.c.b16 %v7099_v45, %v7099_v45  ;;  %v6864_v41 = vsel %vm46_vm1, %v6863_v12, %v6862_v32  ;;  %v6880_v30 = vrot.slane %v6857_v23, 2  ;;  %v6882_v53 = vrot.slane %v11927_v8, 1 }
 0x1dc   :  { %6875 = vrot.lane.b32.xlu0 %v6874_v14, %s8494_s4  ;;  %v6866_v35 = vsel %vm49_vm2, %v6865_v21, %v6864_v41  ;;  %v6886_v17 = vrot.slane %v11923_v20, 7  ;;  %v6887_v39 = vrot.slane %v6857_v23, 6  ;;  %v6889_v43 = vrot.slane %v11927_v8, 5  ;;  %v8432_v20 = vld [vmem:[%s12937_s0 + $0x5c] ss:$0 sps:$4 sm:$0x11]  }
 0x1dd   :  { %7110 = vrot.lane.b32.xlu1 %v11974_v25, %s8493_s30  ;;  %v11990_v38 = vpack.c.b16 %v6866_v35, %v6866_v35  ;;  %v6881_v59 = vsel %vm54_vm3, %v6880_v30, %v6879_v47  ;;  %v6891_v13 = vrot.slane %v11929_v18, 4  ;;  %v4910_v49 = vsel %vm136_vm7, %v4908_v58, %v10868_v34 }
 0x1de   :  { %v6883_v23 = vsel %vm57_vm4, %v6882_v53, %v6881_v59  ;;  %v6888_v8 = vsel %vm43_vm0, %v6887_v39, %v6886_v17  ;;  %v4912_v12 = vsel %vm139_vm8, %v4910_v49, %v11759_v4  ;;  %v4688_v7 = vsel %vm136_vm7, %v4686_v46, %v10879_v40  ;;  %v12005_v56 = vpop.permute.xlu1 %5349  ;;  %v12045_v53 = vld [vmem:[%s12937_s0 + $0x50] ss:$0 sps:$4 sm:$0x11]  }
 0x1df   :  { %v6884_v21 = vsel %vm60_vm5, %v11929_v18, %v6883_v23  ;;  %v6890_v34 = vsel %vm46_vm1, %v6889_v43, %v6888_v8  ;;  %v4690_v58 = vsel %vm139_vm8, %v4688_v7, %v11787_v51  ;;  %v12012_v14 = vunpack.c.l.b16 %v8429_v36  ;;  %8064 = vmatpush3.bf16.msra.mxu1 %v4912_v12  ;;  %v12026_v18 = vld [vmem:[%s12937_s0 + $0x38] ss:$0 sps:$4 sm:$0x11]   ;;  %v12031_v51 = vld [vmem:[%s12937_s0 + $0x44] ss:$0 sps:$4 sm:$0x11]  }
 0x1e0   :  { %6877 = vrot.lane.b32.xlu0 %v11990_v38, %s8493_s30  ;;  %v12016_v4 = vpack.c.b16 %v6884_v21, %v6884_v21  ;;  %v6892_v40 = vsel %vm49_vm2, %v6891_v13, %v6890_v34  ;;  %v12019_v46 = vunpack.c.l.b16 %v8430_v31  ;;  %v12021_v45 = vunpack.c.l.b16 %v8431_v5  ;;  %8054 = vmatpush3.bf16.msra.mxu0 %v4690_v58  ;;  %v12033_v32 = vpop.permute.xlu0 %5120  ;;  %v12069_v12 = vld [vmem:[%s12937_s0 + $0x5c] ss:$0 sps:$4 sm:$0x11]  }
 0x1e1   :  { %v6893_v47 = vpack.c.b16 %v6892_v40, %v6892_v40  ;;  %v12035_v36 = vunpack.c.l.b16 %v8432_v20  ;;  %v7128_v41 = vrot.slane %v12012_v14, 4  ;;  %v4915_v30 = vsel %vm132_vm6, %v11811_v52, 0  ;;  %8055 = vmatprep.subr.bf16.mxu0 %v12959_v1  ;;  %8065 = vmatprep.subr.bf16.mxu1 %v12959_v1 }
 0x1e2   :  { %12981 = vst [vmem:[#allocation10_spill] sm:$0xff] %v12016_v4  ;;  %6896 = vrot.lane.b32.xlu1 %v12016_v4, %s8493_s30  ;;  %v7129_v31 = vrot.slane %v12019_v46, 3  ;;  %v7131_v35 = vrot.slane %v12021_v45, 2  ;;  %v7136_v17 = vrot.slane %v12019_v46, 7  ;;  %v7138_v52 = vrot.slane %v12021_v45, 6  ;;  %v12053_v39 = vpop.permute.xlu1 %5351  ;;  %v12117_v4 = vpop.f32.mrb[0].mxu1 }
 0x1e3   :  { %v7133_v43 = vrot.slane %v12035_v36, 1  ;;  %v7140_v5 = vrot.slane %v12035_v36, 5  ;;  %v4693_v59 = vsel %vm132_vm6, %v11822_v29, 0  ;;  %v7154_v13 = vrot.slane %v12012_v14, 5  ;;  %8066 = vmatpush3.bf16.msra.mxu1 %v4915_v30 }
 0x1e4   :  { %6894 = vrot.lane.b32.xlu0 %v6893_v47, %s8494_s4  ;;  %v7130_v49 = vsel %vm54_vm3, %v7129_v31, %v7128_v41  ;;  %v7137_v20 = vsel %vm43_vm0, %v7136_v17, %v12012_v14  ;;  %v7155_v23 = vrot.slane %v12019_v46, 4  ;;  %v7157_v8 = vrot.slane %v12021_v45, 3  ;;  %8056 = vmatpush3.bf16.msra.mxu0 %v4693_v59  ;;  %v12071_v29 = vpop.permute.xlu0 %5129 }
 0x1e5   :  { %v7132_v7 = vsel %vm57_vm4, %v7131_v35, %v7130_v49  ;;  %v7139_v21 = vsel %vm46_vm1, %v7138_v52, %v7137_v20  ;;  %v7159_v34 = vrot.slane %v12035_v36, 2  ;;  %v6921_v58 = vunpack.c.l.b16 %v12026_v18  ;;  %8071 = vmatprep.subr.bf16.mxu0 %v12959_v1  ;;  %8081 = vmatprep.subr.bf16.mxu1 %v12959_v1 }
 0x1e6   :  { %v7134_v40 = vsel %vm60_vm5, %v7133_v43, %v7132_v7  ;;  %v7141_v47 = vsel %vm49_vm2, %v7140_v5, %v7139_v21  ;;  %v7156_v41 = vsel %vm54_vm3, %v7155_v23, %v7154_v13  ;;  %v6922_v30 = vunpack.c.l.b16 %v12031_v51  ;;  %8068 = vmatmul.mubr.msk.bf16.vlgmr.msra.gmra.mrb[40].mxu1 %vm156_vm10, %v11841_v9 }
 0x1e7   :  { %v12085_v31 = vpack.c.b16 %v7134_v40, %v7134_v40  ;;  %v7142_v35 = vpack.c.b16 %v7141_v47, %v7141_v47  ;;  %v7158_v17 = vsel %vm57_vm4, %v7157_v8, %v7156_v41  ;;  %v6923_v52 = vunpack.c.l.b16 %v12045_v53  ;;  %8058 = vmatmul.mubr.msk.bf16.vlgmr.msra.gmra.mrb[40].mxu0 %vm156_vm10, %v11841_v9  ;;  %8087 = vmatprep.mubr.msk.bf16.mxu1 %vm8496_vm9, %v12959_v1 }
 0x1e8   :  { %v7160_v43 = vsel %vm60_vm5, %v7159_v34, %v7158_v17  ;;  %v6924_v5 = vunpack.c.l.b16 %v12069_v12  ;;  %v6925_v59 = vrot.slane %v6921_v58, 4  ;;  %v6926_v13 = vrot.slane %v6922_v30, 3  ;;  %v12095_v49 = vpop.permute.xlu1 %5750  ;;  %8077 = vmatprep.mubr.msk.bf16.mxu0 %vm8496_vm9, %v12959_v1 }
 0x1e9   :  { %7145 = vrot.lane.b32.xlu1 %v12085_v31, %s8493_s30  ;;  %7143 = vrot.lane.b32.xlu0 %v7142_v35, %s8494_s4  ;;  %v7161_v20 = vpack.c.b16 %v7160_v43, %v7160_v43  ;;  %v6928_v23 = vrot.slane %v6923_v52, 2  ;;  %v5355_v8 = vsel %vm132_vm6, %v10939_v61, %v11862_v63  ;;  %v5133_v7 = vsel %vm132_vm6, %v10956_v19, %v11885_v44  ;;  %v12113_v35 = vpop.f32.mrb[0].mxu0 }
 0x1ea   :  { %v6927_v21 = vsel %vm54_vm3, %v6926_v13, %v6925_v59  ;;  %v6930_v34 = vrot.slane %v6924_v5, 1  ;;  %v7147_v40 = vrot.slane %v12012_v14, 1  ;;  %v7149_v47 = vrot.slane %v12021_v45, 7  ;;  %v12111_v41 = vpop.permute.xlu0 %5517  ;;  %12982 = vst [vmem:[#allocation11_spill] sm:$0xff] %v12113_v35  ;;  %v7859_v19 = vpop.f32.mrb[1].mxu0 }
 0x1eb   :  { %v6929_v17 = vsel %vm57_vm4, %v6928_v23, %v6927_v21  ;;  %v7151_v43 = vrot.slane %v12035_v36, 6  ;;  %v6935_v61 = vrot.slane %v6922_v30, 7  ;;  %v6937_v63 = vrot.slane %v6923_v52, 6  ;;  %v7869_v35 = vpop.f32.mrb[1].mxu1  ;;  %v200_v21 = vpop.f32.mrb[2].mxu0 }
 0x1ec   :  { %v6931_v44 = vsel %vm60_vm5, %v6930_v34, %v6929_v17  ;;  %v7148_v14 = vsel %vm43_vm0, %v12019_v46, %v7147_v40  ;;  %v6939_v59 = vrot.slane %v6924_v5, 5  ;;  %v5357_v45 = vsel %vm136_vm7, %v5355_v8, %v11898_v3  ;;  %v5753_v13 = vpop.permute.xlu1 %5752  ;;  %v423_v34 = vpop.f32.mrb[2].mxu1  ;;  %v12983_v40 = vld [vmem:[#allocation5_spill] sm:$0xff] }
 0x1ed   :  { %7162 = vrot.lane.b32.xlu1 %v7161_v20, %s8494_s4  ;;  %v6932_v23 = vpack.c.b16 %v6931_v44, %v6931_v44  ;;  %v7150_v36 = vsel %vm46_vm1, %v7149_v47, %v7148_v14  ;;  %v6936_v30 = vsel %vm43_vm0, %v6935_v61, %v6921_v58  ;;  %v5135_v52 = vsel %vm136_vm7, %v5133_v7, %v11915_v60  ;;  %v12984_v8 = vld [vmem:[#allocation13_spill] sm:$0xff]  ;;  %v7860_v35 = vpop.f32.mrb[3].mxu0  ;;  %v7870_v17 = vpop.f32.mrb[3].mxu1  ;;  %v8460_v7 = vld [vmem:[%s12937_s0 + $0x34] ss:$0 sps:$4 sm:$0x11]  }
 0x1ee   :  { %v7152_v46 = vsel %vm49_vm2, %v7151_v43, %v7150_v36  ;;  %v6938_v5 = vsel %vm46_vm1, %v6937_v63, %v6936_v30  ;;  %v5137_v3 = vsel %vm139_vm8, %v5135_v52, %v12983_v40  ;;  %v5359_v20 = vsel %vm139_vm8, %v5357_v45, %v12984_v8  ;;  %v8461_v63 = vld [vmem:[%s12937_s0 + $0x40] ss:$0 sps:$4 sm:$0x11]   ;;  %v8462_v44 = vld [vmem:[%s12937_s0 + $0x4c] ss:$0 sps:$4 sm:$0x11]  }
 0x1ef   :  { %6933 = vrot.lane.b32.xlu0 %v6932_v23, %s8494_s4  ;;  %v12136_v58 = vpack.c.b16 %v7152_v46, %v7152_v46  ;;  %v6940_v60 = vsel %vm49_vm2, %v6939_v59, %v6938_v5  ;;  %8072 = vmatpush3.bf16.msra.mxu0 %v5137_v3  ;;  %v5097_v47 = vunpack.c.h.b16 %v8460_v7  ;;  %v5363_v61 = vsel %vm132_vm6, %v11972_v24, %v11970_v55  ;;  %v12985_v45 = vld [vmem:[#allocation6_spill] sm:$0xff]  ;;  %v8463_v55 = vld [vmem:[%s12937_s0 + $0x58] ss:$0 sps:$4 sm:$0x11]  }
 0x1f0   :  { %v6941_v43 = vpack.c.b16 %v6940_v60, %v6940_v60  ;;  %8082 = vmatpush3.bf16.msra.mxu1 %v5359_v20  ;;  %v5098_v19 = vunpack.c.h.b16 %v8461_v63  ;;  %v5099_v14 = vunpack.c.h.b16 %v8462_v44  ;;  %8073 = vmatprep.subr.bf16.mxu0 %v12959_v1  ;;  %v5531_v59 = vpop.permute.xlu0 %5530  ;;  %v5365_v23 = vsel %vm136_vm7, %v5363_v61, %v12985_v45 }
 0x1f1   :  { %7164 = vrot.lane.b32.xlu1 %v12136_v58, %s8493_s30  ;;  %v5100_v24 = vunpack.c.h.b16 %v8463_v55  ;;  %8083 = vmatprep.subr.bf16.mxu1 %v12959_v1  ;;  %v5367_v36 = vsel %vm139_vm8, %v5365_v23, %v12005_v56  ;;  %v5502_v34 = vrot.slane %v11132_v26, 7  ;;  %v5504_v46 = vrot.slane %v11138_v57, 6  ;;  %v17_v56 = vld [vmem:[%s12939_s2] sm:$0xff]  ;;  %v5550_v8 = vpop.permute.xlu1 %5549  ;;  %v12986_v57 = vld [vmem:[#allocation7_spill] sm:$0xff] }
 0x1f2   :  { %v5101_v30 = vrot.slane %v5098_v19, 7  ;;  %v5103_v52 = vrot.slane %v5099_v14, 6  ;;  %v5506_v5 = vrot.slane %v11140_v27, 5  ;;  %v5810_v3 = vsel %vm132_vm6, %v11178_v11, %v12095_v49 }
 0x1f3   :  { %6942 = vrot.lane.b32.xlu0 %v6941_v43, %s8493_s30  ;;  %v5105_v21 = vrot.slane %v5100_v24, 5  ;;  %v5370_v26 = vsel %vm132_vm6, %v12053_v39, 0  ;;  %v5503_v27 = vsel %vm43_vm0, %v5502_v34, %v12986_v57  ;;  %v8497_v35 = vmov 0  }
 0x1f4   :  { %v5102_v40 = vsel %vm43_vm0, %v5101_v30, %v5097_v47  ;;  %8084 = vmatpush3.bf16.msra.mxu1 %v5367_v36  ;;  %8180 = vset.pattern.permute.xlu0 %v8497_v35  ;;  %v5812_v17 = vsel %vm136_vm7, %v5810_v3, %v5753_v13  ;;  %v5548_v11 = vpop.permute.xlu0 %5547  ;;  %v5141_v49 = vsel %vm132_vm6, %v11939_v0, %v11937_v2  ;;  %v6910_v63 = vunpack.c.h.b16 %v12026_v18 }
 0x1f5   :  { %v5104_v20 = vsel %vm46_vm1, %v5103_v52, %v5102_v40  ;;  %8085 = vmatprep.subr.bf16.mxu1 %v12959_v1  ;;  %v5505_v7 = vsel %vm46_vm1, %v5504_v46, %v5503_v27  ;;  %v5814_v61 = vsel %vm139_vm8, %v5812_v17, %v11296_v22  ;;  %v6911_v2 = vunpack.c.h.b16 %v12031_v51  ;;  %v8466_v40 = vld [vmem:[%s12937_s0 + $0x34] ss:$0 sps:$4 sm:$0x44]  }
 0x1f6   :  { %v5106_v60 = vsel %vm49_vm2, %v5105_v21, %v5104_v20  ;;  %v5507_v39 = vsel %vm49_vm2, %v5506_v5, %v5505_v7  ;;  %v6912_v0 = vunpack.c.h.b16 %v12045_v53  ;;  %v6913_v14 = vunpack.c.h.b16 %v12069_v12  ;;  %v12987_v21 = vld [vmem:[#allocation8_spill] sm:$0xff] }
 0x1f7   :  { %v5107_v47 = vpack.c.b16 %v5106_v60, %v5106_v60  ;;  %153 = vperm.xlu0 %8180, %v17_v56   ;;  %v5508_v43 = vpack.c.b16 %v5507_v39, %v5507_v39  ;;  %v6914_v45 = vrot.slane %v6911_v2, 7  ;;  %v5148_v18 = vsel %vm132_vm6, %v12071_v29, 0  ;;  %v8464_v29 = vld [vmem:[%s12937_s0 + $0x40] ss:$0 sps:$4 sm:$0x44]  }
 0x1f8   :  { %8086 = vmatpush3.bf16.msra.mxu1 %v5370_v26  ;;  %v6916_v23 = vrot.slane %v6912_v0, 6  ;;  %v6918_v53 = vrot.slane %v6913_v14, 5  ;;  %v6215_v55 = vunpack.c.h.b16 %v8464_v29  ;;  %v5596_v46 = vsel %vm132_vm6, %v5548_v11, %v5550_v8  ;;  %v8467_v26 = vld [vmem:[%s12937_s0 + $0x58] ss:$0 sps:$4 sm:$0x44]   ;;  %v12241_v11 = vpop.f32.mrb[4].mxu0 }
 0x1f9   :  { %v5143_v13 = vsel %vm136_vm7, %v5141_v49, %v5107_v47  ;;  %8101 = vmatprep.subr.bf16.mxu1 %v12959_v1  ;;  %v5588_v51 = vsel %vm132_vm6, %v5508_v43, %v12111_v41  ;;  %v6915_v24 = vsel %vm43_vm0, %v6914_v45, %v6910_v63  ;;  %v6214_v3 = vunpack.c.h.b16 %v8466_v40  ;;  %v7879_v60 = vpop.f32.mrb[5].mxu0  ;;  %v12251_v63 = vpop.f32.mrb[4].mxu1 }
 0x1fa   :  { %v5145_v19 = vsel %vm139_vm8, %v5143_v13, %v12033_v32  ;;  %v5788_v44 = vpop.permute.xlu1 %5787  ;;  %v5590_v12 = vsel %vm136_vm7, %v5588_v51, %v5531_v59  ;;  %v6917_v30 = vsel %vm46_vm1, %v6916_v23, %v6915_v24  ;;  %v6218_v56 = vrot.slane %v6215_v55, 7  ;;  %v649_v7 = vpop.f32.mrb[6].mxu0 }
 0x1fb   :  { %8074 = vmatpush3.bf16.msra.mxu0 %v5145_v19  ;;  %8088 = vmatmul.mubr.msk.bf16.vlgmr.msra.gmra.mrb[44].mxu1 %vm156_vm10, %v11841_v9  ;;  %v5786_v22 = vpop.permute.xlu0 %5785  ;;  %v12217_v52 = vsel %vm49_vm2, %v6918_v53, %v6917_v30  ;;  %v5592_v34 = vsel %vm139_vm8, %v5590_v12, %v12987_v21  ;;  %v5598_v8 = vsel %vm136_vm7, %v5596_v46, %v11400_v54  ;;  %v6217_v57 = vunpack.c.h.b16 %v8467_v26  ;;  %v7880_v43 = vpop.f32.mrb[7].mxu0 }
 0x1fc   :  { %8075 = vmatprep.subr.bf16.mxu0 %v12959_v1  ;;  %8102 = vmatpush3.bf16.msra.mxu1 %v5814_v61  ;;  %v5818_v32 = vsel %vm132_vm6, %v5786_v22, %v5788_v44  ;;  %v6219_v54 = vsel %vm54_vm3, %v6218_v56, %v6214_v3  ;;  %v7889_v2 = vpop.f32.mrb[5].mxu1  ;;  %v12255_v0 = vpop.f32.mrb[8].mxu0  ;;  %vm232_vm11 = vcmask 253952  }
 0x1fd   :  { %8103 = vmatprep.subr.bf16.mxu1 %v12959_v1  ;;  %8107 = vmatprep.mubr.msk.bf16.mxu1 %vm8496_vm9, %v12959_v1  ;;  %v5820_v41 = vsel %vm136_vm7, %v5818_v32, %v11381_v15  ;;  %v8465_v15 = vld [vmem:[%s12937_s0 + $0x4c] ss:$0 sps:$4 sm:$0x44]   ;;  %v6222_v39 = vrot.slane %v6217_v57, 5  ;;  %v882_v44 = vpop.f32.mrb[6].mxu1  ;;  %v7899_v14 = vpop.f32.mrb[9].mxu0 }
 0x1fe   :  { %v5805_v36 = vpop.permute.xlu1 %5804  ;;  %v6216_v5 = vunpack.c.h.b16 %v8465_v15  ;;  %v7890_v45 = vpop.f32.mrb[7].mxu1  ;;  %v12988_v44 = vld [vmem:[#allocation9_spill] sm:$0xff] }
 0x1ff   :  { %8076 = vmatpush3.bf16.msra.mxu0 %v5148_v18  ;;  %v5822_v59 = vsel %vm139_vm8, %v5820_v41, %v5805_v36  ;;  %v1104_v23 = vpop.f32.mrb[10].mxu0  ;;  %v12261_v32 = vpop.f32.mrb[8].mxu1 }
 0x200   :  { %8091 = vmatprep.subr.bf16.mxu0 %v12959_v1  ;;  %8104 = vmatpush3.bf16.msra.mxu1 %v5822_v59  ;;  %v6220_v17 = vrot.slane %v6216_v5, 6  ;;  %v7909_v53 = vpop.f32.mrb[9].mxu1  ;;  %v7900_v12 = vpop.f32.mrb[11].mxu0 }
 0x201   :  { %8105 = vmatprep.subr.bf16.mxu1 %v12959_v1  ;;  %v1326_v24 = vpop.f32.mrb[10].mxu1  ;;  %v12268_v30 = vpop.f32.mrb[12].mxu0 }
 0x202   :  { %8078 = vmatmul.mubr.msk.bf16.vlgmr.msra.gmra.mrb[44].mxu0 %vm156_vm10, %v11841_v9  ;;  %v6221_v13 = vsel %vm57_vm4, %v6220_v17, %v6219_v54  ;;  %v7910_v41 = vpop.f32.mrb[11].mxu1  ;;  %v7919_v46 = vpop.f32.mrb[13].mxu0 }
 0x203   :  { %8092 = vmatpush3.bf16.msra.mxu0 %v5592_v34  ;;  %v5583_v20 = vpop.permute.xlu0 %5582  ;;  %8097 = vmatprep.mubr.msk.bf16.mxu0 %vm8496_vm9, %v12959_v1  ;;  %v6223_v19 = vsel %vm60_vm5, %v6222_v39, %v6221_v13  ;;  %v1559_v5 = vpop.f32.mrb[14].mxu0 }
 0x204   :  { %v5600_v27 = vsel %vm139_vm8, %v5598_v8, %v5583_v20  ;;  %8093 = vmatprep.subr.bf16.mxu0 %v12959_v1  ;;  %v5807_v35 = vpop.permute.xlu1 %5806  ;;  %v6224_v51 = vpack.c.b16 %v6223_v19, %v6223_v19  ;;  %v12277_v3 = vpop.f32.mrb[12].mxu1 }
 0x205   :  { %v5825_v49 = vsel %vm132_vm6, %v5807_v35, 0  ;;  %v7929_v56 = vpop.f32.mrb[13].mxu1  ;;  %v7920_v8 = vpop.f32.mrb[15].mxu0 }
 0x206   :  { %8106 = vmatpush3.bf16.msra.mxu1 %v5825_v49  ;;  %v1781_v20 = vpop.f32.mrb[14].mxu1  ;;  %v12280_v57 = vpop.f32.mrb[16].mxu0 }
 0x207   :  { %8094 = vmatpush3.bf16.msra.mxu0 %v5600_v27  ;;  %v5585_v47 = vpop.permute.xlu0 %5584  ;;  %8121 = vmatprep.subr.bf16.mxu1 %v12959_v1  ;;  %v7930_v26 = vpop.f32.mrb[15].mxu1 }
 0x208   :  { %v5603_v61 = vsel %vm132_vm6, %v5585_v47, 0  ;;  %8095 = vmatprep.subr.bf16.mxu0 %v12959_v1  ;;  %v7939_v27 = vpop.f32.mrb[17].mxu0  ;;  %v12283_v49 = vpop.f32.mrb[16].mxu1 }
 0x209   :  { %8108 = vmatmul.mubr.msk.bf16.vlgmr.msra.gmra.mrb[48].mxu1 %vm156_vm10, %v11841_v9  ;;  %v2014_v54 = vpop.f32.mrb[18].mxu0  ;;  %v7949_v60 = vpop.f32.mrb[17].mxu1 }
 0x20a   :  { %8127 = vmatprep.mubr.msk.bf16.mxu1 %vm8496_vm9, %v12959_v1  ;;  %v7940_v7 = vpop.f32.mrb[19].mxu0  ;;  %v2236_v39 = vpop.f32.mrb[18].mxu1 }
 0x20b   :  { %8096 = vmatpush3.bf16.msra.mxu0 %v5603_v61  ;;  %v7950_v13 = vpop.f32.mrb[19].mxu1 }
 0x20c   :  { %v6199_v22 = vpop.permute.xlu1 %6198  ;;  %8111 = vmatprep.subr.bf16.mxu0 %v12959_v1 }
 0x20d   :  { %v6269_v29 = vsel %vm132_vm6, %v11463_v10, %v6199_v22 }
 0x20e   :  { %v5973_v18 = vpop.permute.xlu0 %5972  ;;  %8098 = vmatmul.mubr.msk.bf16.vlgmr.msra.gmra.mrb[48].mxu0 %vm156_vm10, %v11841_v9 }
 0x20f   :  { %8117 = vmatprep.mubr.msk.bf16.mxu0 %vm8496_vm9, %v12959_v1  ;;  %v6036_v59 = vsel %vm132_vm6, %v11471_v6, %v5973_v18 }
 0x210   :  { %v6201_v55 = vpop.permute.xlu1 %6200 }
 0x211   :  { %v6271_v36 = vsel %vm136_vm7, %v6269_v29, %v6201_v55 }
 0x212   :  { %v5975_v21 = vpop.permute.xlu0 %5974  ;;  %v6273_v34 = vsel %vm139_vm8, %v6271_v36, %v6224_v51 }
 0x213   :  { %v6038_v15 = vsel %vm136_vm7, %v6036_v59, %v5975_v21  ;;  %8122 = vmatpush3.bf16.msra.mxu1 %v6273_v34 }
 0x214   :  { %v6040_v10 = vsel %vm139_vm8, %v6038_v15, %v11498_v16  ;;  %v5994_v40 = vpop.permute.xlu1 %5993  ;;  %8123 = vmatprep.subr.bf16.mxu1 %v12959_v1 }
 0x215   :  { %8112 = vmatpush3.bf16.msra.mxu0 %v6040_v10 }
 0x216   :  { %v5992_v6 = vpop.permute.xlu0 %5991  ;;  %8113 = vmatprep.subr.bf16.mxu0 %v12959_v1 }
 0x217   :  { %v6044_v47 = vsel %vm132_vm6, %v5992_v6, %v5994_v40 }
 0x218   :  { %v6046_v14 = vsel %vm136_vm7, %v6044_v47, %v12988_v44 }
 0x21b   :  { %v6247_v35 = vpop.permute.xlu1 %6246  ;;  %v6238_v17 = vpop.permute.xlu0 %6237 }
 0x21c   :  { %v6277_v16 = vsel %vm132_vm6, %v6238_v17, %v6247_v35  ;;  %v12289_v19 = vpop.f32.mrb[20].mxu0  ;;  %v12297_v12 = vpop.f32.mrb[20].mxu1 }
 0x21d   :  { %v6279_v61 = vsel %vm136_vm7, %v6277_v16, %v11636_v37  ;;  %v7959_v45 = vpop.f32.mrb[21].mxu0  ;;  %v7969_v29 = vpop.f32.mrb[21].mxu1 }
 0x21e   :  { %v2462_v18 = vpop.f32.mrb[22].mxu0  ;;  %v2695_v24 = vpop.f32.mrb[22].mxu1 }
 0x21f   :  { %v6264_v43 = vpop.permute.xlu1 %6263  ;;  %v7960_v53 = vpop.f32.mrb[23].mxu0  ;;  %v12989_v24 = vld [vmem:[#allocation10_spill] sm:$0xff] }
 0x220   :  { %v6281_v2 = vsel %vm139_vm8, %v6279_v61, %v6264_v43  ;;  %v7970_v41 = vpop.f32.mrb[23].mxu1 }
 0x221   :  { %v6031_v22 = vpop.permute.xlu0 %6030  ;;  %8124 = vmatpush3.bf16.msra.mxu1 %v6281_v2 }
 0x222   :  { %v6048_v23 = vsel %vm139_vm8, %v6046_v14, %v6031_v22  ;;  %8125 = vmatprep.subr.bf16.mxu1 %v12959_v1 }
 0x223   :  { %8114 = vmatpush3.bf16.msra.mxu0 %v6048_v23  ;;  %v6266_v51 = vpop.permute.xlu1 %6265 }
 0x224   :  { %v6284_v37 = vsel %vm132_vm6, %v6266_v51, 0  ;;  %8115 = vmatprep.subr.bf16.mxu0 %v12959_v1 }
 0x225   :  { %8126 = vmatpush3.bf16.msra.mxu1 %v6284_v37 }
 0x226   :  { %v6033_v55 = vpop.permute.xlu0 %6032  ;;  %8141 = vmatprep.subr.bf16.mxu1 %v12959_v1 }
 0x227   :  { %v6051_v36 = vsel %vm132_vm6, %v6033_v55, 0 }
 0x228   :  { %8116 = vmatpush3.bf16.msra.mxu0 %v6051_v36  ;;  %8128 = vmatmul.mubr.msk.bf16.vlgmr.msra.gmra.mrb[52].mxu1 %vm156_vm10, %v11841_v9 }
 0x229   :  { %8131 = vmatprep.subr.bf16.mxu0 %v12959_v1  ;;  %8147 = vmatprep.mubr.msk.bf16.mxu1 %vm8496_vm9, %v12959_v1 }
 0x22a   :  { %v6654_v59 = vpop.permute.xlu1 %6653 }
 0x22b   :  { %8118 = vmatmul.mubr.msk.bf16.vlgmr.msra.gmra.mrb[52].mxu0 %vm156_vm10, %v11841_v9  ;;  %v6713_v34 = vsel %vm132_vm6, %v11727_v33, %v6654_v59 }
 0x22c   :  { %8137 = vmatprep.mubr.msk.bf16.mxu0 %vm8496_vm9, %v12959_v1  ;;  %v6432_v21 = vpop.permute.xlu0 %6431 }
 0x22d   :  { %v6491_v5 = vsel %vm132_vm6, %v11744_v62, %v6432_v21 }
 0x231   :  { %v6656_v46 = vpop.permute.xlu1 %6655 }
 0x232   :  { %v6715_v15 = vsel %vm136_vm7, %v6713_v34, %v6656_v46 }
 0x233   :  { %v6434_v10 = vpop.permute.xlu0 %6433  ;;  %v6717_v40 = vsel %vm139_vm8, %v6715_v15, %v11834_v48  ;;  %v6920_v15 = vpack.c.b16 %v12217_v52, %v12217_v52 }
 0x234   :  { %v6493_v56 = vsel %vm136_vm7, %v6491_v5, %v6434_v10  ;;  %8142 = vmatpush3.bf16.msra.mxu1 %v6717_v40 }
 0x235   :  { %v6495_v8 = vsel %vm139_vm8, %v6493_v56, %v11763_v42  ;;  %8143 = vmatprep.subr.bf16.mxu1 %v12959_v1  ;;  %v6453_v33 = vpop.permute.xlu1 %6452 }
 0x236   :  { %8132 = vmatpush3.bf16.msra.mxu0 %v6495_v8 }
 0x237   :  { %v6451_v6 = vpop.permute.xlu0 %6450  ;;  %8133 = vmatprep.subr.bf16.mxu0 %v12959_v1 }
 0x238   :  { %v12322_v20 = vpop.f32.mrb[24].mxu1  ;;  %v6499_v7 = vsel %vm132_vm6, %v6451_v6, %v6453_v33 }
 0x239   :  { %v12324_v62 = vpop.f32.mrb[24].mxu0  ;;  %v7989_v26 = vpop.f32.mrb[25].mxu1  ;;  %v6501_v61 = vsel %vm136_vm7, %v6499_v7, %v11921_v28 }
 0x23a   :  { %v7979_v27 = vpop.f32.mrb[25].mxu0  ;;  %v3139_v48 = vpop.f32.mrb[26].mxu1 }
 0x23b   :  { %v2917_v35 = vpop.f32.mrb[26].mxu0  ;;  %v7990_v17 = vpop.f32.mrb[27].mxu1 }
 0x23c   :  { %v7980_v16 = vpop.f32.mrb[27].mxu0 }
 0x23d   :  { %v6691_v54 = vpop.permute.xlu1 %6690  ;;  %v6689_v60 = vpop.permute.xlu0 %6688 }
 0x23e   :  { %v6721_v42 = vsel %vm132_vm6, %v6689_v60, %v6691_v54  ;;  %v8468_v60 = vld [vmem:[%s12938_s1] sm:$0xf]  ;;  %s8499_s1 = smov [#allocation2]  }
 0x23f   :  { %v6723_v39 = vsel %vm136_vm7, %v6721_v42, %v11918_v50  ;;  %v8498_v42 = vmov 1966171168   ;;  %s7296_s13 = sshll.u32 %s8499_s1, 4  ;;  %s7297_s13 = int_to_ptr.vmem [resolvable:$true] %s7296_s13 }
 0x240   :  { %v205_v7 = vunpack.c.l.s4 %v8498_v42  ;;  %s8469_s14 = scalar_lea.vmem %s7297_s13, 4096  ;;  %p8474_p1 = scmp.lt.s32.totalorder %s7297_s13, %s7297_s13 }
 0x241   :  { %v6708_v47 = vpop.permute.xlu1 %6707  ;;  %p8470_p0 = scmp.ne.s32.totalorder %s7297_s13, %s8469_s14  ;;  %p8475_p2 = scmp.lt.s32.totalorder %s8469_s14, %s8469_s14 }
 0x242   :  { %v6725_v43 = vsel %vm139_vm8, %v6723_v39, %v6708_v47  ;;  %v207_v47 = vlaneseq }
 0x243   :  { %v6486_v13 = vpop.permute.xlu0 %6485  ;;  %8144 = vmatpush3.bf16.msra.mxu1 %v6725_v43  ;;  %p8476_p3 = por %p8475_p2, %p8474_p1 }
 0x244   :  { %v6503_v2 = vsel %vm139_vm8, %v6501_v61, %v6486_v13  ;;  %8145 = vmatprep.subr.bf16.mxu1 %v12959_v1  ;;  %v208_v39 = vshrl.u32 %v207_v47, 7  ;;  %v12990_v13 = vld [vmem:[#allocation11_spill] sm:$0xff] }
 0x245   :  { %8134 = vmatpush3.bf16.msra.mxu0 %v6503_v2  ;;  %v6710_v44 = vpop.permute.xlu1 %6709  ;;  %p8477_p4 = pnand %p8476_p3, %p8470_p0 }
 0x246   :  { %v6728_v14 = vsel %vm132_vm6, %v6710_v44, 0  ;;  %8135 = vmatprep.subr.bf16.mxu0 %v12959_v1 }
 0x247   :  { %v6488_v22 = vpop.permute.xlu0 %6487  ;;  %8146 = vmatpush3.bf16.msra.mxu1 %v6728_v14 }
 0x248   :  { %v6506_v50 = vsel %vm132_vm6, %v6488_v22, 0  ;;  %8161 = vmatprep.subr.bf16.mxu1 %v12959_v1 }
 0x249   :  { %8136 = vmatpush3.bf16.msra.mxu0 %v6506_v50 }
 0x24a   :  { %8151 = vmatprep.subr.bf16.mxu0 %v12959_v1  ;;  %8148 = vmatmul.mubr.msk.bf16.vlgmr.msra.gmra.mrb[56].mxu1 %vm156_vm10, %v11841_v9 }
 0x24b   :  { %v7109_v28 = vpop.permute.xlu1 %7108  ;;  %8167 = vmatprep.mubr.msk.bf16.mxu1 %vm8496_vm9, %v12959_v1 }
 0x24c   :  { %8138 = vmatmul.mubr.msk.bf16.vlgmr.msra.gmra.mrb[56].mxu0 %vm156_vm10, %v11841_v9  ;;  %v7168_v23 = vsel %vm132_vm6, %v11974_v25, %v7109_v28 }
 0x24d   :  { %8157 = vmatprep.mubr.msk.bf16.mxu0 %vm8496_vm9, %v12959_v1 }
 0x24e   :  { %v6876_v45 = vpop.permute.xlu0 %6875 }
 0x24f   :  { %v7111_v18 = vpop.permute.xlu1 %7110  ;;  %v6946_v37 = vsel %vm132_vm6, %v11990_v38, %v6876_v45 }
 0x250   :  { %v7170_v51 = vsel %vm136_vm7, %v7168_v23, %v7111_v18 }
 0x251   :  { %v7172_v53 = vsel %vm139_vm8, %v7170_v51, %v12085_v31 }
 0x252   :  { %v6878_v29 = vpop.permute.xlu0 %6877  ;;  %8162 = vmatpush3.bf16.msra.mxu1 %v7172_v53 }
 0x253   :  { %v6948_v55 = vsel %vm136_vm7, %v6946_v37, %v6878_v29  ;;  %8163 = vmatprep.subr.bf16.mxu1 %v12959_v1 }
 0x254   :  { %v6950_v36 = vsel %vm139_vm8, %v6948_v55, %v12989_v24  ;;  %v6897_v25 = vpop.permute.xlu1 %6896 }
 0x255   :  { %8152 = vmatpush3.bf16.msra.mxu0 %v6950_v36 }
 0x256   :  { %v6895_v41 = vpop.permute.xlu0 %6894  ;;  %8153 = vmatprep.subr.bf16.mxu0 %v12959_v1 }
 0x257   :  { %v6954_v10 = vsel %vm132_vm6, %v6895_v41, %v6897_v25 }
 0x258   :  { %v6956_v33 = vsel %vm136_vm7, %v6954_v10, %v6920_v15 }
 0x259   :  { %v12360_v59 = vpop.f32.mrb[28].mxu1 }
 0x25a   :  { %v8009_v31 = vpop.f32.mrb[29].mxu1 }
 0x25b   :  { %v7146_v21 = vpop.permute.xlu1 %7145  ;;  %v7144_v34 = vpop.permute.xlu0 %7143 }
 0x25c   :  { %v7176_v38 = vsel %vm132_vm6, %v7144_v34, %v7146_v21  ;;  %v3594_v46 = vpop.f32.mrb[30].mxu1 }
 0x25d   :  { %v8010_v5 = vpop.f32.mrb[31].mxu1  ;;  %v7178_v56 = vsel %vm136_vm7, %v7176_v38, %v12136_v58 }
 0x25f   :  { %v7163_v40 = vpop.permute.xlu1 %7162 }
 0x260   :  { %v7180_v8 = vsel %vm139_vm8, %v7178_v56, %v7163_v40 }
 0x261   :  { %v6934_v6 = vpop.permute.xlu0 %6933  ;;  %8164 = vmatpush3.bf16.msra.mxu1 %v7180_v8 }
 0x262   :  { %v6958_v26 = vsel %vm139_vm8, %v6956_v33, %v6934_v6  ;;  %8165 = vmatprep.subr.bf16.mxu1 %v12959_v1  ;;  %v12372_v27 = vpop.f32.mrb[28].mxu0 }
 0x263   :  { %8154 = vmatpush3.bf16.msra.mxu0 %v6958_v26  ;;  %v7165_v52 = vpop.permute.xlu1 %7164  ;;  %v7999_v48 = vpop.f32.mrb[29].mxu0 }
 0x264   :  { %v7183_v35 = vsel %vm132_vm6, %v7165_v52, 0  ;;  %8155 = vmatprep.subr.bf16.mxu0 %v12959_v1  ;;  %v3372_v58 = vpop.f32.mrb[30].mxu0  ;;  %v206_v1 = vunpack.c.0.s8 %v205_v7 }
 0x265   :  { %v6943_v17 = vpop.permute.xlu0 %6942  ;;  %8166 = vmatpush3.bf16.msra.mxu1 %v7183_v35  ;;  %v8000_v16 = vpop.f32.mrb[31].mxu0 }
 0x266   :  { %v6961_v54 = vsel %vm132_vm6, %v6943_v17, 0  ;;  %v12383_v43 = vsub.s32 %v206_v1, %v208_v39 }
 0x267   :  { %8156 = vmatpush3.bf16.msra.mxu0 %v6961_v54 }
 0x268   :  { %8168 = vmatmul.mubr.msk.bf16.vlgmr.msra.gmra.mrb[60].mxu1 %vm156_vm10, %v11841_v9 }
 0x26a   :  { %8158 = vmatmul.mubr.msk.bf16.vlgmr.msra.gmra.mrb[60].mxu0 %vm156_vm10, %v8468_v60 }
 0x276   :  { %v12385_v61 = vpop.permute.xlu0 %153 }
 0x277   :  { %v198_v2 = vadd.f32 %v12990_v13, %v12385_v61  ;;  %v421_v9 = vadd.f32 %v12117_v4, %v12385_v61  ;;  %v647_v44 = vadd.f32 %v12241_v11, %v12385_v61  ;;  %v12395_v14 = vadd.f32 %v12251_v63, %v12385_v61 }
 0x278   :  { %v12399_v22 = vadd.f32 %v12255_v0, %v12385_v61  ;;  %v12403_v50 = vadd.f32 %v12261_v32, %v12385_v61  ;;  %v12407_v28 = vadd.f32 %v12268_v30, %v12385_v61  ;;  %v12411_v4 = vadd.f32 %v12277_v3, %v12385_v61 }
 0x279   :  { %v210_v11 = vrot.slane %v198_v2, %v12383_v43  ;;  %v237_v63 = vcombine.high %v198_v2, %v198_v2  ;;  %v433_v45 = vrot.slane %v421_v9, %v12383_v43  ;;  %v459_v23 = vcombine.high %v421_v9, %v421_v9 }
 0x27a   :  { %v659_v0 = vrot.slane %v647_v44, %v12383_v43  ;;  %v685_v18 = vcombine.high %v647_v44, %v647_v44  ;;  %v12418_v32 = vrot.slane %v12395_v14, %v12383_v43  ;;  %v918_v30 = vcombine.high %v12395_v14, %v12395_v14  ;;  %v12422_v51 = vpop.f32.mrb[32].mxu0 }
 0x27b   :  { %v211_v3 = vcombine.high %v210_v11, %v210_v11  ;;  %v218_v53 = vrot.slane %v210_v11, %v12383_v43  ;;  %v244_v37 = vrot.slane %v237_v63, %v12383_v43  ;;  %v434_v29 = vcombine.high %v433_v45, %v433_v45  ;;  %v12426_v55 = vpop.f32.mrb[32].mxu1  ;;  %v8019_v24 = vpop.f32.mrb[33].mxu0 }
 0x27c   :  { %v441_v36 = vrot.slane %v433_v45, %v12383_v43  ;;  %v466_v25 = vrot.slane %v459_v23, %v12383_v43  ;;  %v660_v41 = vcombine.high %v659_v0, %v659_v0  ;;  %v667_v31 = vrot.slane %v659_v0, %v12383_v43  ;;  %v8029_v21 = vpop.f32.mrb[33].mxu1  ;;  %v3828_v34 = vpop.f32.mrb[34].mxu0 }
 0x27d   :  { %v225_v38 = vrot.slane %v211_v3, %v12383_v43  ;;  %v226_v46 = vcombine.high %v218_v53, %v218_v53  ;;  %233 = vst.msk [vmem:[#allocation2] sm:$0x1] %vm232_vm11, %v218_v53  ;;  %v245_v15 = vcombine.high %v244_v37, %v244_v37  ;;  %v252_v5 = vrot.slane %v244_v37, %v12383_v43  ;;  %v4051_v10 = vpop.f32.mrb[34].mxu1  ;;  %v8020_v40 = vpop.f32.mrb[35].mxu0 }
 0x27e   :  { %v448_v56 = vrot.slane %v434_v29, %v12383_v43  ;;  %v449_v8 = vcombine.high %v441_v36, %v441_v36  ;;  %455 = vst.msk [vmem:[#allocation2 + $0x2] sm:$0x1] %vm232_vm11, %v441_v36  ;;  %v467_v33 = vcombine.high %v466_v25, %v466_v25  ;;  %v474_v6 = vrot.slane %v466_v25, %v12383_v43  ;;  %v8030_v26 = vpop.f32.mrb[35].mxu1 }
 0x27f   :  { %681 = vst.msk [vmem:[#allocation2 + $0x4] sm:$0x1] %vm232_vm11, %v667_v31  ;;  %v227_v52 = vcombine.high %v225_v38, %v225_v38  ;;  %234 = vst.msk [vmem:[#allocation2 + $0x20] sm:$0x1] %vm232_vm11, %v225_v38  ;;  %v259_v48 = vrot.slane %v245_v15, %v12383_v43  ;;  %v260_v35 = vcombine.high %v252_v5, %v252_v5 }
 0x280   :  { %235 = vst.msk [vmem:[#allocation2 + $0x40] sm:$0x1] %vm232_vm11, %v226_v46  ;;  %266 = vst.msk [vmem:[#allocation2 + $0x1] sm:$0x1] %vm232_vm11, %v252_v5  ;;  %v674_v58 = vrot.slane %v660_v41, %v12383_v43  ;;  %v450_v17 = vcombine.high %v448_v56, %v448_v56  ;;  %v481_v16 = vrot.slane %v467_v33, %v12383_v43 }
 0x281   :  { %456 = vst.msk [vmem:[#allocation2 + $0x22] sm:$0x1] %vm232_vm11, %v448_v56  ;;  %457 = vst.msk [vmem:[#allocation2 + $0x42] sm:$0x1] %vm232_vm11, %v449_v8  ;;  %v482_v54 = vcombine.high %v474_v6, %v474_v6  ;;  %v675_v60 = vcombine.high %v667_v31, %v667_v31  ;;  %v261_v42 = vcombine.high %v259_v48, %v259_v48 }
 0x282   :  { %488 = vst.msk [vmem:[#allocation2 + $0x3] sm:$0x1] %vm232_vm11, %v474_v6  ;;  %236 = vst.msk [vmem:[#allocation2 + $0x60] sm:$0x1] %vm232_vm11, %v227_v52  ;;  %v676_v7 = vcombine.high %v674_v58, %v674_v58  ;;  %v692_v47 = vrot.slane %v685_v18, %v12383_v43  ;;  %v893_v1 = vcombine.high %v12418_v32, %v12418_v32 }
 0x283   :  { %267 = vst.msk [vmem:[#allocation2 + $0x21] sm:$0x1] %vm232_vm11, %v259_v48  ;;  %268 = vst.msk [vmem:[#allocation2 + $0x41] sm:$0x1] %vm232_vm11, %v260_v35  ;;  %v483_v39 = vcombine.high %v481_v16, %v481_v16  ;;  %v900_v13 = vrot.slane %v12418_v32, %v12383_v43  ;;  %v925_v2 = vrot.slane %v918_v30, %v12383_v43 }
 0x284   :  { %682 = vst.msk [vmem:[#allocation2 + $0x24] sm:$0x1] %vm232_vm11, %v674_v58  ;;  %458 = vst.msk [vmem:[#allocation2 + $0x62] sm:$0x1] %vm232_vm11, %v450_v17  ;;  %v1114_v9 = vrot.slane %v12399_v22, %v12383_v43  ;;  %v693_v44 = vcombine.high %v692_v47, %v692_v47  ;;  %v700_v14 = vrot.slane %v692_v47, %v12383_v43 }
 0x285   :  { %489 = vst.msk [vmem:[#allocation2 + $0x23] sm:$0x1] %vm232_vm11, %v481_v16  ;;  %490 = vst.msk [vmem:[#allocation2 + $0x43] sm:$0x1] %vm232_vm11, %v482_v54  ;;  %v907_v11 = vrot.slane %v893_v1, %v12383_v43  ;;  %v1140_v63 = vcombine.high %v12399_v22, %v12399_v22  ;;  %v908_v45 = vcombine.high %v900_v13, %v900_v13 }
 0x286   :  { %683 = vst.msk [vmem:[#allocation2 + $0x44] sm:$0x1] %vm232_vm11, %v675_v60  ;;  %269 = vst.msk [vmem:[#allocation2 + $0x61] sm:$0x1] %vm232_vm11, %v261_v42  ;;  %v926_v23 = vcombine.high %v925_v2, %v925_v2  ;;  %v933_v0 = vrot.slane %v925_v2, %v12383_v43  ;;  %v1115_v18 = vcombine.high %v1114_v9, %v1114_v9 }
 0x287   :  { %684 = vst.msk [vmem:[#allocation2 + $0x64] sm:$0x1] %vm232_vm11, %v676_v7  ;;  %491 = vst.msk [vmem:[#allocation2 + $0x63] sm:$0x1] %vm232_vm11, %v483_v39  ;;  %v707_v32 = vrot.slane %v693_v44, %v12383_v43  ;;  %v708_v30 = vcombine.high %v700_v14, %v700_v14  ;;  %v909_v3 = vcombine.high %v907_v11, %v907_v11 }
 0x288   :  { %914 = vst.msk [vmem:[#allocation2 + $0x6] sm:$0x1] %vm232_vm11, %v900_v13  ;;  %714 = vst.msk [vmem:[#allocation2 + $0x5] sm:$0x1] %vm232_vm11, %v700_v14  ;;  %v1122_v53 = vrot.slane %v1114_v9, %v12383_v43  ;;  %v940_v22 = vrot.slane %v926_v23, %v12383_v43  ;;  %v941_v37 = vcombine.high %v933_v0, %v933_v0 }
 0x289   :  { %915 = vst.msk [vmem:[#allocation2 + $0x26] sm:$0x1] %vm232_vm11, %v907_v11  ;;  %916 = vst.msk [vmem:[#allocation2 + $0x46] sm:$0x1] %vm232_vm11, %v908_v45  ;;  %v1129_v29 = vrot.slane %v1115_v18, %v12383_v43  ;;  %v1147_v24 = vrot.slane %v1140_v63, %v12383_v43  ;;  %v709_v36 = vcombine.high %v707_v32, %v707_v32 }
 0x28a   :  { %947 = vst.msk [vmem:[#allocation2 + $0x7] sm:$0x1] %vm232_vm11, %v933_v0  ;;  %715 = vst.msk [vmem:[#allocation2 + $0x25] sm:$0x1] %vm232_vm11, %v707_v32  ;;  %v1130_v25 = vcombine.high %v1122_v53, %v1122_v53  ;;  %v1336_v41 = vrot.slane %v12403_v50, %v12383_v43  ;;  %v1362_v31 = vcombine.high %v12403_v50, %v12403_v50 }
 0x28b   :  { %716 = vst.msk [vmem:[#allocation2 + $0x45] sm:$0x1] %vm232_vm11, %v708_v30  ;;  %917 = vst.msk [vmem:[#allocation2 + $0x66] sm:$0x1] %vm232_vm11, %v909_v3  ;;  %v942_v21 = vcombine.high %v940_v22, %v940_v22  ;;  %v1131_v34 = vcombine.high %v1129_v29, %v1129_v29  ;;  %v1148_v38 = vcombine.high %v1147_v24, %v1147_v24 }
 0x28c   :  { %1136 = vst.msk [vmem:[#allocation2 + $0x8] sm:$0x1] %vm232_vm11, %v1122_v53  ;;  %948 = vst.msk [vmem:[#allocation2 + $0x27] sm:$0x1] %vm232_vm11, %v940_v22  ;;  %v1155_v46 = vrot.slane %v1147_v24, %v12383_v43  ;;  %v1337_v15 = vcombine.high %v1336_v41, %v1336_v41  ;;  %v1344_v5 = vrot.slane %v1336_v41, %v12383_v43 }
 0x28d   :  { %949 = vst.msk [vmem:[#allocation2 + $0x47] sm:$0x1] %vm232_vm11, %v941_v37  ;;  %1137 = vst.msk [vmem:[#allocation2 + $0x28] sm:$0x1] %vm232_vm11, %v1129_v29  ;;  %v1369_v50 = vrot.slane %v1362_v31, %v12383_v43  ;;  %v1569_v10 = vrot.slane %v12407_v28, %v12383_v43  ;;  %v1162_v40 = vrot.slane %v1148_v38, %v12383_v43 }
 0x28e   :  { %717 = vst.msk [vmem:[#allocation2 + $0x65] sm:$0x1] %vm232_vm11, %v709_v36  ;;  %1138 = vst.msk [vmem:[#allocation2 + $0x48] sm:$0x1] %vm232_vm11, %v1130_v25  ;;  %v1163_v56 = vcombine.high %v1155_v46, %v1155_v46  ;;  %v1595_v8 = vcombine.high %v12407_v28, %v12407_v28  ;;  %v1791_v33 = vrot.slane %v12411_v4, %v12383_v43 }
 0x28f   :  { %950 = vst.msk [vmem:[#allocation2 + $0x67] sm:$0x1] %vm232_vm11, %v942_v21  ;;  %1139 = vst.msk [vmem:[#allocation2 + $0x68] sm:$0x1] %vm232_vm11, %v1131_v34  ;;  %v1351_v6 = vrot.slane %v1337_v15, %v12383_v43  ;;  %v1352_v26 = vcombine.high %v1344_v5, %v1344_v5  ;;  %v1370_v52 = vcombine.high %v1369_v50, %v1369_v50 }
 0x290   :  { %1169 = vst.msk [vmem:[#allocation2 + $0x9] sm:$0x1] %vm232_vm11, %v1155_v46  ;;  %1358 = vst.msk [vmem:[#allocation2 + $0xa] sm:$0x1] %vm232_vm11, %v1344_v5  ;;  %v1377_v48 = vrot.slane %v1369_v50, %v12383_v43  ;;  %v1164_v35 = vcombine.high %v1162_v40, %v1162_v40  ;;  %v1570_v58 = vcombine.high %v1569_v10, %v1569_v10 }
 0x291   :  { %1170 = vst.msk [vmem:[#allocation2 + $0x29] sm:$0x1] %vm232_vm11, %v1162_v40  ;;  %1171 = vst.msk [vmem:[#allocation2 + $0x49] sm:$0x1] %vm232_vm11, %v1163_v56  ;;  %v1577_v17 = vrot.slane %v1569_v10, %v12383_v43  ;;  %v1602_v28 = vrot.slane %v1595_v8, %v12383_v43  ;;  %v1353_v16 = vcombine.high %v1351_v6, %v1351_v6 }
 0x292   :  { %1359 = vst.msk [vmem:[#allocation2 + $0x2a] sm:$0x1] %vm232_vm11, %v1351_v6  ;;  %1360 = vst.msk [vmem:[#allocation2 + $0x4a] sm:$0x1] %vm232_vm11, %v1352_v26  ;;  %v1384_v54 = vrot.slane %v1370_v52, %v12383_v43  ;;  %v1385_v60 = vcombine.high %v1377_v48, %v1377_v48  ;;  %v1792_v42 = vcombine.high %v1791_v33, %v1791_v33 }
 0x293   :  { %1391 = vst.msk [vmem:[#allocation2 + $0xb] sm:$0x1] %vm232_vm11, %v1377_v48  ;;  %1172 = vst.msk [vmem:[#allocation2 + $0x69] sm:$0x1] %vm232_vm11, %v1164_v35  ;;  %v1584_v7 = vrot.slane %v1570_v58, %v12383_v43  ;;  %v1585_v47 = vcombine.high %v1577_v17, %v1577_v17  ;;  %v1603_v1 = vcombine.high %v1602_v28, %v1602_v28 }
 0x294   :  { %1591 = vst.msk [vmem:[#allocation2 + $0xc] sm:$0x1] %vm232_vm11, %v1577_v17  ;;  %v1610_v39 = vrot.slane %v1602_v28, %v12383_v43  ;;  %1361 = vst.msk [vmem:[#allocation2 + $0x6a] sm:$0x1] %vm232_vm11, %v1353_v16  ;;  %v1386_v13 = vcombine.high %v1384_v54, %v1384_v54  ;;  %v1799_v2 = vrot.slane %v1791_v33, %v12383_v43 }
 0x295   :  { %1392 = vst.msk [vmem:[#allocation2 + $0x2b] sm:$0x1] %vm232_vm11, %v1384_v54  ;;  %1393 = vst.msk [vmem:[#allocation2 + $0x4b] sm:$0x1] %vm232_vm11, %v1385_v60  ;;  %v1806_v9 = vrot.slane %v1792_v42, %v12383_v43  ;;  %v1817_v44 = vcombine.high %v12411_v4, %v12411_v4  ;;  %v1586_v14 = vcombine.high %v1584_v7, %v1584_v7 }
 0x296   :  { %1592 = vst.msk [vmem:[#allocation2 + $0x2c] sm:$0x1] %vm232_vm11, %v1584_v7  ;;  %1593 = vst.msk [vmem:[#allocation2 + $0x4c] sm:$0x1] %vm232_vm11, %v1585_v47  ;;  %v1617_v11 = vrot.slane %v1603_v1, %v12383_v43  ;;  %v1618_v63 = vcombine.high %v1610_v39, %v1610_v39  ;;  %v2012_v45 = vadd.f32 %v12280_v57, %v12385_v61 }
 0x297   :  { %1624 = vst.msk [vmem:[#allocation2 + $0xd] sm:$0x1] %vm232_vm11, %v1610_v39  ;;  %1394 = vst.msk [vmem:[#allocation2 + $0x6b] sm:$0x1] %vm232_vm11, %v1386_v13  ;;  %v1807_v23 = vcombine.high %v1799_v2, %v1799_v2  ;;  %v1808_v0 = vcombine.high %v1806_v9, %v1806_v9  ;;  %v1824_v4 = vrot.slane %v1817_v44, %v12383_v43 }
 0x298   :  { %1813 = vst.msk [vmem:[#allocation2 + $0xe] sm:$0x1] %vm232_vm11, %v1799_v2  ;;  %1814 = vst.msk [vmem:[#allocation2 + $0x2e] sm:$0x1] %vm232_vm11, %v1806_v9  ;;  %v2234_v18 = vadd.f32 %v12283_v49, %v12385_v61  ;;  %v1619_v32 = vcombine.high %v1617_v11, %v1617_v11  ;;  %v2024_v57 = vrot.slane %v2012_v45, %v12383_v43 }
 0x299   :  { %1594 = vst.msk [vmem:[#allocation2 + $0x6c] sm:$0x1] %vm232_vm11, %v1586_v14  ;;  %1625 = vst.msk [vmem:[#allocation2 + $0x2d] sm:$0x1] %vm232_vm11, %v1617_v11  ;;  %v2050_v30 = vcombine.high %v2012_v45, %v2012_v45  ;;  %v2460_v3 = vadd.f32 %v12289_v19, %v12385_v61  ;;  %v1825_v53 = vcombine.high %v1824_v4, %v1824_v4 }
 0x29a   :  { %1626 = vst.msk [vmem:[#allocation2 + $0x4d] sm:$0x1] %vm232_vm11, %v1618_v63  ;;  %1815 = vst.msk [vmem:[#allocation2 + $0x4e] sm:$0x1] %vm232_vm11, %v1807_v23  ;;  %v1832_v49 = vrot.slane %v1824_v4, %v12383_v43  ;;  %v2246_v22 = vrot.slane %v2234_v18, %v12383_v43  ;;  %v2272_v37 = vcombine.high %v2234_v18, %v2234_v18 }
 0x29b   :  { %1816 = vst.msk [vmem:[#allocation2 + $0x6e] sm:$0x1] %vm232_vm11, %v1808_v0  ;;  %1627 = vst.msk [vmem:[#allocation2 + $0x6d] sm:$0x1] %vm232_vm11, %v1619_v32  ;;  %v2025_v29 = vcombine.high %v2024_v57, %v2024_v57  ;;  %v2032_v24 = vrot.slane %v2024_v57, %v12383_v43  ;;  %v2057_v36 = vrot.slane %v2050_v30, %v12383_v43 }
 0x29c   :  { %v2472_v25 = vrot.slane %v2460_v3, %v12383_v43  ;;  %v1839_v19 = vrot.slane %v1825_v53, %v12383_v43  ;;  %v1840_v41 = vcombine.high %v1832_v49, %v1832_v49  ;;  %1846 = vst.msk [vmem:[#allocation2 + $0xf] sm:$0x1] %vm232_vm11, %v1832_v49  ;;  %v2247_v31 = vcombine.high %v2246_v22, %v2246_v22  ;;  %v12591_v13 = vpop.f32.mrb[36].mxu0  ;;  %v12593_v2 = vpop.f32.mrb[36].mxu1 }
 0x29d   :  { %v2254_v21 = vrot.slane %v2246_v22, %v12383_v43  ;;  %v2039_v34 = vrot.slane %v2025_v29, %v12383_v43  ;;  %v2040_v38 = vcombine.high %v2032_v24, %v2032_v24  ;;  %2046 = vst.msk [vmem:[#allocation2 + $0x10] sm:$0x1] %vm232_vm11, %v2032_v24  ;;  %v2058_v46 = vcombine.high %v2057_v36, %v2057_v36  ;;  %v8039_v11 = vpop.f32.mrb[37].mxu0  ;;  %v8049_v63 = vpop.f32.mrb[37].mxu1 }
 0x29e   :  { %v2065_v15 = vrot.slane %v2057_v36, %v12383_v43  ;;  %v1841_v5 = vcombine.high %v1839_v19, %v1839_v19  ;;  %1847 = vst.msk [vmem:[#allocation2 + $0x2f] sm:$0x1] %vm232_vm11, %v1839_v19  ;;  %1848 = vst.msk [vmem:[#allocation2 + $0x4f] sm:$0x1] %vm232_vm11, %v1840_v41  ;;  %v2261_v50 = vrot.slane %v2247_v31, %v12383_v43  ;;  %v4277_v18 = vpop.f32.mrb[38].mxu0  ;;  %v4510_v32 = vpop.f32.mrb[38].mxu1 }
 0x29f   :  { %v2262_v10 = vcombine.high %v2254_v21, %v2254_v21  ;;  %2268 = vst.msk [vmem:[#allocation2 + $0x12] sm:$0x1] %vm232_vm11, %v2254_v21  ;;  %v2279_v40 = vrot.slane %v2272_v37, %v12383_v43  ;;  %v2041_v56 = vcombine.high %v2039_v34, %v2039_v34  ;;  %2047 = vst.msk [vmem:[#allocation2 + $0x30] sm:$0x1] %vm232_vm11, %v2039_v34  ;;  %v8040_v53 = vpop.f32.mrb[39].mxu0  ;;  %v8050_v49 = vpop.f32.mrb[39].mxu1 }
 0x2a0   :  { %2048 = vst.msk [vmem:[#allocation2 + $0x50] sm:$0x1] %vm232_vm11, %v2040_v38  ;;  %v2072_v8 = vrot.slane %v2058_v46, %v12383_v43  ;;  %v2073_v33 = vcombine.high %v2065_v15, %v2065_v15  ;;  %2079 = vst.msk [vmem:[#allocation2 + $0x11] sm:$0x1] %vm232_vm11, %v2065_v15  ;;  %v2473_v6 = vcombine.high %v2472_v25, %v2472_v25 }
 0x2a1   :  { %1849 = vst.msk [vmem:[#allocation2 + $0x6f] sm:$0x1] %vm232_vm11, %v1841_v5  ;;  %v2263_v26 = vcombine.high %v2261_v50, %v2261_v50  ;;  %2269 = vst.msk [vmem:[#allocation2 + $0x32] sm:$0x1] %vm232_vm11, %v2261_v50  ;;  %v2280_v52 = vcombine.high %v2279_v40, %v2279_v40  ;;  %v2287_v48 = vrot.slane %v2279_v40, %v12383_v43 }
 0x2a2   :  { %2270 = vst.msk [vmem:[#allocation2 + $0x52] sm:$0x1] %vm232_vm11, %v2262_v10  ;;  %v2480_v35 = vrot.slane %v2472_v25, %v12383_v43  ;;  %2049 = vst.msk [vmem:[#allocation2 + $0x70] sm:$0x1] %vm232_vm11, %v2041_v56  ;;  %v2074_v58 = vcombine.high %v2072_v8, %v2072_v8  ;;  %v2487_v17 = vrot.slane %v2473_v6, %v12383_v43 }
 0x2a3   :  { %2080 = vst.msk [vmem:[#allocation2 + $0x31] sm:$0x1] %vm232_vm11, %v2072_v8  ;;  %2081 = vst.msk [vmem:[#allocation2 + $0x51] sm:$0x1] %vm232_vm11, %v2073_v33  ;;  %v2498_v28 = vcombine.high %v2460_v3, %v2460_v3  ;;  %v2693_v16 = vadd.f32 %v12297_v12, %v12385_v61  ;;  %v2294_v54 = vrot.slane %v2280_v52, %v12383_v43 }
 0x2a4   :  { %2271 = vst.msk [vmem:[#allocation2 + $0x72] sm:$0x1] %vm232_vm11, %v2263_v26  ;;  %v2295_v60 = vcombine.high %v2287_v48, %v2287_v48  ;;  %2301 = vst.msk [vmem:[#allocation2 + $0x13] sm:$0x1] %vm232_vm11, %v2287_v48  ;;  %v2488_v42 = vcombine.high %v2480_v35, %v2480_v35  ;;  %v2915_v7 = vadd.f32 %v12324_v62, %v12385_v61 }
 0x2a5   :  { %2494 = vst.msk [vmem:[#allocation2 + $0x14] sm:$0x1] %vm232_vm11, %v2480_v35  ;;  %2082 = vst.msk [vmem:[#allocation2 + $0x71] sm:$0x1] %vm232_vm11, %v2074_v58  ;;  %v2489_v47 = vcombine.high %v2487_v17, %v2487_v17  ;;  %v2505_v12 = vrot.slane %v2498_v28, %v12383_v43  ;;  %v2705_v1 = vrot.slane %v2693_v16, %v12383_v43 }
 0x2a6   :  { %2495 = vst.msk [vmem:[#allocation2 + $0x34] sm:$0x1] %vm232_vm11, %v2487_v17  ;;  %v2731_v39 = vcombine.high %v2693_v16, %v2693_v16  ;;  %v2296_v9 = vcombine.high %v2294_v54, %v2294_v54  ;;  %2302 = vst.msk [vmem:[#allocation2 + $0x33] sm:$0x1] %vm232_vm11, %v2294_v54  ;;  %v2927_v62 = vrot.slane %v2915_v7, %v12383_v43 }
 0x2a7   :  { %2303 = vst.msk [vmem:[#allocation2 + $0x53] sm:$0x1] %vm232_vm11, %v2295_v60  ;;  %2496 = vst.msk [vmem:[#allocation2 + $0x54] sm:$0x1] %vm232_vm11, %v2488_v42  ;;  %v2953_v44 = vcombine.high %v2915_v7, %v2915_v7  ;;  %v3137_v14 = vadd.f32 %v12322_v20, %v12385_v61  ;;  %v2506_v45 = vcombine.high %v2505_v12, %v2505_v12 }
 0x2a8   :  { %2497 = vst.msk [vmem:[#allocation2 + $0x74] sm:$0x1] %vm232_vm11, %v2489_v47  ;;  %v2513_v23 = vrot.slane %v2505_v12, %v12383_v43  ;;  %v2706_v0 = vcombine.high %v2705_v1, %v2705_v1  ;;  %v2713_v4 = vrot.slane %v2705_v1, %v12383_v43  ;;  %2304 = vst.msk [vmem:[#allocation2 + $0x73] sm:$0x1] %vm232_vm11, %v2296_v9 }
 0x2a9   :  { %v2738_v57 = vrot.slane %v2731_v39, %v12383_v43  ;;  %v2928_v30 = vcombine.high %v2927_v62, %v2927_v62  ;;  %v2935_v3 = vrot.slane %v2927_v62, %v12383_v43  ;;  %v2960_v20 = vrot.slane %v2953_v44, %v12383_v43 }
 0x2aa   :  { %v2520_v22 = vrot.slane %v2506_v45, %v12383_v43  ;;  %v2521_v37 = vcombine.high %v2513_v23, %v2513_v23  ;;  %2527 = vst.msk [vmem:[#allocation2 + $0x15] sm:$0x1] %vm232_vm11, %v2513_v23  ;;  %v2720_v29 = vrot.slane %v2706_v0, %v12383_v43  ;;  %v2721_v24 = vcombine.high %v2713_v4, %v2713_v4 }
 0x2ab   :  { %2727 = vst.msk [vmem:[#allocation2 + $0x16] sm:$0x1] %vm232_vm11, %v2713_v4  ;;  %v2739_v36 = vcombine.high %v2738_v57, %v2738_v57  ;;  %v2746_v25 = vrot.slane %v2738_v57, %v12383_v43  ;;  %v2942_v19 = vrot.slane %v2928_v30, %v12383_v43  ;;  %v2943_v41 = vcombine.high %v2935_v3, %v2935_v3 }
 0x2ac   :  { %2949 = vst.msk [vmem:[#allocation2 + $0x18] sm:$0x1] %vm232_vm11, %v2935_v3  ;;  %v2522_v31 = vcombine.high %v2520_v22, %v2520_v22  ;;  %2528 = vst.msk [vmem:[#allocation2 + $0x35] sm:$0x1] %vm232_vm11, %v2520_v22  ;;  %v2722_v21 = vcombine.high %v2720_v29, %v2720_v29  ;;  %v2961_v34 = vcombine.high %v2960_v20, %v2960_v20 }
 0x2ad   :  { %2529 = vst.msk [vmem:[#allocation2 + $0x55] sm:$0x1] %vm232_vm11, %v2521_v37  ;;  %2728 = vst.msk [vmem:[#allocation2 + $0x36] sm:$0x1] %vm232_vm11, %v2720_v29  ;;  %v2968_v38 = vrot.slane %v2960_v20, %v12383_v43  ;;  %v2753_v46 = vrot.slane %v2739_v36, %v12383_v43  ;;  %v2754_v15 = vcombine.high %v2746_v25, %v2746_v25 }
 0x2ae   :  { %2729 = vst.msk [vmem:[#allocation2 + $0x56] sm:$0x1] %vm232_vm11, %v2721_v24  ;;  %2760 = vst.msk [vmem:[#allocation2 + $0x17] sm:$0x1] %vm232_vm11, %v2746_v25  ;;  %v2944_v5 = vcombine.high %v2942_v19, %v2942_v19  ;;  %v3149_v50 = vrot.slane %v3137_v14, %v12383_v43  ;;  %v2975_v10 = vrot.slane %v2961_v34, %v12383_v43 }
 0x2af   :  { %2950 = vst.msk [vmem:[#allocation2 + $0x38] sm:$0x1] %vm232_vm11, %v2942_v19  ;;  %2951 = vst.msk [vmem:[#allocation2 + $0x58] sm:$0x1] %vm232_vm11, %v2943_v41  ;;  %v2976_v40 = vcombine.high %v2968_v38, %v2968_v38  ;;  %v3175_v56 = vcombine.high %v3137_v14, %v3137_v14  ;;  %v3370_v8 = vadd.f32 %v12372_v27, %v12385_v61 }
 0x2b0   :  { %2530 = vst.msk [vmem:[#allocation2 + $0x75] sm:$0x1] %vm232_vm11, %v2522_v31  ;;  %2730 = vst.msk [vmem:[#allocation2 + $0x76] sm:$0x1] %vm232_vm11, %v2722_v21  ;;  %v2755_v33 = vcombine.high %v2753_v46, %v2753_v46  ;;  %v3150_v6 = vcombine.high %v3149_v50, %v3149_v50  ;;  %v3157_v26 = vrot.slane %v3149_v50, %v12383_v43 }
 0x2b1   :  { %2982 = vst.msk [vmem:[#allocation2 + $0x19] sm:$0x1] %vm232_vm11, %v2968_v38  ;;  %2761 = vst.msk [vmem:[#allocation2 + $0x37] sm:$0x1] %vm232_vm11, %v2753_v46  ;;  %v3592_v52 = vadd.f32 %v12360_v59, %v12385_v61  ;;  %v2977_v48 = vcombine.high %v2975_v10, %v2975_v10  ;;  %v3182_v27 = vrot.slane %v3175_v56, %v12383_v43 }
 0x2b2   :  { %2762 = vst.msk [vmem:[#allocation2 + $0x57] sm:$0x1] %vm232_vm11, %v2754_v15  ;;  %2952 = vst.msk [vmem:[#allocation2 + $0x78] sm:$0x1] %vm232_vm11, %v2944_v5  ;;  %v3382_v35 = vrot.slane %v3370_v8, %v12383_v43  ;;  %v3408_v58 = vcombine.high %v3370_v8, %v3370_v8  ;;  %v3164_v17 = vrot.slane %v3150_v6, %v12383_v43 }
 0x2b3   :  { %2983 = vst.msk [vmem:[#allocation2 + $0x39] sm:$0x1] %vm232_vm11, %v2975_v10  ;;  %2984 = vst.msk [vmem:[#allocation2 + $0x59] sm:$0x1] %vm232_vm11, %v2976_v40  ;;  %v3165_v28 = vcombine.high %v3157_v26, %v3157_v26  ;;  %v3604_v16 = vrot.slane %v3592_v52, %v12383_v43  ;;  %v3630_v59 = vcombine.high %v3592_v52, %v3592_v52 }
 0x2b4   :  { %2763 = vst.msk [vmem:[#allocation2 + $0x77] sm:$0x1] %vm232_vm11, %v2755_v33  ;;  %3171 = vst.msk [vmem:[#allocation2 + $0x1a] sm:$0x1] %vm232_vm11, %v3157_v26  ;;  %v3183_v54 = vcombine.high %v3182_v27, %v3182_v27  ;;  %v3190_v60 = vrot.slane %v3182_v27, %v12383_v43  ;;  %v3383_v42 = vcombine.high %v3382_v35, %v3382_v35 }
 0x2b5   :  { %2985 = vst.msk [vmem:[#allocation2 + $0x79] sm:$0x1] %vm232_vm11, %v2977_v48  ;;  %v3390_v7 = vrot.slane %v3382_v35, %v12383_v43  ;;  %v3166_v47 = vcombine.high %v3164_v17, %v3164_v17  ;;  %3172 = vst.msk [vmem:[#allocation2 + $0x3a] sm:$0x1] %vm232_vm11, %v3164_v17  ;;  %v3415_v12 = vrot.slane %v3408_v58, %v12383_v43 }
 0x2b6   :  { %3173 = vst.msk [vmem:[#allocation2 + $0x5a] sm:$0x1] %vm232_vm11, %v3165_v28  ;;  %v3605_v1 = vcombine.high %v3604_v16, %v3604_v16  ;;  %v3612_v39 = vrot.slane %v3604_v16, %v12383_v43  ;;  %v3197_v9 = vrot.slane %v3183_v54, %v12383_v43  ;;  %v3198_v62 = vcombine.high %v3190_v60, %v3190_v60 }
 0x2b7   :  { %3204 = vst.msk [vmem:[#allocation2 + $0x1b] sm:$0x1] %vm232_vm11, %v3190_v60  ;;  %v3397_v44 = vrot.slane %v3383_v42, %v12383_v43  ;;  %v3398_v14 = vcombine.high %v3390_v7, %v3390_v7  ;;  %3404 = vst.msk [vmem:[#allocation2 + $0x1c] sm:$0x1] %vm232_vm11, %v3390_v7  ;;  %v3416_v11 = vcombine.high %v3415_v12, %v3415_v12 }
 0x2b8   :  { %3174 = vst.msk [vmem:[#allocation2 + $0x7a] sm:$0x1] %vm232_vm11, %v3166_v47  ;;  %v3423_v63 = vrot.slane %v3415_v12, %v12383_v43  ;;  %v3619_v45 = vrot.slane %v3605_v1, %v12383_v43  ;;  %v3620_v23 = vcombine.high %v3612_v39, %v3612_v39  ;;  %3626 = vst.msk [vmem:[#allocation2 + $0x1e] sm:$0x1] %vm232_vm11, %v3612_v39 }
 0x2b9   :  { %v3199_v0 = vcombine.high %v3197_v9, %v3197_v9  ;;  %3205 = vst.msk [vmem:[#allocation2 + $0x3b] sm:$0x1] %vm232_vm11, %v3197_v9  ;;  %3206 = vst.msk [vmem:[#allocation2 + $0x5b] sm:$0x1] %vm232_vm11, %v3198_v62  ;;  %v3399_v4 = vcombine.high %v3397_v44, %v3397_v44  ;;  %v3637_v18 = vrot.slane %v3630_v59, %v12383_v43  ;;  %v4951_v39 = vpop.f32.mrb[40].mxu1 }
 0x2ba   :  { %3405 = vst.msk [vmem:[#allocation2 + $0x3c] sm:$0x1] %vm232_vm11, %v3397_v44  ;;  %3406 = vst.msk [vmem:[#allocation2 + $0x5c] sm:$0x1] %vm232_vm11, %v3398_v14  ;;  %v3826_v32 = vadd.f32 %v12422_v51, %v12385_v61  ;;  %v3430_v57 = vrot.slane %v3416_v11, %v12383_v43  ;;  %v3431_v30 = vcombine.high %v3423_v63, %v3423_v63  ;;  %v4729_v62 = vpop.f32.mrb[40].mxu0  ;;  %v8069_v14 = vpop.f32.mrb[41].mxu1 }
 0x2bb   :  { %3437 = vst.msk [vmem:[#allocation2 + $0x1d] sm:$0x1] %vm232_vm11, %v3423_v63  ;;  %v3621_v3 = vcombine.high %v3619_v45, %v3619_v45  ;;  %3627 = vst.msk [vmem:[#allocation2 + $0x3e] sm:$0x1] %vm232_vm11, %v3619_v45  ;;  %v4049_v20 = vadd.f32 %v12426_v55, %v12385_v61  ;;  %v3638_v53 = vcombine.high %v3637_v18, %v3637_v18 }
 0x2bc   :  { %3628 = vst.msk [vmem:[#allocation2 + $0x5e] sm:$0x1] %vm232_vm11, %v3620_v23  ;;  %3207 = vst.msk [vmem:[#allocation2 + $0x7b] sm:$0x1] %vm232_vm11, %v3199_v0  ;;  %v3645_v51 = vrot.slane %v3637_v18, %v12383_v43  ;;  %v3838_v49 = vrot.slane %v3826_v32, %v12383_v43  ;;  %v3865_v22 = vcombine.high %v3826_v32, %v3826_v32  ;;  %v8059_v0 = vpop.f32.mrb[41].mxu0 }
 0x2bd   :  { %3407 = vst.msk [vmem:[#allocation2 + $0x7c] sm:$0x1] %vm232_vm11, %v3399_v4  ;;  %v3432_v37 = vcombine.high %v3430_v57, %v3430_v57  ;;  %3438 = vst.msk [vmem:[#allocation2 + $0x3d] sm:$0x1] %vm232_vm11, %v3430_v57  ;;  %v4061_v29 = vrot.slane %v4049_v20, %v12383_v43  ;;  %v4087_v55 = vcombine.high %v4049_v20, %v4049_v20  ;;  %v4954_v4 = vpop.f32.mrb[42].mxu1 }
 0x2be   :  { %3439 = vst.msk [vmem:[#allocation2 + $0x5d] sm:$0x1] %vm232_vm11, %v3431_v30  ;;  %3629 = vst.msk [vmem:[#allocation2 + $0x7e] sm:$0x1] %vm232_vm11, %v3621_v3  ;;  %v4275_v24 = vadd.f32 %v12591_v13, %v12385_v61  ;;  %v3652_v36 = vrot.slane %v3638_v53, %v12383_v43  ;;  %v3653_v25 = vcombine.high %v3645_v51, %v3645_v51  ;;  %v4732_v3 = vpop.f32.mrb[42].mxu0  ;;  %v8070_v20 = vpop.f32.mrb[43].mxu1 }
 0x2bf   :  { %3659 = vst.msk [vmem:[#allocation2 + $0x1f] sm:$0x1] %vm232_vm11, %v3645_v51  ;;  %v3839_v19 = vcombine.high %v3838_v49, %v3838_v49  ;;  %v3846_v41 = vrot.slane %v3838_v49, %v12383_v43  ;;  %3440 = vst.msk [vmem:[#allocation2 + $0x7d] sm:$0x1] %vm232_vm11, %v3432_v37  ;;  %v3872_v31 = vrot.slane %v3865_v22, %v12383_v43  ;;  %v8060_v37 = vpop.f32.mrb[43].mxu0 }
 0x2c0   :  { %v4062_v21 = vcombine.high %v4061_v29, %v4061_v29  ;;  %v4069_v34 = vrot.slane %v4061_v29, %v12383_v43  ;;  %v4094_v38 = vrot.slane %v4087_v55, %v12383_v43  ;;  %v3654_v46 = vcombine.high %v3652_v36, %v3652_v36  ;;  %3660 = vst.msk [vmem:[#allocation2 + $0x3f] sm:$0x1] %vm232_vm11, %v3652_v36 }
 0x2c1   :  { %3661 = vst.msk [vmem:[#allocation2 + $0x5f] sm:$0x1] %vm232_vm11, %v3653_v25  ;;  %v3853_v13 = vrot.slane %v3839_v19, %v12383_v43  ;;  %v3854_v15 = vcombine.high %v3846_v41, %v3846_v41  ;;  %3861 = vst.msk [vmem:[#allocation2 + $0x80] sm:$0x1] %vm232_vm11, %v3846_v41  ;;  %v4287_v5 = vrot.slane %v4275_v24, %v12383_v43 }
 0x2c2   :  { %v3873_v50 = vcombine.high %v3872_v31, %v3872_v31  ;;  %v3880_v10 = vrot.slane %v3872_v31, %v12383_v43  ;;  %v4076_v40 = vrot.slane %v4062_v21, %v12383_v43  ;;  %v4077_v56 = vcombine.high %v4069_v34, %v4069_v34  ;;  %4083 = vst.msk [vmem:[#allocation2 + $0x82] sm:$0x1] %vm232_vm11, %v4069_v34 }
 0x2c3   :  { %3662 = vst.msk [vmem:[#allocation2 + $0x7f] sm:$0x1] %vm232_vm11, %v3654_v46  ;;  %v3855_v8 = vcombine.high %v3853_v13, %v3853_v13  ;;  %3862 = vst.msk [vmem:[#allocation2 + $0xa0] sm:$0x1] %vm232_vm11, %v3853_v13  ;;  %v4095_v33 = vcombine.high %v4094_v38, %v4094_v38  ;;  %v4102_v6 = vrot.slane %v4094_v38, %v12383_v43 }
 0x2c4   :  { %3863 = vst.msk [vmem:[#allocation2 + $0xc0] sm:$0x1] %vm232_vm11, %v3854_v15  ;;  %v4288_v26 = vcombine.high %v4287_v5, %v4287_v5  ;;  %v3887_v52 = vrot.slane %v3873_v50, %v12383_v43  ;;  %v3888_v48 = vcombine.high %v3880_v10, %v3880_v10  ;;  %3894 = vst.msk [vmem:[#allocation2 + $0x81] sm:$0x1] %vm232_vm11, %v3880_v10 }
 0x2c5   :  { %v4078_v27 = vcombine.high %v4076_v40, %v4076_v40  ;;  %4084 = vst.msk [vmem:[#allocation2 + $0xa2] sm:$0x1] %vm232_vm11, %v4076_v40  ;;  %4085 = vst.msk [vmem:[#allocation2 + $0xc2] sm:$0x1] %vm232_vm11, %v4077_v56  ;;  %v4295_v35 = vrot.slane %v4287_v5, %v12383_v43  ;;  %v4109_v58 = vrot.slane %v4095_v33, %v12383_v43 }
 0x2c6   :  { %3864 = vst.msk [vmem:[#allocation2 + $0xe0] sm:$0x1] %vm232_vm11, %v3855_v8  ;;  %v4110_v17 = vcombine.high %v4102_v6, %v4102_v6  ;;  %4116 = vst.msk [vmem:[#allocation2 + $0x83] sm:$0x1] %vm232_vm11, %v4102_v6  ;;  %v4302_v28 = vrot.slane %v4288_v26, %v12383_v43  ;;  %v4313_v16 = vcombine.high %v4275_v24, %v4275_v24 }
 0x2c7   :  { %v3889_v59 = vcombine.high %v3887_v52, %v3887_v52  ;;  %3895 = vst.msk [vmem:[#allocation2 + $0xa1] sm:$0x1] %vm232_vm11, %v3887_v52  ;;  %3896 = vst.msk [vmem:[#allocation2 + $0xc1] sm:$0x1] %vm232_vm11, %v3888_v48  ;;  %v4303_v54 = vcombine.high %v4295_v35, %v4295_v35  ;;  %v4508_v60 = vadd.f32 %v12593_v2, %v12385_v61 }
 0x2c8   :  { %4086 = vst.msk [vmem:[#allocation2 + $0xe2] sm:$0x1] %vm232_vm11, %v4078_v27  ;;  %4309 = vst.msk [vmem:[#allocation2 + $0x84] sm:$0x1] %vm232_vm11, %v4295_v35  ;;  %v4111_v42 = vcombine.high %v4109_v58, %v4109_v58  ;;  %v4304_v7 = vcombine.high %v4302_v28, %v4302_v28  ;;  %v4320_v47 = vrot.slane %v4313_v16, %v12383_v43 }
 0x2c9   :  { %4117 = vst.msk [vmem:[#allocation2 + $0xa3] sm:$0x1] %vm232_vm11, %v4109_v58  ;;  %4118 = vst.msk [vmem:[#allocation2 + $0xc3] sm:$0x1] %vm232_vm11, %v4110_v17  ;;  %v4520_v12 = vrot.slane %v4508_v60, %v12383_v43  ;;  %v4546_v1 = vcombine.high %v4508_v60, %v4508_v60  ;;  %v4952_v44 = vadd.f32 %v4951_v39, %v12385_v61 }
 0x2ca   :  { %4310 = vst.msk [vmem:[#allocation2 + $0xa4] sm:$0x1] %vm232_vm11, %v4302_v28  ;;  %3897 = vst.msk [vmem:[#allocation2 + $0xe1] sm:$0x1] %vm232_vm11, %v3889_v59  ;;  %v4321_v2 = vcombine.high %v4320_v47, %v4320_v47  ;;  %v4328_v9 = vrot.slane %v4320_v47, %v12383_v43  ;;  %v4730_v23 = vadd.f32 %v4729_v62, %v12385_v61 }
 0x2cb   :  { %4311 = vst.msk [vmem:[#allocation2 + $0xc4] sm:$0x1] %vm232_vm11, %v4303_v54  ;;  %4119 = vst.msk [vmem:[#allocation2 + $0xe3] sm:$0x1] %vm232_vm11, %v4111_v42  ;;  %v4521_v11 = vcombine.high %v4520_v12, %v4520_v12  ;;  %v4528_v63 = vrot.slane %v4520_v12, %v12383_v43  ;;  %v4553_v45 = vrot.slane %v4546_v1, %v12383_v43 }
 0x2cc   :  { %4312 = vst.msk [vmem:[#allocation2 + $0xe4] sm:$0x1] %vm232_vm11, %v4304_v7  ;;  %v4335_v18 = vrot.slane %v4321_v2, %v12383_v43  ;;  %v4336_v32 = vcombine.high %v4328_v9, %v4328_v9  ;;  %4342 = vst.msk [vmem:[#allocation2 + $0x85] sm:$0x1] %vm232_vm11, %v4328_v9  ;;  %v4964_v57 = vrot.slane %v4952_v44, %v12383_v43 }
 0x2cd   :  { %v4990_v30 = vcombine.high %v4952_v44, %v4952_v44  ;;  %v4535_v53 = vrot.slane %v4521_v11, %v12383_v43  ;;  %v4536_v51 = vcombine.high %v4528_v63, %v4528_v63  ;;  %4542 = vst.msk [vmem:[#allocation2 + $0x86] sm:$0x1] %vm232_vm11, %v4528_v63  ;;  %v4554_v49 = vcombine.high %v4553_v45, %v4553_v45 }
 0x2ce   :  { %v4561_v22 = vrot.slane %v4553_v45, %v12383_v43  ;;  %v4337_v29 = vcombine.high %v4335_v18, %v4335_v18  ;;  %4343 = vst.msk [vmem:[#allocation2 + $0xa5] sm:$0x1] %vm232_vm11, %v4335_v18  ;;  %4344 = vst.msk [vmem:[#allocation2 + $0xc5] sm:$0x1] %vm232_vm11, %v4336_v32  ;;  %v4742_v55 = vrot.slane %v4730_v23, %v12383_v43  ;;  %v5406_v28 = vpop.f32.mrb[44].mxu1 }
 0x2cf   :  { %v4768_v24 = vcombine.high %v4730_v23, %v4730_v23  ;;  %v4965_v36 = vcombine.high %v4964_v57, %v4964_v57  ;;  %v4537_v25 = vcombine.high %v4535_v53, %v4535_v53  ;;  %4543 = vst.msk [vmem:[#allocation2 + $0xa6] sm:$0x1] %vm232_vm11, %v4535_v53  ;;  %4544 = vst.msk [vmem:[#allocation2 + $0xc6] sm:$0x1] %vm232_vm11, %v4536_v51  ;;  %v8089_v59 = vpop.f32.mrb[45].mxu1 }
 0x2d0   :  { %v4568_v19 = vrot.slane %v4554_v49, %v12383_v43  ;;  %v4569_v41 = vcombine.high %v4561_v22, %v4561_v22  ;;  %4575 = vst.msk [vmem:[#allocation2 + $0x87] sm:$0x1] %vm232_vm11, %v4561_v22  ;;  %v4972_v31 = vrot.slane %v4964_v57, %v12383_v43  ;;  %4345 = vst.msk [vmem:[#allocation2 + $0xe5] sm:$0x1] %vm232_vm11, %v4337_v29  ;;  %v5409_v54 = vpop.f32.mrb[46].mxu1 }
 0x2d1   :  { %v4743_v21 = vcombine.high %v4742_v55, %v4742_v55  ;;  %v4750_v34 = vrot.slane %v4742_v55, %v12383_v43  ;;  %v4775_v38 = vrot.slane %v4768_v24, %v12383_v43  ;;  %v4979_v46 = vrot.slane %v4965_v36, %v12383_v43  ;;  %4545 = vst.msk [vmem:[#allocation2 + $0xe6] sm:$0x1] %vm232_vm11, %v4537_v25  ;;  %v8090_v7 = vpop.f32.mrb[47].mxu1 }
 0x2d2   :  { %v4570_v13 = vcombine.high %v4568_v19, %v4568_v19  ;;  %4576 = vst.msk [vmem:[#allocation2 + $0xa7] sm:$0x1] %vm232_vm11, %v4568_v19  ;;  %4577 = vst.msk [vmem:[#allocation2 + $0xc7] sm:$0x1] %vm232_vm11, %v4569_v41  ;;  %v4980_v15 = vcombine.high %v4972_v31, %v4972_v31  ;;  %v4997_v5 = vrot.slane %v4990_v30, %v12383_v43 }
 0x2d3   :  { %4986 = vst.msk [vmem:[#allocation2 + $0x8a] sm:$0x1] %vm232_vm11, %v4972_v31  ;;  %v4757_v50 = vrot.slane %v4743_v21, %v12383_v43  ;;  %v4758_v10 = vcombine.high %v4750_v34, %v4750_v34  ;;  %4764 = vst.msk [vmem:[#allocation2 + $0x88] sm:$0x1] %vm232_vm11, %v4750_v34  ;;  %v4776_v40 = vcombine.high %v4775_v38, %v4775_v38 }
 0x2d4   :  { %v4783_v56 = vrot.slane %v4775_v38, %v12383_v43  ;;  %4987 = vst.msk [vmem:[#allocation2 + $0xaa] sm:$0x1] %vm232_vm11, %v4979_v46  ;;  %4578 = vst.msk [vmem:[#allocation2 + $0xe7] sm:$0x1] %vm232_vm11, %v4570_v13  ;;  %v4981_v8 = vcombine.high %v4979_v46, %v4979_v46  ;;  %v4998_v33 = vcombine.high %v4997_v5, %v4997_v5 }
 0x2d5   :  { %4988 = vst.msk [vmem:[#allocation2 + $0xca] sm:$0x1] %vm232_vm11, %v4980_v15  ;;  %v5005_v6 = vrot.slane %v4997_v5, %v12383_v43  ;;  %v4759_v26 = vcombine.high %v4757_v50, %v4757_v50  ;;  %4765 = vst.msk [vmem:[#allocation2 + $0xa8] sm:$0x1] %vm232_vm11, %v4757_v50  ;;  %v4790_v52 = vrot.slane %v4776_v40, %v12383_v43  ;;  %v5184_v39 = vpop.f32.mrb[44].mxu0 }
 0x2d6   :  { %4766 = vst.msk [vmem:[#allocation2 + $0xc8] sm:$0x1] %vm232_vm11, %v4758_v10  ;;  %v4791_v48 = vcombine.high %v4783_v56, %v4783_v56  ;;  %4797 = vst.msk [vmem:[#allocation2 + $0x89] sm:$0x1] %vm232_vm11, %v4783_v56  ;;  %v5012_v27 = vrot.slane %v4998_v33, %v12383_v43  ;;  %v5407_v16 = vadd.f32 %v5406_v28, %v12385_v61  ;;  %v8079_v11 = vpop.f32.mrb[45].mxu0 }
 0x2d7   :  { %4989 = vst.msk [vmem:[#allocation2 + $0xea] sm:$0x1] %vm232_vm11, %v4981_v8  ;;  %v5013_v35 = vcombine.high %v5005_v6, %v5005_v6  ;;  %5019 = vst.msk [vmem:[#allocation2 + $0x8b] sm:$0x1] %vm232_vm11, %v5005_v6  ;;  %v4792_v58 = vcombine.high %v4790_v52, %v4790_v52  ;;  %v5185_v14 = vadd.f32 %v5184_v39, %v12385_v61  ;;  %v5187_v0 = vpop.f32.mrb[46].mxu0 }
 0x2d8   :  { %4767 = vst.msk [vmem:[#allocation2 + $0xe8] sm:$0x1] %vm232_vm11, %v4759_v26  ;;  %4798 = vst.msk [vmem:[#allocation2 + $0xa9] sm:$0x1] %vm232_vm11, %v4790_v52  ;;  %v5014_v17 = vcombine.high %v5012_v27, %v5012_v27  ;;  %v5419_v60 = vrot.slane %v5407_v16, %v12383_v43  ;;  %v5445_v42 = vcombine.high %v5407_v16, %v5407_v16  ;;  %v8080_v32 = vpop.f32.mrb[47].mxu0 }
 0x2d9   :  { %4799 = vst.msk [vmem:[#allocation2 + $0xc9] sm:$0x1] %vm232_vm11, %v4791_v48  ;;  %5020 = vst.msk [vmem:[#allocation2 + $0xab] sm:$0x1] %vm232_vm11, %v5012_v27  ;;  %v5197_v4 = vrot.slane %v5185_v14, %v12383_v43  ;;  %v5223_v18 = vcombine.high %v5185_v14, %v5185_v14 }
 0x2da   :  { %5021 = vst.msk [vmem:[#allocation2 + $0xcb] sm:$0x1] %vm232_vm11, %v5013_v35  ;;  %4800 = vst.msk [vmem:[#allocation2 + $0xe9] sm:$0x1] %vm232_vm11, %v4792_v58  ;;  %v5420_v47 = vcombine.high %v5419_v60, %v5419_v60  ;;  %v5427_v12 = vrot.slane %v5419_v60, %v12383_v43  ;;  %v5452_v1 = vrot.slane %v5445_v42, %v12383_v43 }
 0x2db   :  { %5022 = vst.msk [vmem:[#allocation2 + $0xeb] sm:$0x1] %vm232_vm11, %v5014_v17  ;;  %v5198_v30 = vcombine.high %v5197_v4, %v5197_v4  ;;  %v5205_v3 = vrot.slane %v5197_v4, %v12383_v43  ;;  %v5230_v20 = vrot.slane %v5223_v18, %v12383_v43 }
 0x2dc   :  { %v5434_v2 = vrot.slane %v5420_v47, %v12383_v43  ;;  %v5435_v9 = vcombine.high %v5427_v12, %v5427_v12  ;;  %5441 = vst.msk [vmem:[#allocation2 + $0x8e] sm:$0x1] %vm232_vm11, %v5427_v12  ;;  %v5453_v62 = vcombine.high %v5452_v1, %v5452_v1  ;;  %v5460_v44 = vrot.slane %v5452_v1, %v12383_v43  ;;  %v5861_v37 = vpop.f32.mrb[48].mxu1 }
 0x2dd   :  { %v5212_v53 = vrot.slane %v5198_v30, %v12383_v43  ;;  %v5213_v51 = vcombine.high %v5205_v3, %v5205_v3  ;;  %5219 = vst.msk [vmem:[#allocation2 + $0x8c] sm:$0x1] %vm232_vm11, %v5205_v3  ;;  %v5231_v49 = vcombine.high %v5230_v20, %v5230_v20  ;;  %v5238_v22 = vrot.slane %v5230_v20, %v12383_v43  ;;  %v8109_v55 = vpop.f32.mrb[49].mxu1 }
 0x2de   :  { %v5436_v63 = vcombine.high %v5434_v2, %v5434_v2  ;;  %5442 = vst.msk [vmem:[#allocation2 + $0xae] sm:$0x1] %vm232_vm11, %v5434_v2  ;;  %5443 = vst.msk [vmem:[#allocation2 + $0xce] sm:$0x1] %vm232_vm11, %v5435_v9  ;;  %v5467_v45 = vrot.slane %v5453_v62, %v12383_v43  ;;  %v5468_v23 = vcombine.high %v5460_v44, %v5460_v44  ;;  %v5864_v19 = vpop.f32.mrb[50].mxu1 }
 0x2df   :  { %5474 = vst.msk [vmem:[#allocation2 + $0x8f] sm:$0x1] %vm232_vm11, %v5460_v44  ;;  %v5862_v29 = vadd.f32 %v5861_v37, %v12385_v61  ;;  %v5214_v24 = vcombine.high %v5212_v53, %v5212_v53  ;;  %5220 = vst.msk [vmem:[#allocation2 + $0xac] sm:$0x1] %vm232_vm11, %v5212_v53  ;;  %v5245_v36 = vrot.slane %v5231_v49, %v12383_v43  ;;  %v8110_v21 = vpop.f32.mrb[51].mxu1 }
 0x2e0   :  { %5444 = vst.msk [vmem:[#allocation2 + $0xee] sm:$0x1] %vm232_vm11, %v5436_v63  ;;  %v5469_v57 = vcombine.high %v5467_v45, %v5467_v45  ;;  %5475 = vst.msk [vmem:[#allocation2 + $0xaf] sm:$0x1] %vm232_vm11, %v5467_v45  ;;  %v5246_v25 = vcombine.high %v5238_v22, %v5238_v22 }
 0x2e1   :  { %5476 = vst.msk [vmem:[#allocation2 + $0xcf] sm:$0x1] %vm232_vm11, %v5468_v23  ;;  %5221 = vst.msk [vmem:[#allocation2 + $0xcc] sm:$0x1] %vm232_vm11, %v5213_v51  ;;  %v5874_v41 = vrot.slane %v5862_v29, %v12383_v43  ;;  %v5900_v31 = vcombine.high %v5862_v29, %v5862_v29  ;;  %v5247_v34 = vcombine.high %v5245_v36, %v5245_v36  ;;  %v5639_v38 = vpop.f32.mrb[48].mxu0 }
 0x2e2   :  { %5477 = vst.msk [vmem:[#allocation2 + $0xef] sm:$0x1] %vm232_vm11, %v5469_v57  ;;  %5252 = vst.msk [vmem:[#allocation2 + $0x8d] sm:$0x1] %vm232_vm11, %v5238_v22  ;;  %v5640_v5 = vadd.f32 %v5639_v38, %v12385_v61  ;;  %v8099_v50 = vpop.f32.mrb[49].mxu0 }
 0x2e3   :  { %5222 = vst.msk [vmem:[#allocation2 + $0xec] sm:$0x1] %vm232_vm11, %v5214_v24  ;;  %5253 = vst.msk [vmem:[#allocation2 + $0xad] sm:$0x1] %vm232_vm11, %v5245_v36  ;;  %v5875_v46 = vcombine.high %v5874_v41, %v5874_v41  ;;  %v5882_v13 = vrot.slane %v5874_v41, %v12383_v43  ;;  %v5907_v15 = vrot.slane %v5900_v31, %v12383_v43  ;;  %v5642_v33 = vpop.f32.mrb[50].mxu0 }
 0x2e4   :  { %5254 = vst.msk [vmem:[#allocation2 + $0xcd] sm:$0x1] %vm232_vm11, %v5246_v25  ;;  %5255 = vst.msk [vmem:[#allocation2 + $0xed] sm:$0x1] %vm232_vm11, %v5247_v34  ;;  %v5652_v6 = vrot.slane %v5640_v5, %v12383_v43  ;;  %v5678_v26 = vcombine.high %v5640_v5, %v5640_v5  ;;  %v8100_v52 = vpop.f32.mrb[51].mxu0 }
 0x2e5   :  { %v5889_v10 = vrot.slane %v5875_v46, %v12383_v43  ;;  %v5890_v40 = vcombine.high %v5882_v13, %v5882_v13  ;;  %5896 = vst.msk [vmem:[#allocation2 + $0x92] sm:$0x1] %vm232_vm11, %v5882_v13  ;;  %v5908_v56 = vcombine.high %v5907_v15, %v5907_v15  ;;  %v5915_v8 = vrot.slane %v5907_v15, %v12383_v43 }
 0x2e6   :  { %v5653_v58 = vcombine.high %v5652_v6, %v5652_v6  ;;  %v5660_v17 = vrot.slane %v5652_v6, %v12383_v43  ;;  %v5685_v28 = vrot.slane %v5678_v26, %v12383_v43 }
 0x2e7   :  { %v5891_v48 = vcombine.high %v5889_v10, %v5889_v10  ;;  %5897 = vst.msk [vmem:[#allocation2 + $0xb2] sm:$0x1] %vm232_vm11, %v5889_v10  ;;  %5898 = vst.msk [vmem:[#allocation2 + $0xd2] sm:$0x1] %vm232_vm11, %v5890_v40  ;;  %v5922_v27 = vrot.slane %v5908_v56, %v12383_v43  ;;  %v5923_v35 = vcombine.high %v5915_v8, %v5915_v8 }
 0x2e8   :  { %5929 = vst.msk [vmem:[#allocation2 + $0x93] sm:$0x1] %vm232_vm11, %v5915_v8  ;;  %v5667_v59 = vrot.slane %v5653_v58, %v12383_v43  ;;  %v5668_v54 = vcombine.high %v5660_v17, %v5660_v17  ;;  %5674 = vst.msk [vmem:[#allocation2 + $0x90] sm:$0x1] %vm232_vm11, %v5660_v17  ;;  %v5686_v60 = vcombine.high %v5685_v28, %v5685_v28 }
 0x2e9   :  { %5899 = vst.msk [vmem:[#allocation2 + $0xf2] sm:$0x1] %vm232_vm11, %v5891_v48  ;;  %v5924_v16 = vcombine.high %v5922_v27, %v5922_v27  ;;  %5930 = vst.msk [vmem:[#allocation2 + $0xb3] sm:$0x1] %vm232_vm11, %v5922_v27  ;;  %v5693_v42 = vrot.slane %v5685_v28, %v12383_v43 }
 0x2ea   :  { %5931 = vst.msk [vmem:[#allocation2 + $0xd3] sm:$0x1] %vm232_vm11, %v5923_v35  ;;  %v5669_v7 = vcombine.high %v5667_v59, %v5667_v59  ;;  %5675 = vst.msk [vmem:[#allocation2 + $0xb0] sm:$0x1] %vm232_vm11, %v5667_v59  ;;  %v5700_v47 = vrot.slane %v5686_v60, %v12383_v43 }
 0x2eb   :  { %5932 = vst.msk [vmem:[#allocation2 + $0xf3] sm:$0x1] %vm232_vm11, %v5924_v16  ;;  %5676 = vst.msk [vmem:[#allocation2 + $0xd0] sm:$0x1] %vm232_vm11, %v5668_v54  ;;  %v5701_v12 = vcombine.high %v5693_v42, %v5693_v42 }
 0x2ec   :  { %5707 = vst.msk [vmem:[#allocation2 + $0x91] sm:$0x1] %vm232_vm11, %v5693_v42  ;;  %5677 = vst.msk [vmem:[#allocation2 + $0xf0] sm:$0x1] %vm232_vm11, %v5669_v7  ;;  %v5702_v1 = vcombine.high %v5700_v47, %v5700_v47 }
 0x2ed   :  { %5708 = vst.msk [vmem:[#allocation2 + $0xb1] sm:$0x1] %vm232_vm11, %v5700_v47  ;;  %5709 = vst.msk [vmem:[#allocation2 + $0xd1] sm:$0x1] %vm232_vm11, %v5701_v12 }
 0x2ee   :  { %5710 = vst.msk [vmem:[#allocation2 + $0xf1] sm:$0x1] %vm232_vm11, %v5702_v1 }
 0x2fb   :  { %v6320_v39 = vpop.f32.mrb[52].mxu1 }
 0x2fc   :  { %v6321_v2 = vadd.f32 %v6320_v39, %v12385_v61  ;;  %v8129_v9 = vpop.f32.mrb[53].mxu1 }
 0x2fd   :  { %v6323_v62 = vpop.f32.mrb[54].mxu1 }
 0x2fe   :  { %v6087_v44 = vpop.f32.mrb[52].mxu0  ;;  %v6333_v14 = vrot.slane %v6321_v2, %v12383_v43  ;;  %v6359_v11 = vcombine.high %v6321_v2, %v6321_v2  ;;  %v8130_v63 = vpop.f32.mrb[55].mxu1 }
 0x2ff   :  { %v6088_v45 = vadd.f32 %v6087_v44, %v12385_v61  ;;  %v8119_v23 = vpop.f32.mrb[53].mxu0 }
 0x300   :  { %v6334_v0 = vcombine.high %v6333_v14, %v6333_v14  ;;  %v6341_v4 = vrot.slane %v6333_v14, %v12383_v43  ;;  %v6366_v18 = vrot.slane %v6359_v11, %v12383_v43  ;;  %v6090_v32 = vpop.f32.mrb[54].mxu0 }
 0x301   :  { %v6100_v57 = vrot.slane %v6088_v45, %v12383_v43  ;;  %v6126_v30 = vcombine.high %v6088_v45, %v6088_v45  ;;  %v8120_v3 = vpop.f32.mrb[55].mxu0 }
 0x302   :  { %v6348_v20 = vrot.slane %v6334_v0, %v12383_v43  ;;  %v6349_v53 = vcombine.high %v6341_v4, %v6341_v4  ;;  %6355 = vst.msk [vmem:[#allocation2 + $0x96] sm:$0x1] %vm232_vm11, %v6341_v4  ;;  %v6367_v51 = vcombine.high %v6366_v18, %v6366_v18  ;;  %v6374_v49 = vrot.slane %v6366_v18, %v12383_v43 }
 0x303   :  { %v6101_v22 = vcombine.high %v6100_v57, %v6100_v57  ;;  %v6108_v37 = vrot.slane %v6100_v57, %v12383_v43  ;;  %v6133_v29 = vrot.slane %v6126_v30, %v12383_v43 }
 0x304   :  { %v6350_v55 = vcombine.high %v6348_v20, %v6348_v20  ;;  %6356 = vst.msk [vmem:[#allocation2 + $0xb6] sm:$0x1] %vm232_vm11, %v6348_v20  ;;  %6357 = vst.msk [vmem:[#allocation2 + $0xd6] sm:$0x1] %vm232_vm11, %v6349_v53  ;;  %v6381_v24 = vrot.slane %v6367_v51, %v12383_v43  ;;  %v6382_v36 = vcombine.high %v6374_v49, %v6374_v49 }
 0x305   :  { %6388 = vst.msk [vmem:[#allocation2 + $0x97] sm:$0x1] %vm232_vm11, %v6374_v49  ;;  %v6115_v25 = vrot.slane %v6101_v22, %v12383_v43  ;;  %v6116_v19 = vcombine.high %v6108_v37, %v6108_v37  ;;  %6122 = vst.msk [vmem:[#allocation2 + $0x94] sm:$0x1] %vm232_vm11, %v6108_v37  ;;  %v6134_v41 = vcombine.high %v6133_v29, %v6133_v29 }
 0x306   :  { %v6141_v31 = vrot.slane %v6133_v29, %v12383_v43  ;;  %6358 = vst.msk [vmem:[#allocation2 + $0xf6] sm:$0x1] %vm232_vm11, %v6350_v55  ;;  %v6383_v21 = vcombine.high %v6381_v24, %v6381_v24  ;;  %6389 = vst.msk [vmem:[#allocation2 + $0xb7] sm:$0x1] %vm232_vm11, %v6381_v24 }
 0x307   :  { %6390 = vst.msk [vmem:[#allocation2 + $0xd7] sm:$0x1] %vm232_vm11, %v6382_v36  ;;  %v6117_v34 = vcombine.high %v6115_v25, %v6115_v25  ;;  %6123 = vst.msk [vmem:[#allocation2 + $0xb4] sm:$0x1] %vm232_vm11, %v6115_v25  ;;  %v6148_v38 = vrot.slane %v6134_v41, %v12383_v43 }
 0x308   :  { %6124 = vst.msk [vmem:[#allocation2 + $0xd4] sm:$0x1] %vm232_vm11, %v6116_v19  ;;  %v6149_v46 = vcombine.high %v6141_v31, %v6141_v31  ;;  %6155 = vst.msk [vmem:[#allocation2 + $0x95] sm:$0x1] %vm232_vm11, %v6141_v31 }
 0x309   :  { %6391 = vst.msk [vmem:[#allocation2 + $0xf7] sm:$0x1] %vm232_vm11, %v6383_v21  ;;  %6125 = vst.msk [vmem:[#allocation2 + $0xf4] sm:$0x1] %vm232_vm11, %v6117_v34  ;;  %v6150_v13 = vcombine.high %v6148_v38, %v6148_v38 }
 0x30a   :  { %6156 = vst.msk [vmem:[#allocation2 + $0xb5] sm:$0x1] %vm232_vm11, %v6148_v38  ;;  %6157 = vst.msk [vmem:[#allocation2 + $0xd5] sm:$0x1] %vm232_vm11, %v6149_v46 }
 0x30b   :  { %6158 = vst.msk [vmem:[#allocation2 + $0xf5] sm:$0x1] %vm232_vm11, %v6150_v13 }
 0x31d   :  { %v6764_v15 = vpop.f32.mrb[56].mxu1 }
 0x31e   :  { %v6765_v5 = vadd.f32 %v6764_v15, %v12385_v61  ;;  %v8149_v50 = vpop.f32.mrb[57].mxu1 }
 0x31f   :  { %v6542_v10 = vpop.f32.mrb[56].mxu0  ;;  %v6767_v40 = vpop.f32.mrb[58].mxu1 }
 0x320   :  { %v6543_v56 = vadd.f32 %v6542_v10, %v12385_v61  ;;  %v6777_v8 = vrot.slane %v6765_v5, %v12383_v43  ;;  %v6803_v33 = vcombine.high %v6765_v5, %v6765_v5  ;;  %v8139_v6 = vpop.f32.mrb[57].mxu0  ;;  %v8150_v26 = vpop.f32.mrb[59].mxu1 }
 0x321   :  { %v6545_v52 = vpop.f32.mrb[58].mxu0 }
 0x322   :  { %v6555_v48 = vrot.slane %v6543_v56, %v12383_v43  ;;  %v6581_v27 = vcombine.high %v6543_v56, %v6543_v56  ;;  %v6778_v35 = vcombine.high %v6777_v8, %v6777_v8  ;;  %v6785_v58 = vrot.slane %v6777_v8, %v12383_v43  ;;  %v8140_v17 = vpop.f32.mrb[59].mxu0 }
 0x323   :  { %v6810_v28 = vrot.slane %v6803_v33, %v12383_v43 }
 0x324   :  { %v6556_v16 = vcombine.high %v6555_v48, %v6555_v48  ;;  %v6563_v59 = vrot.slane %v6555_v48, %v12383_v43  ;;  %v6588_v54 = vrot.slane %v6581_v27, %v12383_v43  ;;  %v6792_v60 = vrot.slane %v6778_v35, %v12383_v43  ;;  %6799 = vst.msk [vmem:[#allocation2 + $0x9a] sm:$0x1] %vm232_vm11, %v6785_v58 }
 0x325   :  { %v6793_v42 = vcombine.high %v6785_v58, %v6785_v58  ;;  %v6811_v7 = vcombine.high %v6810_v28, %v6810_v28  ;;  %v6818_v47 = vrot.slane %v6810_v28, %v12383_v43 }
 0x326   :  { %v6570_v12 = vrot.slane %v6556_v16, %v12383_v43  ;;  %v6571_v1 = vcombine.high %v6563_v59, %v6563_v59  ;;  %6577 = vst.msk [vmem:[#allocation2 + $0x98] sm:$0x1] %vm232_vm11, %v6563_v59  ;;  %v6589_v39 = vcombine.high %v6588_v54, %v6588_v54  ;;  %v6596_v2 = vrot.slane %v6588_v54, %v12383_v43 }
 0x327   :  { %6800 = vst.msk [vmem:[#allocation2 + $0xba] sm:$0x1] %vm232_vm11, %v6792_v60  ;;  %v6794_v9 = vcombine.high %v6792_v60, %v6792_v60  ;;  %6801 = vst.msk [vmem:[#allocation2 + $0xda] sm:$0x1] %vm232_vm11, %v6793_v42  ;;  %v6825_v62 = vrot.slane %v6811_v7, %v12383_v43  ;;  %v6826_v44 = vcombine.high %v6818_v47, %v6818_v47 }
 0x328   :  { %6832 = vst.msk [vmem:[#allocation2 + $0x9b] sm:$0x1] %vm232_vm11, %v6818_v47  ;;  %v6572_v14 = vcombine.high %v6570_v12, %v6570_v12  ;;  %6578 = vst.msk [vmem:[#allocation2 + $0xb8] sm:$0x1] %vm232_vm11, %v6570_v12  ;;  %v6603_v11 = vrot.slane %v6589_v39, %v12383_v43  ;;  %v6604_v63 = vcombine.high %v6596_v2, %v6596_v2 }
 0x329   :  { %6579 = vst.msk [vmem:[#allocation2 + $0xd8] sm:$0x1] %vm232_vm11, %v6571_v1  ;;  %6610 = vst.msk [vmem:[#allocation2 + $0x99] sm:$0x1] %vm232_vm11, %v6596_v2  ;;  %v6827_v45 = vcombine.high %v6825_v62, %v6825_v62 }
 0x32a   :  { %6802 = vst.msk [vmem:[#allocation2 + $0xfa] sm:$0x1] %vm232_vm11, %v6794_v9  ;;  %6833 = vst.msk [vmem:[#allocation2 + $0xbb] sm:$0x1] %vm232_vm11, %v6825_v62  ;;  %v6605_v23 = vcombine.high %v6603_v11, %v6603_v11 }
 0x32b   :  { %6834 = vst.msk [vmem:[#allocation2 + $0xdb] sm:$0x1] %vm232_vm11, %v6826_v44  ;;  %6580 = vst.msk [vmem:[#allocation2 + $0xf8] sm:$0x1] %vm232_vm11, %v6572_v14 }
 0x32c   :  { %6611 = vst.msk [vmem:[#allocation2 + $0xb9] sm:$0x1] %vm232_vm11, %v6603_v11  ;;  %6612 = vst.msk [vmem:[#allocation2 + $0xd9] sm:$0x1] %vm232_vm11, %v6604_v63 }
 0x32d   :  { %6835 = vst.msk [vmem:[#allocation2 + $0xfb] sm:$0x1] %vm232_vm11, %v6827_v45  ;;  %6613 = vst.msk [vmem:[#allocation2 + $0xf9] sm:$0x1] %vm232_vm11, %v6605_v23 }
 0x33b   :  { %v7219_v0 = vpop.f32.mrb[60].mxu1 }
 0x33c   :  { %v7220_v4 = vadd.f32 %v7219_v0, %v12385_v61  ;;  %v8169_v18 = vpop.f32.mrb[61].mxu1 }
 0x33d   :  { %v6997_v32 = vpop.f32.mrb[60].mxu0  ;;  %v7222_v57 = vpop.f32.mrb[62].mxu1 }
 0x33e   :  { %v6998_v30 = vadd.f32 %v6997_v32, %v12385_v61  ;;  %v7232_v3 = vrot.slane %v7220_v4, %v12383_v43  ;;  %v7258_v20 = vcombine.high %v7220_v4, %v7220_v4  ;;  %v8159_v53 = vpop.f32.mrb[61].mxu0  ;;  %v8170_v51 = vpop.f32.mrb[63].mxu1 }
 0x33f   :  { %v7000_v49 = vpop.f32.mrb[62].mxu0 }
 0x340   :  { %v7010_v22 = vrot.slane %v6998_v30, %v12383_v43  ;;  %v7036_v37 = vcombine.high %v6998_v30, %v6998_v30  ;;  %v7233_v29 = vcombine.high %v7232_v3, %v7232_v3  ;;  %v7240_v55 = vrot.slane %v7232_v3, %v12383_v43  ;;  %v8160_v24 = vpop.f32.mrb[63].mxu0 }
 0x341   :  { %v7265_v36 = vrot.slane %v7258_v20, %v12383_v43 }
 0x342   :  { %v7011_v25 = vcombine.high %v7010_v22, %v7010_v22  ;;  %v7018_v19 = vrot.slane %v7010_v22, %v12383_v43  ;;  %v7043_v61 = vrot.slane %v7036_v37, %v12383_v43  ;;  %v7247_v41 = vrot.slane %v7233_v29, %v12383_v43  ;;  %7254 = vst.msk [vmem:[#allocation2 + $0x9e] sm:$0x1] %vm232_vm11, %v7240_v55 }
 0x343   :  { %v7248_v31 = vcombine.high %v7240_v55, %v7240_v55  ;;  %v7266_v21 = vcombine.high %v7265_v36, %v7265_v36  ;;  %v7273_v34 = vrot.slane %v7265_v36, %v12383_v43 }
 0x344   :  { %v7025_v38 = vrot.slane %v7011_v25, %v12383_v43  ;;  %v7026_v46 = vcombine.high %v7018_v19, %v7018_v19  ;;  %7032 = vst.msk [vmem:[#allocation2 + $0x9c] sm:$0x1] %vm232_vm11, %v7018_v19  ;;  %v7044_v13 = vcombine.high %v7043_v61, %v7043_v61  ;;  %v7051_v15 = vrot.slane %v7043_v61, %v12383_v43 }
 0x345   :  { %7255 = vst.msk [vmem:[#allocation2 + $0xbe] sm:$0x1] %vm232_vm11, %v7247_v41  ;;  %v7249_v5 = vcombine.high %v7247_v41, %v7247_v41  ;;  %7256 = vst.msk [vmem:[#allocation2 + $0xde] sm:$0x1] %vm232_vm11, %v7248_v31  ;;  %v7280_v50 = vrot.slane %v7266_v21, %v12383_v43  ;;  %v7281_v10 = vcombine.high %v7273_v34, %v7273_v34 }
 0x346   :  { %7287 = vst.msk [vmem:[#allocation2 + $0x9f] sm:$0x1] %vm232_vm11, %v7273_v34  ;;  %v7027_v40 = vcombine.high %v7025_v38, %v7025_v38  ;;  %7033 = vst.msk [vmem:[#allocation2 + $0xbc] sm:$0x1] %vm232_vm11, %v7025_v38  ;;  %v7058_v56 = vrot.slane %v7044_v13, %v12383_v43  ;;  %v7059_v8 = vcombine.high %v7051_v15, %v7051_v15 }
 0x347   :  { %7034 = vst.msk [vmem:[#allocation2 + $0xdc] sm:$0x1] %vm232_vm11, %v7026_v46  ;;  %7065 = vst.msk [vmem:[#allocation2 + $0x9d] sm:$0x1] %vm232_vm11, %v7051_v15  ;;  %v7282_v33 = vcombine.high %v7280_v50, %v7280_v50 }
 0x348   :  { %7257 = vst.msk [vmem:[#allocation2 + $0xfe] sm:$0x1] %vm232_vm11, %v7249_v5  ;;  %7288 = vst.msk [vmem:[#allocation2 + $0xbf] sm:$0x1] %vm232_vm11, %v7280_v50  ;;  %v7060_v6 = vcombine.high %v7058_v56, %v7058_v56 }
 0x349   :  { %7289 = vst.msk [vmem:[#allocation2 + $0xdf] sm:$0x1] %vm232_vm11, %v7281_v10  ;;  %7035 = vst.msk [vmem:[#allocation2 + $0xfc] sm:$0x1] %vm232_vm11, %v7027_v40 }
 0x34a   :  { %7066 = vst.msk [vmem:[#allocation2 + $0xbd] sm:$0x1] %vm232_vm11, %v7058_v56  ;;  %7067 = vst.msk [vmem:[#allocation2 + $0xdd] sm:$0x1] %vm232_vm11, %v7059_v8 }
 0x34b   :  { %7290 = vst.msk [vmem:[#allocation2 + $0xff] sm:$0x1] %vm232_vm11, %v7282_v33  ;;  %7068 = vst.msk [vmem:[#allocation2 + $0xfd] sm:$0x1] %vm232_vm11, %v7060_v6 }
 0x34c   :  { %8480 = shalt.err (!%p8477_p4)
}
 0x34d   :  { %s8481_s17 = scalar_lea.hbm %s12940_s3, 4096 }
 0x34e   :  { %p8482_p5 = scmp.ne.s32.totalorder %s12940_s3, %s8481_s17  ;;  %p8485_p6 = scmp.lt.u32.totalorder %s8481_s17, %s12940_s3 }
 0x350   :  { %p8487_p7 = pnand %p8485_p6, %p8482_p5 }
 0x352   :  { %8490 = shalt.err (!%p8487_p7)
}
 0x353   :  { %s8500_s22 = smov 128   ;;  %s8501_s23 = smov 8  }
 0x354   :  { %7302 = dma.vmem_to_hbm [thread:$0]  %s7297_s13, 4096, %s12940_s3, [#allocation3], %s8500_s22, %s8500_s22, %s8501_s23  }
 0x355   :  { %8491 = dma.done.wait [#allocation3], 4096  }
 0x356   :  { %8492 = vsyncadd [#allocation3], 4294963200 }
 0x357   :  { %7306 = vsyncpa [#allocation3], 1 }

</bundles_post_ra>
